<compile_context>
chip_gen: v5e
topology: v5e:2x2
jax: 0.10.0
libtpu: 0.0.40
codegen_flags: <defaults>
</compile_context>

<pallas_src>
import jax
import jax.numpy as jnp
from jax import lax
from jax.experimental import pallas as pl
from jax.experimental.pallas import tpu as pltpu

VMEM = pltpu.MemorySpace.VMEM
BN_EPS = 1e-5
LANES = 128

# Packed weight-blob row offsets (all multiples of 16 -> clean bf16 sublane tiles).
_W1_OFF, _W1_ROWS = 0, 128                       # conv1: K = 5*5*3 = 75 -> 128
_W2_OFF, _W2_ROWS = 128, 25 * LANES              # conv2: 25 taps x 128-padded Cin
_W3_OFF, _W3_ROWS = _W2_OFF + _W2_ROWS, 16 * LANES
_FC0_OFF = _W3_OFF + _W3_ROWS
_FC12_OFF = _FC0_OFF + 128
_W_ROWS = _FC12_OFF + 128                        # 5632 rows total


# ----------------------------- fused Pallas kernel ---------------------------

def _fused_encoder_kernel(xp_ref, w_ref, vec_ref, eps_ref,
                          z_ref, mu_ref, lv_ref,
                          y1_ref, p1_ref, patch2_ref, y2_ref, patch3_ref):
    """Entire VaeEncoderEnv1 forward on VMEM-resident data.

    xp_ref  : (B*576, 128) f32  conv1 im2col patches (75 real lanes, zero padded)
    w_ref   : (5632, 128)  bf16 packed weights [conv1 | conv2 | conv3 | fc0 | fc1+fc2]
    vec_ref : (16, 128)    f32  packed bias / bn-gamma / bn-beta rows
    eps_ref : (B, 64)      f32  reparameterization noise (zero padded)
    z/mu/lv : (B, 64)      f32  outputs (mu in lanes 0..9 pre-slice in wrapper)
    scratch : y1 (B,24,24,128) | p1 (B,12,12,128) | conv2 patches (B*64, 3200)
              y2 (B,8,8,128)   | conv3 patches (B, 2048)
    """
    f32 = jnp.float32
    B = eps_ref.shape[0]

    def vrow(i):                               # packed per-channel vectors
        return vec_ref[i:i + 1, :]             # (1, 128)

    def wblk(off, rows):                       # packed weight block, upcast to f32
        return w_ref[off:off + rows, :].astype(f32)

    def bn_relu(acc, bias, gamma, beta):
        # Training-mode batch statistics (biased var), folded into scale/shift + ReLU.
        y = acc + bias
        inv_n = 1.0 / float(y.shape[0])
        s1 = jnp.sum(y, axis=0, keepdims=True)
        s2 = jnp.sum(y * y, axis=0, keepdims=True)
        mean = s1 * inv_n
        var = s2 * inv_n - mean * mean
        scale = gamma * lax.rsqrt(var + BN_EPS)
        shift = beta - mean * scale
        return jnp.maximum(y * scale + shift, 0.0)

    # ---- conv1 (3 -> 10, 5x5, 28 -> 24) + bn1 + relu : ONE K=128 matmul ------
    acc1 = jnp.dot(xp_ref[...], wblk(_W1_OFF, _W1_ROWS),
                   preferred_element_type=f32)                    # (B*576, 128)
    y1 = bn_relu(acc1, vrow(0), vrow(1), vrow(2))
    y1_ref[...] = y1.reshape(B, 24, 24, LANES)

    # ---- pool1 (2x2 / 2): 24 -> 12 (strided reads + outer-dim split) ---------
    wmax = jnp.maximum(y1_ref[:, :, pl.ds(0, 12, stride=2), :],
                       y1_ref[:, :, pl.ds(1, 12, stride=2), :])   # (B, 24, 12, 128)
    wmax = wmax.reshape(B, 12, 2, 12, LANES)
    p1_ref[...] = jnp.maximum(wmax[:, :, 0, :, :], wmax[:, :, 1, :, :])

    # ---- conv2 (10 -> 20, 5x5, 12 -> 8): patch scratch + ONE K=3200 matmul ----
    r2 = B * 8 * 8
    for kh in range(5):
        for kw in range(5):
            t = kh * 5 + kw
            win = p1_ref[:, kh:kh + 8, kw:kw + 8, :]              # (B, 8, 8, 128)
            patch2_ref[:, t * LANES:(t + 1) * LANES] = win.reshape(r2, LANES)
    acc2 = jnp.dot(patch2_ref[...], wblk(_W2_OFF, _W2_ROWS),
                   preferred_element_type=f32)                    # (B*64, 128)
    y2 = bn_relu(acc2, vrow(3), vrow(4), vrow(5))
    y2_ref[...] = y2.reshape(B, 8, 8, LANES)

    # ---- pool2 (2x2 / 2, 8 -> 4) fused with conv3 patch build ----------------
    for ph in range(4):
        for pw in range(4):
            t = ph * 4 + pw
            a = y2_ref[:, 2 * ph, 2 * pw, :]
            b = y2_ref[:, 2 * ph, 2 * pw + 1, :]
            c = y2_ref[:, 2 * ph + 1, 2 * pw, :]
            d = y2_ref[:, 2 * ph + 1, 2 * pw + 1, :]
            patch3_ref[:, t * LANES:(t + 1) * LANES] = jnp.maximum(
                jnp.maximum(a, b), jnp.maximum(c, d))             # (B, 128)

    # ---- conv3 (20 -> 100, 4x4 on 4x4 -> 1x1) + relu : ONE K=2048 matmul ------
    h = jnp.dot(patch3_ref[...], wblk(_W3_OFF, _W3_ROWS),
                preferred_element_type=f32)                       # (B, 128)
    h = jnp.maximum(h + vrow(6), 0.0)

    # ---- fc0 (100 -> 50) + relu ----------------------------------------------
    h = jnp.maximum(jnp.dot(h, wblk(_FC0_OFF, 128),
                            preferred_element_type=f32) + vrow(7), 0.0)

    # ---- bottleneck: fc1/fc2 packed in ONE weight block, single dot ----------
    mulv = jnp.dot(h, wblk(_FC12_OFF, 128),
                   preferred_element_type=f32) + vrow(8)          # (B, 128)
    mu = mulv[:, 0:64]                                            # mu  in lanes 0..9
    lv = mulv[:, 64:128]                                          # lv  in lanes 0..9
    z = mu + eps_ref[...] * jnp.exp(0.5 * lv)
    z_ref[...] = z
    mu_ref[...] = mu
    lv_ref[...] = lv


# ------------------------------ parameter packing ----------------------------

def prepare_params(params):
    """One-time re-layout / padding of PyTorch-layout params (outside the jit).

    All matmul weights are packed into ONE bf16 blob (single DMA); activations and
    accumulation stay f32 inside the kernel.
    """
    f32 = jnp.float32
    z_dim = params["fc1_w"].shape[0]
    assert z_dim <= 64

    def conv_taps(w):            # (Cout, Cin, KH, KW) -> (KH*KW, Cin, Cout), t=kh*KW+kw
        cout, cin, kh, kw = w.shape
        return jnp.transpose(w.astype(f32), (2, 3, 1, 0)).reshape(kh * kw, cin, cout)

    def pad_kn_taps(a):          # (T, K, N) -> (T*128, 128)
        t, k, n = a.shape
        a = jnp.pad(a, ((0, 0), (0, LANES - k), (0, LANES - n)))
        return a.reshape(t * LANES, LANES)

    # conv1: taps stacked along K (row = (kh*5+kw)*3 + ci), padded 75 -> 128.
    w1 = conv_taps(params["conv1_w"]).reshape(25 * 3, 10)
    w1 = jnp.pad(w1, ((0, LANES - 75), (0, LANES - 10)))              # (128, 128)
    w2 = pad_kn_taps(conv_taps(params["conv2_w"]))                    # (3200, 128)
    w3 = pad_kn_taps(conv_taps(params["conv3_w"]))                    # (2048, 128)

    def fc_pad(w):               # PyTorch Linear (out, in) -> (128, 128)
        wt = w.astype(f32).T
        return jnp.pad(wt, ((0, LANES - wt.shape[0]), (0, LANES - wt.shape[1])))

    fc0 = fc_pad(params["fc0_w"])
    fc12 = jnp.zeros((LANES, LANES), f32)
    fc12 = fc12.at[:50, 0:z_dim].set(params["fc1_w"].astype(f32).T)        # mu lanes
    fc12 = fc12.at[:50, 64:64 + z_dim].set(params["fc2_w"].astype(f32).T)  # lv lanes

    w_blob = jnp.concatenate([w1, w2, w3, fc0, fc12], axis=0).astype(jnp.bfloat16)
    assert w_blob.shape == (_W_ROWS, LANES)

    def pad_row(v):
        return jnp.pad(v.astype(f32)[None, :], ((0, 0), (0, LANES - v.shape[0])))

    fc12_b = jnp.zeros((1, LANES), f32)
    fc12_b = fc12_b.at[0, 0:z_dim].set(params["fc1_b"].astype(f32))
    fc12_b = fc12_b.at[0, 64:64 + z_dim].set(params["fc2_b"].astype(f32))

    vecs = jnp.concatenate(
        [pad_row(params["conv1_b"]), pad_row(params["bn1_g"]), pad_row(params["bn1_b"]),
         pad_row(params["conv2_b"]), pad_row(params["bn2_g"]), pad_row(params["bn2_b"]),
         pad_row(params["conv3_b"]), pad_row(params["fc0_b"]), fc12_b,
         jnp.zeros((7, LANES), f32)], axis=0)                         # (16, 128)

    return {"w": w_blob, "vecs": vecs, "z_dim": z_dim}


def init_params(key, z_dim=10, num_in_channels=3):
    ks = jax.random.split(key, 16)
    w = lambda k, s, sc=0.05: sc * jax.random.normal(k, s, dtype=jnp.float32)
    return {
        "conv1_w": w(ks[0], (10, num_in_channels, 5, 5)),
        "conv1_b": w(ks[1], (10,)),
        "bn1_g": 1.0 + 0.1 * jax.random.normal(ks[2], (10,), jnp.float32),
        "bn1_b": 0.1 * jax.random.normal(ks[3], (10,), jnp.float32),
        "conv2_w": w(ks[4], (20, 10, 5, 5)),
        "conv2_b": w(ks[5], (20,)),
        "bn2_g": 1.0 + 0.1 * jax.random.normal(ks[6], (20,), jnp.float32),
        "bn2_b": 0.1 * jax.random.normal(ks[7], (20,), jnp.float32),
        "conv3_w": w(ks[8], (100, 20, 4, 4)),
        "conv3_b": w(ks[9], (100,)),
        "fc0_w": w(ks[10], (50, 100)),      # PyTorch Linear weight layout (out, in)
        "fc0_b": w(ks[11], (50,)),
        "fc1_w": w(ks[12], (z_dim, 50)),
        "fc1_b": w(ks[13], (z_dim,)),
        "fc2_w": w(ks[14], (z_dim, 50)),
        "fc2_b": w(ks[15], (z_dim,)),
    }


# --------------------------------- JAX wrapper --------------------------------

def vae_encoder_env1_forward(prep, x_nchw, eps):
    """Forward pass of VaeEncoderEnv1: returns (z, mu, logvar)."""
    f32 = jnp.float32
    x = jnp.transpose(x_nchw, (0, 2, 3, 1)).astype(f32)          # NCHW -> NHWC
    B = x.shape[0]
    z_dim = eps.shape[1]

    # conv1 im2col: lane-dense (B*576, 75 -> 128) patch matrix, t = kh*5 + kw.
    cols = [x[:, kh:kh + 24, kw:kw + 24, :] for kh in range(5) for kw in range(5)]
    xp = jnp.concatenate(cols, axis=-1).reshape(B * 576, 75)
    xp = jnp.pad(xp, ((0, 0), (0, LANES - 75)))

    eps_p = jnp.pad(eps.astype(f32), ((0, 0), (0, 64 - z_dim)))

    out_sds = tuple(jax.ShapeDtypeStruct((B, 64), f32) for _ in range(3))
    z, mu, lv = pl.pallas_call(
        _fused_encoder_kernel,
        out_shape=out_sds,
        in_specs=[pl.BlockSpec(memory_space=VMEM)] * 4,
        out_specs=tuple(pl.BlockSpec(memory_space=VMEM) for _ in range(3)),
        scratch_shapes=[
            pltpu.VMEM((B, 24, 24, LANES), f32),      # y1 (post bn1/relu)
            pltpu.VMEM((B, 12, 12, LANES), f32),      # pool1 output
            pltpu.VMEM((B * 64, 25 * LANES), f32),    # conv2 im2col patches
            pltpu.VMEM((B, 8, 8, LANES), f32),        # y2 (post bn2/relu)
            pltpu.VMEM((B, 16 * LANES), f32),         # conv3 patches (pool2 output)
        ],
        # ~2 MB inputs + ~3 MB scratch + <5 MB temporaries at B=2 -> 24 MiB cap
        # leaves >2x headroom and stays under every generation's physical VMEM.
        compiler_params=pltpu.CompilerParams(vmem_limit_bytes=24 * 1024 * 1024),
    )(xp, prep["w"], prep["vecs"], eps_p)

    return z[:, :z_dim], mu[:, :z_dim], lv[:, :z_dim]


if __name__ == "__main__":
    key = jax.random.PRNGKey(0)
    kp, kx, ke = jax.random.split(key, 3)

    B, Z = 2, 10
    params = init_params(kp, z_dim=Z, num_in_channels=3)
    prep = prepare_params(params)          # one-time packing, outside the jit

    x = jax.random.normal(kx, (B, 3, 28, 28), dtype=jnp.float32)
    # TODO(synk): torch.randn_like RNG cannot be bit-matched; eps ~ N(0, I) is
    # drawn with jax.random in the wrapper and fed to the fused kernel.
    eps = jax.random.normal(ke, (B, Z), dtype=jnp.float32)

    z, mu, logvar = jax.jit(vae_encoder_env1_forward)(prep, x, eps)
    jax.block_until_ready((z, mu, logvar))

    assert z.shape == (B, Z) and mu.shape == (B, Z) and logvar.shape == (B, Z)
    assert bool(jnp.all(jnp.isfinite(z)))
    assert bool(jnp.all(jnp.isfinite(mu)))
    assert bool(jnp.all(jnp.isfinite(logvar)))
    print("KERNEL_OK")
</pallas_src>

<mosaic_0001>
module attributes {stable_mosaic.version = 11 : i64} {
  func.func @_fused_encoder_kernel(%arg0: memref<1152x128xf32, #tpu.memory_space<vmem>>, %arg1: memref<5632x128xbf16, #tpu.memory_space<vmem>>, %arg2: memref<16x128xf32, #tpu.memory_space<vmem>>, %arg3: memref<2x64xf32, #tpu.memory_space<vmem>>, %arg4: memref<2x64xf32, #tpu.memory_space<vmem>>, %arg5: memref<2x64xf32, #tpu.memory_space<vmem>>, %arg6: memref<2x64xf32, #tpu.memory_space<vmem>>, %arg7: memref<2x24x24x128xf32, #tpu.memory_space<vmem>>, %arg8: memref<2x12x12x128xf32, #tpu.memory_space<vmem>>, %arg9: memref<128x3200xf32, #tpu.memory_space<vmem>>, %arg10: memref<2x8x8x128xf32, #tpu.memory_space<vmem>>, %arg11: memref<2x2048xf32, #tpu.memory_space<vmem>>) attributes {dimension_semantics = [], scalar_prefetch = 0 : i64, scratch_operands = 5 : i64, tpu.core_type = #tpu.core_type<tc>} {
    %c0 = arith.constant 0 : index
    %c0_0 = arith.constant 0 : index
    %0 = vector.load %arg0[%c0, %c0_0] : memref<1152x128xf32, #tpu.memory_space<vmem>>, vector<1152x128xf32>
    %c0_1 = arith.constant 0 : index
    %c0_2 = arith.constant 0 : index
    %1 = vector.load %arg1[%c0_1, %c0_2] : memref<5632x128xbf16, #tpu.memory_space<vmem>>, vector<128x128xbf16>
    %2 = arith.extf %1 : vector<128x128xbf16> to vector<128x128xf32>
    %cst = arith.constant dense<0.000000e+00> : vector<1152x128xf32>
    %3 = tpu.matmul %0, %2, %cst {dimension_numbers = #tpu.dot_dimension_numbers<[1], [0], [0], [1], [0, 0, 1, 1], [], []>} : vector<1152x128xf32>, vector<128x128xf32>, vector<1152x128xf32> -> vector<1152x128xf32>
    %c0_3 = arith.constant 0 : index
    %c0_4 = arith.constant 0 : index
    %4 = vector.load %arg2[%c0_3, %c0_4] : memref<16x128xf32, #tpu.memory_space<vmem>>, vector<1x128xf32>
    %c1 = arith.constant 1 : index
    %c0_5 = arith.constant 0 : index
    %5 = vector.load %arg2[%c1, %c0_5] : memref<16x128xf32, #tpu.memory_space<vmem>>, vector<1x128xf32>
    %c2 = arith.constant 2 : index
    %c0_6 = arith.constant 0 : index
    %6 = vector.load %arg2[%c2, %c0_6] : memref<16x128xf32, #tpu.memory_space<vmem>>, vector<1x128xf32>
    %7 = vector.broadcast %4 : vector<1x128xf32> to vector<1152x128xf32>
    %8 = arith.addf %3, %7 : vector<1152x128xf32>
    %cst_7 = arith.constant dense<0.000000e+00> : vector<128xf32>
    %9 = vector.multi_reduction <add>, %8, %cst_7 [0] : vector<1152x128xf32> to vector<128xf32>
    %10 = vector.shape_cast %9 : vector<128xf32> to vector<1x128xf32>
    %11 = arith.mulf %8, %8 : vector<1152x128xf32>
    %cst_8 = arith.constant dense<0.000000e+00> : vector<128xf32>
    %12 = vector.multi_reduction <add>, %11, %cst_8 [0] : vector<1152x128xf32> to vector<128xf32>
    %13 = vector.shape_cast %12 : vector<128xf32> to vector<1x128xf32>
    %cst_9 = arith.constant 8.68055562E-4 : f32
    %14 = vector.broadcast %cst_9 : f32 to vector<1x128xf32>
    %15 = arith.mulf %10, %14 : vector<1x128xf32>
    %cst_10 = arith.constant 8.68055562E-4 : f32
    %16 = vector.broadcast %cst_10 : f32 to vector<1x128xf32>
    %17 = arith.mulf %13, %16 : vector<1x128xf32>
    %18 = arith.mulf %15, %15 : vector<1x128xf32>
    %19 = arith.subf %17, %18 : vector<1x128xf32>
    %cst_11 = arith.constant 9.99999974E-6 : f32
    %20 = vector.broadcast %cst_11 : f32 to vector<1x128xf32>
    %21 = arith.addf %19, %20 : vector<1x128xf32>
    %22 = math.rsqrt %21 : vector<1x128xf32>
    %23 = arith.mulf %5, %22 : vector<1x128xf32>
    %24 = arith.mulf %15, %23 : vector<1x128xf32>
    %25 = arith.subf %6, %24 : vector<1x128xf32>
    %26 = vector.broadcast %23 : vector<1x128xf32> to vector<1152x128xf32>
    %27 = arith.mulf %8, %26 : vector<1152x128xf32>
    %28 = vector.broadcast %25 : vector<1x128xf32> to vector<1152x128xf32>
    %29 = arith.addf %27, %28 : vector<1152x128xf32>
    %cst_12 = arith.constant 0.000000e+00 : f32
    %30 = vector.broadcast %cst_12 : f32 to vector<1152x128xf32>
    %31 = arith.maximumf %29, %30 : vector<1152x128xf32>
    %32 = vector.shape_cast %31 : vector<1152x128xf32> to vector<2x24x24x128xf32>
    %c0_13 = arith.constant 0 : index
    %c0_14 = arith.constant 0 : index
    %c0_15 = arith.constant 0 : index
    %c0_16 = arith.constant 0 : index
    %33 = vector.load %arg7[%c0_13, %c0_14, %c0_15, %c0_16] : memref<2x24x24x128xf32, #tpu.memory_space<vmem>>, vector<2x24x24x128xf32>
    tpu.vector_store %arg7[%c0_13, %c0_14, %c0_15, %c0_16], %32 {strides = array<i32>} : memref<2x24x24x128xf32, #tpu.memory_space<vmem>>, vector<2x24x24x128xf32>,
    %c0_17 = arith.constant 0 : index
    %c0_18 = arith.constant 0 : index
    %c0_19 = arith.constant 0 : index
    %c0_20 = arith.constant 0 : index
    %34 = tpu.strided_load %arg7[%c0_17, %c0_18, %c0_19, %c0_20] {strides = array<i32: 1, 1, 2, 1>} : memref<2x24x24x128xf32, #tpu.memory_space<vmem>>, vector<2x24x12x128xf32>
    %c0_21 = arith.constant 0 : index
    %c0_22 = arith.constant 0 : index
    %c1_23 = arith.constant 1 : index
    %c0_24 = arith.constant 0 : index
    %35 = tpu.strided_load %arg7[%c0_21, %c0_22, %c1_23, %c0_24] {strides = array<i32: 1, 1, 2, 1>} : memref<2x24x24x128xf32, #tpu.memory_space<vmem>>, vector<2x24x12x128xf32>
    %36 = arith.maximumf %34, %35 : vector<2x24x12x128xf32>
    %37 = vector.shape_cast %36 : vector<2x24x12x128xf32> to vector<2x12x2x12x128xf32>
    %38 = vector.extract_strided_slice %37 {offsets = [0, 0, 0, 0, 0], sizes = [2, 12, 1, 12, 128], strides = [1, 1, 1, 1, 1]} : vector<2x12x2x12x128xf32> to vector<2x12x1x12x128xf32>
    %39 = vector.shape_cast %38 : vector<2x12x1x12x128xf32> to vector<2x12x12x128xf32>
    %40 = vector.extract_strided_slice %37 {offsets = [0, 0, 1, 0, 0], sizes = [2, 12, 1, 12, 128], strides = [1, 1, 1, 1, 1]} : vector<2x12x2x12x128xf32> to vector<2x12x1x12x128xf32>
    %41 = vector.shape_cast %40 : vector<2x12x1x12x128xf32> to vector<2x12x12x128xf32>
    %42 = arith.maximumf %39, %41 : vector<2x12x12x128xf32>
    %c0_25 = arith.constant 0 : index
    %c0_26 = arith.constant 0 : index
    %c0_27 = arith.constant 0 : index
    %c0_28 = arith.constant 0 : index
    %43 = vector.load %arg8[%c0_25, %c0_26, %c0_27, %c0_28] : memref<2x12x12x128xf32, #tpu.memory_space<vmem>>, vector<2x12x12x128xf32>
    tpu.vector_store %arg8[%c0_25, %c0_26, %c0_27, %c0_28], %42 {strides = array<i32>} : memref<2x12x12x128xf32, #tpu.memory_space<vmem>>, vector<2x12x12x128xf32>,
    %c0_29 = arith.constant 0 : index
    %c0_30 = arith.constant 0 : index
    %c0_31 = arith.constant 0 : index
    %c0_32 = arith.constant 0 : index
    %44 = vector.load %arg8[%c0_29, %c0_30, %c0_31, %c0_32] : memref<2x12x12x128xf32, #tpu.memory_space<vmem>>, vector<2x8x8x128xf32>
    %45 = vector.shape_cast %44 : vector<2x8x8x128xf32> to vector<128x128xf32>
    %c0_33 = arith.constant 0 : index
    %c0_34 = arith.constant 0 : index
    %46 = vector.load %arg9[%c0_33, %c0_34] : memref<128x3200xf32, #tpu.memory_space<vmem>>, vector<128x128xf32>
    tpu.vector_store %arg9[%c0_33, %c0_34], %45 {strides = array<i32>} : memref<128x3200xf32, #tpu.memory_space<vmem>>, vector<128x128xf32>,
    %c0_35 = arith.constant 0 : index
    %c0_36 = arith.constant 0 : index
    %c1_37 = arith.constant 1 : index
    %c0_38 = arith.constant 0 : index
    %47 = vector.load %arg8[%c0_35, %c0_36, %c1_37, %c0_38] : memref<2x12x12x128xf32, #tpu.memory_space<vmem>>, vector<2x8x8x128xf32>
    %48 = vector.shape_cast %47 : vector<2x8x8x128xf32> to vector<128x128xf32>
    %c0_39 = arith.constant 0 : index
    %c128 = arith.constant 128 : index
    %49 = vector.load %arg9[%c0_39, %c128] : memref<128x3200xf32, #tpu.memory_space<vmem>>, vector<128x128xf32>
    tpu.vector_store %arg9[%c0_39, %c128], %48 {strides = array<i32>} : memref<128x3200xf32, #tpu.memory_space<vmem>>, vector<128x128xf32>,
    %c0_40 = arith.constant 0 : index
    %c0_41 = arith.constant 0 : index
    %c2_42 = arith.constant 2 : index
    %c0_43 = arith.constant 0 : index
    %50 = vector.load %arg8[%c0_40, %c0_41, %c2_42, %c0_43] : memref<2x12x12x128xf32, #tpu.memory_space<vmem>>, vector<2x8x8x128xf32>
    %51 = vector.shape_cast %50 : vector<2x8x8x128xf32> to vector<128x128xf32>
    %c0_44 = arith.constant 0 : index
    %c256 = arith.constant 256 : index
    %52 = vector.load %arg9[%c0_44, %c256] : memref<128x3200xf32, #tpu.memory_space<vmem>>, vector<128x128xf32>
    tpu.vector_store %arg9[%c0_44, %c256], %51 {strides = array<i32>} : memref<128x3200xf32, #tpu.memory_space<vmem>>, vector<128x128xf32>,
    %c0_45 = arith.constant 0 : index
    %c0_46 = arith.constant 0 : index
    %c3 = arith.constant 3 : index
    %c0_47 = arith.constant 0 : index
    %53 = vector.load %arg8[%c0_45, %c0_46, %c3, %c0_47] : memref<2x12x12x128xf32, #tpu.memory_space<vmem>>, vector<2x8x8x128xf32>
    %54 = vector.shape_cast %53 : vector<2x8x8x128xf32> to vector<128x128xf32>
    %c0_48 = arith.constant 0 : index
    %c384 = arith.constant 384 : index
    %55 = vector.load %arg9[%c0_48, %c384] : memref<128x3200xf32, #tpu.memory_space<vmem>>, vector<128x128xf32>
    tpu.vector_store %arg9[%c0_48, %c384], %54 {strides = array<i32>} : memref<128x3200xf32, #tpu.memory_space<vmem>>, vector<128x128xf32>,
    %c0_49 = arith.constant 0 : index
    %c0_50 = arith.constant 0 : index
    %c4 = arith.constant 4 : index
    %c0_51 = arith.constant 0 : index
    %56 = vector.load %arg8[%c0_49, %c0_50, %c4, %c0_51] : memref<2x12x12x128xf32, #tpu.memory_space<vmem>>, vector<2x8x8x128xf32>
    %57 = vector.shape_cast %56 : vector<2x8x8x128xf32> to vector<128x128xf32>
    %c0_52 = arith.constant 0 : index
    %c512 = arith.constant 512 : index
    %58 = vector.load %arg9[%c0_52, %c512] : memref<128x3200xf32, #tpu.memory_space<vmem>>, vector<128x128xf32>
    tpu.vector_store %arg9[%c0_52, %c512], %57 {strides = array<i32>} : memref<128x3200xf32, #tpu.memory_space<vmem>>, vector<128x128xf32>,
    %c0_53 = arith.constant 0 : index
    %c1_54 = arith.constant 1 : index
    %c0_55 = arith.constant 0 : index
    %c0_56 = arith.constant 0 : index
    %59 = vector.load %arg8[%c0_53, %c1_54, %c0_55, %c0_56] : memref<2x12x12x128xf32, #tpu.memory_space<vmem>>, vector<2x8x8x128xf32>
    %60 = vector.shape_cast %59 : vector<2x8x8x128xf32> to vector<128x128xf32>
    %c0_57 = arith.constant 0 : index
    %c640 = arith.constant 640 : index
    %61 = vector.load %arg9[%c0_57, %c640] : memref<128x3200xf32, #tpu.memory_space<vmem>>, vector<128x128xf32>
    tpu.vector_store %arg9[%c0_57, %c640], %60 {strides = array<i32>} : memref<128x3200xf32, #tpu.memory_space<vmem>>, vector<128x128xf32>,
    %c0_58 = arith.constant 0 : index
    %c1_59 = arith.constant 1 : index
    %c1_60 = arith.constant 1 : index
    %c0_61 = arith.constant 0 : index
    %62 = vector.load %arg8[%c0_58, %c1_59, %c1_60, %c0_61] : memref<2x12x12x128xf32, #tpu.memory_space<vmem>>, vector<2x8x8x128xf32>
    %63 = vector.shape_cast %62 : vector<2x8x8x128xf32> to vector<128x128xf32>
    %c0_62 = arith.constant 0 : index
    %c768 = arith.constant 768 : index
    %64 = vector.load %arg9[%c0_62, %c768] : memref<128x3200xf32, #tpu.memory_space<vmem>>, vector<128x128xf32>
    tpu.vector_store %arg9[%c0_62, %c768], %63 {strides = array<i32>} : memref<128x3200xf32, #tpu.memory_space<vmem>>, vector<128x128xf32>,
    %c0_63 = arith.constant 0 : index
    %c1_64 = arith.constant 1 : index
    %c2_65 = arith.constant 2 : index
    %c0_66 = arith.constant 0 : index
    %65 = vector.load %arg8[%c0_63, %c1_64, %c2_65, %c0_66] : memref<2x12x12x128xf32, #tpu.memory_space<vmem>>, vector<2x8x8x128xf32>
    %66 = vector.shape_cast %65 : vector<2x8x8x128xf32> to vector<128x128xf32>
    %c0_67 = arith.constant 0 : index
    %c896 = arith.constant 896 : index
    %67 = vector.load %arg9[%c0_67, %c896] : memref<128x3200xf32, #tpu.memory_space<vmem>>, vector<128x128xf32>
    tpu.vector_store %arg9[%c0_67, %c896], %66 {strides = array<i32>} : memref<128x3200xf32, #tpu.memory_space<vmem>>, vector<128x128xf32>,
    %c0_68 = arith.constant 0 : index
    %c1_69 = arith.constant 1 : index
    %c3_70 = arith.constant 3 : index
    %c0_71 = arith.constant 0 : index
    %68 = vector.load %arg8[%c0_68, %c1_69, %c3_70, %c0_71] : memref<2x12x12x128xf32, #tpu.memory_space<vmem>>, vector<2x8x8x128xf32>
    %69 = vector.shape_cast %68 : vector<2x8x8x128xf32> to vector<128x128xf32>
    %c0_72 = arith.constant 0 : index
    %c1024 = arith.constant 1024 : index
    %70 = vector.load %arg9[%c0_72, %c1024] : memref<128x3200xf32, #tpu.memory_space<vmem>>, vector<128x128xf32>
    tpu.vector_store %arg9[%c0_72, %c1024], %69 {strides = array<i32>} : memref<128x3200xf32, #tpu.memory_space<vmem>>, vector<128x128xf32>,
    %c0_73 = arith.constant 0 : index
    %c1_74 = arith.constant 1 : index
    %c4_75 = arith.constant 4 : index
    %c0_76 = arith.constant 0 : index
    %71 = vector.load %arg8[%c0_73, %c1_74, %c4_75, %c0_76] : memref<2x12x12x128xf32, #tpu.memory_space<vmem>>, vector<2x8x8x128xf32>
    %72 = vector.shape_cast %71 : vector<2x8x8x128xf32> to vector<128x128xf32>
    %c0_77 = arith.constant 0 : index
    %c1152 = arith.constant 1152 : index
    %73 = vector.load %arg9[%c0_77, %c1152] : memref<128x3200xf32, #tpu.memory_space<vmem>>, vector<128x128xf32>
    tpu.vector_store %arg9[%c0_77, %c1152], %72 {strides = array<i32>} : memref<128x3200xf32, #tpu.memory_space<vmem>>, vector<128x128xf32>,
    %c0_78 = arith.constant 0 : index
    %c2_79 = arith.constant 2 : index
    %c0_80 = arith.constant 0 : index
    %c0_81 = arith.constant 0 : index
    %74 = vector.load %arg8[%c0_78, %c2_79, %c0_80, %c0_81] : memref<2x12x12x128xf32, #tpu.memory_space<vmem>>, vector<2x8x8x128xf32>
    %75 = vector.shape_cast %74 : vector<2x8x8x128xf32> to vector<128x128xf32>
    %c0_82 = arith.constant 0 : index
    %c1280 = arith.constant 1280 : index
    %76 = vector.load %arg9[%c0_82, %c1280] : memref<128x3200xf32, #tpu.memory_space<vmem>>, vector<128x128xf32>
    tpu.vector_store %arg9[%c0_82, %c1280], %75 {strides = array<i32>} : memref<128x3200xf32, #tpu.memory_space<vmem>>, vector<128x128xf32>,
    %c0_83 = arith.constant 0 : index
    %c2_84 = arith.constant 2 : index
    %c1_85 = arith.constant 1 : index
    %c0_86 = arith.constant 0 : index
    %77 = vector.load %arg8[%c0_83, %c2_84, %c1_85, %c0_86] : memref<2x12x12x128xf32, #tpu.memory_space<vmem>>, vector<2x8x8x128xf32>
    %78 = vector.shape_cast %77 : vector<2x8x8x128xf32> to vector<128x128xf32>
    %c0_87 = arith.constant 0 : index
    %c1408 = arith.constant 1408 : index
    %79 = vector.load %arg9[%c0_87, %c1408] : memref<128x3200xf32, #tpu.memory_space<vmem>>, vector<128x128xf32>
    tpu.vector_store %arg9[%c0_87, %c1408], %78 {strides = array<i32>} : memref<128x3200xf32, #tpu.memory_space<vmem>>, vector<128x128xf32>,
    %c0_88 = arith.constant 0 : index
    %c2_89 = arith.constant 2 : index
    %c2_90 = arith.constant 2 : index
    %c0_91 = arith.constant 0 : index
    %80 = vector.load %arg8[%c0_88, %c2_89, %c2_90, %c0_91] : memref<2x12x12x128xf32, #tpu.memory_space<vmem>>, vector<2x8x8x128xf32>
    %81 = vector.shape_cast %80 : vector<2x8x8x128xf32> to vector<128x128xf32>
    %c0_92 = arith.constant 0 : index
    %c1536 = arith.constant 1536 : index
    %82 = vector.load %arg9[%c0_92, %c1536] : memref<128x3200xf32, #tpu.memory_space<vmem>>, vector<128x128xf32>
    tpu.vector_store %arg9[%c0_92, %c1536], %81 {strides = array<i32>} : memref<128x3200xf32, #tpu.memory_space<vmem>>, vector<128x128xf32>,
    %c0_93 = arith.constant 0 : index
    %c2_94 = arith.constant 2 : index
    %c3_95 = arith.constant 3 : index
    %c0_96 = arith.constant 0 : index
    %83 = vector.load %arg8[%c0_93, %c2_94, %c3_95, %c0_96] : memref<2x12x12x128xf32, #tpu.memory_space<vmem>>, vector<2x8x8x128xf32>
    %84 = vector.shape_cast %83 : vector<2x8x8x128xf32> to vector<128x128xf32>
    %c0_97 = arith.constant 0 : index
    %c1664 = arith.constant 1664 : index
    %85 = vector.load %arg9[%c0_97, %c1664] : memref<128x3200xf32, #tpu.memory_space<vmem>>, vector<128x128xf32>
    tpu.vector_store %arg9[%c0_97, %c1664], %84 {strides = array<i32>} : memref<128x3200xf32, #tpu.memory_space<vmem>>, vector<128x128xf32>,
    %c0_98 = arith.constant 0 : index
    %c2_99 = arith.constant 2 : index
    %c4_100 = arith.constant 4 : index
    %c0_101 = arith.constant 0 : index
    %86 = vector.load %arg8[%c0_98, %c2_99, %c4_100, %c0_101] : memref<2x12x12x128xf32, #tpu.memory_space<vmem>>, vector<2x8x8x128xf32>
    %87 = vector.shape_cast %86 : vector<2x8x8x128xf32> to vector<128x128xf32>
    %c0_102 = arith.constant 0 : index
    %c1792 = arith.constant 1792 : index
    %88 = vector.load %arg9[%c0_102, %c1792] : memref<128x3200xf32, #tpu.memory_space<vmem>>, vector<128x128xf32>
    tpu.vector_store %arg9[%c0_102, %c1792], %87 {strides = array<i32>} : memref<128x3200xf32, #tpu.memory_space<vmem>>, vector<128x128xf32>,
    %c0_103 = arith.constant 0 : index
    %c3_104 = arith.constant 3 : index
    %c0_105 = arith.constant 0 : index
    %c0_106 = arith.constant 0 : index
    %89 = vector.load %arg8[%c0_103, %c3_104, %c0_105, %c0_106] : memref<2x12x12x128xf32, #tpu.memory_space<vmem>>, vector<2x8x8x128xf32>
    %90 = vector.shape_cast %89 : vector<2x8x8x128xf32> to vector<128x128xf32>
    %c0_107 = arith.constant 0 : index
    %c1920 = arith.constant 1920 : index
    %91 = vector.load %arg9[%c0_107, %c1920] : memref<128x3200xf32, #tpu.memory_space<vmem>>, vector<128x128xf32>
    tpu.vector_store %arg9[%c0_107, %c1920], %90 {strides = array<i32>} : memref<128x3200xf32, #tpu.memory_space<vmem>>, vector<128x128xf32>,
    %c0_108 = arith.constant 0 : index
    %c3_109 = arith.constant 3 : index
    %c1_110 = arith.constant 1 : index
    %c0_111 = arith.constant 0 : index
    %92 = vector.load %arg8[%c0_108, %c3_109, %c1_110, %c0_111] : memref<2x12x12x128xf32, #tpu.memory_space<vmem>>, vector<2x8x8x128xf32>
    %93 = vector.shape_cast %92 : vector<2x8x8x128xf32> to vector<128x128xf32>
    %c0_112 = arith.constant 0 : index
    %c2048 = arith.constant 2048 : index
    %94 = vector.load %arg9[%c0_112, %c2048] : memref<128x3200xf32, #tpu.memory_space<vmem>>, vector<128x128xf32>
    tpu.vector_store %arg9[%c0_112, %c2048], %93 {strides = array<i32>} : memref<128x3200xf32, #tpu.memory_space<vmem>>, vector<128x128xf32>,
    %c0_113 = arith.constant 0 : index
    %c3_114 = arith.constant 3 : index
    %c2_115 = arith.constant 2 : index
    %c0_116 = arith.constant 0 : index
    %95 = vector.load %arg8[%c0_113, %c3_114, %c2_115, %c0_116] : memref<2x12x12x128xf32, #tpu.memory_space<vmem>>, vector<2x8x8x128xf32>
    %96 = vector.shape_cast %95 : vector<2x8x8x128xf32> to vector<128x128xf32>
    %c0_117 = arith.constant 0 : index
    %c2176 = arith.constant 2176 : index
    %97 = vector.load %arg9[%c0_117, %c2176] : memref<128x3200xf32, #tpu.memory_space<vmem>>, vector<128x128xf32>
    tpu.vector_store %arg9[%c0_117, %c2176], %96 {strides = array<i32>} : memref<128x3200xf32, #tpu.memory_space<vmem>>, vector<128x128xf32>,
    %c0_118 = arith.constant 0 : index
    %c3_119 = arith.constant 3 : index
    %c3_120 = arith.constant 3 : index
    %c0_121 = arith.constant 0 : index
    %98 = vector.load %arg8[%c0_118, %c3_119, %c3_120, %c0_121] : memref<2x12x12x128xf32, #tpu.memory_space<vmem>>, vector<2x8x8x128xf32>
    %99 = vector.shape_cast %98 : vector<2x8x8x128xf32> to vector<128x128xf32>
    %c0_122 = arith.constant 0 : index
    %c2304 = arith.constant 2304 : index
    %100 = vector.load %arg9[%c0_122, %c2304] : memref<128x3200xf32, #tpu.memory_space<vmem>>, vector<128x128xf32>
    tpu.vector_store %arg9[%c0_122, %c2304], %99 {strides = array<i32>} : memref<128x3200xf32, #tpu.memory_space<vmem>>, vector<128x128xf32>,
    %c0_123 = arith.constant 0 : index
    %c3_124 = arith.constant 3 : index
    %c4_125 = arith.constant 4 : index
    %c0_126 = arith.constant 0 : index
    %101 = vector.load %arg8[%c0_123, %c3_124, %c4_125, %c0_126] : memref<2x12x12x128xf32, #tpu.memory_space<vmem>>, vector<2x8x8x128xf32>
    %102 = vector.shape_cast %101 : vector<2x8x8x128xf32> to vector<128x128xf32>
    %c0_127 = arith.constant 0 : index
    %c2432 = arith.constant 2432 : index
    %103 = vector.load %arg9[%c0_127, %c2432] : memref<128x3200xf32, #tpu.memory_space<vmem>>, vector<128x128xf32>
    tpu.vector_store %arg9[%c0_127, %c2432], %102 {strides = array<i32>} : memref<128x3200xf32, #tpu.memory_space<vmem>>, vector<128x128xf32>,
    %c0_128 = arith.constant 0 : index
    %c4_129 = arith.constant 4 : index
    %c0_130 = arith.constant 0 : index
    %c0_131 = arith.constant 0 : index
    %104 = vector.load %arg8[%c0_128, %c4_129, %c0_130, %c0_131] : memref<2x12x12x128xf32, #tpu.memory_space<vmem>>, vector<2x8x8x128xf32>
    %105 = vector.shape_cast %104 : vector<2x8x8x128xf32> to vector<128x128xf32>
    %c0_132 = arith.constant 0 : index
    %c2560 = arith.constant 2560 : index
    %106 = vector.load %arg9[%c0_132, %c2560] : memref<128x3200xf32, #tpu.memory_space<vmem>>, vector<128x128xf32>
    tpu.vector_store %arg9[%c0_132, %c2560], %105 {strides = array<i32>} : memref<128x3200xf32, #tpu.memory_space<vmem>>, vector<128x128xf32>,
    %c0_133 = arith.constant 0 : index
    %c4_134 = arith.constant 4 : index
    %c1_135 = arith.constant 1 : index
    %c0_136 = arith.constant 0 : index
    %107 = vector.load %arg8[%c0_133, %c4_134, %c1_135, %c0_136] : memref<2x12x12x128xf32, #tpu.memory_space<vmem>>, vector<2x8x8x128xf32>
    %108 = vector.shape_cast %107 : vector<2x8x8x128xf32> to vector<128x128xf32>
    %c0_137 = arith.constant 0 : index
    %c2688 = arith.constant 2688 : index
    %109 = vector.load %arg9[%c0_137, %c2688] : memref<128x3200xf32, #tpu.memory_space<vmem>>, vector<128x128xf32>
    tpu.vector_store %arg9[%c0_137, %c2688], %108 {strides = array<i32>} : memref<128x3200xf32, #tpu.memory_space<vmem>>, vector<128x128xf32>,
    %c0_138 = arith.constant 0 : index
    %c4_139 = arith.constant 4 : index
    %c2_140 = arith.constant 2 : index
    %c0_141 = arith.constant 0 : index
    %110 = vector.load %arg8[%c0_138, %c4_139, %c2_140, %c0_141] : memref<2x12x12x128xf32, #tpu.memory_space<vmem>>, vector<2x8x8x128xf32>
    %111 = vector.shape_cast %110 : vector<2x8x8x128xf32> to vector<128x128xf32>
    %c0_142 = arith.constant 0 : index
    %c2816 = arith.constant 2816 : index
    %112 = vector.load %arg9[%c0_142, %c2816] : memref<128x3200xf32, #tpu.memory_space<vmem>>, vector<128x128xf32>
    tpu.vector_store %arg9[%c0_142, %c2816], %111 {strides = array<i32>} : memref<128x3200xf32, #tpu.memory_space<vmem>>, vector<128x128xf32>,
    %c0_143 = arith.constant 0 : index
    %c4_144 = arith.constant 4 : index
    %c3_145 = arith.constant 3 : index
    %c0_146 = arith.constant 0 : index
    %113 = vector.load %arg8[%c0_143, %c4_144, %c3_145, %c0_146] : memref<2x12x12x128xf32, #tpu.memory_space<vmem>>, vector<2x8x8x128xf32>
    %114 = vector.shape_cast %113 : vector<2x8x8x128xf32> to vector<128x128xf32>
    %c0_147 = arith.constant 0 : index
    %c2944 = arith.constant 2944 : index
    %115 = vector.load %arg9[%c0_147, %c2944] : memref<128x3200xf32, #tpu.memory_space<vmem>>, vector<128x128xf32>
    tpu.vector_store %arg9[%c0_147, %c2944], %114 {strides = array<i32>} : memref<128x3200xf32, #tpu.memory_space<vmem>>, vector<128x128xf32>,
    %c0_148 = arith.constant 0 : index
    %c4_149 = arith.constant 4 : index
    %c4_150 = arith.constant 4 : index
    %c0_151 = arith.constant 0 : index
    %116 = vector.load %arg8[%c0_148, %c4_149, %c4_150, %c0_151] : memref<2x12x12x128xf32, #tpu.memory_space<vmem>>, vector<2x8x8x128xf32>
    %117 = vector.shape_cast %116 : vector<2x8x8x128xf32> to vector<128x128xf32>
    %c0_152 = arith.constant 0 : index
    %c3072 = arith.constant 3072 : index
    %118 = vector.load %arg9[%c0_152, %c3072] : memref<128x3200xf32, #tpu.memory_space<vmem>>, vector<128x128xf32>
    tpu.vector_store %arg9[%c0_152, %c3072], %117 {strides = array<i32>} : memref<128x3200xf32, #tpu.memory_space<vmem>>, vector<128x128xf32>,
    %c0_153 = arith.constant 0 : index
    %c0_154 = arith.constant 0 : index
    %119 = vector.load %arg9[%c0_153, %c0_154] : memref<128x3200xf32, #tpu.memory_space<vmem>>, vector<128x3200xf32>
    %c128_155 = arith.constant 128 : index
    %c0_156 = arith.constant 0 : index
    %120 = vector.load %arg1[%c128_155, %c0_156] : memref<5632x128xbf16, #tpu.memory_space<vmem>>, vector<3200x128xbf16>
    %121 = arith.extf %120 : vector<3200x128xbf16> to vector<3200x128xf32>
    %cst_157 = arith.constant dense<0.000000e+00> : vector<128x128xf32>
    %122 = tpu.matmul %119, %121, %cst_157 {dimension_numbers = #tpu.dot_dimension_numbers<[1], [0], [0], [1], [0, 0, 1, 1], [], []>} : vector<128x3200xf32>, vector<3200x128xf32>, vector<128x128xf32> -> vector<128x128xf32>
    %c3_158 = arith.constant 3 : index
    %c0_159 = arith.constant 0 : index
    %123 = vector.load %arg2[%c3_158, %c0_159] : memref<16x128xf32, #tpu.memory_space<vmem>>, vector<1x128xf32>
    %c4_160 = arith.constant 4 : index
    %c0_161 = arith.constant 0 : index
    %124 = vector.load %arg2[%c4_160, %c0_161] : memref<16x128xf32, #tpu.memory_space<vmem>>, vector<1x128xf32>
    %c5 = arith.constant 5 : index
    %c0_162 = arith.constant 0 : index
    %125 = vector.load %arg2[%c5, %c0_162] : memref<16x128xf32, #tpu.memory_space<vmem>>, vector<1x128xf32>
    %126 = vector.broadcast %123 : vector<1x128xf32> to vector<128x128xf32>
    %127 = arith.addf %122, %126 : vector<128x128xf32>
    %cst_163 = arith.constant dense<0.000000e+00> : vector<128xf32>
    %128 = vector.multi_reduction <add>, %127, %cst_163 [0] : vector<128x128xf32> to vector<128xf32>
    %129 = vector.shape_cast %128 : vector<128xf32> to vector<1x128xf32>
    %130 = arith.mulf %127, %127 : vector<128x128xf32>
    %cst_164 = arith.constant dense<0.000000e+00> : vector<128xf32>
    %131 = vector.multi_reduction <add>, %130, %cst_164 [0] : vector<128x128xf32> to vector<128xf32>
    %132 = vector.shape_cast %131 : vector<128xf32> to vector<1x128xf32>
    %cst_165 = arith.constant 7.812500e-03 : f32
    %133 = vector.broadcast %cst_165 : f32 to vector<1x128xf32>
    %134 = arith.mulf %129, %133 : vector<1x128xf32>
    %cst_166 = arith.constant 7.812500e-03 : f32
    %135 = vector.broadcast %cst_166 : f32 to vector<1x128xf32>
    %136 = arith.mulf %132, %135 : vector<1x128xf32>
    %137 = arith.mulf %134, %134 : vector<1x128xf32>
    %138 = arith.subf %136, %137 : vector<1x128xf32>
    %cst_167 = arith.constant 9.99999974E-6 : f32
    %139 = vector.broadcast %cst_167 : f32 to vector<1x128xf32>
    %140 = arith.addf %138, %139 : vector<1x128xf32>
    %141 = math.rsqrt %140 : vector<1x128xf32>
    %142 = arith.mulf %124, %141 : vector<1x128xf32>
    %143 = arith.mulf %134, %142 : vector<1x128xf32>
    %144 = arith.subf %125, %143 : vector<1x128xf32>
    %145 = vector.broadcast %142 : vector<1x128xf32> to vector<128x128xf32>
    %146 = arith.mulf %127, %145 : vector<128x128xf32>
    %147 = vector.broadcast %144 : vector<1x128xf32> to vector<128x128xf32>
    %148 = arith.addf %146, %147 : vector<128x128xf32>
    %cst_168 = arith.constant 0.000000e+00 : f32
    %149 = vector.broadcast %cst_168 : f32 to vector<128x128xf32>
    %150 = arith.maximumf %148, %149 : vector<128x128xf32>
    %151 = vector.shape_cast %150 : vector<128x128xf32> to vector<2x8x8x128xf32>
    %c0_169 = arith.constant 0 : index
    %c0_170 = arith.constant 0 : index
    %c0_171 = arith.constant 0 : index
    %c0_172 = arith.constant 0 : index
    %152 = vector.load %arg10[%c0_169, %c0_170, %c0_171, %c0_172] : memref<2x8x8x128xf32, #tpu.memory_space<vmem>>, vector<2x8x8x128xf32>
    tpu.vector_store %arg10[%c0_169, %c0_170, %c0_171, %c0_172], %151 {strides = array<i32>} : memref<2x8x8x128xf32, #tpu.memory_space<vmem>>, vector<2x8x8x128xf32>,
    %c0_173 = arith.constant 0 : index
    %c0_174 = arith.constant 0 : index
    %c0_175 = arith.constant 0 : index
    %c0_176 = arith.constant 0 : index
    %153 = vector.load %arg10[%c0_173, %c0_174, %c0_175, %c0_176] : memref<2x8x8x128xf32, #tpu.memory_space<vmem>>, vector<2x1x1x128xf32>
    %154 = vector.shape_cast %153 : vector<2x1x1x128xf32> to vector<2x128xf32>
    %c0_177 = arith.constant 0 : index
    %c0_178 = arith.constant 0 : index
    %c1_179 = arith.constant 1 : index
    %c0_180 = arith.constant 0 : index
    %155 = vector.load %arg10[%c0_177, %c0_178, %c1_179, %c0_180] : memref<2x8x8x128xf32, #tpu.memory_space<vmem>>, vector<2x1x1x128xf32>
    %156 = vector.shape_cast %155 : vector<2x1x1x128xf32> to vector<2x128xf32>
    %c0_181 = arith.constant 0 : index
    %c1_182 = arith.constant 1 : index
    %c0_183 = arith.constant 0 : index
    %c0_184 = arith.constant 0 : index
    %157 = vector.load %arg10[%c0_181, %c1_182, %c0_183, %c0_184] : memref<2x8x8x128xf32, #tpu.memory_space<vmem>>, vector<2x1x1x128xf32>
    %158 = vector.shape_cast %157 : vector<2x1x1x128xf32> to vector<2x128xf32>
    %c0_185 = arith.constant 0 : index
    %c1_186 = arith.constant 1 : index
    %c1_187 = arith.constant 1 : index
    %c0_188 = arith.constant 0 : index
    %159 = vector.load %arg10[%c0_185, %c1_186, %c1_187, %c0_188] : memref<2x8x8x128xf32, #tpu.memory_space<vmem>>, vector<2x1x1x128xf32>
    %160 = vector.shape_cast %159 : vector<2x1x1x128xf32> to vector<2x128xf32>
    %161 = arith.maximumf %154, %156 : vector<2x128xf32>
    %162 = arith.maximumf %158, %160 : vector<2x128xf32>
    %163 = arith.maximumf %161, %162 : vector<2x128xf32>
    %c0_189 = arith.constant 0 : index
    %c0_190 = arith.constant 0 : index
    %164 = vector.load %arg11[%c0_189, %c0_190] : memref<2x2048xf32, #tpu.memory_space<vmem>>, vector<2x128xf32>
    tpu.vector_store %arg11[%c0_189, %c0_190], %163 {strides = array<i32>} : memref<2x2048xf32, #tpu.memory_space<vmem>>, vector<2x128xf32>,
    %c0_191 = arith.constant 0 : index
    %c0_192 = arith.constant 0 : index
    %c2_193 = arith.constant 2 : index
    %c0_194 = arith.constant 0 : index
    %165 = vector.load %arg10[%c0_191, %c0_192, %c2_193, %c0_194] : memref<2x8x8x128xf32, #tpu.memory_space<vmem>>, vector<2x1x1x128xf32>
    %166 = vector.shape_cast %165 : vector<2x1x1x128xf32> to vector<2x128xf32>
    %c0_195 = arith.constant 0 : index
    %c0_196 = arith.constant 0 : index
    %c3_197 = arith.constant 3 : index
    %c0_198 = arith.constant 0 : index
    %167 = vector.load %arg10[%c0_195, %c0_196, %c3_197, %c0_198] : memref<2x8x8x128xf32, #tpu.memory_space<vmem>>, vector<2x1x1x128xf32>
    %168 = vector.shape_cast %167 : vector<2x1x1x128xf32> to vector<2x128xf32>
    %c0_199 = arith.constant 0 : index
    %c1_200 = arith.constant 1 : index
    %c2_201 = arith.constant 2 : index
    %c0_202 = arith.constant 0 : index
    %169 = vector.load %arg10[%c0_199, %c1_200, %c2_201, %c0_202] : memref<2x8x8x128xf32, #tpu.memory_space<vmem>>, vector<2x1x1x128xf32>
    %170 = vector.shape_cast %169 : vector<2x1x1x128xf32> to vector<2x128xf32>
    %c0_203 = arith.constant 0 : index
    %c1_204 = arith.constant 1 : index
    %c3_205 = arith.constant 3 : index
    %c0_206 = arith.constant 0 : index
    %171 = vector.load %arg10[%c0_203, %c1_204, %c3_205, %c0_206] : memref<2x8x8x128xf32, #tpu.memory_space<vmem>>, vector<2x1x1x128xf32>
    %172 = vector.shape_cast %171 : vector<2x1x1x128xf32> to vector<2x128xf32>
    %173 = arith.maximumf %166, %168 : vector<2x128xf32>
    %174 = arith.maximumf %170, %172 : vector<2x128xf32>
    %175 = arith.maximumf %173, %174 : vector<2x128xf32>
    %c0_207 = arith.constant 0 : index
    %c128_208 = arith.constant 128 : index
    %176 = vector.load %arg11[%c0_207, %c128_208] : memref<2x2048xf32, #tpu.memory_space<vmem>>, vector<2x128xf32>
    tpu.vector_store %arg11[%c0_207, %c128_208], %175 {strides = array<i32>} : memref<2x2048xf32, #tpu.memory_space<vmem>>, vector<2x128xf32>,
    %c0_209 = arith.constant 0 : index
    %c0_210 = arith.constant 0 : index
    %c4_211 = arith.constant 4 : index
    %c0_212 = arith.constant 0 : index
    %177 = vector.load %arg10[%c0_209, %c0_210, %c4_211, %c0_212] : memref<2x8x8x128xf32, #tpu.memory_space<vmem>>, vector<2x1x1x128xf32>
    %178 = vector.shape_cast %177 : vector<2x1x1x128xf32> to vector<2x128xf32>
    %c0_213 = arith.constant 0 : index
    %c0_214 = arith.constant 0 : index
    %c5_215 = arith.constant 5 : index
    %c0_216 = arith.constant 0 : index
    %179 = vector.load %arg10[%c0_213, %c0_214, %c5_215, %c0_216] : memref<2x8x8x128xf32, #tpu.memory_space<vmem>>, vector<2x1x1x128xf32>
    %180 = vector.shape_cast %179 : vector<2x1x1x128xf32> to vector<2x128xf32>
    %c0_217 = arith.constant 0 : index
    %c1_218 = arith.constant 1 : index
    %c4_219 = arith.constant 4 : index
    %c0_220 = arith.constant 0 : index
    %181 = vector.load %arg10[%c0_217, %c1_218, %c4_219, %c0_220] : memref<2x8x8x128xf32, #tpu.memory_space<vmem>>, vector<2x1x1x128xf32>
    %182 = vector.shape_cast %181 : vector<2x1x1x128xf32> to vector<2x128xf32>
    %c0_221 = arith.constant 0 : index
    %c1_222 = arith.constant 1 : index
    %c5_223 = arith.constant 5 : index
    %c0_224 = arith.constant 0 : index
    %183 = vector.load %arg10[%c0_221, %c1_222, %c5_223, %c0_224] : memref<2x8x8x128xf32, #tpu.memory_space<vmem>>, vector<2x1x1x128xf32>
    %184 = vector.shape_cast %183 : vector<2x1x1x128xf32> to vector<2x128xf32>
    %185 = arith.maximumf %178, %180 : vector<2x128xf32>
    %186 = arith.maximumf %182, %184 : vector<2x128xf32>
    %187 = arith.maximumf %185, %186 : vector<2x128xf32>
    %c0_225 = arith.constant 0 : index
    %c256_226 = arith.constant 256 : index
    %188 = vector.load %arg11[%c0_225, %c256_226] : memref<2x2048xf32, #tpu.memory_space<vmem>>, vector<2x128xf32>
    tpu.vector_store %arg11[%c0_225, %c256_226], %187 {strides = array<i32>} : memref<2x2048xf32, #tpu.memory_space<vmem>>, vector<2x128xf32>,
    %c0_227 = arith.constant 0 : index
    %c0_228 = arith.constant 0 : index
    %c6 = arith.constant 6 : index
    %c0_229 = arith.constant 0 : index
    %189 = vector.load %arg10[%c0_227, %c0_228, %c6, %c0_229] : memref<2x8x8x128xf32, #tpu.memory_space<vmem>>, vector<2x1x1x128xf32>
    %190 = vector.shape_cast %189 : vector<2x1x1x128xf32> to vector<2x128xf32>
    %c0_230 = arith.constant 0 : index
    %c0_231 = arith.constant 0 : index
    %c7 = arith.constant 7 : index
    %c0_232 = arith.constant 0 : index
    %191 = vector.load %arg10[%c0_230, %c0_231, %c7, %c0_232] : memref<2x8x8x128xf32, #tpu.memory_space<vmem>>, vector<2x1x1x128xf32>
    %192 = vector.shape_cast %191 : vector<2x1x1x128xf32> to vector<2x128xf32>
    %c0_233 = arith.constant 0 : index
    %c1_234 = arith.constant 1 : index
    %c6_235 = arith.constant 6 : index
    %c0_236 = arith.constant 0 : index
    %193 = vector.load %arg10[%c0_233, %c1_234, %c6_235, %c0_236] : memref<2x8x8x128xf32, #tpu.memory_space<vmem>>, vector<2x1x1x128xf32>
    %194 = vector.shape_cast %193 : vector<2x1x1x128xf32> to vector<2x128xf32>
    %c0_237 = arith.constant 0 : index
    %c1_238 = arith.constant 1 : index
    %c7_239 = arith.constant 7 : index
    %c0_240 = arith.constant 0 : index
    %195 = vector.load %arg10[%c0_237, %c1_238, %c7_239, %c0_240] : memref<2x8x8x128xf32, #tpu.memory_space<vmem>>, vector<2x1x1x128xf32>
    %196 = vector.shape_cast %195 : vector<2x1x1x128xf32> to vector<2x128xf32>
    %197 = arith.maximumf %190, %192 : vector<2x128xf32>
    %198 = arith.maximumf %194, %196 : vector<2x128xf32>
    %199 = arith.maximumf %197, %198 : vector<2x128xf32>
    %c0_241 = arith.constant 0 : index
    %c384_242 = arith.constant 384 : index
    %200 = vector.load %arg11[%c0_241, %c384_242] : memref<2x2048xf32, #tpu.memory_space<vmem>>, vector<2x128xf32>
    tpu.vector_store %arg11[%c0_241, %c384_242], %199 {strides = array<i32>} : memref<2x2048xf32, #tpu.memory_space<vmem>>, vector<2x128xf32>,
    %c0_243 = arith.constant 0 : index
    %c2_244 = arith.constant 2 : index
    %c0_245 = arith.constant 0 : index
    %c0_246 = arith.constant 0 : index
    %201 = vector.load %arg10[%c0_243, %c2_244, %c0_245, %c0_246] : memref<2x8x8x128xf32, #tpu.memory_space<vmem>>, vector<2x1x1x128xf32>
    %202 = vector.shape_cast %201 : vector<2x1x1x128xf32> to vector<2x128xf32>
    %c0_247 = arith.constant 0 : index
    %c2_248 = arith.constant 2 : index
    %c1_249 = arith.constant 1 : index
    %c0_250 = arith.constant 0 : index
    %203 = vector.load %arg10[%c0_247, %c2_248, %c1_249, %c0_250] : memref<2x8x8x128xf32, #tpu.memory_space<vmem>>, vector<2x1x1x128xf32>
    %204 = vector.shape_cast %203 : vector<2x1x1x128xf32> to vector<2x128xf32>
    %c0_251 = arith.constant 0 : index
    %c3_252 = arith.constant 3 : index
    %c0_253 = arith.constant 0 : index
    %c0_254 = arith.constant 0 : index
    %205 = vector.load %arg10[%c0_251, %c3_252, %c0_253, %c0_254] : memref<2x8x8x128xf32, #tpu.memory_space<vmem>>, vector<2x1x1x128xf32>
    %206 = vector.shape_cast %205 : vector<2x1x1x128xf32> to vector<2x128xf32>
    %c0_255 = arith.constant 0 : index
    %c3_256 = arith.constant 3 : index
    %c1_257 = arith.constant 1 : index
    %c0_258 = arith.constant 0 : index
    %207 = vector.load %arg10[%c0_255, %c3_256, %c1_257, %c0_258] : memref<2x8x8x128xf32, #tpu.memory_space<vmem>>, vector<2x1x1x128xf32>
    %208 = vector.shape_cast %207 : vector<2x1x1x128xf32> to vector<2x128xf32>
    %209 = arith.maximumf %202, %204 : vector<2x128xf32>
    %210 = arith.maximumf %206, %208 : vector<2x128xf32>
    %211 = arith.maximumf %209, %210 : vector<2x128xf32>
    %c0_259 = arith.constant 0 : index
    %c512_260 = arith.constant 512 : index
    %212 = vector.load %arg11[%c0_259, %c512_260] : memref<2x2048xf32, #tpu.memory_space<vmem>>, vector<2x128xf32>
    tpu.vector_store %arg11[%c0_259, %c512_260], %211 {strides = array<i32>} : memref<2x2048xf32, #tpu.memory_space<vmem>>, vector<2x128xf32>,
    %c0_261 = arith.constant 0 : index
    %c2_262 = arith.constant 2 : index
    %c2_263 = arith.constant 2 : index
    %c0_264 = arith.constant 0 : index
    %213 = vector.load %arg10[%c0_261, %c2_262, %c2_263, %c0_264] : memref<2x8x8x128xf32, #tpu.memory_space<vmem>>, vector<2x1x1x128xf32>
    %214 = vector.shape_cast %213 : vector<2x1x1x128xf32> to vector<2x128xf32>
    %c0_265 = arith.constant 0 : index
    %c2_266 = arith.constant 2 : index
    %c3_267 = arith.constant 3 : index
    %c0_268 = arith.constant 0 : index
    %215 = vector.load %arg10[%c0_265, %c2_266, %c3_267, %c0_268] : memref<2x8x8x128xf32, #tpu.memory_space<vmem>>, vector<2x1x1x128xf32>
    %216 = vector.shape_cast %215 : vector<2x1x1x128xf32> to vector<2x128xf32>
    %c0_269 = arith.constant 0 : index
    %c3_270 = arith.constant 3 : index
    %c2_271 = arith.constant 2 : index
    %c0_272 = arith.constant 0 : index
    %217 = vector.load %arg10[%c0_269, %c3_270, %c2_271, %c0_272] : memref<2x8x8x128xf32, #tpu.memory_space<vmem>>, vector<2x1x1x128xf32>
    %218 = vector.shape_cast %217 : vector<2x1x1x128xf32> to vector<2x128xf32>
    %c0_273 = arith.constant 0 : index
    %c3_274 = arith.constant 3 : index
    %c3_275 = arith.constant 3 : index
    %c0_276 = arith.constant 0 : index
    %219 = vector.load %arg10[%c0_273, %c3_274, %c3_275, %c0_276] : memref<2x8x8x128xf32, #tpu.memory_space<vmem>>, vector<2x1x1x128xf32>
    %220 = vector.shape_cast %219 : vector<2x1x1x128xf32> to vector<2x128xf32>
    %221 = arith.maximumf %214, %216 : vector<2x128xf32>
    %222 = arith.maximumf %218, %220 : vector<2x128xf32>
    %223 = arith.maximumf %221, %222 : vector<2x128xf32>
    %c0_277 = arith.constant 0 : index
    %c640_278 = arith.constant 640 : index
    %224 = vector.load %arg11[%c0_277, %c640_278] : memref<2x2048xf32, #tpu.memory_space<vmem>>, vector<2x128xf32>
    tpu.vector_store %arg11[%c0_277, %c640_278], %223 {strides = array<i32>} : memref<2x2048xf32, #tpu.memory_space<vmem>>, vector<2x128xf32>,
    %c0_279 = arith.constant 0 : index
    %c2_280 = arith.constant 2 : index
    %c4_281 = arith.constant 4 : index
    %c0_282 = arith.constant 0 : index
    %225 = vector.load %arg10[%c0_279, %c2_280, %c4_281, %c0_282] : memref<2x8x8x128xf32, #tpu.memory_space<vmem>>, vector<2x1x1x128xf32>
    %226 = vector.shape_cast %225 : vector<2x1x1x128xf32> to vector<2x128xf32>
    %c0_283 = arith.constant 0 : index
    %c2_284 = arith.constant 2 : index
    %c5_285 = arith.constant 5 : index
    %c0_286 = arith.constant 0 : index
    %227 = vector.load %arg10[%c0_283, %c2_284, %c5_285, %c0_286] : memref<2x8x8x128xf32, #tpu.memory_space<vmem>>, vector<2x1x1x128xf32>
    %228 = vector.shape_cast %227 : vector<2x1x1x128xf32> to vector<2x128xf32>
    %c0_287 = arith.constant 0 : index
    %c3_288 = arith.constant 3 : index
    %c4_289 = arith.constant 4 : index
    %c0_290 = arith.constant 0 : index
    %229 = vector.load %arg10[%c0_287, %c3_288, %c4_289, %c0_290] : memref<2x8x8x128xf32, #tpu.memory_space<vmem>>, vector<2x1x1x128xf32>
    %230 = vector.shape_cast %229 : vector<2x1x1x128xf32> to vector<2x128xf32>
    %c0_291 = arith.constant 0 : index
    %c3_292 = arith.constant 3 : index
    %c5_293 = arith.constant 5 : index
    %c0_294 = arith.constant 0 : index
    %231 = vector.load %arg10[%c0_291, %c3_292, %c5_293, %c0_294] : memref<2x8x8x128xf32, #tpu.memory_space<vmem>>, vector<2x1x1x128xf32>
    %232 = vector.shape_cast %231 : vector<2x1x1x128xf32> to vector<2x128xf32>
    %233 = arith.maximumf %226, %228 : vector<2x128xf32>
    %234 = arith.maximumf %230, %232 : vector<2x128xf32>
    %235 = arith.maximumf %233, %234 : vector<2x128xf32>
    %c0_295 = arith.constant 0 : index
    %c768_296 = arith.constant 768 : index
    %236 = vector.load %arg11[%c0_295, %c768_296] : memref<2x2048xf32, #tpu.memory_space<vmem>>, vector<2x128xf32>
    tpu.vector_store %arg11[%c0_295, %c768_296], %235 {strides = array<i32>} : memref<2x2048xf32, #tpu.memory_space<vmem>>, vector<2x128xf32>,
    %c0_297 = arith.constant 0 : index
    %c2_298 = arith.constant 2 : index
    %c6_299 = arith.constant 6 : index
    %c0_300 = arith.constant 0 : index
    %237 = vector.load %arg10[%c0_297, %c2_298, %c6_299, %c0_300] : memref<2x8x8x128xf32, #tpu.memory_space<vmem>>, vector<2x1x1x128xf32>
    %238 = vector.shape_cast %237 : vector<2x1x1x128xf32> to vector<2x128xf32>
    %c0_301 = arith.constant 0 : index
    %c2_302 = arith.constant 2 : index
    %c7_303 = arith.constant 7 : index
    %c0_304 = arith.constant 0 : index
    %239 = vector.load %arg10[%c0_301, %c2_302, %c7_303, %c0_304] : memref<2x8x8x128xf32, #tpu.memory_space<vmem>>, vector<2x1x1x128xf32>
    %240 = vector.shape_cast %239 : vector<2x1x1x128xf32> to vector<2x128xf32>
    %c0_305 = arith.constant 0 : index
    %c3_306 = arith.constant 3 : index
    %c6_307 = arith.constant 6 : index
    %c0_308 = arith.constant 0 : index
    %241 = vector.load %arg10[%c0_305, %c3_306, %c6_307, %c0_308] : memref<2x8x8x128xf32, #tpu.memory_space<vmem>>, vector<2x1x1x128xf32>
    %242 = vector.shape_cast %241 : vector<2x1x1x128xf32> to vector<2x128xf32>
    %c0_309 = arith.constant 0 : index
    %c3_310 = arith.constant 3 : index
    %c7_311 = arith.constant 7 : index
    %c0_312 = arith.constant 0 : index
    %243 = vector.load %arg10[%c0_309, %c3_310, %c7_311, %c0_312] : memref<2x8x8x128xf32, #tpu.memory_space<vmem>>, vector<2x1x1x128xf32>
    %244 = vector.shape_cast %243 : vector<2x1x1x128xf32> to vector<2x128xf32>
    %245 = arith.maximumf %238, %240 : vector<2x128xf32>
    %246 = arith.maximumf %242, %244 : vector<2x128xf32>
    %247 = arith.maximumf %245, %246 : vector<2x128xf32>
    %c0_313 = arith.constant 0 : index
    %c896_314 = arith.constant 896 : index
    %248 = vector.load %arg11[%c0_313, %c896_314] : memref<2x2048xf32, #tpu.memory_space<vmem>>, vector<2x128xf32>
    tpu.vector_store %arg11[%c0_313, %c896_314], %247 {strides = array<i32>} : memref<2x2048xf32, #tpu.memory_space<vmem>>, vector<2x128xf32>,
    %c0_315 = arith.constant 0 : index
    %c4_316 = arith.constant 4 : index
    %c0_317 = arith.constant 0 : index
    %c0_318 = arith.constant 0 : index
    %249 = vector.load %arg10[%c0_315, %c4_316, %c0_317, %c0_318] : memref<2x8x8x128xf32, #tpu.memory_space<vmem>>, vector<2x1x1x128xf32>
    %250 = vector.shape_cast %249 : vector<2x1x1x128xf32> to vector<2x128xf32>
    %c0_319 = arith.constant 0 : index
    %c4_320 = arith.constant 4 : index
    %c1_321 = arith.constant 1 : index
    %c0_322 = arith.constant 0 : index
    %251 = vector.load %arg10[%c0_319, %c4_320, %c1_321, %c0_322] : memref<2x8x8x128xf32, #tpu.memory_space<vmem>>, vector<2x1x1x128xf32>
    %252 = vector.shape_cast %251 : vector<2x1x1x128xf32> to vector<2x128xf32>
    %c0_323 = arith.constant 0 : index
    %c5_324 = arith.constant 5 : index
    %c0_325 = arith.constant 0 : index
    %c0_326 = arith.constant 0 : index
    %253 = vector.load %arg10[%c0_323, %c5_324, %c0_325, %c0_326] : memref<2x8x8x128xf32, #tpu.memory_space<vmem>>, vector<2x1x1x128xf32>
    %254 = vector.shape_cast %253 : vector<2x1x1x128xf32> to vector<2x128xf32>
    %c0_327 = arith.constant 0 : index
    %c5_328 = arith.constant 5 : index
    %c1_329 = arith.constant 1 : index
    %c0_330 = arith.constant 0 : index
    %255 = vector.load %arg10[%c0_327, %c5_328, %c1_329, %c0_330] : memref<2x8x8x128xf32, #tpu.memory_space<vmem>>, vector<2x1x1x128xf32>
    %256 = vector.shape_cast %255 : vector<2x1x1x128xf32> to vector<2x128xf32>
    %257 = arith.maximumf %250, %252 : vector<2x128xf32>
    %258 = arith.maximumf %254, %256 : vector<2x128xf32>
    %259 = arith.maximumf %257, %258 : vector<2x128xf32>
    %c0_331 = arith.constant 0 : index
    %c1024_332 = arith.constant 1024 : index
    %260 = vector.load %arg11[%c0_331, %c1024_332] : memref<2x2048xf32, #tpu.memory_space<vmem>>, vector<2x128xf32>
    tpu.vector_store %arg11[%c0_331, %c1024_332], %259 {strides = array<i32>} : memref<2x2048xf32, #tpu.memory_space<vmem>>, vector<2x128xf32>,
    %c0_333 = arith.constant 0 : index
    %c4_334 = arith.constant 4 : index
    %c2_335 = arith.constant 2 : index
    %c0_336 = arith.constant 0 : index
    %261 = vector.load %arg10[%c0_333, %c4_334, %c2_335, %c0_336] : memref<2x8x8x128xf32, #tpu.memory_space<vmem>>, vector<2x1x1x128xf32>
    %262 = vector.shape_cast %261 : vector<2x1x1x128xf32> to vector<2x128xf32>
    %c0_337 = arith.constant 0 : index
    %c4_338 = arith.constant 4 : index
    %c3_339 = arith.constant 3 : index
    %c0_340 = arith.constant 0 : index
    %263 = vector.load %arg10[%c0_337, %c4_338, %c3_339, %c0_340] : memref<2x8x8x128xf32, #tpu.memory_space<vmem>>, vector<2x1x1x128xf32>
    %264 = vector.shape_cast %263 : vector<2x1x1x128xf32> to vector<2x128xf32>
    %c0_341 = arith.constant 0 : index
    %c5_342 = arith.constant 5 : index
    %c2_343 = arith.constant 2 : index
    %c0_344 = arith.constant 0 : index
    %265 = vector.load %arg10[%c0_341, %c5_342, %c2_343, %c0_344] : memref<2x8x8x128xf32, #tpu.memory_space<vmem>>, vector<2x1x1x128xf32>
    %266 = vector.shape_cast %265 : vector<2x1x1x128xf32> to vector<2x128xf32>
    %c0_345 = arith.constant 0 : index
    %c5_346 = arith.constant 5 : index
    %c3_347 = arith.constant 3 : index
    %c0_348 = arith.constant 0 : index
    %267 = vector.load %arg10[%c0_345, %c5_346, %c3_347, %c0_348] : memref<2x8x8x128xf32, #tpu.memory_space<vmem>>, vector<2x1x1x128xf32>
    %268 = vector.shape_cast %267 : vector<2x1x1x128xf32> to vector<2x128xf32>
    %269 = arith.maximumf %262, %264 : vector<2x128xf32>
    %270 = arith.maximumf %266, %268 : vector<2x128xf32>
    %271 = arith.maximumf %269, %270 : vector<2x128xf32>
    %c0_349 = arith.constant 0 : index
    %c1152_350 = arith.constant 1152 : index
    %272 = vector.load %arg11[%c0_349, %c1152_350] : memref<2x2048xf32, #tpu.memory_space<vmem>>, vector<2x128xf32>
    tpu.vector_store %arg11[%c0_349, %c1152_350], %271 {strides = array<i32>} : memref<2x2048xf32, #tpu.memory_space<vmem>>, vector<2x128xf32>,
    %c0_351 = arith.constant 0 : index
    %c4_352 = arith.constant 4 : index
    %c4_353 = arith.constant 4 : index
    %c0_354 = arith.constant 0 : index
    %273 = vector.load %arg10[%c0_351, %c4_352, %c4_353, %c0_354] : memref<2x8x8x128xf32, #tpu.memory_space<vmem>>, vector<2x1x1x128xf32>
    %274 = vector.shape_cast %273 : vector<2x1x1x128xf32> to vector<2x128xf32>
    %c0_355 = arith.constant 0 : index
    %c4_356 = arith.constant 4 : index
    %c5_357 = arith.constant 5 : index
    %c0_358 = arith.constant 0 : index
    %275 = vector.load %arg10[%c0_355, %c4_356, %c5_357, %c0_358] : memref<2x8x8x128xf32, #tpu.memory_space<vmem>>, vector<2x1x1x128xf32>
    %276 = vector.shape_cast %275 : vector<2x1x1x128xf32> to vector<2x128xf32>
    %c0_359 = arith.constant 0 : index
    %c5_360 = arith.constant 5 : index
    %c4_361 = arith.constant 4 : index
    %c0_362 = arith.constant 0 : index
    %277 = vector.load %arg10[%c0_359, %c5_360, %c4_361, %c0_362] : memref<2x8x8x128xf32, #tpu.memory_space<vmem>>, vector<2x1x1x128xf32>
    %278 = vector.shape_cast %277 : vector<2x1x1x128xf32> to vector<2x128xf32>
    %c0_363 = arith.constant 0 : index
    %c5_364 = arith.constant 5 : index
    %c5_365 = arith.constant 5 : index
    %c0_366 = arith.constant 0 : index
    %279 = vector.load %arg10[%c0_363, %c5_364, %c5_365, %c0_366] : memref<2x8x8x128xf32, #tpu.memory_space<vmem>>, vector<2x1x1x128xf32>
    %280 = vector.shape_cast %279 : vector<2x1x1x128xf32> to vector<2x128xf32>
    %281 = arith.maximumf %274, %276 : vector<2x128xf32>
    %282 = arith.maximumf %278, %280 : vector<2x128xf32>
    %283 = arith.maximumf %281, %282 : vector<2x128xf32>
    %c0_367 = arith.constant 0 : index
    %c1280_368 = arith.constant 1280 : index
    %284 = vector.load %arg11[%c0_367, %c1280_368] : memref<2x2048xf32, #tpu.memory_space<vmem>>, vector<2x128xf32>
    tpu.vector_store %arg11[%c0_367, %c1280_368], %283 {strides = array<i32>} : memref<2x2048xf32, #tpu.memory_space<vmem>>, vector<2x128xf32>,
    %c0_369 = arith.constant 0 : index
    %c4_370 = arith.constant 4 : index
    %c6_371 = arith.constant 6 : index
    %c0_372 = arith.constant 0 : index
    %285 = vector.load %arg10[%c0_369, %c4_370, %c6_371, %c0_372] : memref<2x8x8x128xf32, #tpu.memory_space<vmem>>, vector<2x1x1x128xf32>
    %286 = vector.shape_cast %285 : vector<2x1x1x128xf32> to vector<2x128xf32>
    %c0_373 = arith.constant 0 : index
    %c4_374 = arith.constant 4 : index
    %c7_375 = arith.constant 7 : index
    %c0_376 = arith.constant 0 : index
    %287 = vector.load %arg10[%c0_373, %c4_374, %c7_375, %c0_376] : memref<2x8x8x128xf32, #tpu.memory_space<vmem>>, vector<2x1x1x128xf32>
    %288 = vector.shape_cast %287 : vector<2x1x1x128xf32> to vector<2x128xf32>
    %c0_377 = arith.constant 0 : index
    %c5_378 = arith.constant 5 : index
    %c6_379 = arith.constant 6 : index
    %c0_380 = arith.constant 0 : index
    %289 = vector.load %arg10[%c0_377, %c5_378, %c6_379, %c0_380] : memref<2x8x8x128xf32, #tpu.memory_space<vmem>>, vector<2x1x1x128xf32>
    %290 = vector.shape_cast %289 : vector<2x1x1x128xf32> to vector<2x128xf32>
    %c0_381 = arith.constant 0 : index
    %c5_382 = arith.constant 5 : index
    %c7_383 = arith.constant 7 : index
    %c0_384 = arith.constant 0 : index
    %291 = vector.load %arg10[%c0_381, %c5_382, %c7_383, %c0_384] : memref<2x8x8x128xf32, #tpu.memory_space<vmem>>, vector<2x1x1x128xf32>
    %292 = vector.shape_cast %291 : vector<2x1x1x128xf32> to vector<2x128xf32>
    %293 = arith.maximumf %286, %288 : vector<2x128xf32>
    %294 = arith.maximumf %290, %292 : vector<2x128xf32>
    %295 = arith.maximumf %293, %294 : vector<2x128xf32>
    %c0_385 = arith.constant 0 : index
    %c1408_386 = arith.constant 1408 : index
    %296 = vector.load %arg11[%c0_385, %c1408_386] : memref<2x2048xf32, #tpu.memory_space<vmem>>, vector<2x128xf32>
    tpu.vector_store %arg11[%c0_385, %c1408_386], %295 {strides = array<i32>} : memref<2x2048xf32, #tpu.memory_space<vmem>>, vector<2x128xf32>,
    %c0_387 = arith.constant 0 : index
    %c6_388 = arith.constant 6 : index
    %c0_389 = arith.constant 0 : index
    %c0_390 = arith.constant 0 : index
    %297 = vector.load %arg10[%c0_387, %c6_388, %c0_389, %c0_390] : memref<2x8x8x128xf32, #tpu.memory_space<vmem>>, vector<2x1x1x128xf32>
    %298 = vector.shape_cast %297 : vector<2x1x1x128xf32> to vector<2x128xf32>
    %c0_391 = arith.constant 0 : index
    %c6_392 = arith.constant 6 : index
    %c1_393 = arith.constant 1 : index
    %c0_394 = arith.constant 0 : index
    %299 = vector.load %arg10[%c0_391, %c6_392, %c1_393, %c0_394] : memref<2x8x8x128xf32, #tpu.memory_space<vmem>>, vector<2x1x1x128xf32>
    %300 = vector.shape_cast %299 : vector<2x1x1x128xf32> to vector<2x128xf32>
    %c0_395 = arith.constant 0 : index
    %c7_396 = arith.constant 7 : index
    %c0_397 = arith.constant 0 : index
    %c0_398 = arith.constant 0 : index
    %301 = vector.load %arg10[%c0_395, %c7_396, %c0_397, %c0_398] : memref<2x8x8x128xf32, #tpu.memory_space<vmem>>, vector<2x1x1x128xf32>
    %302 = vector.shape_cast %301 : vector<2x1x1x128xf32> to vector<2x128xf32>
    %c0_399 = arith.constant 0 : index
    %c7_400 = arith.constant 7 : index
    %c1_401 = arith.constant 1 : index
    %c0_402 = arith.constant 0 : index
    %303 = vector.load %arg10[%c0_399, %c7_400, %c1_401, %c0_402] : memref<2x8x8x128xf32, #tpu.memory_space<vmem>>, vector<2x1x1x128xf32>
    %304 = vector.shape_cast %303 : vector<2x1x1x128xf32> to vector<2x128xf32>
    %305 = arith.maximumf %298, %300 : vector<2x128xf32>
    %306 = arith.maximumf %302, %304 : vector<2x128xf32>
    %307 = arith.maximumf %305, %306 : vector<2x128xf32>
    %c0_403 = arith.constant 0 : index
    %c1536_404 = arith.constant 1536 : index
    %308 = vector.load %arg11[%c0_403, %c1536_404] : memref<2x2048xf32, #tpu.memory_space<vmem>>, vector<2x128xf32>
    tpu.vector_store %arg11[%c0_403, %c1536_404], %307 {strides = array<i32>} : memref<2x2048xf32, #tpu.memory_space<vmem>>, vector<2x128xf32>,
    %c0_405 = arith.constant 0 : index
    %c6_406 = arith.constant 6 : index
    %c2_407 = arith.constant 2 : index
    %c0_408 = arith.constant 0 : index
    %309 = vector.load %arg10[%c0_405, %c6_406, %c2_407, %c0_408] : memref<2x8x8x128xf32, #tpu.memory_space<vmem>>, vector<2x1x1x128xf32>
    %310 = vector.shape_cast %309 : vector<2x1x1x128xf32> to vector<2x128xf32>
    %c0_409 = arith.constant 0 : index
    %c6_410 = arith.constant 6 : index
    %c3_411 = arith.constant 3 : index
    %c0_412 = arith.constant 0 : index
    %311 = vector.load %arg10[%c0_409, %c6_410, %c3_411, %c0_412] : memref<2x8x8x128xf32, #tpu.memory_space<vmem>>, vector<2x1x1x128xf32>
    %312 = vector.shape_cast %311 : vector<2x1x1x128xf32> to vector<2x128xf32>
    %c0_413 = arith.constant 0 : index
    %c7_414 = arith.constant 7 : index
    %c2_415 = arith.constant 2 : index
    %c0_416 = arith.constant 0 : index
    %313 = vector.load %arg10[%c0_413, %c7_414, %c2_415, %c0_416] : memref<2x8x8x128xf32, #tpu.memory_space<vmem>>, vector<2x1x1x128xf32>
    %314 = vector.shape_cast %313 : vector<2x1x1x128xf32> to vector<2x128xf32>
    %c0_417 = arith.constant 0 : index
    %c7_418 = arith.constant 7 : index
    %c3_419 = arith.constant 3 : index
    %c0_420 = arith.constant 0 : index
    %315 = vector.load %arg10[%c0_417, %c7_418, %c3_419, %c0_420] : memref<2x8x8x128xf32, #tpu.memory_space<vmem>>, vector<2x1x1x128xf32>
    %316 = vector.shape_cast %315 : vector<2x1x1x128xf32> to vector<2x128xf32>
    %317 = arith.maximumf %310, %312 : vector<2x128xf32>
    %318 = arith.maximumf %314, %316 : vector<2x128xf32>
    %319 = arith.maximumf %317, %318 : vector<2x128xf32>
    %c0_421 = arith.constant 0 : index
    %c1664_422 = arith.constant 1664 : index
    %320 = vector.load %arg11[%c0_421, %c1664_422] : memref<2x2048xf32, #tpu.memory_space<vmem>>, vector<2x128xf32>
    tpu.vector_store %arg11[%c0_421, %c1664_422], %319 {strides = array<i32>} : memref<2x2048xf32, #tpu.memory_space<vmem>>, vector<2x128xf32>,
    %c0_423 = arith.constant 0 : index
    %c6_424 = arith.constant 6 : index
    %c4_425 = arith.constant 4 : index
    %c0_426 = arith.constant 0 : index
    %321 = vector.load %arg10[%c0_423, %c6_424, %c4_425, %c0_426] : memref<2x8x8x128xf32, #tpu.memory_space<vmem>>, vector<2x1x1x128xf32>
    %322 = vector.shape_cast %321 : vector<2x1x1x128xf32> to vector<2x128xf32>
    %c0_427 = arith.constant 0 : index
    %c6_428 = arith.constant 6 : index
    %c5_429 = arith.constant 5 : index
    %c0_430 = arith.constant 0 : index
    %323 = vector.load %arg10[%c0_427, %c6_428, %c5_429, %c0_430] : memref<2x8x8x128xf32, #tpu.memory_space<vmem>>, vector<2x1x1x128xf32>
    %324 = vector.shape_cast %323 : vector<2x1x1x128xf32> to vector<2x128xf32>
    %c0_431 = arith.constant 0 : index
    %c7_432 = arith.constant 7 : index
    %c4_433 = arith.constant 4 : index
    %c0_434 = arith.constant 0 : index
    %325 = vector.load %arg10[%c0_431, %c7_432, %c4_433, %c0_434] : memref<2x8x8x128xf32, #tpu.memory_space<vmem>>, vector<2x1x1x128xf32>
    %326 = vector.shape_cast %325 : vector<2x1x1x128xf32> to vector<2x128xf32>
    %c0_435 = arith.constant 0 : index
    %c7_436 = arith.constant 7 : index
    %c5_437 = arith.constant 5 : index
    %c0_438 = arith.constant 0 : index
    %327 = vector.load %arg10[%c0_435, %c7_436, %c5_437, %c0_438] : memref<2x8x8x128xf32, #tpu.memory_space<vmem>>, vector<2x1x1x128xf32>
    %328 = vector.shape_cast %327 : vector<2x1x1x128xf32> to vector<2x128xf32>
    %329 = arith.maximumf %322, %324 : vector<2x128xf32>
    %330 = arith.maximumf %326, %328 : vector<2x128xf32>
    %331 = arith.maximumf %329, %330 : vector<2x128xf32>
    %c0_439 = arith.constant 0 : index
    %c1792_440 = arith.constant 1792 : index
    %332 = vector.load %arg11[%c0_439, %c1792_440] : memref<2x2048xf32, #tpu.memory_space<vmem>>, vector<2x128xf32>
    tpu.vector_store %arg11[%c0_439, %c1792_440], %331 {strides = array<i32>} : memref<2x2048xf32, #tpu.memory_space<vmem>>, vector<2x128xf32>,
    %c0_441 = arith.constant 0 : index
    %c6_442 = arith.constant 6 : index
    %c6_443 = arith.constant 6 : index
    %c0_444 = arith.constant 0 : index
    %333 = vector.load %arg10[%c0_441, %c6_442, %c6_443, %c0_444] : memref<2x8x8x128xf32, #tpu.memory_space<vmem>>, vector<2x1x1x128xf32>
    %334 = vector.shape_cast %333 : vector<2x1x1x128xf32> to vector<2x128xf32>
    %c0_445 = arith.constant 0 : index
    %c6_446 = arith.constant 6 : index
    %c7_447 = arith.constant 7 : index
    %c0_448 = arith.constant 0 : index
    %335 = vector.load %arg10[%c0_445, %c6_446, %c7_447, %c0_448] : memref<2x8x8x128xf32, #tpu.memory_space<vmem>>, vector<2x1x1x128xf32>
    %336 = vector.shape_cast %335 : vector<2x1x1x128xf32> to vector<2x128xf32>
    %c0_449 = arith.constant 0 : index
    %c7_450 = arith.constant 7 : index
    %c6_451 = arith.constant 6 : index
    %c0_452 = arith.constant 0 : index
    %337 = vector.load %arg10[%c0_449, %c7_450, %c6_451, %c0_452] : memref<2x8x8x128xf32, #tpu.memory_space<vmem>>, vector<2x1x1x128xf32>
    %338 = vector.shape_cast %337 : vector<2x1x1x128xf32> to vector<2x128xf32>
    %c0_453 = arith.constant 0 : index
    %c7_454 = arith.constant 7 : index
    %c7_455 = arith.constant 7 : index
    %c0_456 = arith.constant 0 : index
    %339 = vector.load %arg10[%c0_453, %c7_454, %c7_455, %c0_456] : memref<2x8x8x128xf32, #tpu.memory_space<vmem>>, vector<2x1x1x128xf32>
    %340 = vector.shape_cast %339 : vector<2x1x1x128xf32> to vector<2x128xf32>
    %341 = arith.maximumf %334, %336 : vector<2x128xf32>
    %342 = arith.maximumf %338, %340 : vector<2x128xf32>
    %343 = arith.maximumf %341, %342 : vector<2x128xf32>
    %c0_457 = arith.constant 0 : index
    %c1920_458 = arith.constant 1920 : index
    %344 = vector.load %arg11[%c0_457, %c1920_458] : memref<2x2048xf32, #tpu.memory_space<vmem>>, vector<2x128xf32>
    tpu.vector_store %arg11[%c0_457, %c1920_458], %343 {strides = array<i32>} : memref<2x2048xf32, #tpu.memory_space<vmem>>, vector<2x128xf32>,
    %c0_459 = arith.constant 0 : index
    %c0_460 = arith.constant 0 : index
    %345 = vector.load %arg11[%c0_459, %c0_460] : memref<2x2048xf32, #tpu.memory_space<vmem>>, vector<2x2048xf32>
    %c3328 = arith.constant 3328 : index
    %c0_461 = arith.constant 0 : index
    %346 = vector.load %arg1[%c3328, %c0_461] : memref<5632x128xbf16, #tpu.memory_space<vmem>>, vector<2048x128xbf16>
    %347 = arith.extf %346 : vector<2048x128xbf16> to vector<2048x128xf32>
    %cst_462 = arith.constant dense<0.000000e+00> : vector<2x128xf32>
    %348 = tpu.matmul %345, %347, %cst_462 {dimension_numbers = #tpu.dot_dimension_numbers<[1], [0], [0], [1], [0, 0, 1, 1], [], []>} : vector<2x2048xf32>, vector<2048x128xf32>, vector<2x128xf32> -> vector<2x128xf32>
    %c6_463 = arith.constant 6 : index
    %c0_464 = arith.constant 0 : index
    %349 = vector.load %arg2[%c6_463, %c0_464] : memref<16x128xf32, #tpu.memory_space<vmem>>, vector<1x128xf32>
    %350 = vector.broadcast %349 : vector<1x128xf32> to vector<2x128xf32>
    %351 = arith.addf %348, %350 : vector<2x128xf32>
    %cst_465 = arith.constant 0.000000e+00 : f32
    %352 = vector.broadcast %cst_465 : f32 to vector<2x128xf32>
    %353 = arith.maximumf %351, %352 : vector<2x128xf32>
    %c5376 = arith.constant 5376 : index
    %c0_466 = arith.constant 0 : index
    %354 = vector.load %arg1[%c5376, %c0_466] : memref<5632x128xbf16, #tpu.memory_space<vmem>>, vector<128x128xbf16>
    %355 = arith.extf %354 : vector<128x128xbf16> to vector<128x128xf32>
    %cst_467 = arith.constant dense<0.000000e+00> : vector<2x128xf32>
    %356 = tpu.matmul %353, %355, %cst_467 {dimension_numbers = #tpu.dot_dimension_numbers<[1], [0], [0], [1], [0, 0, 1, 1], [], []>} : vector<2x128xf32>, vector<128x128xf32>, vector<2x128xf32> -> vector<2x128xf32>
    %c7_468 = arith.constant 7 : index
    %c0_469 = arith.constant 0 : index
    %357 = vector.load %arg2[%c7_468, %c0_469] : memref<16x128xf32, #tpu.memory_space<vmem>>, vector<1x128xf32>
    %358 = vector.broadcast %357 : vector<1x128xf32> to vector<2x128xf32>
    %359 = arith.addf %356, %358 : vector<2x128xf32>
    %cst_470 = arith.constant 0.000000e+00 : f32
    %360 = vector.broadcast %cst_470 : f32 to vector<2x128xf32>
    %361 = arith.maximumf %359, %360 : vector<2x128xf32>
    %c5504 = arith.constant 5504 : index
    %c0_471 = arith.constant 0 : index
    %362 = vector.load %arg1[%c5504, %c0_471] : memref<5632x128xbf16, #tpu.memory_space<vmem>>, vector<128x128xbf16>
    %363 = arith.extf %362 : vector<128x128xbf16> to vector<128x128xf32>
    %cst_472 = arith.constant dense<0.000000e+00> : vector<2x128xf32>
    %364 = tpu.matmul %361, %363, %cst_472 {dimension_numbers = #tpu.dot_dimension_numbers<[1], [0], [0], [1], [0, 0, 1, 1], [], []>} : vector<2x128xf32>, vector<128x128xf32>, vector<2x128xf32> -> vector<2x128xf32>
    %c8 = arith.constant 8 : index
    %c0_473 = arith.constant 0 : index
    %365 = vector.load %arg2[%c8, %c0_473] : memref<16x128xf32, #tpu.memory_space<vmem>>, vector<1x128xf32>
    %366 = vector.broadcast %365 : vector<1x128xf32> to vector<2x128xf32>
    %367 = arith.addf %364, %366 : vector<2x128xf32>
    %368 = vector.extract_strided_slice %367 {offsets = [0, 0], sizes = [2, 64], strides = [1, 1]} : vector<2x128xf32> to vector<2x64xf32>
    %369 = vector.extract_strided_slice %367 {offsets = [0, 64], sizes = [2, 64], strides = [1, 1]} : vector<2x128xf32> to vector<2x64xf32>
    %c0_474 = arith.constant 0 : index
    %c0_475 = arith.constant 0 : index
    %370 = vector.load %arg3[%c0_474, %c0_475] : memref<2x64xf32, #tpu.memory_space<vmem>>, vector<2x64xf32>
    %cst_476 = arith.constant 5.000000e-01 : f32
    %371 = vector.broadcast %cst_476 : f32 to vector<2x64xf32>
    %372 = arith.mulf %371, %369 : vector<2x64xf32>
    %373 = math.exp %372 : vector<2x64xf32>
    %374 = arith.mulf %370, %373 : vector<2x64xf32>
    %375 = arith.addf %368, %374 : vector<2x64xf32>
    %c0_477 = arith.constant 0 : index
    %c0_478 = arith.constant 0 : index
    %376 = vector.load %arg4[%c0_477, %c0_478] : memref<2x64xf32, #tpu.memory_space<vmem>>, vector<2x64xf32>
    tpu.vector_store %arg4[%c0_477, %c0_478], %375 {strides = array<i32>} : memref<2x64xf32, #tpu.memory_space<vmem>>, vector<2x64xf32>,
    %c0_479 = arith.constant 0 : index
    %c0_480 = arith.constant 0 : index
    %377 = vector.load %arg5[%c0_479, %c0_480] : memref<2x64xf32, #tpu.memory_space<vmem>>, vector<2x64xf32>
    tpu.vector_store %arg5[%c0_479, %c0_480], %368 {strides = array<i32>} : memref<2x64xf32, #tpu.memory_space<vmem>>, vector<2x64xf32>,
    %c0_481 = arith.constant 0 : index
    %c0_482 = arith.constant 0 : index
    %378 = vector.load %arg6[%c0_481, %c0_482] : memref<2x64xf32, #tpu.memory_space<vmem>>, vector<2x64xf32>
    tpu.vector_store %arg6[%c0_481, %c0_482], %369 {strides = array<i32>} : memref<2x64xf32, #tpu.memory_space<vmem>>, vector<2x64xf32>,
    return
  }
}

</mosaic_0001>

<bundles_post_ra>
// kernel: vae_encoder_env1_forward.1
= control target key start
LH: loop header
LB: loop body
LE: loop exit
PB: predicated region body
PF: predicated region fallthrough
CT: control target
= control target key end

     0   :  { %12 = vsyncpa [#allocation8], 0  ;;  %s14204_s0 = inlined_call_operand.vmem [shape: f32[1152,128], index: 0, kind: input, shape index: {}]   ;;  %s14205_s1 = inlined_call_operand.vmem [shape: bf16[5632,128], index: 1, kind: input, shape index: {}]   ;;  %s14206_s2 = inlined_call_operand.vmem [shape: f32[16,128], index: 2, kind: input, shape index: {}]   ;;  %s14207_s3 = inlined_call_operand.vmem [shape: f32[2,64], index: 3, kind: input, shape index: {}]   ;;  %s14208_s4 = inlined_call_operand.hbm [shape: f32[2,64], index: 4, kind: output, shape index: {0}]   ;;  %s14209_s5 = inlined_call_operand.hbm [shape: f32[2,64], index: 5, kind: output, shape index: {1}]   ;;  %s14210_s6 = inlined_call_operand.hbm [shape: f32[2,64], index: 6, kind: output, shape index: {2}]  }
   0x1   :  { %v8920_v0 = vld [vmem:[%s14205_s1 + $0x38] sm:$0xff]   ;;  %v8919_v1 = vld [vmem:[%s14205_s1 + $0x30] sm:$0xff]   ;;  %v8918_v5 = vld [vmem:[%s14205_s1 + $0x28] sm:$0xff]  }
   0x2   :  { %v7537_v2 = vunpack.c.h.bf16 %v8920_v0  ;;  %v7536_v3 = vunpack.c.l.bf16 %v8920_v0  ;;  %v7533_v4 = vunpack.c.h.bf16 %v8919_v1  ;;  %v7532_v6 = vunpack.c.l.bf16 %v8919_v1 }
   0x4   :  { %202 = vmatpush.msra.mxu0 %v7537_v2 }
   0x6   :  { %203 = vmatpush.msra.mxu0 %v7536_v3 }
   0x7   :  { %13 = vsyncpa [#allocation10], 0  ;;  %v7529_v7 = vunpack.c.h.bf16 %v8918_v5  ;;  %v8917_v8 = vld [vmem:[%s14205_s1 + $0x20] sm:$0xff]   ;;  %v7528_v9 = vunpack.c.l.bf16 %v8918_v5  ;;  %v8916_v11 = vld [vmem:[%s14205_s1 + $0x18] sm:$0xff]   ;;  %vm6061_vm6 = vcmask 1041409   ;;  %vm6063_vm7 = vcmask 1043459  }
   0x8   :  { %204 = vmatpush.msra.mxu0 %v7533_v4  ;;  %v7525_v10 = vunpack.c.h.bf16 %v8917_v8  ;;  %v7524_v12 = vunpack.c.l.bf16 %v8917_v8  ;;  %v7521_v13 = vunpack.c.h.bf16 %v8916_v11  ;;  %v8915_v14 = vld [vmem:[%s14205_s1 + $0x10] sm:$0xff]   ;;  %v7520_v15 = vunpack.c.l.bf16 %v8916_v11  ;;  %v8914_v17 = vld [vmem:[%s14205_s1 + $0x8] sm:$0xff]   ;;  %v7507_v20 = vld [vmem:[%s14205_s1] sm:$0xff]   ;;  %s9374_s20 = smov [#allocation9]   ;;  %s7477_s24 = sshll.u32 %s14209_s5, 4  ;;  %s7478_s24 = int_to_ptr.hbm [resolvable:$true] %s7477_s24 }
   0x9   :  { %v7517_v16 = vunpack.c.h.bf16 %v8915_v14  ;;  %v7516_v18 = vunpack.c.l.bf16 %v8915_v14  ;;  %v7513_v19 = vunpack.c.h.bf16 %v8914_v17  ;;  %v7512_v21 = vunpack.c.l.bf16 %v8914_v17  ;;  %v22_v24 = vld [vmem:[%s14204_s0] sm:$0xff]  ;;  %v23_v25 = vld [vmem:[%s14204_s0 + $0x8] sm:$0xff]  ;;  %v24_v26 = vld [vmem:[%s14204_s0 + $0x10] sm:$0xff]  ;;  %s7475_s21 = sshll.u32 %s9374_s20, 4  ;;  %s9375_s26 = smov [#allocation7]   ;;  %s7476_s21 = int_to_ptr.vmem [resolvable:$true] %s7475_s21 }
   0xa   :  { %205 = vmatpush.msra.mxu0 %v7532_v6  ;;  %v7509_v22 = vunpack.c.h.bf16 %v7507_v20  ;;  %v7508_v23 = vunpack.c.l.bf16 %v7507_v20  ;;  %v25_v27 = vld [vmem:[%s14204_s0 + $0x18] sm:$0xff]  ;;  %v26_v28 = vld [vmem:[%s14204_s0 + $0x20] sm:$0xff]  ;;  %v27_v29 = vld [vmem:[%s14204_s0 + $0x28] sm:$0xff]  ;;  %vm6065_vm8 = vcmask 1045509   ;;  %vm6067_vm9 = vcmask 1047559   ;;  %s7464_s27 = sshll.u32 %s9375_s26, 4  ;;  %s7465_s27 = int_to_ptr.vmem [resolvable:$true] %s7464_s27 }
   0xb   :  { %v28_v30 = vld [vmem:[%s14204_s0 + $0x30] sm:$0xff]  ;;  %v29_v31 = vld [vmem:[%s14204_s0 + $0x38] sm:$0xff]  ;;  %v30_v32 = vld [vmem:[%s14204_s0 + $0x40] sm:$0xff]  ;;  %vm7451_vm10 = vcmask 517120   ;;  %s7466_s30 = sshll.u32 %s14208_s4, 4  ;;  %s9376_s5 = smov [#allocation11]   ;;  %s7467_s30 = int_to_ptr.hbm [resolvable:$true] %s7466_s30 }
   0xc   :  { %206 = vmatpush.msra.mxu0 %v7529_v7  ;;  %v31_v33 = vld [vmem:[%s14204_s0 + $0x48] sm:$0xff]  ;;  %v32_v34 = vld [vmem:[%s14204_s0 + $0x50] sm:$0xff]  ;;  %v33_v35 = vld [vmem:[%s14204_s0 + $0x58] sm:$0xff]  ;;  %s7486_s7 = sshll.u32 %s9376_s5, 4  ;;  %s7488_s10 = sshll.u32 %s14210_s6, 4  ;;  %s7487_s7 = int_to_ptr.vmem [resolvable:$true] %s7486_s7  ;;  %s7489_s10 = int_to_ptr.hbm [resolvable:$true] %s7488_s10 }
   0xd   :  { %v34_v36 = vld [vmem:[%s14204_s0 + $0x60] sm:$0xff]  ;;  %v35_v37 = vld [vmem:[%s14204_s0 + $0x68] sm:$0xff]  ;;  %v36_v38 = vld [vmem:[%s14204_s0 + $0x70] sm:$0xff] }
   0xe   :  { %207 = vmatpush.msra.mxu0 %v7528_v9  ;;  %v37_v39 = vld [vmem:[%s14204_s0 + $0x78] sm:$0xff]  ;;  %v38_v41 = vld [vmem:[%s14204_s0 + $0x80] sm:$0xff]  ;;  %v39_v43 = vld [vmem:[%s14204_s0 + $0x88] sm:$0xff] }
   0xf   :  { %v40_v45 = vld [vmem:[%s14204_s0 + $0x90] sm:$0xff]  ;;  %v41_v47 = vld [vmem:[%s14204_s0 + $0x98] sm:$0xff]  ;;  %v42_v49 = vld [vmem:[%s14204_s0 + $0xa0] sm:$0xff] }
  0x10   :  { %208 = vmatpush.msra.mxu0 %v7525_v10  ;;  %v43_v51 = vld [vmem:[%s14204_s0 + $0xa8] sm:$0xff]  ;;  %v44_v53 = vld [vmem:[%s14204_s0 + $0xb0] sm:$0xff]  ;;  %v45_v55 = vld [vmem:[%s14204_s0 + $0xb8] sm:$0xff] }
  0x11   :  { %v46_v57 = vld [vmem:[%s14204_s0 + $0xc0] sm:$0xff]  ;;  %v47_v59 = vld [vmem:[%s14204_s0 + $0xc8] sm:$0xff]  ;;  %v48_v61 = vld [vmem:[%s14204_s0 + $0xd0] sm:$0xff] }
  0x12   :  { %209 = vmatpush.msra.mxu0 %v7524_v12  ;;  %v49_v63 = vld [vmem:[%s14204_s0 + $0xd8] sm:$0xff]  ;;  %v50_v1 = vld [vmem:[%s14204_s0 + $0xe0] sm:$0xff]  ;;  %v51_v3 = vld [vmem:[%s14204_s0 + $0xe8] sm:$0xff] }
  0x13   :  { %v52_v5 = vld [vmem:[%s14204_s0 + $0xf0] sm:$0xff]  ;;  %v53_v7 = vld [vmem:[%s14204_s0 + $0xf8] sm:$0xff]  ;;  %v54_v9 = vld [vmem:[%s14204_s0 + $0x100] sm:$0xff] }
  0x14   :  { %210 = vmatpush.msra.mxu0 %v7521_v13  ;;  %v55_v11 = vld [vmem:[%s14204_s0 + $0x108] sm:$0xff]  ;;  %v56_v13 = vld [vmem:[%s14204_s0 + $0x110] sm:$0xff]  ;;  %v58_v17 = vld [vmem:[%s14204_s0 + $0x120] sm:$0xff] }
  0x16   :  { %211 = vmatpush.msra.mxu0 %v7520_v15  ;;  %v57_v15 = vld [vmem:[%s14204_s0 + $0x118] sm:$0xff] }
  0x18   :  { %212 = vmatpush.msra.mxu0 %v7517_v16 }
  0x1a   :  { %213 = vmatpush.msra.mxu0 %v7516_v18 }
  0x1c   :  { %214 = vmatpush.msra.mxu0 %v7513_v19  ;;  %v59_v19 = vld [vmem:[%s14204_s0 + $0x128] sm:$0xff] }
  0x1e   :  { %215 = vmatpush.msra.mxu0 %v7512_v21  ;;  %v60_v21 = vld [vmem:[%s14204_s0 + $0x130] sm:$0xff] }
  0x20   :  { %216 = vmatpush.msra.mxu0 %v7509_v22 }
  0x22   :  { %217 = vmatpush.msra.mxu0 %v7508_v23  ;;  %v61_v23 = vld [vmem:[%s14204_s0 + $0x138] sm:$0xff] }
  0x23   :  { %218 = vmatmul.f32.vlgmr.msra.gmra.mxu0 %v22_v24 }
  0x2b   :  { %221 = vmatmul.f32.gmra.mxu0 %v23_v25  ;;  %v62_v25 = vld [vmem:[%s14204_s0 + $0x140] sm:$0xff] }
  0x33   :  { %224 = vmatmul.f32.gmra.mxu0 %v24_v26 }
  0x3b   :  { %227 = vmatmul.f32.gmra.mxu0 %v25_v27  ;;  %v63_v27 = vld [vmem:[%s14204_s0 + $0x148] sm:$0xff] }
  0x43   :  { %230 = vmatmul.f32.gmra.mxu0 %v26_v28 }
  0x4b   :  { %233 = vmatmul.f32.gmra.mxu0 %v27_v29  ;;  %v64_v29 = vld [vmem:[%s14204_s0 + $0x150] sm:$0xff] }
  0x53   :  { %236 = vmatmul.f32.gmra.mxu0 %v28_v30 }
  0x5b   :  { %239 = vmatmul.f32.gmra.mxu0 %v29_v31  ;;  %v65_v31 = vld [vmem:[%s14204_s0 + $0x158] sm:$0xff] }
  0x63   :  { %242 = vmatmul.f32.gmra.mxu0 %v30_v32 }
  0x6b   :  { %245 = vmatmul.f32.gmra.mxu0 %v31_v33  ;;  %v66_v33 = vld [vmem:[%s14204_s0 + $0x160] sm:$0xff] }
  0x73   :  { %248 = vmatmul.f32.gmra.mxu0 %v32_v34 }
  0x7b   :  { %251 = vmatmul.f32.gmra.mxu0 %v33_v35  ;;  %v67_v35 = vld [vmem:[%s14204_s0 + $0x168] sm:$0xff] }
  0x83   :  { %254 = vmatmul.f32.gmra.mxu0 %v34_v36 }
  0x8b   :  { %257 = vmatmul.f32.gmra.mxu0 %v35_v37  ;;  %v68_v37 = vld [vmem:[%s14204_s0 + $0x170] sm:$0xff] }
  0x93   :  { %260 = vmatmul.f32.gmra.mxu0 %v36_v38 }
  0x9b   :  { %263 = vmatmul.f32.gmra.mxu0 %v37_v39  ;;  %v69_v39 = vld [vmem:[%s14204_s0 + $0x178] sm:$0xff] }
  0xa0   :  { %v9484_v40 = vpop.f32.mrf.mxu0 }
  0xa3   :  { %266 = vmatmul.f32.gmra.mxu0 %v38_v41 }
  0xa8   :  { %v9489_v42 = vpop.f32.mrf.mxu0 }
  0xab   :  { %269 = vmatmul.f32.gmra.mxu0 %v39_v43  ;;  %v70_v43 = vld [vmem:[%s14204_s0 + $0x180] sm:$0xff] }
  0xb0   :  { %v9494_v44 = vpop.f32.mrf.mxu0 }
  0xb3   :  { %272 = vmatmul.f32.gmra.mxu0 %v40_v45 }
  0xb8   :  { %v9499_v46 = vpop.f32.mrf.mxu0 }
  0xbb   :  { %275 = vmatmul.f32.gmra.mxu0 %v41_v47  ;;  %v71_v47 = vld [vmem:[%s14204_s0 + $0x188] sm:$0xff] }
  0xc0   :  { %v9504_v48 = vpop.f32.mrf.mxu0 }
  0xc3   :  { %278 = vmatmul.f32.gmra.mxu0 %v42_v49 }
  0xc8   :  { %v9509_v50 = vpop.f32.mrf.mxu0 }
  0xcb   :  { %281 = vmatmul.f32.gmra.mxu0 %v43_v51  ;;  %v72_v51 = vld [vmem:[%s14204_s0 + $0x190] sm:$0xff] }
  0xd0   :  { %v9514_v52 = vpop.f32.mrf.mxu0 }
  0xd3   :  { %284 = vmatmul.f32.gmra.mxu0 %v44_v53 }
  0xd8   :  { %v9519_v54 = vpop.f32.mrf.mxu0 }
  0xdb   :  { %287 = vmatmul.f32.gmra.mxu0 %v45_v55  ;;  %v73_v55 = vld [vmem:[%s14204_s0 + $0x198] sm:$0xff] }
  0xe0   :  { %v9524_v56 = vpop.f32.mrf.mxu0 }
  0xe3   :  { %290 = vmatmul.f32.gmra.mxu0 %v46_v57 }
  0xe8   :  { %v9529_v58 = vpop.f32.mrf.mxu0 }
  0xeb   :  { %293 = vmatmul.f32.gmra.mxu0 %v47_v59  ;;  %v74_v59 = vld [vmem:[%s14204_s0 + $0x1a0] sm:$0xff] }
  0xf0   :  { %v9534_v60 = vpop.f32.mrf.mxu0 }
  0xf3   :  { %296 = vmatmul.f32.gmra.mxu0 %v48_v61 }
  0xf8   :  { %v9539_v62 = vpop.f32.mrf.mxu0 }
  0xfb   :  { %299 = vmatmul.f32.gmra.mxu0 %v49_v63  ;;  %v75_v63 = vld [vmem:[%s14204_s0 + $0x1a8] sm:$0xff] }
 0x100   :  { %v9544_v0 = vpop.f32.mrf.mxu0 }
 0x103   :  { %302 = vmatmul.f32.gmra.mxu0 %v50_v1 }
 0x108   :  { %v9549_v2 = vpop.f32.mrf.mxu0 }
 0x10b   :  { %305 = vmatmul.f32.gmra.mxu0 %v51_v3  ;;  %v76_v3 = vld [vmem:[%s14204_s0 + $0x1b0] sm:$0xff] }
 0x110   :  { %v9554_v4 = vpop.f32.mrf.mxu0 }
 0x113   :  { %308 = vmatmul.f32.gmra.mxu0 %v52_v5 }
 0x118   :  { %v9559_v6 = vpop.f32.mrf.mxu0 }
 0x11b   :  { %311 = vmatmul.f32.gmra.mxu0 %v53_v7  ;;  %v77_v7 = vld [vmem:[%s14204_s0 + $0x1b8] sm:$0xff] }
 0x120   :  { %v9564_v8 = vpop.f32.mrf.mxu0 }
 0x123   :  { %314 = vmatmul.f32.gmra.mxu0 %v54_v9 }
 0x128   :  { %v9569_v10 = vpop.f32.mrf.mxu0 }
 0x12b   :  { %317 = vmatmul.f32.gmra.mxu0 %v55_v11  ;;  %v78_v11 = vld [vmem:[%s14204_s0 + $0x1c0] sm:$0xff] }
 0x130   :  { %v9574_v12 = vpop.f32.mrf.mxu0 }
 0x133   :  { %320 = vmatmul.f32.gmra.mxu0 %v56_v13 }
 0x138   :  { %v9579_v14 = vpop.f32.mrf.mxu0 }
 0x13b   :  { %323 = vmatmul.f32.gmra.mxu0 %v57_v15  ;;  %v79_v15 = vld [vmem:[%s14204_s0 + $0x1c8] sm:$0xff] }
 0x140   :  { %v9584_v16 = vpop.f32.mrf.mxu0 }
 0x143   :  { %326 = vmatmul.f32.gmra.mxu0 %v58_v17 }
 0x148   :  { %v9589_v18 = vpop.f32.mrf.mxu0 }
 0x14b   :  { %329 = vmatmul.f32.gmra.mxu0 %v59_v19  ;;  %v80_v19 = vld [vmem:[%s14204_s0 + $0x1d0] sm:$0xff] }
 0x150   :  { %v9594_v20 = vpop.f32.mrf.mxu0 }
 0x153   :  { %332 = vmatmul.f32.gmra.mxu0 %v60_v21 }
 0x158   :  { %v9599_v22 = vpop.f32.mrf.mxu0 }
 0x15b   :  { %335 = vmatmul.f32.gmra.mxu0 %v61_v23  ;;  %v81_v23 = vld [vmem:[%s14204_s0 + $0x1d8] sm:$0xff] }
 0x160   :  { %v9604_v24 = vpop.f32.mrf.mxu0 }
 0x163   :  { %338 = vmatmul.f32.gmra.mxu0 %v62_v25 }
 0x168   :  { %v9609_v26 = vpop.f32.mrf.mxu0 }
 0x16b   :  { %341 = vmatmul.f32.gmra.mxu0 %v63_v27  ;;  %v82_v27 = vld [vmem:[%s14204_s0 + $0x1e0] sm:$0xff] }
 0x170   :  { %v9614_v28 = vpop.f32.mrf.mxu0 }
 0x173   :  { %344 = vmatmul.f32.gmra.mxu0 %v64_v29 }
 0x178   :  { %v9619_v30 = vpop.f32.mrf.mxu0 }
 0x17b   :  { %347 = vmatmul.f32.gmra.mxu0 %v65_v31  ;;  %v83_v31 = vld [vmem:[%s14204_s0 + $0x1e8] sm:$0xff] }
 0x180   :  { %v9624_v32 = vpop.f32.mrf.mxu0 }
 0x183   :  { %350 = vmatmul.f32.gmra.mxu0 %v66_v33 }
 0x188   :  { %v9629_v34 = vpop.f32.mrf.mxu0 }
 0x18b   :  { %353 = vmatmul.f32.gmra.mxu0 %v67_v35  ;;  %v84_v35 = vld [vmem:[%s14204_s0 + $0x1f0] sm:$0xff] }
 0x190   :  { %v9634_v36 = vpop.f32.mrf.mxu0 }
 0x193   :  { %356 = vmatmul.f32.gmra.mxu0 %v68_v37 }
 0x198   :  { %v9639_v38 = vpop.f32.mrf.mxu0 }
 0x19b   :  { %359 = vmatmul.f32.gmra.mxu0 %v69_v39  ;;  %v85_v39 = vld [vmem:[%s14204_s0 + $0x1f8] sm:$0xff] }
 0x1a0   :  { %v9644_v41 = vpop.f32.mrf.mxu0 }
 0x1a3   :  { %362 = vmatmul.f32.gmra.mxu0 %v70_v43 }
 0x1a8   :  { %v9649_v45 = vpop.f32.mrf.mxu0 }
 0x1ab   :  { %365 = vmatmul.f32.gmra.mxu0 %v71_v47  ;;  %v86_v47 = vld [vmem:[%s14204_s0 + $0x200] sm:$0xff] }
 0x1b0   :  { %v9654_v49 = vpop.f32.mrf.mxu0 }
 0x1b3   :  { %368 = vmatmul.f32.gmra.mxu0 %v72_v51 }
 0x1b8   :  { %v9659_v53 = vpop.f32.mrf.mxu0 }
 0x1bb   :  { %371 = vmatmul.f32.gmra.mxu0 %v73_v55  ;;  %v87_v55 = vld [vmem:[%s14204_s0 + $0x208] sm:$0xff] }
 0x1c0   :  { %v9664_v57 = vpop.f32.mrf.mxu0 }
 0x1c3   :  { %374 = vmatmul.f32.gmra.mxu0 %v74_v59 }
 0x1c8   :  { %v9669_v61 = vpop.f32.mrf.mxu0 }
 0x1cb   :  { %377 = vmatmul.f32.gmra.mxu0 %v75_v63  ;;  %v88_v63 = vld [vmem:[%s14204_s0 + $0x210] sm:$0xff] }
 0x1d0   :  { %v9674_v1 = vpop.f32.mrf.mxu0 }
 0x1d3   :  { %380 = vmatmul.f32.gmra.mxu0 %v76_v3 }
 0x1d8   :  { %v9679_v5 = vpop.f32.mrf.mxu0 }
 0x1db   :  { %383 = vmatmul.f32.gmra.mxu0 %v77_v7  ;;  %v89_v7 = vld [vmem:[%s14204_s0 + $0x218] sm:$0xff] }
 0x1e0   :  { %v9684_v9 = vpop.f32.mrf.mxu0 }
 0x1e3   :  { %386 = vmatmul.f32.gmra.mxu0 %v78_v11 }
 0x1e8   :  { %v9689_v13 = vpop.f32.mrf.mxu0 }
 0x1eb   :  { %389 = vmatmul.f32.gmra.mxu0 %v79_v15  ;;  %v90_v15 = vld [vmem:[%s14204_s0 + $0x220] sm:$0xff] }
 0x1f0   :  { %v9694_v17 = vpop.f32.mrf.mxu0 }
 0x1f3   :  { %392 = vmatmul.f32.gmra.mxu0 %v80_v19 }
 0x1f8   :  { %v9699_v21 = vpop.f32.mrf.mxu0 }
 0x1fb   :  { %395 = vmatmul.f32.gmra.mxu0 %v81_v23  ;;  %v91_v23 = vld [vmem:[%s14204_s0 + $0x228] sm:$0xff] }
 0x200   :  { %v9704_v25 = vpop.f32.mrf.mxu0 }
 0x203   :  { %398 = vmatmul.f32.gmra.mxu0 %v82_v27 }
 0x208   :  { %v9709_v29 = vpop.f32.mrf.mxu0 }
 0x20b   :  { %401 = vmatmul.f32.gmra.mxu0 %v83_v31  ;;  %v92_v31 = vld [vmem:[%s14204_s0 + $0x230] sm:$0xff] }
 0x210   :  { %v9714_v33 = vpop.f32.mrf.mxu0 }
 0x213   :  { %404 = vmatmul.f32.gmra.mxu0 %v84_v35 }
 0x218   :  { %v9719_v37 = vpop.f32.mrf.mxu0 }
 0x21b   :  { %407 = vmatmul.f32.gmra.mxu0 %v85_v39  ;;  %v93_v39 = vld [vmem:[%s14204_s0 + $0x238] sm:$0xff] }
 0x220   :  { %v9724_v43 = vpop.f32.mrf.mxu0 }
 0x223   :  { %410 = vmatmul.f32.gmra.mxu0 %v86_v47 }
 0x228   :  { %v9729_v51 = vpop.f32.mrf.mxu0 }
 0x22b   :  { %413 = vmatmul.f32.gmra.mxu0 %v87_v55  ;;  %v94_v55 = vld [vmem:[%s14204_s0 + $0x240] sm:$0xff] }
 0x230   :  { %v9734_v59 = vpop.f32.mrf.mxu0 }
 0x233   :  { %416 = vmatmul.f32.gmra.mxu0 %v88_v63 }
 0x238   :  { %v9739_v3 = vpop.f32.mrf.mxu0 }
 0x23b   :  { %419 = vmatmul.f32.gmra.mxu0 %v89_v7  ;;  %v95_v7 = vld [vmem:[%s14204_s0 + $0x248] sm:$0xff] }
 0x240   :  { %v9744_v11 = vpop.f32.mrf.mxu0 }
 0x241   :  { %14315 = vst [vmem:[#allocation14_spill] sm:$0xff] %v9744_v11 }
 0x243   :  { %422 = vmatmul.f32.gmra.mxu0 %v90_v15 }
 0x248   :  { %v9749_v19 = vpop.f32.mrf.mxu0 }
 0x249   :  { %14316 = vst [vmem:[#allocation15_spill] sm:$0xff] %v9749_v19 }
 0x24b   :  { %425 = vmatmul.f32.gmra.mxu0 %v91_v23  ;;  %v96_v23 = vld [vmem:[%s14204_s0 + $0x250] sm:$0xff] }
 0x250   :  { %v9754_v27 = vpop.f32.mrf.mxu0 }
 0x251   :  { %14317 = vst [vmem:[#allocation16_spill] sm:$0xff] %v9754_v27 }
 0x253   :  { %428 = vmatmul.f32.gmra.mxu0 %v92_v31 }
 0x258   :  { %v9759_v35 = vpop.f32.mrf.mxu0 }
 0x259   :  { %14318 = vst [vmem:[#allocation17_spill] sm:$0xff] %v9759_v35 }
 0x25b   :  { %431 = vmatmul.f32.gmra.mxu0 %v93_v39  ;;  %v97_v39 = vld [vmem:[%s14204_s0 + $0x258] sm:$0xff] }
 0x260   :  { %v9764_v47 = vpop.f32.mrf.mxu0 }
 0x261   :  { %14319 = vst [vmem:[#allocation18_spill] sm:$0xff] %v9764_v47 }
 0x263   :  { %434 = vmatmul.f32.gmra.mxu0 %v94_v55 }
 0x268   :  { %v9769_v63 = vpop.f32.mrf.mxu0 }
 0x269   :  { %14320 = vst [vmem:[#allocation19_spill] sm:$0xff] %v9769_v63 }
 0x26b   :  { %437 = vmatmul.f32.gmra.mxu0 %v95_v7  ;;  %v98_v7 = vld [vmem:[%s14204_s0 + $0x260] sm:$0xff] }
 0x270   :  { %v9774_v15 = vpop.f32.mrf.mxu0 }
 0x271   :  { %14321 = vst [vmem:[#allocation20_spill] sm:$0xff] %v9774_v15 }
 0x273   :  { %440 = vmatmul.f32.gmra.mxu0 %v96_v23  ;;  %v99_v23 = vld [vmem:[%s14204_s0 + $0x268] sm:$0xff] }
 0x278   :  { %v9779_v31 = vpop.f32.mrf.mxu0 }
 0x279   :  { %14322 = vst [vmem:[#allocation21_spill] sm:$0xff] %v9779_v31 }
 0x27b   :  { %443 = vmatmul.f32.gmra.mxu0 %v97_v39  ;;  %v100_v39 = vld [vmem:[%s14204_s0 + $0x270] sm:$0xff] }
 0x280   :  { %v9784_v55 = vpop.f32.mrf.mxu0 }
 0x281   :  { %14323 = vst [vmem:[#allocation22_spill] sm:$0xff] %v9784_v55 }
 0x283   :  { %446 = vmatmul.f32.gmra.mxu0 %v98_v7  ;;  %v101_v7 = vld [vmem:[%s14204_s0 + $0x278] sm:$0xff] }
 0x288   :  { %v9789_v15 = vpop.f32.mrf.mxu0 }
 0x289   :  { %14324 = vst [vmem:[#allocation23_spill] sm:$0xff] %v9789_v15 }
 0x28b   :  { %449 = vmatmul.f32.gmra.mxu0 %v99_v23  ;;  %v102_v23 = vld [vmem:[%s14204_s0 + $0x280] sm:$0xff] }
 0x290   :  { %v9794_v31 = vpop.f32.mrf.mxu0 }
 0x291   :  { %14325 = vst [vmem:[#allocation24_spill] sm:$0xff] %v9794_v31 }
 0x293   :  { %452 = vmatmul.f32.gmra.mxu0 %v100_v39  ;;  %v103_v39 = vld [vmem:[%s14204_s0 + $0x288] sm:$0xff] }
 0x298   :  { %v9799_v55 = vpop.f32.mrf.mxu0 }
 0x299   :  { %14326 = vst [vmem:[#allocation25_spill] sm:$0xff] %v9799_v55 }
 0x29b   :  { %455 = vmatmul.f32.gmra.mxu0 %v101_v7  ;;  %v104_v7 = vld [vmem:[%s14204_s0 + $0x290] sm:$0xff] }
 0x2a0   :  { %v9804_v15 = vpop.f32.mrf.mxu0 }
 0x2a1   :  { %14327 = vst [vmem:[#allocation26_spill] sm:$0xff] %v9804_v15 }
 0x2a3   :  { %458 = vmatmul.f32.gmra.mxu0 %v102_v23  ;;  %v105_v23 = vld [vmem:[%s14204_s0 + $0x298] sm:$0xff] }
 0x2a8   :  { %v9809_v31 = vpop.f32.mrf.mxu0 }
 0x2a9   :  { %14328 = vst [vmem:[#allocation27_spill] sm:$0xff] %v9809_v31 }
 0x2ab   :  { %461 = vmatmul.f32.gmra.mxu0 %v103_v39  ;;  %v106_v39 = vld [vmem:[%s14204_s0 + $0x2a0] sm:$0xff] }
 0x2b0   :  { %v9814_v55 = vpop.f32.mrf.mxu0 }
 0x2b1   :  { %14329 = vst [vmem:[#allocation28_spill] sm:$0xff] %v9814_v55 }
 0x2b3   :  { %464 = vmatmul.f32.gmra.mxu0 %v104_v7  ;;  %v107_v7 = vld [vmem:[%s14204_s0 + $0x2a8] sm:$0xff] }
 0x2b8   :  { %v9819_v15 = vpop.f32.mrf.mxu0 }
 0x2b9   :  { %14330 = vst [vmem:[#allocation29_spill] sm:$0xff] %v9819_v15 }
 0x2bb   :  { %467 = vmatmul.f32.gmra.mxu0 %v105_v23  ;;  %v108_v23 = vld [vmem:[%s14204_s0 + $0x2b0] sm:$0xff] }
 0x2c0   :  { %v9824_v31 = vpop.f32.mrf.mxu0 }
 0x2c1   :  { %14331 = vst [vmem:[#allocation30_spill] sm:$0xff] %v9824_v31 }
 0x2c3   :  { %470 = vmatmul.f32.gmra.mxu0 %v106_v39  ;;  %v109_v39 = vld [vmem:[%s14204_s0 + $0x2b8] sm:$0xff] }
 0x2c8   :  { %v9829_v55 = vpop.f32.mrf.mxu0 }
 0x2c9   :  { %14332 = vst [vmem:[#allocation31_spill] sm:$0xff] %v9829_v55 }
 0x2cb   :  { %473 = vmatmul.f32.gmra.mxu0 %v107_v7  ;;  %v110_v7 = vld [vmem:[%s14204_s0 + $0x2c0] sm:$0xff] }
 0x2d0   :  { %v9834_v15 = vpop.f32.mrf.mxu0 }
 0x2d1   :  { %14333 = vst [vmem:[#allocation32_spill] sm:$0xff] %v9834_v15 }
 0x2d3   :  { %476 = vmatmul.f32.gmra.mxu0 %v108_v23  ;;  %v111_v23 = vld [vmem:[%s14204_s0 + $0x2c8] sm:$0xff] }
 0x2d8   :  { %v9839_v31 = vpop.f32.mrf.mxu0 }
 0x2d9   :  { %14334 = vst [vmem:[#allocation33_spill] sm:$0xff] %v9839_v31 }
 0x2db   :  { %479 = vmatmul.f32.gmra.mxu0 %v109_v39  ;;  %v112_v39 = vld [vmem:[%s14204_s0 + $0x2d0] sm:$0xff] }
 0x2e0   :  { %v9844_v55 = vpop.f32.mrf.mxu0 }
 0x2e1   :  { %14335 = vst [vmem:[#allocation34_spill] sm:$0xff] %v9844_v55 }
 0x2e3   :  { %482 = vmatmul.f32.gmra.mxu0 %v110_v7  ;;  %v113_v7 = vld [vmem:[%s14204_s0 + $0x2d8] sm:$0xff] }
 0x2e8   :  { %v9849_v15 = vpop.f32.mrf.mxu0 }
 0x2e9   :  { %14336 = vst [vmem:[#allocation35_spill] sm:$0xff] %v9849_v15 }
 0x2eb   :  { %485 = vmatmul.f32.gmra.mxu0 %v111_v23  ;;  %v114_v23 = vld [vmem:[%s14204_s0 + $0x2e0] sm:$0xff] }
 0x2f0   :  { %v9854_v31 = vpop.f32.mrf.mxu0 }
 0x2f1   :  { %14337 = vst [vmem:[#allocation36_spill] sm:$0xff] %v9854_v31 }
 0x2f3   :  { %488 = vmatmul.f32.gmra.mxu0 %v112_v39  ;;  %v115_v39 = vld [vmem:[%s14204_s0 + $0x2e8] sm:$0xff] }
 0x2f8   :  { %v9859_v55 = vpop.f32.mrf.mxu0 }
 0x2f9   :  { %14338 = vst [vmem:[#allocation37_spill] sm:$0xff] %v9859_v55 }
 0x2fb   :  { %491 = vmatmul.f32.gmra.mxu0 %v113_v7  ;;  %v116_v7 = vld [vmem:[%s14204_s0 + $0x2f0] sm:$0xff] }
 0x300   :  { %v9864_v15 = vpop.f32.mrf.mxu0 }
 0x301   :  { %14339 = vst [vmem:[#allocation38_spill] sm:$0xff] %v9864_v15 }
 0x303   :  { %494 = vmatmul.f32.gmra.mxu0 %v114_v23  ;;  %v117_v23 = vld [vmem:[%s14204_s0 + $0x2f8] sm:$0xff] }
 0x308   :  { %v9869_v31 = vpop.f32.mrf.mxu0 }
 0x309   :  { %14340 = vst [vmem:[#allocation39_spill] sm:$0xff] %v9869_v31 }
 0x30b   :  { %497 = vmatmul.f32.gmra.mxu0 %v115_v39  ;;  %v118_v39 = vld [vmem:[%s14204_s0 + $0x300] sm:$0xff] }
 0x310   :  { %v9874_v55 = vpop.f32.mrf.mxu0 }
 0x311   :  { %14341 = vst [vmem:[#allocation40_spill] sm:$0xff] %v9874_v55 }
 0x313   :  { %500 = vmatmul.f32.gmra.mxu0 %v116_v7  ;;  %v119_v7 = vld [vmem:[%s14204_s0 + $0x308] sm:$0xff] }
 0x318   :  { %v9879_v15 = vpop.f32.mrf.mxu0 }
 0x319   :  { %14342 = vst [vmem:[#allocation41_spill] sm:$0xff] %v9879_v15 }
 0x31b   :  { %503 = vmatmul.f32.gmra.mxu0 %v117_v23  ;;  %v120_v23 = vld [vmem:[%s14204_s0 + $0x310] sm:$0xff] }
 0x320   :  { %v9884_v31 = vpop.f32.mrf.mxu0 }
 0x321   :  { %14343 = vst [vmem:[#allocation42_spill] sm:$0xff] %v9884_v31 }
 0x323   :  { %506 = vmatmul.f32.gmra.mxu0 %v118_v39  ;;  %v121_v39 = vld [vmem:[%s14204_s0 + $0x318] sm:$0xff] }
 0x328   :  { %v9889_v55 = vpop.f32.mrf.mxu0 }
 0x329   :  { %14344 = vst [vmem:[#allocation43_spill] sm:$0xff] %v9889_v55 }
 0x32b   :  { %509 = vmatmul.f32.gmra.mxu0 %v119_v7  ;;  %v122_v7 = vld [vmem:[%s14204_s0 + $0x320] sm:$0xff] }
 0x330   :  { %v9894_v15 = vpop.f32.mrf.mxu0 }
 0x331   :  { %14345 = vst [vmem:[#allocation44_spill] sm:$0xff] %v9894_v15 }
 0x333   :  { %512 = vmatmul.f32.gmra.mxu0 %v120_v23  ;;  %v123_v23 = vld [vmem:[%s14204_s0 + $0x328] sm:$0xff] }
 0x338   :  { %v9899_v31 = vpop.f32.mrf.mxu0 }
 0x339   :  { %14346 = vst [vmem:[#allocation45_spill] sm:$0xff] %v9899_v31 }
 0x33b   :  { %515 = vmatmul.f32.gmra.mxu0 %v121_v39  ;;  %v124_v39 = vld [vmem:[%s14204_s0 + $0x330] sm:$0xff] }
 0x340   :  { %v9904_v55 = vpop.f32.mrf.mxu0 }
 0x341   :  { %14347 = vst [vmem:[#allocation46_spill] sm:$0xff] %v9904_v55 }
 0x343   :  { %518 = vmatmul.f32.gmra.mxu0 %v122_v7  ;;  %v125_v7 = vld [vmem:[%s14204_s0 + $0x338] sm:$0xff] }
 0x348   :  { %v9909_v15 = vpop.f32.mrf.mxu0 }
 0x349   :  { %14348 = vst [vmem:[#allocation47_spill] sm:$0xff] %v9909_v15 }
 0x34b   :  { %521 = vmatmul.f32.gmra.mxu0 %v123_v23  ;;  %v126_v23 = vld [vmem:[%s14204_s0 + $0x340] sm:$0xff] }
 0x350   :  { %v9914_v31 = vpop.f32.mrf.mxu0 }
 0x351   :  { %14349 = vst [vmem:[#allocation48_spill] sm:$0xff] %v9914_v31 }
 0x353   :  { %524 = vmatmul.f32.gmra.mxu0 %v124_v39  ;;  %v127_v39 = vld [vmem:[%s14204_s0 + $0x348] sm:$0xff] }
 0x358   :  { %v9919_v55 = vpop.f32.mrf.mxu0 }
 0x359   :  { %14350 = vst [vmem:[#allocation49_spill] sm:$0xff] %v9919_v55 }
 0x35b   :  { %527 = vmatmul.f32.gmra.mxu0 %v125_v7  ;;  %v128_v7 = vld [vmem:[%s14204_s0 + $0x350] sm:$0xff] }
 0x360   :  { %v9924_v15 = vpop.f32.mrf.mxu0 }
 0x361   :  { %14351 = vst [vmem:[#allocation50_spill] sm:$0xff] %v9924_v15 }
 0x363   :  { %530 = vmatmul.f32.gmra.mxu0 %v126_v23  ;;  %v129_v23 = vld [vmem:[%s14204_s0 + $0x358] sm:$0xff] }
 0x368   :  { %v9929_v31 = vpop.f32.mrf.mxu0 }
 0x369   :  { %14352 = vst [vmem:[#allocation51_spill] sm:$0xff] %v9929_v31 }
 0x36b   :  { %533 = vmatmul.f32.gmra.mxu0 %v127_v39  ;;  %v130_v39 = vld [vmem:[%s14204_s0 + $0x360] sm:$0xff] }
 0x370   :  { %v9934_v55 = vpop.f32.mrf.mxu0 }
 0x371   :  { %14353 = vst [vmem:[#allocation52_spill] sm:$0xff] %v9934_v55 }
 0x373   :  { %536 = vmatmul.f32.gmra.mxu0 %v128_v7  ;;  %v131_v7 = vld [vmem:[%s14204_s0 + $0x368] sm:$0xff] }
 0x378   :  { %v9939_v15 = vpop.f32.mrf.mxu0 }
 0x379   :  { %14354 = vst [vmem:[#allocation53_spill] sm:$0xff] %v9939_v15 }
 0x37b   :  { %539 = vmatmul.f32.gmra.mxu0 %v129_v23  ;;  %v132_v23 = vld [vmem:[%s14204_s0 + $0x370] sm:$0xff] }
 0x380   :  { %v9944_v31 = vpop.f32.mrf.mxu0 }
 0x381   :  { %14355 = vst [vmem:[#allocation54_spill] sm:$0xff] %v9944_v31 }
 0x383   :  { %542 = vmatmul.f32.gmra.mxu0 %v130_v39  ;;  %v133_v39 = vld [vmem:[%s14204_s0 + $0x378] sm:$0xff] }
 0x388   :  { %v9949_v55 = vpop.f32.mrf.mxu0 }
 0x389   :  { %14356 = vst [vmem:[#allocation55_spill] sm:$0xff] %v9949_v55 }
 0x38b   :  { %545 = vmatmul.f32.gmra.mxu0 %v131_v7  ;;  %v134_v7 = vld [vmem:[%s14204_s0 + $0x380] sm:$0xff] }
 0x390   :  { %v9954_v15 = vpop.f32.mrf.mxu0 }
 0x391   :  { %14357 = vst [vmem:[#allocation56_spill] sm:$0xff] %v9954_v15 }
 0x393   :  { %548 = vmatmul.f32.gmra.mxu0 %v132_v23  ;;  %v135_v23 = vld [vmem:[%s14204_s0 + $0x388] sm:$0xff] }
 0x398   :  { %v9959_v31 = vpop.f32.mrf.mxu0 }
 0x399   :  { %14358 = vst [vmem:[#allocation57_spill] sm:$0xff] %v9959_v31 }
 0x39b   :  { %551 = vmatmul.f32.gmra.mxu0 %v133_v39  ;;  %v136_v39 = vld [vmem:[%s14204_s0 + $0x390] sm:$0xff] }
 0x3a0   :  { %v9964_v55 = vpop.f32.mrf.mxu0 }
 0x3a1   :  { %14359 = vst [vmem:[#allocation58_spill] sm:$0xff] %v9964_v55 }
 0x3a3   :  { %554 = vmatmul.f32.gmra.mxu0 %v134_v7  ;;  %v137_v7 = vld [vmem:[%s14204_s0 + $0x398] sm:$0xff] }
 0x3a8   :  { %v9969_v15 = vpop.f32.mrf.mxu0 }
 0x3a9   :  { %14360 = vst [vmem:[#allocation59_spill] sm:$0xff] %v9969_v15 }
 0x3ab   :  { %557 = vmatmul.f32.gmra.mxu0 %v135_v23  ;;  %v138_v23 = vld [vmem:[%s14204_s0 + $0x3a0] sm:$0xff] }
 0x3b0   :  { %v9974_v31 = vpop.f32.mrf.mxu0 }
 0x3b1   :  { %14361 = vst [vmem:[#allocation60_spill] sm:$0xff] %v9974_v31 }
 0x3b3   :  { %560 = vmatmul.f32.gmra.mxu0 %v136_v39  ;;  %v139_v39 = vld [vmem:[%s14204_s0 + $0x3a8] sm:$0xff] }
 0x3b8   :  { %v9979_v55 = vpop.f32.mrf.mxu0 }
 0x3b9   :  { %14362 = vst [vmem:[#allocation61_spill] sm:$0xff] %v9979_v55 }
 0x3bb   :  { %563 = vmatmul.f32.gmra.mxu0 %v137_v7  ;;  %v140_v7 = vld [vmem:[%s14204_s0 + $0x3b0] sm:$0xff] }
 0x3c0   :  { %v9984_v15 = vpop.f32.mrf.mxu0 }
 0x3c1   :  { %14363 = vst [vmem:[#allocation62_spill] sm:$0xff] %v9984_v15 }
 0x3c3   :  { %566 = vmatmul.f32.gmra.mxu0 %v138_v23  ;;  %v141_v23 = vld [vmem:[%s14204_s0 + $0x3b8] sm:$0xff] }
 0x3c8   :  { %v9989_v31 = vpop.f32.mrf.mxu0 }
 0x3c9   :  { %14364 = vst [vmem:[#allocation63_spill] sm:$0xff] %v9989_v31 }
 0x3cb   :  { %569 = vmatmul.f32.gmra.mxu0 %v139_v39  ;;  %v142_v39 = vld [vmem:[%s14204_s0 + $0x3c0] sm:$0xff] }
 0x3d0   :  { %v9994_v55 = vpop.f32.mrf.mxu0 }
 0x3d1   :  { %14365 = vst [vmem:[#allocation64_spill] sm:$0xff] %v9994_v55 }
 0x3d3   :  { %572 = vmatmul.f32.gmra.mxu0 %v140_v7  ;;  %v143_v7 = vld [vmem:[%s14204_s0 + $0x3c8] sm:$0xff] }
 0x3d8   :  { %v9999_v15 = vpop.f32.mrf.mxu0 }
 0x3d9   :  { %14366 = vst [vmem:[#allocation65_spill] sm:$0xff] %v9999_v15 }
 0x3db   :  { %575 = vmatmul.f32.gmra.mxu0 %v141_v23  ;;  %v144_v23 = vld [vmem:[%s14204_s0 + $0x3d0] sm:$0xff] }
 0x3e0   :  { %v10004_v31 = vpop.f32.mrf.mxu0 }
 0x3e1   :  { %14367 = vst [vmem:[#allocation66_spill] sm:$0xff] %v10004_v31  ;;  %v10022_v31 = vld [vmem:[%s14206_s2] ss:$0 sm:$0xff] }
 0x3e2   :  { %v10045_v63 = vadd.f32 %v10022_v31, %v9499_v46  ;;  %v146_v46 = vld [vmem:[%s14204_s0 + $0x3e0] sm:$0xff]  ;;  %v10074_v11 = vadd.f32 %v10022_v31, %v9514_v52  ;;  %v10088_v52 = vadd.f32 %v10022_v31, %v9524_v56 }
 0x3e3   :  { %578 = vmatmul.f32.gmra.mxu0 %v142_v39 }
 0x3e4   :  { %v803_v19 = vmul.f32 %v10045_v63, %v10045_v63 }
 0x3e8   :  { %v10009_v55 = vpop.f32.mrf.mxu0 }
 0x3e9   :  { %14368 = vst [vmem:[#allocation67_spill] sm:$0xff] %v10009_v55  ;;  %v145_v55 = vld [vmem:[%s14204_s0 + $0x3d8] sm:$0xff] }
 0x3eb   :  { %581 = vmatmul.f32.gmra.mxu0 %v143_v7  ;;  %v10031_v7 = vadd.f32 %v10022_v31, %v9489_v42 }
 0x3ed   :  { %14371 = vst [vmem:[#allocation70_spill] sm:$0xff] %v10031_v7 }
 0x3f0   :  { %v10014_v15 = vpop.f32.mrf.mxu0 }
 0x3f1   :  { %14369 = vst [vmem:[#allocation68_spill] sm:$0xff] %v10014_v15  ;;  %v10035_v15 = vadd.f32 %v10022_v31, %v9484_v40 }
 0x3f3   :  { %584 = vmatmul.f32.gmra.mxu0 %v144_v23  ;;  %14372 = vst [vmem:[#allocation71_spill] sm:$0xff] %v10035_v15  ;;  %v10039_v23 = vadd.f32 %v10022_v31, %v9494_v44  ;;  %v800_v42 = vmul.f32 %v10035_v15, %v10035_v15  ;;  %v651_v47 = vadd.f32 %v10031_v7, %v10035_v15 }
 0x3f4   :  { %v10055_v44 = vadd.f32 %v10022_v31, %v9504_v48 }
 0x3f5   :  { %v802_v40 = vmul.f32 %v10039_v23, %v10039_v23  ;;  %v652_v27 = vadd.f32 %v651_v47, %v10039_v23 }
 0x3f7   :  { %v653_v48 = vadd.f32 %v652_v27, %v10045_v63 }
 0x3f8   :  { %v10024_v39 = vpop.f32.mrf.mxu0 }
 0x3f9   :  { %14370 = vst [vmem:[#allocation69_spill] sm:$0xff] %v10024_v39  ;;  %v801_v39 = vmul.f32 %v10031_v7, %v10031_v7  ;;  %v10067_v7 = vadd.f32 %v10022_v31, %v9509_v50  ;;  %v654_v47 = vadd.f32 %v653_v48, %v10055_v44  ;;  %v10081_v50 = vadd.f32 %v10022_v31, %v9519_v54 }
 0x3fa   :  { %v10100_v48 = vadd.f32 %v10022_v31, %v9529_v58  ;;  %v10114_v58 = vadd.f32 %v10022_v31, %v9539_v62 }
 0x3fb   :  { %587 = vmatmul.f32.gmra.mxu0 %v145_v55  ;;  %v944_v35 = vadd.f32 %v801_v39, %v800_v42  ;;  %14374 = vst [vmem:[#allocation73_spill] sm:$0xff] %v10067_v7  ;;  %v805_v42 = vmul.f32 %v10067_v7, %v10067_v7  ;;  %v655_v27 = vadd.f32 %v654_v47, %v10067_v7 }
 0x3fc   :  { %14375 = vst [vmem:[#allocation74_spill] sm:$0xff] %v10100_v48  ;;  %v808_v47 = vmul.f32 %v10088_v52, %v10088_v52  ;;  %v10107_v7 = vadd.f32 %v10022_v31, %v9534_v60  ;;  %v10121_v60 = vadd.f32 %v10022_v31, %v9544_v0 }
 0x3fd   :  { %v945_v15 = vadd.f32 %v944_v35, %v802_v40  ;;  %v806_v40 = vmul.f32 %v10074_v11, %v10074_v11  ;;  %v656_v54 = vadd.f32 %v655_v27, %v10074_v11  ;;  %v809_v27 = vmul.f32 %v10100_v48, %v10100_v48 }
 0x3ff   :  { %v946_v39 = vadd.f32 %v945_v15, %v803_v19  ;;  %v147_v15 = vld [vmem:[%s14204_s0 + $0x3e8] sm:$0xff]  ;;  %v657_v56 = vadd.f32 %v656_v54, %v10081_v50  ;;  %v810_v54 = vmul.f32 %v10107_v7, %v10107_v7 }
 0x400   :  { %v10057_v55 = vpop.f32.mrf.mxu0 }
 0x401   :  { %14373 = vst [vmem:[#allocation72_spill] sm:$0xff] %v10057_v55  ;;  %v804_v55 = vmul.f32 %v10055_v44, %v10055_v44 }
 0x403   :  { %590 = vmatmul.f32.gmra.mxu0 %v146_v46  ;;  %v947_v35 = vadd.f32 %v946_v39, %v804_v55  ;;  %v807_v55 = vmul.f32 %v10081_v50, %v10081_v50 }
 0x405   :  { %v948_v46 = vadd.f32 %v947_v35, %v805_v42  ;;  %v658_v35 = vadd.f32 %v657_v56, %v10088_v52  ;;  %v811_v56 = vmul.f32 %v10114_v58, %v10114_v58 }
 0x407   :  { %v949_v39 = vadd.f32 %v948_v46, %v806_v40  ;;  %v659_v46 = vadd.f32 %v658_v35, %v10100_v48  ;;  %v812_v35 = vmul.f32 %v10121_v60, %v10121_v60  ;;  %v10140_v48 = vadd.f32 %v10022_v31, %v9554_v4 }
 0x408   :  { %v10090_v19 = vpop.f32.mrf.mxu0  ;;  %v10154_v4 = vadd.f32 %v10022_v31, %v9564_v8 }
 0x409   :  { %v950_v42 = vadd.f32 %v949_v39, %v807_v55  ;;  %v148_v55 = vld [vmem:[%s14204_s0 + $0x3f0] sm:$0xff]  ;;  %v660_v62 = vadd.f32 %v659_v46, %v10107_v7 }
 0x40b   :  { %593 = vmatmul.f32.gmra.mxu0 %v147_v15  ;;  %v951_v40 = vadd.f32 %v950_v42, %v808_v47  ;;  %v10133_v47 = vadd.f32 %v10022_v31, %v9549_v2  ;;  %v661_v0 = vadd.f32 %v660_v62, %v10114_v58  ;;  %v10147_v2 = vadd.f32 %v10022_v31, %v9559_v6 }
 0x40c   :  { %v814_v62 = vmul.f32 %v10140_v48, %v10140_v48 }
 0x40d   :  { %v952_v39 = vadd.f32 %v951_v40, %v809_v27  ;;  %14376 = vst [vmem:[#allocation75_spill] sm:$0xff] %v10133_v47  ;;  %v662_v40 = vadd.f32 %v661_v0, %v10121_v60  ;;  %v813_v46 = vmul.f32 %v10133_v47, %v10133_v47  ;;  %v815_v0 = vmul.f32 %v10147_v2, %v10147_v2 }
 0x40f   :  { %v953_v42 = vadd.f32 %v952_v39, %v810_v54  ;;  %v663_v39 = vadd.f32 %v662_v40, %v10133_v47  ;;  %v816_v40 = vmul.f32 %v10154_v4, %v10154_v4  ;;  %v10173_v47 = vadd.f32 %v10022_v31, %v9574_v12 }
 0x410   :  { %v10123_v15 = vpop.f32.mrf.mxu0  ;;  %v10187_v12 = vadd.f32 %v10022_v31, %v9584_v16 }
 0x411   :  { %v954_v27 = vadd.f32 %v953_v42, %v811_v56  ;;  %v149_v56 = vld [vmem:[%s14204_s0 + $0x3f8] sm:$0xff]  ;;  %v664_v6 = vadd.f32 %v663_v39, %v10140_v48 }
 0x413   :  { %596 = vmatmul.f32.gmra.mxu0 %v148_v55  ;;  %v955_v54 = vadd.f32 %v954_v27, %v812_v35  ;;  %v10166_v35 = vadd.f32 %v10022_v31, %v9569_v10  ;;  %v665_v8 = vadd.f32 %v664_v6, %v10147_v2  ;;  %v10180_v10 = vadd.f32 %v10022_v31, %v9579_v14 }
 0x414   :  { %v818_v6 = vmul.f32 %v10173_v47, %v10173_v47 }
 0x415   :  { %v956_v42 = vadd.f32 %v955_v54, %v813_v46  ;;  %14377 = vst [vmem:[#allocation76_spill] sm:$0xff] %v10166_v35  ;;  %v666_v54 = vadd.f32 %v665_v8, %v10154_v4  ;;  %v817_v39 = vmul.f32 %v10166_v35, %v10166_v35  ;;  %v819_v8 = vmul.f32 %v10180_v10, %v10180_v10 }
 0x417   :  { %v957_v27 = vadd.f32 %v956_v42, %v814_v62  ;;  %v667_v42 = vadd.f32 %v666_v54, %v10166_v35  ;;  %v820_v54 = vmul.f32 %v10187_v12, %v10187_v12  ;;  %v10206_v35 = vadd.f32 %v10022_v31, %v9594_v20 }
 0x418   :  { %v10156_v55 = vpop.f32.mrf.mxu0  ;;  %v10220_v20 = vadd.f32 %v10022_v31, %v9604_v24 }
 0x419   :  { %v958_v46 = vadd.f32 %v957_v27, %v815_v0  ;;  %v150_v0 = vld [vmem:[%s14204_s0 + $0x400] sm:$0xff]  ;;  %v668_v14 = vadd.f32 %v667_v42, %v10173_v47 }
 0x41b   :  { %599 = vmatmul.f32.gmra.mxu0 %v149_v56  ;;  %v959_v62 = vadd.f32 %v958_v46, %v816_v40  ;;  %v10199_v40 = vadd.f32 %v10022_v31, %v9589_v18  ;;  %v669_v16 = vadd.f32 %v668_v14, %v10180_v10  ;;  %v10213_v18 = vadd.f32 %v10022_v31, %v9599_v22 }
 0x41c   :  { %v822_v14 = vmul.f32 %v10206_v35, %v10206_v35 }
 0x41d   :  { %v960_v27 = vadd.f32 %v959_v62, %v817_v39  ;;  %14378 = vst [vmem:[#allocation77_spill] sm:$0xff] %v10199_v40  ;;  %v670_v62 = vadd.f32 %v669_v16, %v10187_v12  ;;  %v821_v42 = vmul.f32 %v10199_v40, %v10199_v40  ;;  %v823_v16 = vmul.f32 %v10213_v18, %v10213_v18 }
 0x41f   :  { %v961_v46 = vadd.f32 %v960_v27, %v818_v6  ;;  %v671_v27 = vadd.f32 %v670_v62, %v10199_v40  ;;  %v824_v62 = vmul.f32 %v10220_v20, %v10220_v20  ;;  %v10239_v40 = vadd.f32 %v10022_v31, %v9614_v28 }
 0x420   :  { %v10189_v56 = vpop.f32.mrf.mxu0  ;;  %v10253_v28 = vadd.f32 %v10022_v31, %v9624_v32 }
 0x421   :  { %v962_v39 = vadd.f32 %v961_v46, %v819_v8  ;;  %v151_v8 = vld [vmem:[%s14204_s0 + $0x408] sm:$0xff]  ;;  %v672_v22 = vadd.f32 %v671_v27, %v10206_v35 }
 0x423   :  { %602 = vmatmul.f32.gmra.mxu0 %v150_v0  ;;  %v963_v6 = vadd.f32 %v962_v39, %v820_v54  ;;  %v10232_v54 = vadd.f32 %v10022_v31, %v9609_v26  ;;  %v673_v24 = vadd.f32 %v672_v22, %v10213_v18  ;;  %v10246_v26 = vadd.f32 %v10022_v31, %v9619_v30 }
 0x424   :  { %v826_v22 = vmul.f32 %v10239_v40, %v10239_v40 }
 0x425   :  { %v964_v46 = vadd.f32 %v963_v6, %v821_v42  ;;  %14379 = vst [vmem:[#allocation78_spill] sm:$0xff] %v10232_v54  ;;  %v674_v6 = vadd.f32 %v673_v24, %v10220_v20  ;;  %v825_v27 = vmul.f32 %v10232_v54, %v10232_v54  ;;  %v827_v24 = vmul.f32 %v10246_v26, %v10246_v26 }
 0x427   :  { %v965_v39 = vadd.f32 %v964_v46, %v822_v14  ;;  %v675_v46 = vadd.f32 %v674_v6, %v10232_v54  ;;  %v828_v6 = vmul.f32 %v10253_v28, %v10253_v28  ;;  %v10272_v54 = vadd.f32 %v10022_v31, %v9634_v36 }
 0x428   :  { %v10222_v0 = vpop.f32.mrf.mxu0  ;;  %v10286_v36 = vadd.f32 %v10022_v31, %v9644_v41 }
 0x429   :  { %v966_v42 = vadd.f32 %v965_v39, %v823_v16  ;;  %v152_v16 = vld [vmem:[%s14204_s0 + $0x410] sm:$0xff]  ;;  %v676_v30 = vadd.f32 %v675_v46, %v10239_v40  ;;  %14381 = vst [vmem:[#allocation80_spill] sm:$0xff] %v10272_v54 }
 0x42a   :  { %14383 = vst [vmem:[#allocation82_spill] sm:$0xff] %v10286_v36 }
 0x42b   :  { %605 = vmatmul.f32.gmra.mxu0 %v151_v8  ;;  %v967_v14 = vadd.f32 %v966_v42, %v824_v62  ;;  %v10265_v62 = vadd.f32 %v10022_v31, %v9629_v34  ;;  %v677_v32 = vadd.f32 %v676_v30, %v10246_v26  ;;  %v10279_v34 = vadd.f32 %v10022_v31, %v9639_v38 }
 0x42c   :  { %v830_v30 = vmul.f32 %v10272_v54, %v10272_v54 }
 0x42d   :  { %v968_v39 = vadd.f32 %v967_v14, %v825_v27  ;;  %14380 = vst [vmem:[#allocation79_spill] sm:$0xff] %v10265_v62  ;;  %v678_v14 = vadd.f32 %v677_v32, %v10253_v28  ;;  %v829_v46 = vmul.f32 %v10265_v62, %v10265_v62  ;;  %v831_v32 = vmul.f32 %v10279_v34, %v10279_v34 }
 0x42e   :  { %14382 = vst [vmem:[#allocation81_spill] sm:$0xff] %v10279_v34 }
 0x42f   :  { %v969_v42 = vadd.f32 %v968_v39, %v826_v22  ;;  %v679_v39 = vadd.f32 %v678_v14, %v10265_v62  ;;  %v832_v14 = vmul.f32 %v10286_v36, %v10286_v36  ;;  %v10305_v62 = vadd.f32 %v10022_v31, %v9654_v49 }
 0x430   :  { %v10255_v8 = vpop.f32.mrf.mxu0  ;;  %v10319_v49 = vadd.f32 %v10022_v31, %v9664_v57 }
 0x431   :  { %v970_v27 = vadd.f32 %v969_v42, %v827_v24  ;;  %v153_v24 = vld [vmem:[%s14204_s0 + $0x418] sm:$0xff]  ;;  %v680_v38 = vadd.f32 %v679_v39, %v10272_v54  ;;  %14385 = vst [vmem:[#allocation84_spill] sm:$0xff] %v10305_v62 }
 0x432   :  { %14387 = vst [vmem:[#allocation86_spill] sm:$0xff] %v10319_v49 }
 0x433   :  { %608 = vmatmul.f32.gmra.mxu0 %v152_v16  ;;  %v971_v22 = vadd.f32 %v970_v27, %v828_v6  ;;  %v10298_v6 = vadd.f32 %v10022_v31, %v9649_v45  ;;  %v681_v41 = vadd.f32 %v680_v38, %v10279_v34  ;;  %v10312_v45 = vadd.f32 %v10022_v31, %v9659_v53 }
 0x434   :  { %v834_v38 = vmul.f32 %v10305_v62, %v10305_v62 }
 0x435   :  { %v972_v42 = vadd.f32 %v971_v22, %v829_v46  ;;  %14384 = vst [vmem:[#allocation83_spill] sm:$0xff] %v10298_v6  ;;  %v682_v22 = vadd.f32 %v681_v41, %v10286_v36  ;;  %v833_v39 = vmul.f32 %v10298_v6, %v10298_v6  ;;  %v835_v41 = vmul.f32 %v10312_v45, %v10312_v45 }
 0x436   :  { %14386 = vst [vmem:[#allocation85_spill] sm:$0xff] %v10312_v45 }
 0x437   :  { %v973_v27 = vadd.f32 %v972_v42, %v830_v30  ;;  %v683_v42 = vadd.f32 %v682_v22, %v10298_v6  ;;  %v836_v22 = vmul.f32 %v10319_v49, %v10319_v49  ;;  %v10338_v6 = vadd.f32 %v10022_v31, %v9674_v1 }
 0x438   :  { %v10288_v16 = vpop.f32.mrf.mxu0  ;;  %v10352_v1 = vadd.f32 %v10022_v31, %v9684_v9 }
 0x439   :  { %v974_v46 = vadd.f32 %v973_v27, %v831_v32  ;;  %v154_v32 = vld [vmem:[%s14204_s0 + $0x420] sm:$0xff]  ;;  %v684_v53 = vadd.f32 %v683_v42, %v10305_v62  ;;  %14389 = vst [vmem:[#allocation88_spill] sm:$0xff] %v10338_v6 }
 0x43a   :  { %14391 = vst [vmem:[#allocation90_spill] sm:$0xff] %v10352_v1 }
 0x43b   :  { %611 = vmatmul.f32.gmra.mxu0 %v153_v24  ;;  %v975_v30 = vadd.f32 %v974_v46, %v832_v14  ;;  %v10331_v14 = vadd.f32 %v10022_v31, %v9669_v61  ;;  %v685_v57 = vadd.f32 %v684_v53, %v10312_v45  ;;  %v10345_v61 = vadd.f32 %v10022_v31, %v9679_v5 }
 0x43c   :  { %v838_v53 = vmul.f32 %v10338_v6, %v10338_v6 }
 0x43d   :  { %v976_v27 = vadd.f32 %v975_v30, %v833_v39  ;;  %14388 = vst [vmem:[#allocation87_spill] sm:$0xff] %v10331_v14  ;;  %v686_v30 = vadd.f32 %v685_v57, %v10319_v49  ;;  %v837_v42 = vmul.f32 %v10331_v14, %v10331_v14  ;;  %v839_v57 = vmul.f32 %v10345_v61, %v10345_v61 }
 0x43e   :  { %14390 = vst [vmem:[#allocation89_spill] sm:$0xff] %v10345_v61 }
 0x43f   :  { %v977_v46 = vadd.f32 %v976_v27, %v834_v38  ;;  %v687_v27 = vadd.f32 %v686_v30, %v10331_v14  ;;  %v840_v30 = vmul.f32 %v10352_v1, %v10352_v1  ;;  %v10371_v14 = vadd.f32 %v10022_v31, %v9694_v17 }
 0x440   :  { %v10321_v24 = vpop.f32.mrf.mxu0  ;;  %v10385_v17 = vadd.f32 %v10022_v31, %v9704_v25 }
 0x441   :  { %v978_v39 = vadd.f32 %v977_v46, %v835_v41  ;;  %v155_v41 = vld [vmem:[%s14204_s0 + $0x428] sm:$0xff]  ;;  %v688_v5 = vadd.f32 %v687_v27, %v10338_v6  ;;  %14393 = vst [vmem:[#allocation92_spill] sm:$0xff] %v10371_v14 }
 0x442   :  { %14395 = vst [vmem:[#allocation94_spill] sm:$0xff] %v10385_v17 }
 0x443   :  { %614 = vmatmul.f32.gmra.mxu0 %v154_v32  ;;  %v979_v38 = vadd.f32 %v978_v39, %v836_v22  ;;  %v10364_v22 = vadd.f32 %v10022_v31, %v9689_v13  ;;  %v689_v9 = vadd.f32 %v688_v5, %v10345_v61  ;;  %v10378_v13 = vadd.f32 %v10022_v31, %v9699_v21 }
 0x444   :  { %v842_v5 = vmul.f32 %v10371_v14, %v10371_v14 }
 0x445   :  { %v980_v46 = vadd.f32 %v979_v38, %v837_v42  ;;  %14392 = vst [vmem:[#allocation91_spill] sm:$0xff] %v10364_v22  ;;  %v690_v38 = vadd.f32 %v689_v9, %v10352_v1  ;;  %v841_v27 = vmul.f32 %v10364_v22, %v10364_v22  ;;  %v843_v9 = vmul.f32 %v10378_v13, %v10378_v13 }
 0x446   :  { %14394 = vst [vmem:[#allocation93_spill] sm:$0xff] %v10378_v13 }
 0x447   :  { %v981_v39 = vadd.f32 %v980_v46, %v838_v53  ;;  %v691_v46 = vadd.f32 %v690_v38, %v10364_v22  ;;  %v844_v38 = vmul.f32 %v10385_v17, %v10385_v17  ;;  %v10404_v22 = vadd.f32 %v10022_v31, %v9714_v33 }
 0x448   :  { %v10354_v32 = vpop.f32.mrf.mxu0  ;;  %v10418_v33 = vadd.f32 %v10022_v31, %v9724_v43 }
 0x449   :  { %v982_v42 = vadd.f32 %v981_v39, %v839_v57  ;;  %v156_v57 = vld [vmem:[%s14204_s0 + $0x430] sm:$0xff]  ;;  %v692_v21 = vadd.f32 %v691_v46, %v10371_v14  ;;  %14397 = vst [vmem:[#allocation96_spill] sm:$0xff] %v10404_v22 }
 0x44a   :  { %14399 = vst [vmem:[#allocation98_spill] sm:$0xff] %v10418_v33 }
 0x44b   :  { %617 = vmatmul.f32.gmra.mxu0 %v155_v41  ;;  %v983_v53 = vadd.f32 %v982_v42, %v840_v30  ;;  %v10397_v30 = vadd.f32 %v10022_v31, %v9709_v29  ;;  %v693_v25 = vadd.f32 %v692_v21, %v10378_v13  ;;  %v10411_v29 = vadd.f32 %v10022_v31, %v9719_v37 }
 0x44c   :  { %v846_v21 = vmul.f32 %v10404_v22, %v10404_v22 }
 0x44d   :  { %v984_v39 = vadd.f32 %v983_v53, %v841_v27  ;;  %14396 = vst [vmem:[#allocation95_spill] sm:$0xff] %v10397_v30  ;;  %v694_v53 = vadd.f32 %v693_v25, %v10385_v17  ;;  %v845_v46 = vmul.f32 %v10397_v30, %v10397_v30  ;;  %v847_v25 = vmul.f32 %v10411_v29, %v10411_v29 }
 0x44e   :  { %14398 = vst [vmem:[#allocation97_spill] sm:$0xff] %v10411_v29 }
 0x44f   :  { %v985_v42 = vadd.f32 %v984_v39, %v842_v5  ;;  %v695_v39 = vadd.f32 %v694_v53, %v10397_v30  ;;  %v848_v53 = vmul.f32 %v10418_v33, %v10418_v33  ;;  %v10437_v30 = vadd.f32 %v10022_v31, %v9734_v59 }
 0x450   :  { %v10387_v41 = vpop.f32.mrf.mxu0 }
 0x451   :  { %v986_v27 = vadd.f32 %v985_v42, %v843_v9  ;;  %v157_v9 = vld [vmem:[%s14204_s0 + $0x438] sm:$0xff]  ;;  %v696_v37 = vadd.f32 %v695_v39, %v10404_v22  ;;  %14401 = vst [vmem:[#allocation100_spill] sm:$0xff] %v10437_v30 }
 0x453   :  { %620 = vmatmul.f32.gmra.mxu0 %v156_v57  ;;  %v987_v5 = vadd.f32 %v986_v27, %v844_v38  ;;  %v10430_v38 = vadd.f32 %v10022_v31, %v9729_v51  ;;  %v697_v43 = vadd.f32 %v696_v37, %v10411_v29  ;;  %v10444_v51 = vadd.f32 %v10022_v31, %v9739_v3  ;;  %v14403_v29 = vld [vmem:[#allocation14_spill] sm:$0xff] }
 0x454   :  { %v850_v37 = vmul.f32 %v10437_v30, %v10437_v30  ;;  %v10451_v59 = vadd.f32 %v10022_v31, %v14403_v29 }
 0x455   :  { %v988_v42 = vadd.f32 %v987_v5, %v845_v46  ;;  %14400 = vst [vmem:[#allocation99_spill] sm:$0xff] %v10430_v38  ;;  %v698_v5 = vadd.f32 %v697_v43, %v10418_v33  ;;  %v849_v39 = vmul.f32 %v10430_v38, %v10430_v38  ;;  %v851_v43 = vmul.f32 %v10444_v51, %v10444_v51  ;;  %v14407_v33 = vld [vmem:[#allocation16_spill] sm:$0xff] }
 0x456   :  { %14402 = vst [vmem:[#allocation101_spill] sm:$0xff] %v10444_v51  ;;  %v10470_v22 = vadd.f32 %v10022_v31, %v14407_v33 }
 0x457   :  { %v989_v27 = vadd.f32 %v988_v42, %v846_v21  ;;  %v699_v42 = vadd.f32 %v698_v5, %v10430_v38  ;;  %14404 = vst [vmem:[#allocation14_spill] sm:$0xff] %v10451_v59  ;;  %v852_v38 = vmul.f32 %v10451_v59, %v10451_v59 }
 0x458   :  { %v10420_v57 = vpop.f32.mrf.mxu0  ;;  %14408 = vst [vmem:[#allocation16_spill] sm:$0xff] %v10470_v22 }
 0x459   :  { %v990_v46 = vadd.f32 %v989_v27, %v847_v25  ;;  %v158_v25 = vld [vmem:[%s14204_s0 + $0x440] sm:$0xff]  ;;  %v700_v3 = vadd.f32 %v699_v42, %v10437_v30 }
 0x45a   :  { %v14409_v30 = vld [vmem:[#allocation17_spill] sm:$0xff] }
 0x45b   :  { %623 = vmatmul.f32.gmra.mxu0 %v157_v9  ;;  %v991_v21 = vadd.f32 %v990_v46, %v848_v53  ;;  %v14405_v53 = vld [vmem:[#allocation15_spill] sm:$0xff]  ;;  %v701_v29 = vadd.f32 %v700_v3, %v10444_v51  ;;  %v854_v3 = vmul.f32 %v10470_v22, %v10470_v22  ;;  %v14411_v51 = vld [vmem:[#allocation18_spill] sm:$0xff] }
 0x45c   :  { %v10463_v46 = vadd.f32 %v10022_v31, %v14405_v53  ;;  %v10477_v53 = vadd.f32 %v10022_v31, %v14409_v30  ;;  %v10484_v33 = vadd.f32 %v10022_v31, %v14411_v51 }
 0x45d   :  { %v992_v27 = vadd.f32 %v991_v21, %v849_v39  ;;  %v702_v21 = vadd.f32 %v701_v29, %v10451_v59  ;;  %v14413_v29 = vld [vmem:[#allocation19_spill] sm:$0xff]  ;;  %v14415_v59 = vld [vmem:[#allocation20_spill] sm:$0xff] }
 0x45e   :  { %14406 = vst [vmem:[#allocation15_spill] sm:$0xff] %v10463_v46  ;;  %v853_v42 = vmul.f32 %v10463_v46, %v10463_v46  ;;  %v10503_v17 = vadd.f32 %v10022_v31, %v14415_v59 }
 0x45f   :  { %v993_v5 = vadd.f32 %v992_v27, %v850_v37  ;;  %14410 = vst [vmem:[#allocation17_spill] sm:$0xff] %v10477_v53  ;;  %v703_v27 = vadd.f32 %v702_v21, %v10463_v46  ;;  %v856_v46 = vmul.f32 %v10484_v33, %v10484_v33 }
 0x460   :  { %v10453_v9 = vpop.f32.mrf.mxu0  ;;  %14412 = vst [vmem:[#allocation18_spill] sm:$0xff] %v10484_v33 }
 0x461   :  { %v994_v39 = vadd.f32 %v993_v5, %v851_v43  ;;  %v159_v43 = vld [vmem:[%s14204_s0 + $0x448] sm:$0xff]  ;;  %v704_v30 = vadd.f32 %v703_v27, %v10470_v22  ;;  %14416 = vst [vmem:[#allocation20_spill] sm:$0xff] %v10503_v17 }
 0x462   :  { %v14417_v22 = vld [vmem:[#allocation21_spill] sm:$0xff] }
 0x463   :  { %626 = vmatmul.f32.gmra.mxu0 %v158_v25  ;;  %v995_v37 = vadd.f32 %v994_v39, %v852_v38  ;;  %v855_v38 = vmul.f32 %v10477_v53, %v10477_v53  ;;  %v10496_v39 = vadd.f32 %v10022_v31, %v14413_v29  ;;  %v705_v51 = vadd.f32 %v704_v30, %v10477_v53  ;;  %v14419_v53 = vld [vmem:[#allocation22_spill] sm:$0xff] }
 0x464   :  { %v10510_v29 = vadd.f32 %v10022_v31, %v14417_v22  ;;  %v858_v30 = vmul.f32 %v10503_v17, %v10503_v17  ;;  %v10517_v59 = vadd.f32 %v10022_v31, %v14419_v53 }
 0x465   :  { %v996_v5 = vadd.f32 %v995_v37, %v853_v42  ;;  %14414 = vst [vmem:[#allocation19_spill] sm:$0xff] %v10496_v39  ;;  %v706_v37 = vadd.f32 %v705_v51, %v10484_v33  ;;  %v857_v27 = vmul.f32 %v10496_v39, %v10496_v39  ;;  %v14421_v51 = vld [vmem:[#allocation23_spill] sm:$0xff]  ;;  %v14423_v33 = vld [vmem:[#allocation24_spill] sm:$0xff] }
 0x466   :  { %14418 = vst [vmem:[#allocation21_spill] sm:$0xff] %v10510_v29  ;;  %v10536_v13 = vadd.f32 %v10022_v31, %v14423_v33 }
 0x467   :  { %v997_v21 = vadd.f32 %v996_v5, %v854_v3  ;;  %v707_v5 = vadd.f32 %v706_v37, %v10496_v39  ;;  %14420 = vst [vmem:[#allocation22_spill] sm:$0xff] %v10517_v59  ;;  %v860_v39 = vmul.f32 %v10517_v59, %v10517_v59 }
 0x468   :  { %v10486_v25 = vpop.f32.mrf.mxu0  ;;  %14424 = vst [vmem:[#allocation24_spill] sm:$0xff] %v10536_v13 }
 0x469   :  { %v998_v42 = vadd.f32 %v997_v21, %v855_v38  ;;  %v160_v38 = vld [vmem:[%s14204_s0 + $0x450] sm:$0xff]  ;;  %v708_v22 = vadd.f32 %v707_v5, %v10503_v17  ;;  %v14425_v17 = vld [vmem:[#allocation25_spill] sm:$0xff] }
 0x46b   :  { %629 = vmatmul.f32.gmra.mxu0 %v159_v43  ;;  %v999_v3 = vadd.f32 %v998_v42, %v856_v46  ;;  %v859_v46 = vmul.f32 %v10510_v29, %v10510_v29  ;;  %v10529_v42 = vadd.f32 %v10022_v31, %v14421_v51  ;;  %v709_v53 = vadd.f32 %v708_v22, %v10510_v29  ;;  %v14427_v29 = vld [vmem:[#allocation26_spill] sm:$0xff] }
 0x46c   :  { %v10543_v51 = vadd.f32 %v10022_v31, %v14425_v17  ;;  %v862_v22 = vmul.f32 %v10536_v13, %v10536_v13  ;;  %v10550_v33 = vadd.f32 %v10022_v31, %v14427_v29 }
 0x46d   :  { %v1000_v21 = vadd.f32 %v999_v3, %v857_v27  ;;  %14422 = vst [vmem:[#allocation23_spill] sm:$0xff] %v10529_v42  ;;  %v710_v3 = vadd.f32 %v709_v53, %v10517_v59  ;;  %v861_v5 = vmul.f32 %v10529_v42, %v10529_v42  ;;  %v14429_v53 = vld [vmem:[#allocation27_spill] sm:$0xff]  ;;  %v14431_v59 = vld [vmem:[#allocation28_spill] sm:$0xff] }
 0x46e   :  { %14426 = vst [vmem:[#allocation25_spill] sm:$0xff] %v10543_v51  ;;  %v10569_v14 = vadd.f32 %v10022_v31, %v14431_v59 }
 0x46f   :  { %v1001_v37 = vadd.f32 %v1000_v21, %v858_v30  ;;  %v711_v21 = vadd.f32 %v710_v3, %v10529_v42  ;;  %14428 = vst [vmem:[#allocation26_spill] sm:$0xff] %v10550_v33  ;;  %v864_v42 = vmul.f32 %v10550_v33, %v10550_v33 }
 0x470   :  { %v10519_v43 = vpop.f32.mrf.mxu0  ;;  %14432 = vst [vmem:[#allocation28_spill] sm:$0xff] %v10569_v14 }
 0x471   :  { %v1002_v27 = vadd.f32 %v1001_v37, %v859_v46  ;;  %v161_v46 = vld [vmem:[%s14204_s0 + $0x458] sm:$0xff]  ;;  %v712_v17 = vadd.f32 %v711_v21, %v10536_v13  ;;  %v14433_v13 = vld [vmem:[#allocation29_spill] sm:$0xff] }
 0x473   :  { %632 = vmatmul.f32.gmra.mxu0 %v160_v38  ;;  %v1003_v30 = vadd.f32 %v1002_v27, %v860_v39  ;;  %v863_v39 = vmul.f32 %v10543_v51, %v10543_v51  ;;  %v10562_v27 = vadd.f32 %v10022_v31, %v14429_v53  ;;  %v713_v29 = vadd.f32 %v712_v17, %v10543_v51  ;;  %v14435_v51 = vld [vmem:[#allocation30_spill] sm:$0xff] }
 0x474   :  { %v10576_v53 = vadd.f32 %v10022_v31, %v14433_v13  ;;  %v866_v17 = vmul.f32 %v10569_v14, %v10569_v14  ;;  %v10583_v59 = vadd.f32 %v10022_v31, %v14435_v51 }
 0x475   :  { %v1004_v37 = vadd.f32 %v1003_v30, %v861_v5  ;;  %14430 = vst [vmem:[#allocation27_spill] sm:$0xff] %v10562_v27  ;;  %v714_v30 = vadd.f32 %v713_v29, %v10550_v33  ;;  %v865_v21 = vmul.f32 %v10562_v27, %v10562_v27  ;;  %v14437_v29 = vld [vmem:[#allocation31_spill] sm:$0xff]  ;;  %v14439_v33 = vld [vmem:[#allocation32_spill] sm:$0xff] }
 0x476   :  { %14434 = vst [vmem:[#allocation29_spill] sm:$0xff] %v10576_v53  ;;  %v10602_v1 = vadd.f32 %v10022_v31, %v14439_v33 }
 0x477   :  { %v1005_v3 = vadd.f32 %v1004_v37, %v862_v22  ;;  %v715_v37 = vadd.f32 %v714_v30, %v10562_v27  ;;  %14436 = vst [vmem:[#allocation30_spill] sm:$0xff] %v10583_v59  ;;  %v868_v27 = vmul.f32 %v10583_v59, %v10583_v59 }
 0x478   :  { %v10552_v38 = vpop.f32.mrf.mxu0  ;;  %14440 = vst [vmem:[#allocation32_spill] sm:$0xff] %v10602_v1 }
 0x479   :  { %v1006_v5 = vadd.f32 %v1005_v3, %v863_v39  ;;  %v162_v39 = vld [vmem:[%s14204_s0 + $0x460] sm:$0xff]  ;;  %v716_v13 = vadd.f32 %v715_v37, %v10569_v14 }
 0x47a   :  { %v14441_v14 = vld [vmem:[#allocation33_spill] sm:$0xff] }
 0x47b   :  { %635 = vmatmul.f32.gmra.mxu0 %v161_v46  ;;  %v1007_v22 = vadd.f32 %v1006_v5, %v864_v42  ;;  %v867_v42 = vmul.f32 %v10576_v53, %v10576_v53  ;;  %v10595_v5 = vadd.f32 %v10022_v31, %v14437_v29  ;;  %v717_v51 = vadd.f32 %v716_v13, %v10576_v53  ;;  %v14443_v53 = vld [vmem:[#allocation34_spill] sm:$0xff] }
 0x47c   :  { %v10609_v29 = vadd.f32 %v10022_v31, %v14441_v14  ;;  %v870_v13 = vmul.f32 %v10602_v1, %v10602_v1  ;;  %v10616_v33 = vadd.f32 %v10022_v31, %v14443_v53 }
 0x47d   :  { %v1008_v3 = vadd.f32 %v1007_v22, %v865_v21  ;;  %14438 = vst [vmem:[#allocation31_spill] sm:$0xff] %v10595_v5  ;;  %v718_v22 = vadd.f32 %v717_v51, %v10583_v59  ;;  %v869_v37 = vmul.f32 %v10595_v5, %v10595_v5  ;;  %v14445_v51 = vld [vmem:[#allocation35_spill] sm:$0xff]  ;;  %v14447_v59 = vld [vmem:[#allocation36_spill] sm:$0xff] }
 0x47e   :  { %14442 = vst [vmem:[#allocation33_spill] sm:$0xff] %v10609_v29  ;;  %v10635_v61 = vadd.f32 %v10022_v31, %v14447_v59 }
 0x47f   :  { %v1009_v30 = vadd.f32 %v1008_v3, %v866_v17  ;;  %v719_v3 = vadd.f32 %v718_v22, %v10595_v5  ;;  %14444 = vst [vmem:[#allocation34_spill] sm:$0xff] %v10616_v33  ;;  %v872_v5 = vmul.f32 %v10616_v33, %v10616_v33 }
 0x480   :  { %v10585_v46 = vpop.f32.mrf.mxu0  ;;  %14448 = vst [vmem:[#allocation36_spill] sm:$0xff] %v10635_v61 }
 0x481   :  { %v1010_v21 = vadd.f32 %v1009_v30, %v867_v42  ;;  %v163_v42 = vld [vmem:[%s14204_s0 + $0x468] sm:$0xff]  ;;  %v720_v14 = vadd.f32 %v719_v3, %v10602_v1 }
 0x482   :  { %v14449_v1 = vld [vmem:[#allocation37_spill] sm:$0xff] }
 0x483   :  { %638 = vmatmul.f32.gmra.mxu0 %v162_v39  ;;  %v1011_v17 = vadd.f32 %v1010_v21, %v868_v27  ;;  %v871_v27 = vmul.f32 %v10609_v29, %v10609_v29  ;;  %v10628_v21 = vadd.f32 %v10022_v31, %v14445_v51  ;;  %v721_v53 = vadd.f32 %v720_v14, %v10609_v29  ;;  %v14451_v29 = vld [vmem:[#allocation38_spill] sm:$0xff] }
 0x484   :  { %v10642_v51 = vadd.f32 %v10022_v31, %v14449_v1  ;;  %v874_v14 = vmul.f32 %v10635_v61, %v10635_v61  ;;  %v10649_v59 = vadd.f32 %v10022_v31, %v14451_v29 }
 0x485   :  { %v1012_v30 = vadd.f32 %v1011_v17, %v869_v37  ;;  %14446 = vst [vmem:[#allocation35_spill] sm:$0xff] %v10628_v21  ;;  %v722_v17 = vadd.f32 %v721_v53, %v10616_v33  ;;  %v873_v3 = vmul.f32 %v10628_v21, %v10628_v21  ;;  %v14453_v53 = vld [vmem:[#allocation39_spill] sm:$0xff]  ;;  %v14455_v33 = vld [vmem:[#allocation40_spill] sm:$0xff] }
 0x486   :  { %14450 = vst [vmem:[#allocation37_spill] sm:$0xff] %v10642_v51  ;;  %v10668_v6 = vadd.f32 %v10022_v31, %v14455_v33 }
 0x487   :  { %v1013_v22 = vadd.f32 %v1012_v30, %v870_v13  ;;  %v723_v30 = vadd.f32 %v722_v17, %v10628_v21  ;;  %14452 = vst [vmem:[#allocation38_spill] sm:$0xff] %v10649_v59  ;;  %v876_v21 = vmul.f32 %v10649_v59, %v10649_v59 }
 0x488   :  { %v10618_v39 = vpop.f32.mrf.mxu0  ;;  %14456 = vst [vmem:[#allocation40_spill] sm:$0xff] %v10668_v6 }
 0x489   :  { %v1014_v37 = vadd.f32 %v1013_v22, %v871_v27  ;;  %v164_v27 = vld [vmem:[%s14204_s0 + $0x470] sm:$0xff]  ;;  %v724_v1 = vadd.f32 %v723_v30, %v10635_v61  ;;  %v14457_v61 = vld [vmem:[#allocation41_spill] sm:$0xff] }
 0x48b   :  { %641 = vmatmul.f32.gmra.mxu0 %v163_v42  ;;  %v1015_v13 = vadd.f32 %v1014_v37, %v872_v5  ;;  %v875_v5 = vmul.f32 %v10642_v51, %v10642_v51  ;;  %v10661_v37 = vadd.f32 %v10022_v31, %v14453_v53  ;;  %v725_v29 = vadd.f32 %v724_v1, %v10642_v51  ;;  %v14459_v51 = vld [vmem:[#allocation42_spill] sm:$0xff] }
 0x48c   :  { %v10675_v53 = vadd.f32 %v10022_v31, %v14457_v61  ;;  %v878_v1 = vmul.f32 %v10668_v6, %v10668_v6  ;;  %v10682_v33 = vadd.f32 %v10022_v31, %v14459_v51 }
 0x48d   :  { %v1016_v22 = vadd.f32 %v1015_v13, %v873_v3  ;;  %14454 = vst [vmem:[#allocation39_spill] sm:$0xff] %v10661_v37  ;;  %v726_v13 = vadd.f32 %v725_v29, %v10649_v59  ;;  %v877_v30 = vmul.f32 %v10661_v37, %v10661_v37  ;;  %v14461_v29 = vld [vmem:[#allocation43_spill] sm:$0xff]  ;;  %v14463_v59 = vld [vmem:[#allocation44_spill] sm:$0xff] }
 0x48e   :  { %14458 = vst [vmem:[#allocation41_spill] sm:$0xff] %v10675_v53  ;;  %v10701_v49 = vadd.f32 %v10022_v31, %v14463_v59 }
 0x48f   :  { %v1017_v17 = vadd.f32 %v1016_v22, %v874_v14  ;;  %v727_v22 = vadd.f32 %v726_v13, %v10661_v37  ;;  %14460 = vst [vmem:[#allocation42_spill] sm:$0xff] %v10682_v33  ;;  %v880_v37 = vmul.f32 %v10682_v33, %v10682_v33 }
 0x490   :  { %v10651_v42 = vpop.f32.mrf.mxu0  ;;  %14464 = vst [vmem:[#allocation44_spill] sm:$0xff] %v10701_v49 }
 0x491   :  { %v1018_v3 = vadd.f32 %v1017_v17, %v875_v5  ;;  %v165_v5 = vld [vmem:[%s14204_s0 + $0x478] sm:$0xff]  ;;  %v728_v61 = vadd.f32 %v727_v22, %v10668_v6  ;;  %v14465_v6 = vld [vmem:[#allocation45_spill] sm:$0xff] }
 0x493   :  { %644 = vmatmul.f32.gmra.mxu0 %v164_v27  ;;  %v1019_v14 = vadd.f32 %v1018_v3, %v876_v21  ;;  %v879_v21 = vmul.f32 %v10675_v53, %v10675_v53  ;;  %v10694_v3 = vadd.f32 %v10022_v31, %v14461_v29  ;;  %v729_v51 = vadd.f32 %v728_v61, %v10675_v53  ;;  %v14467_v53 = vld [vmem:[#allocation46_spill] sm:$0xff] }
 0x494   :  { %v10708_v29 = vadd.f32 %v10022_v31, %v14465_v6  ;;  %v882_v61 = vmul.f32 %v10701_v49, %v10701_v49  ;;  %v10715_v59 = vadd.f32 %v10022_v31, %v14467_v53  ;;  %v14469_v6 = vld [vmem:[#allocation47_spill] sm:$0xff]  ;;  %v14471_v53 = vld [vmem:[#allocation48_spill] sm:$0xff] }
 0x495   :  { %v1020_v17 = vadd.f32 %v1019_v14, %v877_v30  ;;  %14462 = vst [vmem:[#allocation43_spill] sm:$0xff] %v10694_v3  ;;  %v730_v14 = vadd.f32 %v729_v51, %v10682_v33  ;;  %v881_v22 = vmul.f32 %v10694_v3, %v10694_v3  ;;  %v10731_v33 = vadd.f32 %v10022_v31, %v14471_v53 }
 0x496   :  { %14466 = vst [vmem:[#allocation45_spill] sm:$0xff] %v10708_v29  ;;  %v883_v51 = vmul.f32 %v10708_v29, %v10708_v29 }
 0x497   :  { %v1021_v13 = vadd.f32 %v1020_v17, %v878_v1  ;;  %v731_v17 = vadd.f32 %v730_v14, %v10694_v3  ;;  %14468 = vst [vmem:[#allocation46_spill] sm:$0xff] %v10715_v59  ;;  %v884_v3 = vmul.f32 %v10715_v59, %v10715_v59 }
 0x498   :  { %v10684_v27 = vpop.f32.mrf.mxu0  ;;  %14472 = vst [vmem:[#allocation48_spill] sm:$0xff] %v10731_v33 }
 0x499   :  { %v1022_v30 = vadd.f32 %v1021_v13, %v879_v21  ;;  %v732_v13 = vadd.f32 %v731_v17, %v10701_v49  ;;  %v14473_v49 = vld [vmem:[#allocation49_spill] sm:$0xff] }
 0x49b   :  { %647 = vmatmul.f32.gmra.mxu0 %v165_v5  ;;  %v1023_v1 = vadd.f32 %v1022_v30, %v880_v37  ;;  %v10724_v37 = vadd.f32 %v10022_v31, %v14469_v6  ;;  %v733_v14 = vadd.f32 %v732_v13, %v10708_v29  ;;  %v10738_v6 = vadd.f32 %v10022_v31, %v14473_v49  ;;  %v14475_v29 = vld [vmem:[#allocation50_spill] sm:$0xff]  ;;  %v14477_v49 = vld [vmem:[#allocation51_spill] sm:$0xff] }
 0x49c   :  { %v886_v13 = vmul.f32 %v10731_v33, %v10731_v33  ;;  %v10745_v53 = vadd.f32 %v10022_v31, %v14475_v29  ;;  %v14479_v29 = vld [vmem:[#allocation52_spill] sm:$0xff] }
 0x49d   :  { %v1024_v21 = vadd.f32 %v1023_v1, %v881_v22  ;;  %14470 = vst [vmem:[#allocation47_spill] sm:$0xff] %v10724_v37  ;;  %v734_v1 = vadd.f32 %v733_v14, %v10715_v59  ;;  %v885_v17 = vmul.f32 %v10724_v37, %v10724_v37  ;;  %v887_v59 = vmul.f32 %v10738_v6, %v10738_v6 }
 0x49e   :  { %14474 = vst [vmem:[#allocation49_spill] sm:$0xff] %v10738_v6  ;;  %v10761_v45 = vadd.f32 %v10022_v31, %v14479_v29 }
 0x49f   :  { %v1025_v30 = vadd.f32 %v1024_v21, %v882_v61  ;;  %v735_v21 = vadd.f32 %v734_v1, %v10724_v37  ;;  %14476 = vst [vmem:[#allocation50_spill] sm:$0xff] %v10745_v53  ;;  %v888_v37 = vmul.f32 %v10745_v53, %v10745_v53 }
 0x4a0   :  { %v10717_v5 = vpop.f32.mrf.mxu0  ;;  %14480 = vst [vmem:[#allocation52_spill] sm:$0xff] %v10761_v45 }
 0x4a1   :  { %v1026_v22 = vadd.f32 %v1025_v30, %v883_v51  ;;  %v736_v14 = vadd.f32 %v735_v21, %v10731_v33  ;;  %v14481_v33 = vld [vmem:[#allocation53_spill] sm:$0xff] }
 0x4a3   :  { %v1027_v61 = vadd.f32 %v1026_v22, %v884_v3  ;;  %v10754_v3 = vadd.f32 %v10022_v31, %v14477_v49  ;;  %v737_v1 = vadd.f32 %v736_v14, %v10738_v6  ;;  %v10768_v49 = vadd.f32 %v10022_v31, %v14481_v33  ;;  %v14483_v6 = vld [vmem:[#allocation54_spill] sm:$0xff]  ;;  %v14485_v33 = vld [vmem:[#allocation55_spill] sm:$0xff] }
 0x4a4   :  { %v890_v14 = vmul.f32 %v10761_v45, %v10761_v45  ;;  %v10775_v29 = vadd.f32 %v10022_v31, %v14483_v6  ;;  %v14487_v6 = vld [vmem:[#allocation56_spill] sm:$0xff] }
 0x4a5   :  { %v1028_v30 = vadd.f32 %v1027_v61, %v885_v17  ;;  %14478 = vst [vmem:[#allocation51_spill] sm:$0xff] %v10754_v3  ;;  %v738_v61 = vadd.f32 %v737_v1, %v10745_v53  ;;  %v889_v21 = vmul.f32 %v10754_v3, %v10754_v3  ;;  %v891_v53 = vmul.f32 %v10768_v49, %v10768_v49 }
 0x4a6   :  { %14482 = vst [vmem:[#allocation53_spill] sm:$0xff] %v10768_v49  ;;  %v10791_v62 = vadd.f32 %v10022_v31, %v14487_v6 }
 0x4a7   :  { %v1029_v22 = vadd.f32 %v1028_v30, %v886_v13  ;;  %v739_v30 = vadd.f32 %v738_v61, %v10754_v3  ;;  %14484 = vst [vmem:[#allocation54_spill] sm:$0xff] %v10775_v29  ;;  %v892_v3 = vmul.f32 %v10775_v29, %v10775_v29 }
 0x4a8   :  { %v10747_v51 = vpop.f32.mrf.mxu0  ;;  %14488 = vst [vmem:[#allocation56_spill] sm:$0xff] %v10791_v62 }
 0x4a9   :  { %v1030_v17 = vadd.f32 %v1029_v22, %v887_v59  ;;  %v740_v1 = vadd.f32 %v739_v30, %v10761_v45  ;;  %v14489_v45 = vld [vmem:[#allocation57_spill] sm:$0xff] }
 0x4ab   :  { %v1031_v13 = vadd.f32 %v1030_v17, %v888_v37  ;;  %v10784_v37 = vadd.f32 %v10022_v31, %v14485_v33  ;;  %v741_v61 = vadd.f32 %v740_v1, %v10768_v49  ;;  %v10798_v33 = vadd.f32 %v10022_v31, %v14489_v45  ;;  %v14491_v49 = vld [vmem:[#allocation58_spill] sm:$0xff]  ;;  %v14493_v45 = vld [vmem:[#allocation59_spill] sm:$0xff] }
 0x4ac   :  { %v894_v1 = vmul.f32 %v10791_v62, %v10791_v62  ;;  %v10805_v6 = vadd.f32 %v10022_v31, %v14491_v49  ;;  %v14495_v49 = vld [vmem:[#allocation60_spill] sm:$0xff] }
 0x4ad   :  { %v1032_v22 = vadd.f32 %v1031_v13, %v889_v21  ;;  %14486 = vst [vmem:[#allocation55_spill] sm:$0xff] %v10784_v37  ;;  %v742_v13 = vadd.f32 %v741_v61, %v10775_v29  ;;  %v893_v30 = vmul.f32 %v10784_v37, %v10784_v37  ;;  %v895_v29 = vmul.f32 %v10798_v33, %v10798_v33 }
 0x4ae   :  { %14490 = vst [vmem:[#allocation57_spill] sm:$0xff] %v10798_v33  ;;  %v10821_v36 = vadd.f32 %v10022_v31, %v14495_v49 }
 0x4af   :  { %v1033_v17 = vadd.f32 %v1032_v22, %v890_v14  ;;  %v743_v22 = vadd.f32 %v742_v13, %v10784_v37  ;;  %14492 = vst [vmem:[#allocation58_spill] sm:$0xff] %v10805_v6  ;;  %v896_v37 = vmul.f32 %v10805_v6, %v10805_v6 }
 0x4b0   :  { %v10777_v59 = vpop.f32.mrf.mxu0  ;;  %14496 = vst [vmem:[#allocation60_spill] sm:$0xff] %v10821_v36 }
 0x4b1   :  { %v1034_v21 = vadd.f32 %v1033_v17, %v891_v53  ;;  %v744_v61 = vadd.f32 %v743_v22, %v10791_v62  ;;  %v14497_v62 = vld [vmem:[#allocation61_spill] sm:$0xff] }
 0x4b3   :  { %v1035_v14 = vadd.f32 %v1034_v21, %v892_v3  ;;  %v10814_v3 = vadd.f32 %v10022_v31, %v14493_v45  ;;  %v745_v13 = vadd.f32 %v744_v61, %v10798_v33  ;;  %v10828_v45 = vadd.f32 %v10022_v31, %v14497_v62  ;;  %v14499_v33 = vld [vmem:[#allocation62_spill] sm:$0xff]  ;;  %v14501_v62 = vld [vmem:[#allocation63_spill] sm:$0xff] }
 0x4b4   :  { %v898_v61 = vmul.f32 %v10821_v36, %v10821_v36  ;;  %v10835_v49 = vadd.f32 %v10022_v31, %v14499_v33  ;;  %v14503_v33 = vld [vmem:[#allocation64_spill] sm:$0xff] }
 0x4b5   :  { %v1036_v17 = vadd.f32 %v1035_v14, %v893_v30  ;;  %14494 = vst [vmem:[#allocation59_spill] sm:$0xff] %v10814_v3  ;;  %v746_v14 = vadd.f32 %v745_v13, %v10805_v6  ;;  %v897_v22 = vmul.f32 %v10814_v3, %v10814_v3  ;;  %v899_v6 = vmul.f32 %v10828_v45, %v10828_v45 }
 0x4b6   :  { %14498 = vst [vmem:[#allocation61_spill] sm:$0xff] %v10828_v45  ;;  %v10851_v34 = vadd.f32 %v10022_v31, %v14503_v33 }
 0x4b7   :  { %v1037_v21 = vadd.f32 %v1036_v17, %v894_v1  ;;  %v747_v17 = vadd.f32 %v746_v14, %v10814_v3  ;;  %14500 = vst [vmem:[#allocation62_spill] sm:$0xff] %v10835_v49  ;;  %v900_v3 = vmul.f32 %v10835_v49, %v10835_v49 }
 0x4b8   :  { %v10807_v53 = vpop.f32.mrf.mxu0  ;;  %14504 = vst [vmem:[#allocation64_spill] sm:$0xff] %v10851_v34 }
 0x4b9   :  { %v1038_v30 = vadd.f32 %v1037_v21, %v895_v29  ;;  %v748_v13 = vadd.f32 %v747_v17, %v10821_v36  ;;  %v14505_v36 = vld [vmem:[#allocation65_spill] sm:$0xff] }
 0x4bb   :  { %v1039_v1 = vadd.f32 %v1038_v30, %v896_v37  ;;  %v10844_v37 = vadd.f32 %v10022_v31, %v14501_v62  ;;  %v749_v14 = vadd.f32 %v748_v13, %v10828_v45  ;;  %v10858_v62 = vadd.f32 %v10022_v31, %v14505_v36  ;;  %v14507_v45 = vld [vmem:[#allocation66_spill] sm:$0xff]  ;;  %v14509_v36 = vld [vmem:[#allocation67_spill] sm:$0xff] }
 0x4bc   :  { %v902_v13 = vmul.f32 %v10851_v34, %v10851_v34  ;;  %v10865_v33 = vadd.f32 %v10022_v31, %v14507_v45  ;;  %v14510_v45 = vld [vmem:[#allocation68_spill] sm:$0xff] }
 0x4bd   :  { %v1040_v21 = vadd.f32 %v1039_v1, %v897_v22  ;;  %14502 = vst [vmem:[#allocation63_spill] sm:$0xff] %v10844_v37  ;;  %v750_v1 = vadd.f32 %v749_v14, %v10835_v49  ;;  %v901_v17 = vmul.f32 %v10844_v37, %v10844_v37  ;;  %v903_v49 = vmul.f32 %v10858_v62, %v10858_v62 }
 0x4be   :  { %14506 = vst [vmem:[#allocation65_spill] sm:$0xff] %v10858_v62  ;;  %v10881_v54 = vadd.f32 %v10022_v31, %v14510_v45 }
 0x4bf   :  { %v1041_v30 = vadd.f32 %v1040_v21, %v898_v61  ;;  %v751_v21 = vadd.f32 %v750_v1, %v10844_v37  ;;  %14508 = vst [vmem:[#allocation66_spill] sm:$0xff] %v10865_v33  ;;  %v904_v37 = vmul.f32 %v10865_v33, %v10865_v33 }
 0x4c0   :  { %v10837_v29 = vpop.f32.mrf.mxu0 }
 0x4c1   :  { %v1042_v22 = vadd.f32 %v1041_v30, %v899_v6  ;;  %v752_v14 = vadd.f32 %v751_v21, %v10851_v34  ;;  %v14511_v34 = vld [vmem:[#allocation69_spill] sm:$0xff] }
 0x4c3   :  { %v1043_v61 = vadd.f32 %v1042_v22, %v900_v3  ;;  %v10874_v3 = vadd.f32 %v10022_v31, %v14509_v36  ;;  %v753_v1 = vadd.f32 %v752_v14, %v10858_v62  ;;  %v10888_v36 = vadd.f32 %v10022_v31, %v14511_v34  ;;  %v14512_v62 = vld [vmem:[#allocation72_spill] sm:$0xff] }
 0x4c4   :  { %v906_v14 = vmul.f32 %v10881_v54, %v10881_v54  ;;  %v10895_v45 = vadd.f32 %v10022_v31, %v14512_v62  ;;  %v10904_v34 = vadd.f32 %v10022_v31, %v10090_v19  ;;  %v10911_v62 = vadd.f32 %v10022_v31, %v10123_v15 }
 0x4c5   :  { %v1044_v30 = vadd.f32 %v1043_v61, %v901_v17  ;;  %v754_v61 = vadd.f32 %v753_v1, %v10865_v33  ;;  %v905_v21 = vmul.f32 %v10874_v3, %v10874_v3  ;;  %v907_v33 = vmul.f32 %v10888_v36, %v10888_v36 }
 0x4c6   :  { %14513 = vst [vmem:[#allocation67_spill] sm:$0xff] %v10895_v45  ;;  %v10918_v19 = vadd.f32 %v10022_v31, %v10156_v55  ;;  %v10925_v15 = vadd.f32 %v10022_v31, %v10189_v56  ;;  %v10935_v55 = vld [vmem:[%s14206_s2] ss:$0 sm:$0xff] }
 0x4c7   :  { %v1045_v22 = vadd.f32 %v1044_v30, %v902_v13  ;;  %v755_v30 = vadd.f32 %v754_v61, %v10874_v3  ;;  %v908_v61 = vmul.f32 %v10895_v45, %v10895_v45 }
 0x4c8   :  { %v10867_v6 = vpop.f32.mrf.mxu0  ;;  %14514 = vst [vmem:[#allocation68_spill] sm:$0xff] %v10925_v15  ;;  %v912_v56 = vmul.f32 %v10925_v15, %v10925_v15 }
 0x4c9   :  { %v1046_v17 = vadd.f32 %v1045_v22, %v903_v49  ;;  %v756_v1 = vadd.f32 %v755_v30, %v10881_v54  ;;  %v909_v30 = vmul.f32 %v10904_v34, %v10904_v34 }
 0x4cb   :  { %v1047_v13 = vadd.f32 %v1046_v17, %v904_v37  ;;  %v757_v17 = vadd.f32 %v756_v1, %v10888_v36  ;;  %v910_v1 = vmul.f32 %v10911_v62, %v10911_v62 }
 0x4cd   :  { %v1048_v22 = vadd.f32 %v1047_v13, %v905_v21  ;;  %v758_v13 = vadd.f32 %v757_v17, %v10895_v45  ;;  %v911_v45 = vmul.f32 %v10918_v19, %v10918_v19 }
 0x4cf   :  { %v1049_v37 = vadd.f32 %v1048_v22, %v906_v14  ;;  %v759_v22 = vadd.f32 %v758_v13, %v10904_v34  ;;  %v10946_v13 = vadd.f32 %v10935_v55, %v10255_v8  ;;  %v10960_v8 = vadd.f32 %v10935_v55, %v10321_v24 }
 0x4d0   :  { %v10897_v49 = vpop.f32.mrf.mxu0  ;;  %v10976_v24 = vadd.f32 %v10935_v55, %v10387_v41  ;;  %v10990_v41 = vadd.f32 %v10935_v55, %v10453_v9  ;;  %v11006_v9 = vadd.f32 %v10935_v55, %v10519_v43  ;;  %v11020_v43 = vadd.f32 %v10935_v55, %v10585_v46 }
 0x4d1   :  { %v1050_v21 = vadd.f32 %v1049_v37, %v907_v33  ;;  %v760_v17 = vadd.f32 %v759_v22, %v10911_v62  ;;  %14515 = vst [vmem:[#allocation69_spill] sm:$0xff] %v10960_v8  ;;  %v11034_v46 = vadd.f32 %v10935_v55, %v10651_v42  ;;  %v11048_v42 = vadd.f32 %v10935_v55, %v10717_v5 }
 0x4d2   :  { %14516 = vst [vmem:[#allocation72_spill] sm:$0xff] %v10990_v41  ;;  %v11062_v5 = vadd.f32 %v10935_v55, %v10777_v59  ;;  %v11076_v59 = vadd.f32 %v10935_v55, %v10837_v29  ;;  %v11090_v29 = vadd.f32 %v10935_v55, %v10897_v49 }
 0x4d3   :  { %v1051_v14 = vadd.f32 %v1050_v21, %v908_v61  ;;  %v10939_v61 = vadd.f32 %v10935_v55, %v10222_v0  ;;  %v761_v31 = vadd.f32 %v760_v17, %v10918_v19  ;;  %v10953_v0 = vadd.f32 %v10935_v55, %v10288_v16  ;;  %14517 = vst [vmem:[#allocation102_spill] sm:$0xff] %v11020_v43 }
 0x4d4   :  { %v914_v17 = vmul.f32 %v10946_v13, %v10946_v13  ;;  %v10969_v16 = vadd.f32 %v10935_v55, %v10354_v32  ;;  %v10983_v32 = vadd.f32 %v10935_v55, %v10420_v57  ;;  %v10999_v57 = vadd.f32 %v10935_v55, %v10486_v25  ;;  %14518 = vst [vmem:[#allocation103_spill] sm:$0xff] %v11048_v42 }
 0x4d5   :  { %v1052_v37 = vadd.f32 %v1051_v14, %v909_v30  ;;  %v762_v14 = vadd.f32 %v761_v31, %v10925_v15  ;;  %v913_v22 = vmul.f32 %v10939_v61, %v10939_v61  ;;  %v915_v15 = vmul.f32 %v10953_v0, %v10953_v0  ;;  %14520 = vst [vmem:[#allocation105_spill] sm:$0xff] %v11062_v5 }
 0x4d6   :  { %v11013_v25 = vadd.f32 %v10935_v55, %v10552_v38  ;;  %v11027_v38 = vadd.f32 %v10935_v55, %v10618_v39  ;;  %v11041_v39 = vadd.f32 %v10935_v55, %v10684_v27  ;;  %v11055_v27 = vadd.f32 %v10935_v55, %v10747_v51  ;;  %14522 = vst [vmem:[#allocation107_spill] sm:$0xff] %v11076_v59 }
 0x4d7   :  { %v1053_v21 = vadd.f32 %v1052_v37, %v910_v1  ;;  %v763_v37 = vadd.f32 %v762_v14, %v10939_v61  ;;  %v916_v14 = vmul.f32 %v10960_v8, %v10960_v8  ;;  %v11069_v51 = vadd.f32 %v10935_v55, %v10807_v53  ;;  %14524 = vst [vmem:[#allocation109_spill] sm:$0xff] %v11090_v29 }
 0x4d8   :  { %v10927_v33 = vpop.f32.mrf.mxu0  ;;  %14519 = vst [vmem:[#allocation104_spill] sm:$0xff] %v11055_v27  ;;  %v11083_v53 = vadd.f32 %v10935_v55, %v10867_v6 }
 0x4d9   :  { %v1054_v30 = vadd.f32 %v1053_v21, %v911_v45  ;;  %v764_v31 = vadd.f32 %v763_v37, %v10946_v13  ;;  %v917_v37 = vmul.f32 %v10969_v16, %v10969_v16  ;;  %14521 = vst [vmem:[#allocation106_spill] sm:$0xff] %v11069_v51  ;;  %v11097_v6 = vadd.f32 %v10935_v55, %v10927_v33 }
 0x4da   :  { %14523 = vst [vmem:[#allocation108_spill] sm:$0xff] %v11083_v53 }
 0x4db   :  { %v1055_v1 = vadd.f32 %v1054_v30, %v912_v56  ;;  %v765_v30 = vadd.f32 %v764_v31, %v10953_v0  ;;  %v918_v31 = vmul.f32 %v10976_v24, %v10976_v24  ;;  %14525 = vst [vmem:[#allocation110_spill] sm:$0xff] %v11097_v6 }
 0x4dd   :  { %v1056_v21 = vadd.f32 %v1055_v1, %v913_v22  ;;  %v766_v1 = vadd.f32 %v765_v30, %v10960_v8  ;;  %v919_v8 = vmul.f32 %v10983_v32, %v10983_v32 }
 0x4df   :  { %v1057_v56 = vadd.f32 %v1056_v21, %v914_v17  ;;  %v767_v21 = vadd.f32 %v766_v1, %v10969_v16  ;;  %v920_v1 = vmul.f32 %v10990_v41, %v10990_v41 }
 0x4e0   :  { %v10962_v45 = vpop.f32.mrf.mxu0 }
 0x4e1   :  { %v1058_v22 = vadd.f32 %v1057_v56, %v915_v15  ;;  %v768_v30 = vadd.f32 %v767_v21, %v10976_v24  ;;  %v921_v21 = vmul.f32 %v10999_v57, %v10999_v57  ;;  %v11104_v49 = vadd.f32 %v10935_v55, %v10962_v45 }
 0x4e3   :  { %v1059_v17 = vadd.f32 %v1058_v22, %v916_v14  ;;  %v769_v22 = vadd.f32 %v768_v30, %v10983_v32  ;;  %v922_v30 = vmul.f32 %v11006_v9, %v11006_v9  ;;  %14526 = vst [vmem:[#allocation111_spill] sm:$0xff] %v11104_v49 }
 0x4e5   :  { %v1060_v56 = vadd.f32 %v1059_v17, %v917_v37  ;;  %v770_v17 = vadd.f32 %v769_v22, %v10990_v41  ;;  %v923_v41 = vmul.f32 %v11013_v25, %v11013_v25 }
 0x4e7   :  { %v1061_v14 = vadd.f32 %v1060_v56, %v918_v31  ;;  %v771_v56 = vadd.f32 %v770_v17, %v10999_v57  ;;  %v924_v17 = vmul.f32 %v11020_v43, %v11020_v43 }
 0x4e8   :  { %v10992_v15 = vpop.f32.mrf.mxu0 }
 0x4e9   :  { %v1062_v37 = vadd.f32 %v1061_v14, %v919_v8  ;;  %v772_v22 = vadd.f32 %v771_v56, %v11006_v9  ;;  %v925_v56 = vmul.f32 %v11027_v38, %v11027_v38  ;;  %v11111_v33 = vadd.f32 %v10935_v55, %v10992_v15 }
 0x4eb   :  { %v1063_v31 = vadd.f32 %v1062_v37, %v920_v1  ;;  %v773_v37 = vadd.f32 %v772_v22, %v11013_v25  ;;  %v926_v22 = vmul.f32 %v11034_v46, %v11034_v46  ;;  %14527 = vst [vmem:[#allocation112_spill] sm:$0xff] %v11111_v33 }
 0x4ed   :  { %v1064_v14 = vadd.f32 %v1063_v31, %v921_v21  ;;  %v774_v31 = vadd.f32 %v773_v37, %v11020_v43  ;;  %v927_v43 = vmul.f32 %v11041_v39, %v11041_v39 }
 0x4ef   :  { %v1065_v1 = vadd.f32 %v1064_v14, %v922_v30  ;;  %v775_v14 = vadd.f32 %v774_v31, %v11027_v38  ;;  %v928_v31 = vmul.f32 %v11048_v42, %v11048_v42 }
 0x4f0   :  { %v633_v8 = vpop.f32.mrf.mxu0 }
 0x4f1   :  { %v1066_v21 = vadd.f32 %v1065_v1, %v923_v41  ;;  %v776_v37 = vadd.f32 %v775_v14, %v11034_v46  ;;  %v929_v14 = vmul.f32 %v11055_v27, %v11055_v27  ;;  %v11117_v45 = vadd.f32 %v10935_v55, %v633_v8 }
 0x4f3   :  { %v1067_v30 = vadd.f32 %v1066_v21, %v924_v17  ;;  %v777_v21 = vadd.f32 %v776_v37, %v11041_v39  ;;  %v930_v37 = vmul.f32 %v11062_v5, %v11062_v5  ;;  %14528 = vst [vmem:[#allocation113_spill] sm:$0xff] %v11117_v45 }
 0x4f5   :  { %v1068_v1 = vadd.f32 %v1067_v30, %v925_v56  ;;  %v778_v30 = vadd.f32 %v777_v21, %v11048_v42  ;;  %v931_v42 = vmul.f32 %v11069_v51, %v11069_v51 }
 0x4f7   :  { %v1069_v17 = vadd.f32 %v1068_v1, %v926_v22  ;;  %v779_v1 = vadd.f32 %v778_v30, %v11055_v27  ;;  %v932_v30 = vmul.f32 %v11076_v59, %v11076_v59 }
 0x4f8   :  { %v636_v41 = vpop.f32.mrf.mxu0 }
 0x4f9   :  { %v1070_v56 = vadd.f32 %v1069_v17, %v927_v43  ;;  %v780_v21 = vadd.f32 %v779_v1, %v11062_v5  ;;  %v933_v1 = vmul.f32 %v11083_v53, %v11083_v53 }
 0x4fb   :  { %v1071_v22 = vadd.f32 %v1070_v56, %v928_v31  ;;  %v781_v56 = vadd.f32 %v780_v21, %v11069_v51  ;;  %v934_v21 = vmul.f32 %v11090_v29, %v11090_v29 }
 0x4fd   :  { %v1072_v17 = vadd.f32 %v1071_v22, %v929_v14  ;;  %v782_v22 = vadd.f32 %v781_v56, %v11076_v59  ;;  %v935_v59 = vmul.f32 %v11097_v6, %v11097_v6 }
 0x4ff   :  { %v1073_v31 = vadd.f32 %v1072_v17, %v930_v37  ;;  %v783_v17 = vadd.f32 %v782_v22, %v11083_v53  ;;  %v936_v22 = vmul.f32 %v11104_v49, %v11104_v49 }
 0x500   :  { %v639_v43 = vpop.f32.mrf.mxu0 }
 0x501   :  { %v1074_v14 = vadd.f32 %v1073_v31, %v931_v42  ;;  %v784_v56 = vadd.f32 %v783_v17, %v11090_v29  ;;  %v11123_v17 = vadd.f32 %v10935_v55, %v636_v41 }
 0x503   :  { %v1075_v37 = vadd.f32 %v1074_v14, %v932_v30  ;;  %v785_v14 = vadd.f32 %v784_v56, %v11097_v6  ;;  %14529 = vst [vmem:[#allocation114_spill] sm:$0xff] %v11123_v17  ;;  %v11129_v56 = vadd.f32 %v10935_v55, %v639_v43 }
 0x505   :  { %v1076_v31 = vadd.f32 %v1075_v37, %v933_v1  ;;  %v786_v1 = vadd.f32 %v785_v14, %v11104_v49  ;;  %v937_v37 = vmul.f32 %v11111_v33, %v11111_v33  ;;  %14530 = vst [vmem:[#allocation115_spill] sm:$0xff] %v11129_v56 }
 0x507   :  { %v1077_v30 = vadd.f32 %v1076_v31, %v934_v21  ;;  %v787_v21 = vadd.f32 %v786_v1, %v11111_v33  ;;  %v938_v31 = vmul.f32 %v11117_v45, %v11117_v45 }
 0x508   :  { %v642_v42 = vpop.f32.mrf.mxu0 }
 0x509   :  { %v1078_v53 = vadd.f32 %v1077_v30, %v935_v59  ;;  %v788_v59 = vadd.f32 %v787_v21, %v11117_v45  ;;  %v939_v30 = vmul.f32 %v11123_v17, %v11123_v17  ;;  %v11135_v14 = vadd.f32 %v10935_v55, %v642_v42 }
 0x50b   :  { %v1079_v15 = vadd.f32 %v1078_v53, %v936_v22  ;;  %14531 = vst [vmem:[#allocation116_spill] sm:$0xff] %v11135_v14  ;;  %v789_v53 = vadd.f32 %v788_v59, %v11123_v17  ;;  %v940_v22 = vmul.f32 %v11129_v56, %v11129_v56 }
 0x50d   :  { %v1080_v6 = vadd.f32 %v1079_v15, %v937_v37  ;;  %v790_v37 = vadd.f32 %v789_v53, %v11129_v56  ;;  %v941_v15 = vmul.f32 %v11135_v14, %v11135_v14 }
 0x50f   :  { %v1081_v41 = vadd.f32 %v1080_v6, %v938_v31  ;;  %v791_v45 = vadd.f32 %v790_v37, %v11135_v14 }
 0x510   :  { %v645_v8 = vpop.f32.mrf.mxu0 }
 0x511   :  { %v11141_v1 = vadd.f32 %v10935_v55, %v645_v8  ;;  %v1082_v43 = vadd.f32 %v1081_v41, %v939_v30 }
 0x513   :  { %14532 = vst [vmem:[#allocation117_spill] sm:$0xff] %v11141_v1  ;;  %v1083_v21 = vadd.f32 %v1082_v43, %v940_v22  ;;  %v942_v6 = vmul.f32 %v11141_v1, %v11141_v1  ;;  %v792_v59 = vadd.f32 %v791_v45, %v11141_v1 }
 0x515   :  { %v1084_v31 = vadd.f32 %v1083_v21, %v941_v15 }
 0x517   :  { %v1085_v8 = vadd.f32 %v1084_v31, %v942_v6 }
 0x518   :  { %v648_v42 = vpop.f32.mrf.mxu0 }
 0x519   :  { %v649_v17 = vadd.f32 %v10935_v55, %v648_v42 }
 0x51b   :  { %v793_v33 = vadd.f32 %v792_v59, %v649_v17  ;;  %v943_v30 = vmul.f32 %v649_v17, %v649_v17 }
 0x51d   :  { %v794_v41 = vrot.slane %v793_v33, 4  ;;  %v1086_v53 = vadd.f32 %v1085_v8, %v943_v30 }
 0x51f   :  { %v795_v56 = vadd.f32 %v794_v41, %v793_v33  ;;  %v1087_v49 = vrot.slane %v1086_v53, 4 }
 0x521   :  { %v796_v29 = vrot.slane %v795_v56, 2  ;;  %v1088_v22 = vadd.f32 %v1087_v49, %v1086_v53 }
 0x523   :  { %v797_v43 = vadd.f32 %v796_v29, %v795_v56  ;;  %v1089_v37 = vrot.slane %v1088_v22, 2  ;;  %v199_v29 = vld [vmem:[%s14206_s2 + $0x1] sm:$0x1] }
 0x525   :  { %v798_v14 = vrot.slane %v797_v43, 1  ;;  %v1090_v51 = vadd.f32 %v1089_v37, %v1088_v22 }
 0x527   :  { %v799_v5 = vadd.f32 %v798_v14, %v797_v43  ;;  %v1091_v27 = vrot.slane %v1090_v51, 1  ;;  %v14533_v43 = vld [vmem:[#allocation71_spill] sm:$0xff] }
 0x529   :  { %v1092_v15 = vadd.f32 %v1091_v27, %v1090_v51  ;;  %v1093_v21 = vmul.f32 0.00086805556, %v799_v5  ;;  %v200_v51 = vld [vmem:[%s14206_s2 + $0x2] sm:$0x1] }
 0x52b   :  { %v1094_v45 = vmul.f32 0.00086805556, %v1092_v15  ;;  %v1095_v1 = vmul.f32 %v1093_v21, %v1093_v21  ;;  %v14534_v15 = vld [vmem:[#allocation70_spill] sm:$0xff] }
 0x52d   :  { %v1096_v55 = vsub.f32 %v1094_v45, %v1095_v1 }
 0x52f   :  { %v1097_v6 = vadd.f32 1e-05, %v1096_v55 }
 0x531   :  { %9274 = vrsqrt.f32 %v1097_v6  ;;  %vm1104_vm1 = vweird.f32 %v1097_v6 }
 0x537   :  { %v9275_v42 = vpop.eup %9274 }
 0x538   :  { %v1099_v31 = vmul.f32 %v9275_v42, %v1097_v6  ;;  %vm1105_vm0 = vweird.f32 %v9275_v42 }
 0x539   :  { %vm1106_vm2 = vmor %vm1104_vm1, %vm1105_vm0 }
 0x53a   :  { %v1100_v59 = vmul.f32 %v9275_v42, %v1099_v31 }
 0x53c   :  { %v1101_v33 = vmul.f32 0.5, %v1100_v59 }
 0x53e   :  { %v1102_v8 = vsub.f32 1.5, %v1101_v33 }
 0x540   :  { %v1103_v49 = vmul.f32 %v9275_v42, %v1102_v8 }
 0x542   :  { %v1107_v27 = vsel %vm1106_vm2, %v9275_v42, %v1103_v49  ;;  %v14535_v42 = vld [vmem:[#allocation73_spill] sm:$0xff] }
 0x543   :  { %v1108_v5 = vmul.f32 %v1107_v27, %v199_v29  ;;  %v14536_v27 = vld [vmem:[#allocation74_spill] sm:$0xff] }
 0x545   :  { %v1109_v56 = vmul.f32 %v1108_v5, %v1093_v21  ;;  %v11157_v14 = vperm.slane %v1108_v5, 0 }
 0x547   :  { %v1110_v1 = vsub.f32 %v200_v51, %v1109_v56  ;;  %v1255_v30 = vmul.f32 %v11157_v14, %v649_v17  ;;  %v1112_v37 = vmul.f32 %v11157_v14, %v14533_v43  ;;  %v1113_v45 = vmul.f32 %v11157_v14, %v14534_v15 }
 0x548   :  { %v1114_v21 = vmul.f32 %v11157_v14, %v10039_v23  ;;  %v1115_v55 = vmul.f32 %v11157_v14, %v10045_v63  ;;  %v1116_v17 = vmul.f32 %v11157_v14, %v10055_v44  ;;  %v1117_v31 = vmul.f32 %v11157_v14, %v14535_v42 }
 0x549   :  { %v11160_v41 = vperm.slane %v1110_v1, 0  ;;  %v1118_v23 = vmul.f32 %v11157_v14, %v10074_v11  ;;  %v1119_v63 = vmul.f32 %v11157_v14, %v10081_v50  ;;  %v1120_v49 = vmul.f32 %v11157_v14, %v10088_v52 }
 0x54a   :  { %v1121_v5 = vmul.f32 %v11157_v14, %v14536_v27  ;;  %v1123_v52 = vmul.f32 %v11157_v14, %v10114_v58  ;;  %v1126_v58 = vmul.f32 %v11157_v14, %v10140_v48 }
 0x54b   :  { %v1400_v53 = vadd.f32 %v11160_v41, %v1255_v30  ;;  %v1257_v6 = vadd.f32 %v11160_v41, %v1112_v37  ;;  %v1258_v59 = vadd.f32 %v11160_v41, %v1113_v45  ;;  %v1259_v33 = vadd.f32 %v11160_v41, %v1114_v21 }
 0x54c   :  { %v1260_v8 = vadd.f32 %v11160_v41, %v1115_v55  ;;  %v1261_v29 = vadd.f32 %v11160_v41, %v1116_v17  ;;  %v1262_v44 = vadd.f32 %v11160_v41, %v1117_v31  ;;  %v1263_v51 = vadd.f32 %v11160_v41, %v1118_v23  ;;  %v14537_v17 = vld [vmem:[#allocation75_spill] sm:$0xff] }
 0x54d   :  { %v1544_v22 = vmax.f32 %v1400_v53, 0.0  ;;  %v1401_v56 = vmax.f32 %v1257_v6, 0.0  ;;  %v1264_v1 = vadd.f32 %v11160_v41, %v1119_v63  ;;  %v1402_v30 = vmax.f32 %v1258_v59, 0.0 }
 0x54e   :  { %v1403_v11 = vmax.f32 %v1259_v33, 0.0  ;;  %v1404_v53 = vmax.f32 %v1260_v8, 0.0  ;;  %v1265_v50 = vadd.f32 %v11160_v41, %v1120_v49  ;;  %v1405_v43 = vmax.f32 %v1261_v29, 0.0 }
 0x54f   :  { %1688 = vst [vmem:[#allocation2 + $0x478] sm:$0xff] %v1544_v22  ;;  %v1122_v22 = vmul.f32 %v11157_v14, %v10107_v7  ;;  %v1266_v37 = vadd.f32 %v11160_v41, %v1121_v5  ;;  %v1406_v15 = vmax.f32 %v1262_v44, 0.0  ;;  %v1124_v45 = vmul.f32 %v11157_v14, %v10121_v60  ;;  %v14538_v44 = vld [vmem:[#allocation76_spill] sm:$0xff] }
 0x550   :  { %1545 = vst [vmem:[#allocation2] sm:$0xff] %v1401_v56  ;;  %v1407_v55 = vmax.f32 %v1263_v51, 0.0  ;;  %v1125_v7 = vmul.f32 %v11157_v14, %v14537_v17  ;;  %v1268_v6 = vadd.f32 %v11160_v41, %v1123_v52  ;;  %v1408_v42 = vmax.f32 %v1264_v1, 0.0 }
 0x551   :  { %1546 = vst [vmem:[#allocation2 + $0x8] sm:$0xff] %v1402_v30  ;;  %v1267_v21 = vadd.f32 %v11160_v41, %v1122_v22  ;;  %v1269_v31 = vadd.f32 %v11160_v41, %v1124_v45  ;;  %v1409_v59 = vmax.f32 %v1265_v50, 0.0  ;;  %v1127_v60 = vmul.f32 %v11157_v14, %v10147_v2  ;;  %v14539_v22 = vld [vmem:[#allocation77_spill] sm:$0xff] }
 0x552   :  { %1547 = vst [vmem:[#allocation2 + $0x10] sm:$0xff] %v1403_v11  ;;  %v1270_v33 = vadd.f32 %v11160_v41, %v1125_v7  ;;  %v1410_v8 = vmax.f32 %v1266_v37, 0.0  ;;  %v1128_v23 = vmul.f32 %v11157_v14, %v10154_v4  ;;  %v1271_v29 = vadd.f32 %v11160_v41, %v1126_v58  ;;  %v14540_v7 = vld [vmem:[#allocation78_spill] sm:$0xff] }
 0x553   :  { %1548 = vst [vmem:[#allocation2 + $0x18] sm:$0xff] %v1404_v53  ;;  %v1411_v63 = vmax.f32 %v1267_v21, 0.0  ;;  %v1129_v48 = vmul.f32 %v11157_v14, %v14538_v44  ;;  %v1272_v49 = vadd.f32 %v11160_v41, %v1127_v60  ;;  %v1412_v27 = vmax.f32 %v1268_v6, 0.0 }
 0x554   :  { %1549 = vst [vmem:[#allocation2 + $0x20] sm:$0xff] %v1405_v43  ;;  %v1130_v2 = vmul.f32 %v11157_v14, %v10173_v47  ;;  %v1273_v5 = vadd.f32 %v11160_v41, %v1128_v23  ;;  %v1413_v51 = vmax.f32 %v1269_v31, 0.0  ;;  %v1131_v4 = vmul.f32 %v11157_v14, %v10180_v10 }
 0x555   :  { %1550 = vst [vmem:[#allocation2 + $0x28] sm:$0xff] %v1406_v15  ;;  %v1274_v56 = vadd.f32 %v11160_v41, %v1129_v48  ;;  %v1414_v1 = vmax.f32 %v1270_v33, 0.0  ;;  %v1132_v30 = vmul.f32 %v11157_v14, %v10187_v12  ;;  %v1415_v53 = vmax.f32 %v1271_v29, 0.0  ;;  %v14541_v29 = vld [vmem:[#allocation79_spill] sm:$0xff]  ;;  %v14542_v48 = vld [vmem:[#allocation80_spill] sm:$0xff] }
 0x556   :  { %1551 = vst [vmem:[#allocation2 + $0x30] sm:$0xff] %v1407_v55  ;;  %v1275_v11 = vadd.f32 %v11160_v41, %v1130_v2  ;;  %v1133_v47 = vmul.f32 %v11157_v14, %v14539_v22  ;;  %v1276_v50 = vadd.f32 %v11160_v41, %v1131_v4  ;;  %v1416_v43 = vmax.f32 %v1272_v49, 0.0  ;;  %v14543_v2 = vld [vmem:[#allocation81_spill] sm:$0xff]  ;;  %v14544_v4 = vld [vmem:[#allocation82_spill] sm:$0xff] }
 0x557   :  { %1552 = vst [vmem:[#allocation2 + $0x38] sm:$0xff] %v1408_v42  ;;  %v1134_v10 = vmul.f32 %v11157_v14, %v10206_v35  ;;  %v1277_v52 = vadd.f32 %v11160_v41, %v1132_v30  ;;  %v1417_v37 = vmax.f32 %v1273_v5, 0.0  ;;  %v1135_v12 = vmul.f32 %v11157_v14, %v10213_v18 }
 0x558   :  { %1553 = vst [vmem:[#allocation2 + $0x40] sm:$0xff] %v1409_v59  ;;  %v1278_v15 = vadd.f32 %v11160_v41, %v1133_v47  ;;  %v1418_v45 = vmax.f32 %v1274_v56, 0.0  ;;  %v1136_v21 = vmul.f32 %v11157_v14, %v10220_v20  ;;  %v1419_v17 = vmax.f32 %v1275_v11, 0.0  ;;  %v14545_v11 = vld [vmem:[#allocation83_spill] sm:$0xff] }
 0x559   :  { %1554 = vst [vmem:[#allocation2 + $0x48] sm:$0xff] %v1410_v8  ;;  %v1279_v55 = vadd.f32 %v11160_v41, %v1134_v10  ;;  %v1137_v35 = vmul.f32 %v11157_v14, %v14540_v7  ;;  %v1280_v6 = vadd.f32 %v11160_v41, %v1135_v12  ;;  %v1420_v42 = vmax.f32 %v1276_v50, 0.0  ;;  %v14546_v50 = vld [vmem:[#allocation84_spill] sm:$0xff] }
 0x55a   :  { %1555 = vst [vmem:[#allocation2 + $0x50] sm:$0xff] %v1411_v63  ;;  %v1138_v18 = vmul.f32 %v11157_v14, %v10239_v40  ;;  %v1281_v58 = vadd.f32 %v11160_v41, %v1136_v21  ;;  %v1421_v31 = vmax.f32 %v1277_v52, 0.0  ;;  %v1139_v20 = vmul.f32 %v11157_v14, %v10246_v26  ;;  %v14548_v21 = vld [vmem:[#allocation86_spill] sm:$0xff] }
 0x55b   :  { %1556 = vst [vmem:[#allocation2 + $0x58] sm:$0xff] %v1412_v27  ;;  %v1282_v59 = vadd.f32 %v11160_v41, %v1137_v35  ;;  %v1422_v60 = vmax.f32 %v1278_v15, 0.0  ;;  %v1140_v33 = vmul.f32 %v11157_v14, %v10253_v28  ;;  %v1423_v23 = vmax.f32 %v1279_v55, 0.0  ;;  %v14549_v35 = vld [vmem:[#allocation87_spill] sm:$0xff] }
 0x55c   :  { %1557 = vst [vmem:[#allocation2 + $0x60] sm:$0xff] %v1413_v51  ;;  %v1283_v8 = vadd.f32 %v11160_v41, %v1138_v18  ;;  %v1141_v40 = vmul.f32 %v11157_v14, %v14541_v29  ;;  %v1284_v63 = vadd.f32 %v11160_v41, %v1139_v20  ;;  %v1424_v44 = vmax.f32 %v1280_v6, 0.0  ;;  %v14552_v29 = vld [vmem:[#allocation90_spill] sm:$0xff] }
 0x55d   :  { %1558 = vst [vmem:[#allocation2 + $0x68] sm:$0xff] %v1414_v1  ;;  %v1142_v26 = vmul.f32 %v11157_v14, %v14542_v48  ;;  %v1285_v49 = vadd.f32 %v11160_v41, %v1140_v33  ;;  %v1425_v27 = vmax.f32 %v1281_v58, 0.0  ;;  %v1143_v28 = vmul.f32 %v11157_v14, %v14543_v2  ;;  %v14550_v58 = vld [vmem:[#allocation88_spill] sm:$0xff]  ;;  %v14553_v48 = vld [vmem:[#allocation91_spill] sm:$0xff] }
 0x55e   :  { %1559 = vst [vmem:[#allocation2 + $0x70] sm:$0xff] %v1415_v53  ;;  %v1286_v5 = vadd.f32 %v11160_v41, %v1141_v40  ;;  %v1426_v51 = vmax.f32 %v1282_v59, 0.0  ;;  %v1144_v56 = vmul.f32 %v11157_v14, %v14544_v4  ;;  %v1427_v30 = vmax.f32 %v1283_v8, 0.0  ;;  %v14554_v2 = vld [vmem:[#allocation92_spill] sm:$0xff]  ;;  %v14555_v4 = vld [vmem:[#allocation93_spill] sm:$0xff] }
 0x55f   :  { %1560 = vst [vmem:[#allocation2 + $0x78] sm:$0xff] %v1416_v43  ;;  %v1287_v1 = vadd.f32 %v11160_v41, %v1142_v26  ;;  %v1145_v53 = vmul.f32 %v11157_v14, %v14545_v11  ;;  %v1288_v22 = vadd.f32 %v11160_v41, %v1143_v28  ;;  %v1428_v47 = vmax.f32 %v1284_v63, 0.0  ;;  %v14556_v11 = vld [vmem:[#allocation94_spill] sm:$0xff] }
 0x560   :  { %1561 = vst [vmem:[#allocation2 + $0x80] sm:$0xff] %v1417_v37  ;;  %v1146_v43 = vmul.f32 %v11157_v14, %v14546_v50  ;;  %v1289_v10 = vadd.f32 %v11160_v41, %v1144_v56  ;;  %v1429_v52 = vmax.f32 %v1285_v49, 0.0  ;;  %v14547_v37 = vld [vmem:[#allocation85_spill] sm:$0xff]  ;;  %v1148_v55 = vmul.f32 %v11157_v14, %v14548_v21  ;;  %v14557_v50 = vld [vmem:[#allocation95_spill] sm:$0xff] }
 0x561   :  { %1562 = vst [vmem:[#allocation2 + $0x88] sm:$0xff] %v1418_v45  ;;  %v1147_v12 = vmul.f32 %v11157_v14, %v14547_v37  ;;  %v1290_v15 = vadd.f32 %v11160_v41, %v1145_v53  ;;  %v1430_v45 = vmax.f32 %v1286_v5, 0.0  ;;  %v1431_v7 = vmax.f32 %v1287_v1, 0.0  ;;  %v14558_v37 = vld [vmem:[#allocation96_spill] sm:$0xff]  ;;  %v14559_v21 = vld [vmem:[#allocation97_spill] sm:$0xff] }
 0x562   :  { %1563 = vst [vmem:[#allocation2 + $0x90] sm:$0xff] %v1419_v17  ;;  %v1291_v17 = vadd.f32 %v11160_v41, %v1146_v43  ;;  %v1149_v6 = vmul.f32 %v11157_v14, %v14549_v35  ;;  %v1432_v18 = vmax.f32 %v1288_v22, 0.0  ;;  %v1293_v20 = vadd.f32 %v11160_v41, %v1148_v55  ;;  %v14560_v35 = vld [vmem:[#allocation98_spill] sm:$0xff] }
 0x563   :  { %1564 = vst [vmem:[#allocation2 + $0x98] sm:$0xff] %v1420_v42  ;;  %v1292_v42 = vadd.f32 %v11160_v41, %v1147_v12  ;;  %v1433_v59 = vmax.f32 %v1289_v10, 0.0  ;;  %v1152_v40 = vmul.f32 %v11157_v14, %v14552_v29  ;;  %v1153_v26 = vmul.f32 %v11157_v14, %v14553_v48  ;;  %v14563_v29 = vld [vmem:[#allocation101_spill] sm:$0xff]  ;;  %v14564_v48 = vld [vmem:[#allocation14_spill] sm:$0xff] }
 0x564   :  { %1565 = vst [vmem:[#allocation2 + $0xa0] sm:$0xff] %v1421_v31  ;;  %v1150_v31 = vmul.f32 %v11157_v14, %v14550_v58  ;;  %v1294_v8 = vadd.f32 %v11160_v41, %v1149_v6  ;;  %v1154_v28 = vmul.f32 %v11157_v14, %v14554_v2  ;;  %v1155_v56 = vmul.f32 %v11157_v14, %v14555_v4  ;;  %v14561_v58 = vld [vmem:[#allocation99_spill] sm:$0xff]  ;;  %v14566_v4 = vld [vmem:[#allocation16_spill] sm:$0xff] }
 0x565   :  { %1566 = vst [vmem:[#allocation2 + $0xa8] sm:$0xff] %v1422_v60  ;;  %v14551_v60 = vld [vmem:[#allocation89_spill] sm:$0xff]  ;;  %v1297_v5 = vadd.f32 %v11160_v41, %v1152_v40  ;;  %v1298_v1 = vadd.f32 %v11160_v41, %v1153_v26  ;;  %v1156_v53 = vmul.f32 %v11157_v14, %v14556_v11  ;;  %v1157_v43 = vmul.f32 %v11157_v14, %v14557_v50  ;;  %v14565_v2 = vld [vmem:[#allocation15_spill] sm:$0xff]  ;;  %v14568_v50 = vld [vmem:[#allocation18_spill] sm:$0xff] }
 0x566   :  { %1567 = vst [vmem:[#allocation2 + $0xb0] sm:$0xff] %v1423_v23  ;;  %v1151_v33 = vmul.f32 %v11157_v14, %v14551_v60  ;;  %v1434_v23 = vmax.f32 %v1290_v15, 0.0  ;;  %v1295_v63 = vadd.f32 %v11160_v41, %v1150_v31  ;;  %v1299_v22 = vadd.f32 %v11160_v41, %v1154_v28  ;;  %v14562_v60 = vld [vmem:[#allocation100_spill] sm:$0xff]  ;;  %v14567_v11 = vld [vmem:[#allocation17_spill] sm:$0xff] }
 0x567   :  { %1568 = vst [vmem:[#allocation2 + $0xb8] sm:$0xff] %v1424_v44  ;;  %v1435_v44 = vmax.f32 %v1291_v17, 0.0  ;;  %v1300_v10 = vadd.f32 %v11160_v41, %v1155_v56  ;;  %v1158_v12 = vmul.f32 %v11157_v14, %v14558_v37  ;;  %v1301_v15 = vadd.f32 %v11160_v41, %v1156_v53  ;;  %v14569_v37 = vld [vmem:[#allocation19_spill] sm:$0xff] }
 0x568   :  { %1569 = vst [vmem:[#allocation2 + $0xc0] sm:$0xff] %v1425_v27  ;;  %v1296_v49 = vadd.f32 %v11160_v41, %v1151_v33  ;;  %v1436_v27 = vmax.f32 %v1292_v42, 0.0  ;;  %v1159_v55 = vmul.f32 %v11157_v14, %v14559_v21  ;;  %v1302_v17 = vadd.f32 %v11160_v41, %v1157_v43  ;;  %v14570_v21 = vld [vmem:[#allocation20_spill] sm:$0xff] }
 0x569   :  { %1570 = vst [vmem:[#allocation2 + $0xc8] sm:$0xff] %v1426_v51  ;;  %v1437_v51 = vmax.f32 %v1293_v20, 0.0  ;;  %v1160_v6 = vmul.f32 %v11157_v14, %v14560_v35  ;;  %v1303_v42 = vadd.f32 %v11160_v41, %v1158_v12  ;;  %v1161_v31 = vmul.f32 %v11157_v14, %v14561_v58  ;;  %v14571_v35 = vld [vmem:[#allocation21_spill] sm:$0xff]  ;;  %v14572_v58 = vld [vmem:[#allocation22_spill] sm:$0xff] }
 0x56a   :  { %1571 = vst [vmem:[#allocation2 + $0xd0] sm:$0xff] %v1427_v30  ;;  %v1438_v30 = vmax.f32 %v1294_v8, 0.0  ;;  %v1304_v20 = vadd.f32 %v11160_v41, %v1159_v55  ;;  %v1162_v33 = vmul.f32 %v11157_v14, %v14562_v60  ;;  %v1163_v40 = vmul.f32 %v11157_v14, %v14563_v29  ;;  %v14573_v60 = vld [vmem:[#allocation23_spill] sm:$0xff]  ;;  %v14574_v29 = vld [vmem:[#allocation24_spill] sm:$0xff] }
 0x56b   :  { %1572 = vst [vmem:[#allocation2 + $0xd8] sm:$0xff] %v1428_v47  ;;  %v1439_v47 = vmax.f32 %v1295_v63, 0.0  ;;  %v1305_v8 = vadd.f32 %v11160_v41, %v1160_v6  ;;  %v1306_v63 = vadd.f32 %v11160_v41, %v1161_v31  ;;  %v1164_v26 = vmul.f32 %v11157_v14, %v14564_v48  ;;  %v14575_v48 = vld [vmem:[#allocation25_spill] sm:$0xff] }
 0x56c   :  { %1573 = vst [vmem:[#allocation2 + $0xe0] sm:$0xff] %v1429_v52  ;;  %v1440_v52 = vmax.f32 %v1296_v49, 0.0  ;;  %v1307_v49 = vadd.f32 %v11160_v41, %v1162_v33  ;;  %v1165_v28 = vmul.f32 %v11157_v14, %v14565_v2  ;;  %v1166_v56 = vmul.f32 %v11157_v14, %v14566_v4  ;;  %v14576_v2 = vld [vmem:[#allocation26_spill] sm:$0xff]  ;;  %v14577_v4 = vld [vmem:[#allocation27_spill] sm:$0xff] }
 0x56d   :  { %1574 = vst [vmem:[#allocation2 + $0xe8] sm:$0xff] %v1430_v45  ;;  %v1441_v45 = vmax.f32 %v1297_v5, 0.0  ;;  %v1308_v5 = vadd.f32 %v11160_v41, %v1163_v40  ;;  %v1167_v53 = vmul.f32 %v11157_v14, %v14567_v11  ;;  %v1168_v43 = vmul.f32 %v11157_v14, %v14568_v50  ;;  %v14578_v11 = vld [vmem:[#allocation28_spill] sm:$0xff]  ;;  %v14579_v50 = vld [vmem:[#allocation29_spill] sm:$0xff] }
 0x56e   :  { %1575 = vst [vmem:[#allocation2 + $0xf0] sm:$0xff] %v1431_v7  ;;  %v1442_v7 = vmax.f32 %v1298_v1, 0.0  ;;  %v1309_v1 = vadd.f32 %v11160_v41, %v1164_v26  ;;  %v1169_v12 = vmul.f32 %v11157_v14, %v14569_v37  ;;  %v1170_v55 = vmul.f32 %v11157_v14, %v14570_v21  ;;  %v14580_v37 = vld [vmem:[#allocation30_spill] sm:$0xff]  ;;  %v14581_v21 = vld [vmem:[#allocation31_spill] sm:$0xff] }
 0x56f   :  { %1576 = vst [vmem:[#allocation2 + $0xf8] sm:$0xff] %v1432_v18  ;;  %v1443_v18 = vmax.f32 %v1299_v22, 0.0  ;;  %v1310_v22 = vadd.f32 %v11160_v41, %v1165_v28  ;;  %v1171_v6 = vmul.f32 %v11157_v14, %v14571_v35  ;;  %v1172_v31 = vmul.f32 %v11157_v14, %v14572_v58  ;;  %v14582_v35 = vld [vmem:[#allocation32_spill] sm:$0xff]  ;;  %v14583_v58 = vld [vmem:[#allocation33_spill] sm:$0xff] }
 0x570   :  { %1577 = vst [vmem:[#allocation2 + $0x100] sm:$0xff] %v1433_v59  ;;  %v1444_v59 = vmax.f32 %v1300_v10, 0.0  ;;  %v1311_v10 = vadd.f32 %v11160_v41, %v1166_v56  ;;  %v1173_v33 = vmul.f32 %v11157_v14, %v14573_v60  ;;  %v1174_v40 = vmul.f32 %v11157_v14, %v14574_v29  ;;  %v14584_v60 = vld [vmem:[#allocation34_spill] sm:$0xff]  ;;  %v14585_v29 = vld [vmem:[#allocation35_spill] sm:$0xff] }
 0x571   :  { %1578 = vst [vmem:[#allocation2 + $0x108] sm:$0xff] %v1434_v23  ;;  %v1445_v23 = vmax.f32 %v1301_v15, 0.0  ;;  %v1312_v15 = vadd.f32 %v11160_v41, %v1167_v53  ;;  %v1175_v26 = vmul.f32 %v11157_v14, %v14575_v48  ;;  %v1176_v28 = vmul.f32 %v11157_v14, %v14576_v2  ;;  %v14586_v48 = vld [vmem:[#allocation36_spill] sm:$0xff]  ;;  %v14587_v2 = vld [vmem:[#allocation37_spill] sm:$0xff] }
 0x572   :  { %1579 = vst [vmem:[#allocation2 + $0x110] sm:$0xff] %v1435_v44  ;;  %v1446_v44 = vmax.f32 %v1302_v17, 0.0  ;;  %v1313_v17 = vadd.f32 %v11160_v41, %v1168_v43  ;;  %v1177_v56 = vmul.f32 %v11157_v14, %v14577_v4  ;;  %v1178_v53 = vmul.f32 %v11157_v14, %v14578_v11  ;;  %v14588_v4 = vld [vmem:[#allocation38_spill] sm:$0xff]  ;;  %v14589_v11 = vld [vmem:[#allocation39_spill] sm:$0xff] }
 0x573   :  { %1580 = vst [vmem:[#allocation2 + $0x118] sm:$0xff] %v1436_v27  ;;  %v1447_v27 = vmax.f32 %v1303_v42, 0.0  ;;  %v1314_v42 = vadd.f32 %v11160_v41, %v1169_v12  ;;  %v1179_v43 = vmul.f32 %v11157_v14, %v14579_v50  ;;  %v1180_v12 = vmul.f32 %v11157_v14, %v14580_v37  ;;  %v14590_v50 = vld [vmem:[#allocation40_spill] sm:$0xff]  ;;  %v14591_v37 = vld [vmem:[#allocation41_spill] sm:$0xff] }
 0x574   :  { %1581 = vst [vmem:[#allocation2 + $0x120] sm:$0xff] %v1437_v51  ;;  %v1448_v51 = vmax.f32 %v1304_v20, 0.0  ;;  %v1315_v20 = vadd.f32 %v11160_v41, %v1170_v55  ;;  %v1181_v55 = vmul.f32 %v11157_v14, %v14581_v21  ;;  %v14592_v21 = vld [vmem:[#allocation42_spill] sm:$0xff] }
 0x575   :  { %1582 = vst [vmem:[#allocation2 + $0x128] sm:$0xff] %v1438_v30  ;;  %v1449_v30 = vmax.f32 %v1305_v8, 0.0  ;;  %v1316_v8 = vadd.f32 %v11160_v41, %v1171_v6  ;;  %v1182_v6 = vmul.f32 %v11157_v14, %v14582_v35  ;;  %v14593_v35 = vld [vmem:[#allocation43_spill] sm:$0xff] }
 0x576   :  { %1583 = vst [vmem:[#allocation2 + $0x130] sm:$0xff] %v1439_v47  ;;  %v1450_v47 = vmax.f32 %v1306_v63, 0.0  ;;  %v1317_v63 = vadd.f32 %v11160_v41, %v1172_v31  ;;  %v1183_v31 = vmul.f32 %v11157_v14, %v14583_v58 }
 0x577   :  { %1584 = vst [vmem:[#allocation2 + $0x138] sm:$0xff] %v1440_v52  ;;  %v1451_v52 = vmax.f32 %v1307_v49, 0.0  ;;  %v1318_v49 = vadd.f32 %v11160_v41, %v1173_v33  ;;  %v1184_v33 = vmul.f32 %v11157_v14, %v14584_v60  ;;  %v14596_v60 = vld [vmem:[#allocation46_spill] sm:$0xff] }
 0x578   :  { %1585 = vst [vmem:[#allocation2 + $0x140] sm:$0xff] %v1441_v45  ;;  %v1452_v45 = vmax.f32 %v1308_v5, 0.0  ;;  %v1319_v5 = vadd.f32 %v11160_v41, %v1174_v40  ;;  %v1185_v40 = vmul.f32 %v11157_v14, %v14585_v29  ;;  %v14597_v29 = vld [vmem:[#allocation47_spill] sm:$0xff] }
 0x579   :  { %1586 = vst [vmem:[#allocation2 + $0x148] sm:$0xff] %v1442_v7  ;;  %v1453_v7 = vmax.f32 %v1309_v1, 0.0  ;;  %v1320_v1 = vadd.f32 %v11160_v41, %v1175_v26  ;;  %v1186_v26 = vmul.f32 %v11157_v14, %v14586_v48 }
 0x57a   :  { %1587 = vst [vmem:[#allocation2 + $0x150] sm:$0xff] %v1443_v18  ;;  %v1454_v18 = vmax.f32 %v1310_v22, 0.0  ;;  %v1321_v22 = vadd.f32 %v11160_v41, %v1176_v28  ;;  %v1187_v28 = vmul.f32 %v11157_v14, %v14587_v2  ;;  %v14600_v2 = vld [vmem:[#allocation50_spill] sm:$0xff] }
 0x57b   :  { %1588 = vst [vmem:[#allocation2 + $0x158] sm:$0xff] %v1444_v59  ;;  %v1455_v59 = vmax.f32 %v1311_v10, 0.0  ;;  %v1322_v10 = vadd.f32 %v11160_v41, %v1177_v56  ;;  %v1188_v56 = vmul.f32 %v11157_v14, %v14588_v4  ;;  %v14601_v4 = vld [vmem:[#allocation51_spill] sm:$0xff] }
 0x57c   :  { %1589 = vst [vmem:[#allocation2 + $0x160] sm:$0xff] %v1445_v23  ;;  %v1456_v23 = vmax.f32 %v1312_v15, 0.0  ;;  %v1323_v15 = vadd.f32 %v11160_v41, %v1178_v53  ;;  %v1189_v53 = vmul.f32 %v11157_v14, %v14589_v11 }
 0x57d   :  { %1590 = vst [vmem:[#allocation2 + $0x168] sm:$0xff] %v1446_v44  ;;  %v1457_v44 = vmax.f32 %v1313_v17, 0.0  ;;  %v1324_v17 = vadd.f32 %v11160_v41, %v1179_v43  ;;  %v1190_v43 = vmul.f32 %v11157_v14, %v14590_v50  ;;  %v14604_v50 = vld [vmem:[#allocation54_spill] sm:$0xff] }
 0x57e   :  { %1591 = vst [vmem:[#allocation2 + $0x170] sm:$0xff] %v1447_v27  ;;  %v1458_v27 = vmax.f32 %v1314_v42, 0.0  ;;  %v1325_v42 = vadd.f32 %v11160_v41, %v1180_v12  ;;  %v1191_v12 = vmul.f32 %v11157_v14, %v14591_v37  ;;  %v14605_v37 = vld [vmem:[#allocation55_spill] sm:$0xff] }
 0x57f   :  { %1592 = vst [vmem:[#allocation2 + $0x178] sm:$0xff] %v1448_v51  ;;  %v1459_v51 = vmax.f32 %v1315_v20, 0.0  ;;  %v1326_v20 = vadd.f32 %v11160_v41, %v1181_v55  ;;  %v1192_v55 = vmul.f32 %v11157_v14, %v14592_v21 }
 0x580   :  { %1593 = vst [vmem:[#allocation2 + $0x180] sm:$0xff] %v1449_v30  ;;  %v1460_v30 = vmax.f32 %v1316_v8, 0.0  ;;  %v1327_v8 = vadd.f32 %v11160_v41, %v1182_v6  ;;  %v1193_v6 = vmul.f32 %v11157_v14, %v14593_v35  ;;  %v1336_v58 = vadd.f32 %v11160_v41, %v1191_v12  ;;  %v14608_v35 = vld [vmem:[#allocation58_spill] sm:$0xff] }
 0x581   :  { %1594 = vst [vmem:[#allocation2 + $0x188] sm:$0xff] %v1450_v47  ;;  %v1461_v47 = vmax.f32 %v1317_v63, 0.0  ;;  %v1328_v63 = vadd.f32 %v11160_v41, %v1183_v31  ;;  %v1205_v12 = vmul.f32 %v11157_v14, %v14605_v37  ;;  %v14617_v37 = vld [vmem:[#allocation67_spill] sm:$0xff] }
 0x582   :  { %1595 = vst [vmem:[#allocation2 + $0x190] sm:$0xff] %v1451_v52  ;;  %v1462_v52 = vmax.f32 %v1318_v49, 0.0  ;;  %v1329_v49 = vadd.f32 %v11160_v41, %v1184_v33  ;;  %v1196_v33 = vmul.f32 %v11157_v14, %v14596_v60  ;;  %v1338_v48 = vadd.f32 %v11160_v41, %v1193_v6 }
 0x583   :  { %1596 = vst [vmem:[#allocation2 + $0x198] sm:$0xff] %v1452_v45  ;;  %v1463_v45 = vmax.f32 %v1319_v5, 0.0  ;;  %v1330_v5 = vadd.f32 %v11160_v41, %v1185_v40  ;;  %v1197_v40 = vmul.f32 %v11157_v14, %v14597_v29  ;;  %v1208_v6 = vmul.f32 %v11157_v14, %v14608_v35  ;;  %v14612_v29 = vld [vmem:[#allocation62_spill] sm:$0xff] }
 0x584   :  { %1597 = vst [vmem:[#allocation2 + $0x1a0] sm:$0xff] %v1453_v7  ;;  %v1464_v7 = vmax.f32 %v1320_v1, 0.0  ;;  %v1331_v1 = vadd.f32 %v11160_v41, %v1186_v26 }
 0x585   :  { %1598 = vst [vmem:[#allocation2 + $0x1a8] sm:$0xff] %v1454_v18  ;;  %v1465_v18 = vmax.f32 %v1321_v22, 0.0  ;;  %v1332_v22 = vadd.f32 %v11160_v41, %v1187_v28  ;;  %v1200_v28 = vmul.f32 %v11157_v14, %v14600_v2  ;;  %v1342_v21 = vadd.f32 %v11160_v41, %v1197_v40 }
 0x586   :  { %1599 = vst [vmem:[#allocation2 + $0x1b0] sm:$0xff] %v1455_v59  ;;  %v1466_v59 = vmax.f32 %v1322_v10, 0.0  ;;  %v1333_v10 = vadd.f32 %v11160_v41, %v1188_v56  ;;  %v1201_v56 = vmul.f32 %v11157_v14, %v14601_v4  ;;  %v11453_v40 = vmul.f32 %v11157_v14, %v14612_v29 }
 0x587   :  { %1600 = vst [vmem:[#allocation2 + $0x1b8] sm:$0xff] %v1456_v23  ;;  %v1467_v23 = vmax.f32 %v1323_v15, 0.0  ;;  %v1334_v15 = vadd.f32 %v11160_v41, %v1189_v53  ;;  %v1476_v31 = vmax.f32 %v1332_v22, 0.0  ;;  %v1480_v53 = vmax.f32 %v1336_v58, 0.0  ;;  %v14603_v22 = vld [vmem:[#allocation53_spill] sm:$0xff]  ;;  %v14609_v58 = vld [vmem:[#allocation59_spill] sm:$0xff] }
 0x588   :  { %1601 = vst [vmem:[#allocation2 + $0x1c0] sm:$0xff] %v1457_v44  ;;  %v1468_v44 = vmax.f32 %v1324_v17, 0.0  ;;  %v1335_v17 = vadd.f32 %v11160_v41, %v1190_v43  ;;  %v1204_v43 = vmul.f32 %v11157_v14, %v14604_v50  ;;  %v1346_v2 = vadd.f32 %v11160_v41, %v1201_v56 }
 0x589   :  { %1602 = vst [vmem:[#allocation2 + $0x1c8] sm:$0xff] %v1458_v27  ;;  %v1469_v27 = vmax.f32 %v1325_v42, 0.0  ;;  %v14594_v42 = vld [vmem:[#allocation44_spill] sm:$0xff]  ;;  %v1478_v26 = vmax.f32 %v1334_v15, 0.0  ;;  %v11480_v56 = vmul.f32 %v11157_v14, %v10881_v54  ;;  %v11494_v54 = vmul.f32 %v11157_v14, %v10904_v34 }
 0x58a   :  { %1603 = vst [vmem:[#allocation2 + $0x1d0] sm:$0xff] %v1459_v51  ;;  %v1470_v51 = vmax.f32 %v1326_v20, 0.0  ;;  %v14595_v20 = vld [vmem:[#allocation45_spill] sm:$0xff]  ;;  %v14606_v15 = vld [vmem:[#allocation56_spill] sm:$0xff] }
 0x58b   :  { %1604 = vst [vmem:[#allocation2 + $0x1d8] sm:$0xff] %v1460_v30  ;;  %v1471_v30 = vmax.f32 %v1327_v8, 0.0  ;;  %v1337_v8 = vadd.f32 %v11160_v41, %v1192_v55  ;;  %v1482_v55 = vmax.f32 %v1338_v48, 0.0  ;;  %v14613_v48 = vld [vmem:[#allocation63_spill] sm:$0xff] }
 0x58c   :  { %1605 = vst [vmem:[#allocation2 + $0x1e0] sm:$0xff] %v1461_v47  ;;  %v1472_v47 = vmax.f32 %v1328_v63, 0.0  ;;  %v14598_v63 = vld [vmem:[#allocation48_spill] sm:$0xff] }
 0x58d   :  { %1606 = vst [vmem:[#allocation2 + $0x1e8] sm:$0xff] %v1462_v52  ;;  %v1473_v52 = vmax.f32 %v1329_v49, 0.0  ;;  %v14599_v49 = vld [vmem:[#allocation49_spill] sm:$0xff] }
 0x58e   :  { %1607 = vst [vmem:[#allocation2 + $0x1f0] sm:$0xff] %v1463_v45  ;;  %v1474_v45 = vmax.f32 %v1330_v5, 0.0 }
 0x58f   :  { %1608 = vst [vmem:[#allocation2 + $0x1f8] sm:$0xff] %v1464_v7  ;;  %v1475_v7 = vmax.f32 %v1331_v1, 0.0  ;;  %v14602_v1 = vld [vmem:[#allocation52_spill] sm:$0xff] }
 0x590   :  { %1609 = vst [vmem:[#allocation2 + $0x200] sm:$0xff] %v1465_v18  ;;  %v1194_v18 = vmul.f32 %v11157_v14, %v14594_v42 }
 0x591   :  { %1610 = vst [vmem:[#allocation2 + $0x208] sm:$0xff] %v1466_v59  ;;  %v1195_v59 = vmul.f32 %v11157_v14, %v14595_v20  ;;  %v14610_v20 = vld [vmem:[#allocation60_spill] sm:$0xff] }
 0x592   :  { %1611 = vst [vmem:[#allocation2 + $0x210] sm:$0xff] %v1467_v23  ;;  %v1477_v23 = vmax.f32 %v1333_v10, 0.0  ;;  %v1339_v5 = vadd.f32 %v11160_v41, %v1194_v18  ;;  %v1341_v10 = vadd.f32 %v11160_v41, %v1196_v33 }
 0x593   :  { %1612 = vst [vmem:[#allocation2 + $0x218] sm:$0xff] %v1468_v44  ;;  %v1198_v44 = vmul.f32 %v11157_v14, %v14598_v63  ;;  %v1340_v11 = vadd.f32 %v11160_v41, %v1195_v59  ;;  %v1210_v59 = vmul.f32 %v11157_v14, %v14610_v20  ;;  %v1345_v63 = vadd.f32 %v11160_v41, %v1200_v28 }
 0x594   :  { %1613 = vst [vmem:[#allocation2 + $0x220] sm:$0xff] %v1469_v27  ;;  %v1199_v27 = vmul.f32 %v11157_v14, %v14599_v49  ;;  %v1483_v18 = vmax.f32 %v1339_v5, 0.0  ;;  %v14614_v49 = vld [vmem:[#allocation64_spill] sm:$0xff]  ;;  %v1486_v5 = vmax.f32 %v1342_v21, 0.0  ;;  %v1350_v21 = vadd.f32 %v11160_v41, %v1205_v12 }
 0x595   :  { %1614 = vst [vmem:[#allocation2 + $0x228] sm:$0xff] %v1470_v51  ;;  %v1479_v51 = vmax.f32 %v1335_v17, 0.0  ;;  %v14607_v17 = vld [vmem:[#allocation57_spill] sm:$0xff]  ;;  %v1343_v42 = vadd.f32 %v11160_v41, %v1198_v44  ;;  %v1484_v33 = vmax.f32 %v1340_v11, 0.0  ;;  %v1485_v44 = vmax.f32 %v1341_v10, 0.0 }
 0x596   :  { %1615 = vst [vmem:[#allocation2 + $0x230] sm:$0xff] %v1471_v30  ;;  %v1202_v30 = vmul.f32 %v11157_v14, %v14602_v1  ;;  %v1344_v60 = vadd.f32 %v11160_v41, %v1199_v27  ;;  %v11462_v27 = vmul.f32 %v11157_v14, %v14614_v49  ;;  %v14616_v1 = vld [vmem:[#allocation66_spill] sm:$0xff]  ;;  %v11516_v12 = vmul.f32 %v11157_v14, %v10946_v13  ;;  %v8928_v13 = vld [vmem:[%s14205_s1 + $0x78] sm:$0xff]  }
 0x597   :  { %1616 = vst [vmem:[#allocation2 + $0x238] sm:$0xff] %v1472_v47  ;;  %v1203_v47 = vmul.f32 %v11157_v14, %v14603_v22  ;;  %v11471_v28 = vmul.f32 %v11157_v14, %v14616_v1  ;;  %v11476_v22 = vmul.f32 %v11157_v14, %v10874_v3  ;;  %v1489_v3 = vmax.f32 %v1345_v63, 0.0  ;;  %v14621_v1 = vld [vmem:[#allocation102_spill] sm:$0xff] }
 0x598   :  { %1617 = vst [vmem:[#allocation2 + $0x240] sm:$0xff] %v1473_v52  ;;  %v1481_v52 = vmax.f32 %v1337_v8, 0.0  ;;  %v14611_v8 = vld [vmem:[#allocation61_spill] sm:$0xff]  ;;  %v1347_v11 = vadd.f32 %v11160_v41, %v1202_v30  ;;  %v1488_v10 = vmax.f32 %v1344_v60, 0.0  ;;  %v11489_v30 = vmul.f32 %v11157_v14, %v14617_v37 }
 0x599   :  { %1618 = vst [vmem:[#allocation2 + $0x248] sm:$0xff] %v1474_v45  ;;  %v1206_v45 = vmul.f32 %v11157_v14, %v14606_v15  ;;  %v1348_v50 = vadd.f32 %v11160_v41, %v1203_v47  ;;  %v1349_v15 = vadd.f32 %v11160_v41, %v1204_v43  ;;  %v11498_v47 = vmul.f32 %v11157_v14, %v10911_v62 }
 0x59a   :  { %1619 = vst [vmem:[#allocation2 + $0x250] sm:$0xff] %v1475_v7  ;;  %v1207_v7 = vmul.f32 %v11157_v14, %v14607_v17  ;;  %v14618_v17 = vld [vmem:[#allocation68_spill] sm:$0xff]  ;;  %v1491_v34 = vmax.f32 %v1347_v11, 0.0  ;;  %v11512_v62 = vmul.f32 %v11157_v14, %v10939_v61  ;;  %v1353_v20 = vadd.f32 %v11160_v41, %v1208_v6 }
 0x59b   :  { %1620 = vst [vmem:[#allocation2 + $0x258] sm:$0xff] %v1476_v31  ;;  %v1209_v31 = vmul.f32 %v11157_v14, %v14609_v58  ;;  %v11507_v43 = vmul.f32 %v11157_v14, %v14618_v17  ;;  %v1351_v35 = vadd.f32 %v11160_v41, %v1206_v45  ;;  %v14619_v58 = vld [vmem:[#allocation69_spill] sm:$0xff]  ;;  %v1493_v61 = vmax.f32 %v1349_v15, 0.0  ;;  %v14622_v17 = vld [vmem:[#allocation103_spill] sm:$0xff] }
 0x59c   :  { %1621 = vst [vmem:[#allocation2 + $0x260] sm:$0xff] %v1477_v23  ;;  %v1211_v23 = vmul.f32 %v11157_v14, %v14611_v8  ;;  %v11525_v45 = vmul.f32 %v11157_v14, %v14619_v58  ;;  %v11538_v8 = vmul.f32 %v11157_v14, %v10976_v24  ;;  %v11542_v6 = vmul.f32 %v11157_v14, %v10983_v32 }
 0x59d   :  { %1622 = vst [vmem:[#allocation2 + $0x268] sm:$0xff] %v1478_v26  ;;  %v11458_v26 = vmul.f32 %v11157_v14, %v14613_v48  ;;  %v1354_v60 = vadd.f32 %v11160_v41, %v1209_v31  ;;  %v1355_v29 = vadd.f32 %v11160_v41, %v1210_v59  ;;  %v1495_v63 = vmax.f32 %v1351_v35, 0.0 }
 0x59e   :  { %1623 = vst [vmem:[#allocation2 + $0x270] sm:$0xff] %v1479_v51  ;;  %v14615_v51 = vld [vmem:[#allocation65_spill] sm:$0xff]  ;;  %v1356_v31 = vadd.f32 %v11160_v41, %v1211_v23  ;;  %v7568_v49 = vunpack.c.l.bf16 %v8928_v13  ;;  %v11552_v24 = vmul.f32 %v11157_v14, %v10999_v57  ;;  %v11556_v32 = vmul.f32 %v11157_v14, %v11006_v9  ;;  %v8927_v23 = vld [vmem:[%s14205_s1 + $0x70] sm:$0xff]  }
 0x59f   :  { %1624 = vst [vmem:[#allocation2 + $0x278] sm:$0xff] %v1480_v53  ;;  %v11467_v4 = vmul.f32 %v11157_v14, %v14615_v51  ;;  %v1487_v53 = vmax.f32 %v1343_v42, 0.0  ;;  %v1352_v42 = vadd.f32 %v11160_v41, %v1207_v7  ;;  %v11533_v7 = vmul.f32 %v11157_v14, %v10969_v16 }
 0x5a0   :  { %1625 = vst [vmem:[#allocation2 + $0x280] sm:$0xff] %v1481_v52  ;;  %v11485_v52 = vmul.f32 %v11157_v14, %v10888_v36  ;;  %v1490_v36 = vmax.f32 %v1346_v2, 0.0  ;;  %v1357_v59 = vadd.f32 %v11160_v41, %v11453_v40  ;;  %v1497_v2 = vmax.f32 %v1353_v20, 0.0 }
 0x5a1   :  { %1626 = vst [vmem:[#allocation2 + $0x288] sm:$0xff] %v1482_v55  ;;  %v11503_v55 = vmul.f32 %v11157_v14, %v10918_v19  ;;  %v1492_v19 = vmax.f32 %v1348_v50, 0.0  ;;  %v1496_v48 = vmax.f32 %v1352_v42, 0.0  ;;  %v1358_v57 = vadd.f32 %v11160_v41, %v11458_v26 }
 0x5a2   :  { %1627 = vst [vmem:[#allocation2 + $0x290] sm:$0xff] %v1483_v18  ;;  %v11521_v18 = vmul.f32 %v11157_v14, %v10953_v0  ;;  %v1494_v0 = vmax.f32 %v1350_v21, 0.0  ;;  %v1498_v51 = vmax.f32 %v1354_v60, 0.0  ;;  %v7565_v9 = vunpack.c.h.bf16 %v8927_v23  ;;  %v14623_v60 = vld [vmem:[#allocation104_spill] sm:$0xff] }
 0x5a3   :  { %1628 = vst [vmem:[#allocation2 + $0x298] sm:$0xff] %v1484_v33  ;;  %v7569_v33 = vunpack.c.h.bf16 %v8928_v13  ;;  %v11571_v40 = vmul.f32 %v11157_v14, %v14621_v1  ;;  %v11575_v11 = vmul.f32 %v11157_v14, %v11027_v38  ;;  %v11581_v26 = vmul.f32 %v11157_v14, %v11034_v46 }
 0x5a4   :  { %1629 = vst [vmem:[#allocation2 + $0x2a0] sm:$0xff] %v1485_v44  ;;  %v14620_v44 = vld [vmem:[#allocation72_spill] sm:$0xff]  ;;  %v1360_v50 = vadd.f32 %v11160_v41, %v11467_v4  ;;  %v7564_v37 = vunpack.c.l.bf16 %v8927_v23  ;;  %v11587_v38 = vmul.f32 %v11157_v14, %v11041_v39  ;;  %v11593_v15 = vadd.f32 %v11160_v41, %v11476_v22  ;;  %v8926_v39 = vld [vmem:[%s14205_s1 + $0x68] sm:$0xff]  }
 0x5a5   :  { %1630 = vst [vmem:[#allocation2 + $0x2a8] sm:$0xff] %v1486_v5  ;;  %v11547_v16 = vmul.f32 %v11157_v14, %v14620_v44  ;;  %4272 = vmatpush.msra.mxu1 %v7569_v33  ;;  %v11565_v5 = vmul.f32 %v11157_v14, %v11013_v25  ;;  %v1499_v25 = vmax.f32 %v1355_v29, 0.0  ;;  %v1501_v46 = vmax.f32 %v1357_v59, 0.0  ;;  %v8936_v4 = vld [vmem:[%s14205_s1 + $0xb8] sm:$0xff]   ;;  %v8935_v29 = vld [vmem:[%s14205_s1 + $0xb0] sm:$0xff]   ;;  %v8925_v44 = vld [vmem:[%s14205_s1 + $0x60] sm:$0xff]  }
 0x5a6   :  { %1631 = vst [vmem:[#allocation2 + $0x2b0] sm:$0xff] %v1487_v53  ;;  %v1359_v53 = vadd.f32 %v11160_v41, %v11462_v27  ;;  %v1361_v27 = vadd.f32 %v11160_v41, %v11471_v28  ;;  %v1502_v21 = vmax.f32 %v1358_v57, 0.0  ;;  %v7601_v28 = vunpack.c.h.bf16 %v8936_v4 }
 0x5a7   :  { %1632 = vst [vmem:[#allocation2 + $0x2b8] sm:$0xff] %v1488_v10  ;;  %4273 = vmatpush.msra.mxu1 %v7568_v49  ;;  %v1500_v10 = vmax.f32 %v1356_v31, 0.0  ;;  %v7561_v22 = vunpack.c.h.bf16 %v8926_v39  ;;  %v11606_v35 = vmul.f32 %v11157_v14, %v14622_v17  ;;  %v1364_v42 = vadd.f32 %v11160_v41, %v11485_v52  ;;  %v14624_v49 = vld [vmem:[#allocation105_spill] sm:$0xff] }
 0x5a8   :  { %1633 = vst [vmem:[#allocation2 + $0x2c0] sm:$0xff] %v1489_v3  ;;  %v8944_v3 = vld [vmem:[%s14205_s1 + $0xf8] sm:$0xff]   ;;  %v1504_v58 = vmax.f32 %v1360_v50, 0.0  ;;  %4337 = vmatpush.msra.mxu2 %v7601_v28  ;;  %v7600_v20 = vunpack.c.l.bf16 %v8936_v4  ;;  %v7560_v13 = vunpack.c.l.bf16 %v8926_v39  ;;  %v1365_v33 = vadd.f32 %v11160_v41, %v11489_v30 }
 0x5a9   :  { %1634 = vst [vmem:[#allocation2 + $0x2c8] sm:$0xff] %v1490_v36  ;;  %4274 = vmatpush.msra.mxu1 %v7565_v9  ;;  %v7633_v36 = vunpack.c.h.bf16 %v8944_v3  ;;  %v1505_v52 = vmax.f32 %v1361_v27, 0.0  ;;  %v1506_v30 = vmax.f32 %v11593_v15, 0.0  ;;  %v11634_v59 = vmul.f32 %v11157_v14, %v14624_v49  ;;  %v8942_v27 = vld [vmem:[%s14205_s1 + $0xe8] sm:$0xff]  }
 0x5aa   :  { %1635 = vst [vmem:[#allocation2 + $0x2d0] sm:$0xff] %v1491_v34  ;;  %v1363_v34 = vadd.f32 %v11160_v41, %v11480_v56  ;;  %v11620_v56 = vadd.f32 %v11160_v41, %v11494_v54  ;;  %4338 = vmatpush.msra.mxu2 %v7600_v20  ;;  %v7597_v54 = vunpack.c.h.bf16 %v8935_v29  ;;  %v11640_v23 = vadd.f32 %v11160_v41, %v11503_v55  ;;  %v8933_v20 = vld [vmem:[%s14205_s1 + $0xa0] sm:$0xff]   ;;  %v8922_v49 = vld [vmem:[%s14205_s1 + $0x48] sm:$0xff]  }
 0x5ab   :  { %1636 = vst [vmem:[#allocation2 + $0x2d8] sm:$0xff] %v1492_v19  ;;  %4275 = vmatpush.msra.mxu1 %v7564_v37  ;;  %v1503_v19 = vmax.f32 %v1359_v53, 0.0  ;;  %4402 = vmatpush.msra.mxu3 %v7633_v36  ;;  %v7596_v9 = vunpack.c.l.bf16 %v8935_v29  ;;  %v7556_v53 = vunpack.c.l.bf16 %v8925_v44  ;;  %v11652_v55 = vadd.f32 %v11160_v41, %v11512_v62  ;;  %v8934_v37 = vld [vmem:[%s14205_s1 + $0xa8] sm:$0xff]   ;;  %v8932_v29 = vld [vmem:[%s14205_s1 + $0x98] sm:$0xff]  }
 0x5ac   :  { %1637 = vst [vmem:[#allocation2 + $0x2e0] sm:$0xff] %v1493_v61  ;;  %v7632_v61 = vunpack.c.l.bf16 %v8944_v3  ;;  %v1507_v57 = vmax.f32 %v1363_v34, 0.0  ;;  %4339 = vmatpush.msra.mxu2 %v7597_v54  ;;  %v1510_v15 = vmax.f32 %v11620_v56, 0.0  ;;  %v7593_v62 = vunpack.c.h.bf16 %v8934_v37  ;;  %v14626_v3 = vld [vmem:[#allocation107_spill] sm:$0xff] }
 0x5ad   :  { %1638 = vst [vmem:[#allocation2 + $0x2e8] sm:$0xff] %v1494_v0  ;;  %v11614_v0 = vmul.f32 %v11157_v14, %v14623_v60  ;;  %4276 = vmatpush.msra.mxu1 %v7561_v22  ;;  %v11666_v39 = vmul.f32 %v11157_v14, %v14626_v3  ;;  %v11674_v28 = vadd.f32 %v11160_v41, %v11521_v18  ;;  %v1512_v22 = vmax.f32 %v11640_v23, 0.0 }
 0x5ae   :  { %1639 = vst [vmem:[#allocation2 + $0x2f0] sm:$0xff] %v1495_v63  ;;  %v8943_v63 = vld [vmem:[%s14205_s1 + $0xf0] sm:$0xff]   ;;  %4403 = vmatpush.msra.mxu3 %v7632_v61  ;;  %4340 = vmatpush.msra.mxu2 %v7596_v9  ;;  %v7592_v17 = vunpack.c.l.bf16 %v8934_v37  ;;  %v7624_v34 = vunpack.c.l.bf16 %v8942_v27  ;;  %v11687_v18 = vadd.f32 %v11160_v41, %v11538_v8  ;;  %v1514_v61 = vmax.f32 %v11652_v55, 0.0  ;;  %v11742_v55 = vld [vmem:[%s14205_s1 + $0x40] sm:$0xff]  }
 0x5af   :  { %1640 = vst [vmem:[#allocation2 + $0x2f8] sm:$0xff] %v1496_v48  ;;  %v7629_v31 = vunpack.c.h.bf16 %v8943_v63  ;;  %v7557_v48 = vunpack.c.h.bf16 %v8925_v44  ;;  %4277 = vmatpush.msra.mxu1 %v7560_v13  ;;  %v7628_v1 = vunpack.c.l.bf16 %v8943_v63  ;;  %v7589_v8 = vunpack.c.h.bf16 %v8933_v20  ;;  %v8940_v63 = vld [vmem:[%s14205_s1 + $0xd8] sm:$0xff]   ;;  %v11728_v9 = vld [vmem:[%s14205_s1 + $0x90] sm:$0xff]   ;;  %v1693_v37 = vld [vmem:[#allocation2 + $0x18] ss:$2 sm:$0xff] }
 0x5b0   :  { %1641 = vst [vmem:[#allocation2 + $0x300] sm:$0xff] %v1497_v2  ;;  %v1367_v2 = vadd.f32 %v11160_v41, %v11498_v47  ;;  %v11648_v47 = vadd.f32 %v11160_v41, %v11507_v43  ;;  %v8924_v43 = vld [vmem:[%s14205_s1 + $0x58] sm:$0xff]   ;;  %4341 = vmatpush.msra.mxu2 %v7593_v62  ;;  %v7588_v56 = vunpack.c.l.bf16 %v8933_v20  ;;  %v1516_v54 = vmax.f32 %v11674_v28, 0.0  ;;  %v1881_v62 = vld [vmem:[#allocation2 + $0x1] ss:$2 sm:$0xff] }
 0x5b1   :  { %1642 = vst [vmem:[#allocation2 + $0x308] sm:$0xff] %v1498_v51  ;;  %v1508_v51 = vmax.f32 %v1364_v42, 0.0  ;;  %4404 = vmatpush.msra.mxu3 %v7629_v31  ;;  %4278 = vmatpush.msra.mxu1 %v7557_v48  ;;  %v7553_v4 = vunpack.c.h.bf16 %v8924_v43  ;;  %v7552_v42 = vunpack.c.l.bf16 %v8924_v43  ;;  %v7585_v31 = vunpack.c.h.bf16 %v8932_v29  ;;  %v11762_v28 = vld [vmem:[%s14205_s1 + $0x88] sm:$0xff]  }
 0x5b2   :  { %1643 = vst [vmem:[#allocation2 + $0x310] sm:$0xff] %v1499_v25  ;;  %v14625_v25 = vld [vmem:[#allocation106_spill] sm:$0xff]  ;;  %v1511_v36 = vmax.f32 %v1367_v2, 0.0  ;;  %4342 = vmatpush.msra.mxu2 %v7592_v17  ;;  %v7617_v48 = vunpack.c.h.bf16 %v8940_v63  ;;  %v14627_v2 = vld [vmem:[#allocation108_spill] sm:$0xff]  ;;  %v1519_v43 = vmax.f32 %v11687_v18, 0.0  ;;  %v14628_v18 = vld [vmem:[#allocation109_spill] sm:$0xff]  ;;  %v1383_v20 = vadd.f32 %v11160_v41, %v11581_v26 }
 0x5b3   :  { %1644 = vst [vmem:[#allocation2 + $0x318] sm:$0xff] %v1500_v10  ;;  %v11644_v50 = vmul.f32 %v11157_v14, %v14625_v25  ;;  %v1509_v10 = vmax.f32 %v1365_v33, 0.0  ;;  %4405 = vmatpush.msra.mxu3 %v7628_v1  ;;  %4279 = vmatpush.msra.mxu1 %v7556_v53  ;;  %v11717_v23 = vmul.f32 %v11157_v14, %v14627_v2  ;;  %v11733_v1 = vld [vmem:[%s14205_s1 + $0xd0] sm:$0xff]   ;;  %v7584_v53 = vunpack.c.l.bf16 %v8932_v29 }
 0x5b4   :  { %1645 = vst [vmem:[#allocation2 + $0x320] sm:$0xff] %v1501_v46  ;;  %v7625_v46 = vunpack.c.h.bf16 %v8942_v27  ;;  %4343 = vmatpush.msra.mxu2 %v7589_v8  ;;  %v7616_v25 = vunpack.c.l.bf16 %v8940_v63  ;;  %v1379_v27 = vadd.f32 %v11160_v41, %v11556_v32  ;;  %v7581_v32 = vunpack.c.h.bf16 %v11728_v9 }
 0x5b5   :  { %1646 = vst [vmem:[#allocation2 + $0x328] sm:$0xff] %v1502_v21  ;;  %v11670_v21 = vadd.f32 %v11160_v41, %v11516_v12  ;;  %v11683_v12 = vadd.f32 %v11160_v41, %v11533_v7  ;;  %4280 = vmatpush.msra.mxu1 %v7553_v4  ;;  %v8923_v7 = vld [vmem:[%s14205_s1 + $0x50] sm:$0xff]   ;;  %v11753_v4 = vadd.f32 %v11160_v41, %v11571_v40  ;;  %v11767_v40 = vld [vmem:[%s14205_s1 + $0xc8] sm:$0xff]   ;;  %v7577_v8 = vunpack.c.h.bf16 %v11762_v28 }
 0x5b6   :  { %1647 = vst [vmem:[#allocation2 + $0x330] sm:$0xff] %v1503_v19  ;;  %4406 = vmatpush.msra.mxu3 %v7625_v46  ;;  %v11679_v19 = vadd.f32 %v11160_v41, %v11525_v45  ;;  %v8941_v45 = vld [vmem:[%s14205_s1 + $0xe0] sm:$0xff]   ;;  %v7549_v60 = vunpack.c.h.bf16 %v8923_v7  ;;  %v7548_v44 = vunpack.c.l.bf16 %v8923_v7  ;;  %4344 = vmatpush.msra.mxu2 %v7588_v56  ;;  %v1384_v7 = vadd.f32 %v11160_v41, %v11587_v38 }
 0x5b7   :  { %1648 = vst [vmem:[#allocation2 + $0x338] sm:$0xff] %v1504_v58  ;;  %v1513_v58 = vmax.f32 %v11648_v47, 0.0  ;;  %v7621_v13 = vunpack.c.h.bf16 %v8941_v45  ;;  %v1515_v33 = vmax.f32 %v11670_v21, 0.0  ;;  %4281 = vmatpush.msra.mxu1 %v7552_v42  ;;  %v7545_v47 = vunpack.c.h.bf16 %v8922_v49  ;;  %v1885_v46 = vld [vmem:[#allocation2 + $0x19] ss:$2 sm:$0xff] }
 0x5b8   :  { %1649 = vst [vmem:[#allocation2 + $0x340] sm:$0xff] %v1505_v52  ;;  %4407 = vmatpush.msra.mxu3 %v7624_v34  ;;  %v7620_v52 = vunpack.c.l.bf16 %v8941_v45  ;;  %4345 = vmatpush.msra.mxu2 %v7585_v31  ;;  %v2074_v17 = vmax.f32 %v1693_v37, %v1885_v46  ;;  %v1382_v34 = vadd.f32 %v11160_v41, %v11575_v11  ;;  %v1523_v45 = vmax.f32 %v1379_v27, 0.0  ;;  %v8929_v38 = vld [vmem:[%s14205_s1 + $0x80] sm:$0xff]  }
 0x5b9   :  { %1650 = vst [vmem:[#allocation2 + $0x348] sm:$0xff] %v1506_v30  ;;  %v11709_v30 = vadd.f32 %v11160_v41, %v11542_v6  ;;  %v1517_v6 = vmax.f32 %v11679_v19, 0.0  ;;  %4282 = vmatpush.msra.mxu1 %v7549_v60  ;;  %v7580_v19 = vunpack.c.l.bf16 %v11728_v9  ;;  %v7540_v11 = vunpack.c.l.bf16 %v11742_v55  ;;  %v14629_v60 = vld [vmem:[#allocation110_spill] sm:$0xff] }
 0x5ba   :  { %1651 = vst [vmem:[#allocation2 + $0x350] sm:$0xff] %v1507_v57  ;;  %4408 = vmatpush.msra.mxu3 %v7621_v13  ;;  %v11721_v57 = vadd.f32 %v11160_v41, %v11547_v16  ;;  %v11737_v16 = vadd.f32 %v11160_v41, %v11552_v24  ;;  %v11748_v24 = vadd.f32 %v11160_v41, %v11565_v5  ;;  %v7613_v5 = vunpack.c.h.bf16 %v11733_v1 }
 0x5bb   :  { %1652 = vst [vmem:[#allocation2 + $0x358] sm:$0xff] %v1508_v51  ;;  %v1518_v51 = vmax.f32 %v11683_v12, 0.0  ;;  %4283 = vmatpush.msra.mxu1 %v7548_v44  ;;  %v1520_v3 = vmax.f32 %v11709_v30, 0.0  ;;  %4346 = vmatpush.msra.mxu2 %v7584_v53  ;;  %v7612_v12 = vunpack.c.l.bf16 %v11733_v1  ;;  %v7609_v13 = vunpack.c.h.bf16 %v11767_v40  ;;  %v1889_v53 = vld [vmem:[#allocation2 + $0x31] ss:$2 sm:$0xff] }
 0x5bc   :  { %1653 = vst [vmem:[#allocation2 + $0x360] sm:$0xff] %v1509_v10  ;;  %4409 = vmatpush.msra.mxu3 %v7620_v52  ;;  %v1689_v10 = vld [vmem:[#allocation2] ss:$2 sm:$0xff]  ;;  %v1521_v21 = vmax.f32 %v11721_v57, 0.0  ;;  %v1522_v42 = vmax.f32 %v11737_v16, 0.0  ;;  %v1247_v26 = vmul.f32 %v11157_v14, %v14629_v60  ;;  %v1525_v56 = vmax.f32 %v11753_v4, 0.0 }
 0x5bd   :  { %1654 = vst [vmem:[#allocation2 + $0x368] sm:$0xff] %v1510_v15  ;;  %v7544_v15 = vunpack.c.l.bf16 %v8922_v49  ;;  %4284 = vmatpush.msra.mxu1 %v7545_v47  ;;  %4347 = vmatpush.msra.mxu2 %v7581_v32  ;;  %v8937_v52 = vld [vmem:[%s14205_s1 + $0xc0] sm:$0xff]   ;;  %v1386_v63 = vadd.f32 %v11160_v41, %v11614_v0  ;;  %v1526_v44 = vmax.f32 %v1382_v34, 0.0  ;;  %v7608_v30 = vunpack.c.l.bf16 %v11767_v40  ;;  %v1883_v60 = vld [vmem:[#allocation2 + $0x11] ss:$2 sm:$0xf] }
 0x5be   :  { %1655 = vst [vmem:[#allocation2 + $0x370] sm:$0xff] %v1511_v36  ;;  %4410 = vmatpush.msra.mxu3 %v7617_v48  ;;  %v7541_v36 = vunpack.c.h.bf16 %v11742_v55  ;;  %v14631_v48 = vld [vmem:[#allocation112_spill] sm:$0xff]  ;;  %v1387_v2 = vadd.f32 %v11160_v41, %v11634_v59  ;;  %v1527_v57 = vmax.f32 %v1383_v20, 0.0  ;;  %v1528_v9 = vmax.f32 %v1384_v7, 0.0  ;;  %v14632_v47 = vld [vmem:[#allocation113_spill] sm:$0xff]  ;;  %v14633_v59 = vld [vmem:[#allocation114_spill] sm:$0xff] }
 0x5bf   :  { %1656 = vst [vmem:[#allocation2 + $0x378] sm:$0xff] %v1512_v22  ;;  %v2072_v22 = vmax.f32 %v1689_v10, %v1881_v62  ;;  %4285 = vmatpush.msra.mxu1 %v7544_v15  ;;  %4348 = vmatpush.msra.mxu2 %v7580_v19  ;;  %v1249_v49 = vmul.f32 %v11157_v14, %v14631_v48  ;;  %v1697_v0 = vld [vmem:[#allocation2 + $0x30] ss:$2 sm:$0xff]  ;;  %v7573_v1 = vunpack.c.h.bf16 %v8929_v38  ;;  %v7605_v16 = vunpack.c.h.bf16 %v8937_v52 }
 0x5c0   :  { %1657 = vst [vmem:[#allocation2 + $0x380] sm:$0xff] %v1513_v58  ;;  %4411 = vmatpush.msra.mxu3 %v7616_v25  ;;  %v1246_v58 = vmul.f32 %v11157_v14, %v14628_v18  ;;  %v1893_v25 = vld [vmem:[#allocation2 + $0x49] ss:$2 sm:$0xff]  ;;  %v1250_v55 = vmul.f32 %v11157_v14, %v14632_v47  ;;  %v1251_v10 = vmul.f32 %v11157_v14, %v14633_v59  ;;  %v7604_v15 = vunpack.c.l.bf16 %v8937_v52  ;;  %v14636_v40 = vld [vmem:[#allocation117_spill] sm:$0xff] }
 0x5c1   :  { %1658 = vst [vmem:[#allocation2 + $0x388] sm:$0xff] %v1514_v61  ;;  %v1524_v61 = vmax.f32 %v11748_v24, 0.0  ;;  %4286 = vmatpush.msra.mxu1 %v7541_v36  ;;  %v11796_v29 = vmax.f32 %v2072_v22, %v2074_v17  ;;  %4349 = vmatpush.msra.mxu2 %v7577_v8  ;;  %v1389_v37 = vadd.f32 %v11160_v41, %v11666_v39  ;;  %v1530_v24 = vmax.f32 %v1386_v63, 0.0  ;;  %v14634_v39 = vld [vmem:[#allocation115_spill] sm:$0xff] }
 0x5c2   :  { %1659 = vst [vmem:[#allocation2 + $0x390] sm:$0xff] %v1515_v33  ;;  %4412 = vmatpush.msra.mxu3 %v7613_v5  ;;  %v1385_v33 = vadd.f32 %v11160_v41, %v11606_v35  ;;  %v7576_v35 = vunpack.c.l.bf16 %v11762_v28  ;;  %v1391_v62 = vadd.f32 %v11160_v41, %v1246_v58  ;;  %v1531_v46 = vmax.f32 %v1387_v2, 0.0  ;;  %v1691_v8 = vld [vmem:[#allocation2 + $0x10] ss:$2 sm:$0xf] }
 0x5c3   :  { %1660 = vst [vmem:[#allocation2 + $0x398] sm:$0xff] %v1516_v54  ;;  %v14630_v54 = vld [vmem:[#allocation111_spill] sm:$0xff]  ;;  %4287 = vmatpush.msra.mxu1 %v7540_v11  ;;  %v2076_v4 = vmax.f32 %v1697_v0, %v1889_v53  ;;  %v1252_v32 = vmul.f32 %v11157_v14, %v14634_v39  ;;  %v1392_v5 = vadd.f32 %v11160_v41, %v1247_v26  ;;  %v1533_v17 = vmax.f32 %v1389_v37, 0.0  ;;  %v11843_v59 = vld [vmem:[#allocation2 + $0xa0] ss:$2 sm:$0xf] }
 0x5c4   :  { %1661 = vst [vmem:[#allocation2 + $0x3a0] sm:$0xff] %v1517_v6  ;;  %4413 = vmatpush.msra.mxu3 %v7612_v12  ;;  %v1248_v31 = vmul.f32 %v11157_v14, %v14630_v54  ;;  %v1701_v6 = vld [vmem:[#allocation2 + $0x48] ss:$2 sm:$0xff]  ;;  %v1529_v27 = vmax.f32 %v1385_v33, 0.0  ;;  %4288 = vmatmul.f32.vlgmr.msra.gmra.mxu1 %v11796_v29  ;;  %v1254_v36 = vmul.f32 %v11157_v14, %v14636_v40  ;;  %v1535_v58 = vmax.f32 %v1391_v62, 0.0 }
 0x5c5   :  { %1662 = vst [vmem:[#allocation2 + $0x3a8] sm:$0xff] %v1518_v51  ;;  %v1388_v51 = vadd.f32 %v11160_v41, %v11644_v50  ;;  %v1390_v50 = vadd.f32 %v11160_v41, %v11717_v23  ;;  %4350 = vmatpush.msra.mxu2 %v7576_v35  ;;  %v14635_v23 = vld [vmem:[#allocation116_spill] sm:$0xff]  ;;  %v1394_v34 = vadd.f32 %v11160_v41, %v1249_v49  ;;  %v1897_v26 = vld [vmem:[#allocation2 + $0x61] ss:$2 sm:$0xff] }
 0x5c6   :  { %1663 = vst [vmem:[#allocation2 + $0x3b0] sm:$0xff] %v1519_v43  ;;  %4414 = vmatpush.msra.mxu3 %v7609_v13  ;;  %v7572_v43 = vunpack.c.l.bf16 %v8929_v38  ;;  %v1253_v28 = vmul.f32 %v11157_v14, %v14635_v23  ;;  %v1393_v22 = vadd.f32 %v11160_v41, %v1248_v31  ;;  %v1396_v12 = vadd.f32 %v11160_v41, %v1251_v10  ;;  %v1705_v14 = vld [vmem:[#allocation2 + $0x60] ss:$2 sm:$0xff]  ;;  %v1901_v33 = vld [vmem:[#allocation2 + $0x79] ss:$2 sm:$0xff] }
 0x5c7   :  { %1664 = vst [vmem:[#allocation2 + $0x3b8] sm:$0xff] %v1520_v3  ;;  %v2078_v3 = vmax.f32 %v1701_v6, %v1893_v25  ;;  %4351 = vmatpush.msra.mxu2 %v7573_v1  ;;  %v1534_v19 = vmax.f32 %v1390_v50, 0.0  ;;  %v1397_v18 = vadd.f32 %v11160_v41, %v1252_v32  ;;  %v11838_v7 = vadd.f32 %v11160_v41, %v1254_v36  ;;  %v1695_v13 = vld [vmem:[#allocation2 + $0x28] ss:$2 sm:$0xf] }
 0x5c8   :  { %1665 = vst [vmem:[#allocation2 + $0x3c0] sm:$0xff] %v1521_v21  ;;  %4415 = vmatpush.msra.mxu3 %v7608_v30  ;;  %v1532_v21 = vmax.f32 %v1388_v51, 0.0  ;;  %v11835_v11 = vadd.f32 %v11160_v41, %v1253_v28  ;;  %v1887_v38 = vld [vmem:[#allocation2 + $0x29] ss:$2 sm:$0xf]  ;;  %v1538_v52 = vmax.f32 %v1394_v34, 0.0  ;;  %v2080_v48 = vmax.f32 %v1705_v14, %v1897_v26 }
 0x5c9   :  { %1666 = vst [vmem:[#allocation2 + $0x3c8] sm:$0xff] %v1522_v42  ;;  %v1395_v42 = vadd.f32 %v11160_v41, %v1250_v55  ;;  %4352 = vmatpush.msra.mxu2 %v7572_v43  ;;  %v11832_v20 = vmax.f32 %v2076_v4, %v2078_v3  ;;  %v1703_v35 = vld [vmem:[#allocation2 + $0x58] ss:$2 sm:$0xf]  ;;  %v1540_v41 = vmax.f32 %v1396_v12, 0.0  ;;  %v1541_v54 = vmax.f32 %v1397_v18, 0.0 }
 0x5ca   :  { %1667 = vst [vmem:[#allocation2 + $0x3d0] sm:$0xff] %v1523_v45  ;;  %4416 = vmatpush.msra.mxu3 %v7605_v16  ;;  %v1709_v45 = vld [vmem:[#allocation2 + $0x78] ss:$2 sm:$0xff]  ;;  %v1891_v30 = vld [vmem:[#allocation2 + $0x41] ss:$2 sm:$0xf]  ;;  %v2075_v1 = vmax.f32 %v1695_v13, %v1887_v38 }
 0x5cb   :  { %1668 = vst [vmem:[#allocation2 + $0x3d8] sm:$0xff] %v1524_v61  ;;  %v1536_v61 = vmax.f32 %v1392_v5, 0.0  ;;  %v1539_v63 = vmax.f32 %v1395_v42, 0.0  ;;  %v1895_v31 = vld [vmem:[#allocation2 + $0x59] ss:$2 sm:$0xf]  ;;  %v2082_v49 = vmax.f32 %v1709_v45, %v1901_v33 }
 0x5cc   :  { %1669 = vst [vmem:[#allocation2 + $0x3e0] sm:$0xff] %v1525_v56  ;;  %4417 = vmatpush.msra.mxu3 %v7604_v15  ;;  %v1537_v56 = vmax.f32 %v1393_v22, 0.0  ;;  %4291 = vmatmul.f32.gmra.mxu1 %v11832_v20  ;;  %v1542_v2 = vmax.f32 %v11835_v11, 0.0  ;;  %v1707_v0 = vld [vmem:[#allocation2 + $0x70] ss:$2 sm:$0xf]  ;;  %v2079_v50 = vmax.f32 %v1703_v35, %v1895_v31 }
 0x5cd   :  { %1670 = vst [vmem:[#allocation2 + $0x3e8] sm:$0xff] %v1526_v44  ;;  %v1699_v44 = vld [vmem:[#allocation2 + $0x40] ss:$2 sm:$0xf]  ;;  %v1713_v53 = vld [vmem:[#allocation2 + $0x90] ss:$2 sm:$0xff] }
 0x5ce   :  { %1671 = vst [vmem:[#allocation2 + $0x3f0] sm:$0xff] %v1527_v57  ;;  %v1543_v57 = vmax.f32 %v11838_v7, 0.0  ;;  %v1711_v6 = vld [vmem:[#allocation2 + $0x88] ss:$2 sm:$0xf] }
 0x5cf   :  { %1672 = vst [vmem:[#allocation2 + $0x3f8] sm:$0xff] %v1528_v9  ;;  %v1899_v51 = vld [vmem:[#allocation2 + $0x71] ss:$2 sm:$0xf]  ;;  %v2073_v9 = vmax.f32 %v1691_v8, %v1883_v60  ;;  %v1717_v25 = vld [vmem:[#allocation2 + $0xa8] ss:$2 sm:$0xff] }
 0x5d0   :  { %1673 = vst [vmem:[#allocation2 + $0x400] sm:$0xff] %v1529_v27  ;;  %v1903_v16 = vld [vmem:[#allocation2 + $0x89] ss:$2 sm:$0xf]  ;;  %v1905_v47 = vld [vmem:[#allocation2 + $0x91] ss:$2 sm:$0xff]  ;;  %v2077_v27 = vmax.f32 %v1699_v44, %v1891_v30 }
 0x5d1   :  { %1674 = vst [vmem:[#allocation2 + $0x408] sm:$0xff] %v1530_v24  ;;  %v1909_v55 = vld [vmem:[#allocation2 + $0xa9] ss:$2 sm:$0xff]  ;;  %v11845_v10 = vld [vmem:[#allocation2 + $0xb8] ss:$2 sm:$0xf]  ;;  %v11847_v24 = vmax.f32 %v2080_v48, %v2082_v49  ;;  %v2169_v5 = vmax.f32 %v2073_v9, %v2075_v1  ;;  %v2083_v23 = vmax.f32 %v1711_v6, %v1903_v16 }
 0x5d2   :  { %1675 = vst [vmem:[#allocation2 + $0x410] sm:$0xff] %v1531_v46  ;;  %v1907_v37 = vld [vmem:[#allocation2 + $0xa1] ss:$2 sm:$0xf]  ;;  %v1721_v15 = vld [vmem:[#allocation2 + $0xc0] ss:$2 sm:$0xff]  ;;  %v2086_v34 = vmax.f32 %v1717_v25, %v1909_v55 }
 0x5d3   :  { %1676 = vst [vmem:[#allocation2 + $0x418] sm:$0xff] %v1532_v21  ;;  %v1911_v43 = vld [vmem:[#allocation2 + $0xb9] ss:$2 sm:$0xf]  ;;  %v1725_v62 = vld [vmem:[#allocation2 + $0xd8] ss:$2 sm:$0xff]  ;;  %v2081_v21 = vmax.f32 %v1707_v0, %v1899_v51  ;;  %v2085_v14 = vmax.f32 %v11843_v59, %v1907_v37 }
 0x5d4   :  { %1677 = vst [vmem:[#allocation2 + $0x420] sm:$0xff] %v1533_v17  ;;  %v1913_v46 = vld [vmem:[#allocation2 + $0xc1] ss:$2 sm:$0xff]  ;;  %v11849_v3 = vld [vmem:[#allocation2 + $0xd0] ss:$2 sm:$0xf]  ;;  %4294 = vmatmul.f32.gmra.mxu1 %v11847_v24  ;;  %v2084_v17 = vmax.f32 %v1713_v53, %v1905_v47  ;;  %v2087_v45 = vmax.f32 %v11845_v10, %v1911_v43 }
 0x5d5   :  { %1678 = vst [vmem:[#allocation2 + $0x428] sm:$0xff] %v1534_v19  ;;  %v1917_v4 = vld [vmem:[#allocation2 + $0xd9] ss:$2 sm:$0xff]  ;;  %v11851_v39 = vld [vmem:[#allocation2 + $0xe8] ss:$2 sm:$0xf]  ;;  %v2088_v13 = vmax.f32 %v1721_v15, %v1913_v46 }
 0x5d6   :  { %1679 = vst [vmem:[#allocation2 + $0x430] sm:$0xff] %v1535_v58  ;;  %v1915_v32 = vld [vmem:[#allocation2 + $0xd1] ss:$2 sm:$0xf]  ;;  %v1729_v40 = vld [vmem:[#allocation2 + $0xf0] ss:$2 sm:$0xff]  ;;  %v2171_v58 = vmax.f32 %v2077_v27, %v2079_v50  ;;  %v2090_v60 = vmax.f32 %v1725_v62, %v1917_v4  ;;  %v11860_v31 = vmax.f32 %v2084_v17, %v2086_v34  ;;  %v2175_v0 = vmax.f32 %v2085_v14, %v2087_v45 }
 0x5d7   :  { %1680 = vst [vmem:[#allocation2 + $0x438] sm:$0xff] %v1536_v61  ;;  %v1919_v28 = vld [vmem:[#allocation2 + $0xe9] ss:$2 sm:$0xf]  ;;  %v1733_v36 = vld [vmem:[#allocation2 + $0x108] ss:$2 sm:$0xff] }
 0x5d8   :  { %1681 = vst [vmem:[#allocation2 + $0x440] sm:$0xff] %v1537_v56  ;;  %v1921_v22 = vld [vmem:[#allocation2 + $0xf1] ss:$2 sm:$0xff]  ;;  %v1731_v19 = vld [vmem:[#allocation2 + $0x100] ss:$2 sm:$0xf]  ;;  %v2091_v44 = vmax.f32 %v11851_v39, %v1919_v28  ;;  %v11863_v16 = vmax.f32 %v2088_v13, %v2090_v60 }
 0x5d9   :  { %1682 = vst [vmem:[#allocation2 + $0x448] sm:$0xff] %v1538_v52  ;;  %v1925_v42 = vld [vmem:[#allocation2 + $0x109] ss:$2 sm:$0xff]  ;;  %v1735_v12 = vld [vmem:[#allocation2 + $0x118] ss:$2 sm:$0xf]  ;;  %v2173_v52 = vmax.f32 %v2081_v21, %v2083_v23 }
 0x5da   :  { %1683 = vst [vmem:[#allocation2 + $0x450] sm:$0xff] %v1539_v63  ;;  %v1923_v18 = vld [vmem:[#allocation2 + $0x101] ss:$2 sm:$0xf]  ;;  %v1737_v7 = vld [vmem:[#allocation2 + $0x120] ss:$2 sm:$0xff]  ;;  %v2089_v63 = vmax.f32 %v11849_v3, %v1915_v32  ;;  %v2094_v48 = vmax.f32 %v1733_v36, %v1925_v42 }
 0x5db   :  { %1684 = vst [vmem:[#allocation2 + $0x458] sm:$0xff] %v1540_v41  ;;  %v1927_v11 = vld [vmem:[#allocation2 + $0x119] ss:$2 sm:$0xf]  ;;  %v1741_v61 = vld [vmem:[#allocation2 + $0x138] ss:$2 sm:$0xff]  ;;  %v2093_v6 = vmax.f32 %v1731_v19, %v1923_v18 }
 0x5dc   :  { %1685 = vst [vmem:[#allocation2 + $0x460] sm:$0xff] %v1541_v54  ;;  %v1929_v8 = vld [vmem:[#allocation2 + $0x121] ss:$2 sm:$0xff]  ;;  %v1739_v33 = vld [vmem:[#allocation2 + $0x130] ss:$2 sm:$0xf]  ;;  %v2095_v51 = vmax.f32 %v1735_v12, %v1927_v11  ;;  %4297 = vmatmul.f32.gmra.mxu1 %v11860_v31  ;;  %v2177_v59 = vmax.f32 %v2089_v63, %v2091_v44 }
 0x5dd   :  { %1686 = vst [vmem:[#allocation2 + $0x468] sm:$0xff] %v1542_v2  ;;  %v1933_v26 = vld [vmem:[#allocation2 + $0x139] ss:$2 sm:$0xff]  ;;  %v1743_v56 = vld [vmem:[#allocation2 + $0x148] ss:$2 sm:$0xf]  ;;  %v2096_v53 = vmax.f32 %v1737_v7, %v1929_v8 }
 0x5de   :  { %1687 = vst [vmem:[#allocation2 + $0x470] sm:$0xff] %v1543_v57  ;;  %v1931_v38 = vld [vmem:[#allocation2 + $0x131] ss:$2 sm:$0xf]  ;;  %v1745_v30 = vld [vmem:[#allocation2 + $0x150] ss:$2 sm:$0xff]  ;;  %v2098_v25 = vmax.f32 %v1741_v61, %v1933_v26  ;;  %v2179_v4 = vmax.f32 %v2093_v6, %v2095_v51 }
 0x5df   :  { %2216 = vst [vmem:[#allocation3] sm:$0xff] %v11796_v29  ;;  %v1935_v35 = vld [vmem:[#allocation2 + $0x149] ss:$2 sm:$0xf]  ;;  %v1749_v41 = vld [vmem:[#allocation2 + $0x168] ss:$2 sm:$0xff]  ;;  %v2092_v29 = vmax.f32 %v1729_v40, %v1921_v22  ;;  %v2097_v10 = vmax.f32 %v1739_v33, %v1931_v38 }
 0x5e0   :  { %2217 = vst [vmem:[#allocation3 + $0x8] sm:$0xf] %v2169_v5  ;;  %v1937_v54 = vld [vmem:[#allocation2 + $0x151] ss:$2 sm:$0xff]  ;;  %v1785_v1 = vld [vmem:[#allocation2 + $0x240] ss:$2 sm:$0xff]  ;;  %v2099_v37 = vmax.f32 %v1743_v56, %v1935_v35  ;;  %v11870_v28 = vmax.f32 %v2096_v53, %v2098_v25 }
 0x5e1   :  { %2218 = vst [vmem:[#allocation3 + $0x10] sm:$0xff] %v11832_v20  ;;  %v1941_v49 = vld [vmem:[#allocation2 + $0x169] ss:$2 sm:$0xff]  ;;  %v1747_v2 = vld [vmem:[#allocation2 + $0x160] ss:$2 sm:$0xf]  ;;  %v11867_v43 = vmax.f32 %v2092_v29, %v2094_v48  ;;  %v2100_v15 = vmax.f32 %v1745_v30, %v1937_v54 }
 0x5e2   :  { %v1751_v57 = vld [vmem:[#allocation2 + $0x178] ss:$2 sm:$0xf]  ;;  %2219 = vst [vmem:[#allocation3 + $0x18] sm:$0xf] %v2171_v58  ;;  %v2102_v62 = vmax.f32 %v1749_v41, %v1941_v49  ;;  %v2181_v17 = vmax.f32 %v2097_v10, %v2099_v37 }
 0x5e3   :  { %v1939_v9 = vld [vmem:[#allocation2 + $0x161] ss:$2 sm:$0xf]  ;;  %2220 = vst [vmem:[#allocation3 + $0x20] sm:$0xff] %v11847_v24  ;;  %v1789_v55 = vld [vmem:[#allocation2 + $0x258] ss:$2 sm:$0xff] }
 0x5e4   :  { %v1943_v47 = vld [vmem:[#allocation2 + $0x179] ss:$2 sm:$0xf]  ;;  %2221 = vst [vmem:[#allocation3 + $0x28] sm:$0xf] %v2173_v52  ;;  %v2101_v3 = vmax.f32 %v1747_v2, %v1939_v9  ;;  %v11873_v19 = vmax.f32 %v2100_v15, %v2102_v62  ;;  %4300 = vmatmul.f32.gmra.mxu1 %v11863_v16  ;;  %v8952_v62 = vld [vmem:[%s14205_s1 + $0x138] sm:$0xff]  }
 0x5e5   :  { %v1977_v27 = vld [vmem:[#allocation2 + $0x241] ss:$2 sm:$0xff]  ;;  %2222 = vst [vmem:[#allocation3 + $0x30] sm:$0xff] %v11860_v31  ;;  %v1787_v46 = vld [vmem:[#allocation2 + $0x250] ss:$2 sm:$0xf]  ;;  %v2103_v39 = vmax.f32 %v1751_v57, %v1943_v47 }
 0x5e6   :  { %v1981_v50 = vld [vmem:[#allocation2 + $0x259] ss:$2 sm:$0xff]  ;;  %2223 = vst [vmem:[#allocation3 + $0x38] sm:$0xf] %v2175_v0  ;;  %v1793_v5 = vld [vmem:[#allocation2 + $0x270] ss:$2 sm:$0xff]  ;;  %v2120_v40 = vmax.f32 %v1785_v1, %v1977_v27 }
 0x5e7   :  { %v1791_v32 = vld [vmem:[#allocation2 + $0x268] ss:$2 sm:$0xf]  ;;  %2224 = vst [vmem:[#allocation3 + $0x40] sm:$0xff] %v11863_v16  ;;  %v2122_v36 = vmax.f32 %v1789_v55, %v1981_v50  ;;  %v2183_v58 = vmax.f32 %v2101_v3, %v2103_v39  ;;  %v1985_v14 = vld [vmem:[#allocation2 + $0x271] ss:$2 sm:$0xff]  ;;  %v7665_v3 = vunpack.c.h.bf16 %v8952_v62 }
 0x5e8   :  { %v2296_v21 = vld [vmem:[#allocation3 + $0x1] sm:$0xff]  ;;  %v1979_v22 = vld [vmem:[#allocation2 + $0x251] ss:$2 sm:$0xf]  ;;  %2225 = vst [vmem:[#allocation3 + $0x48] sm:$0xf] %v2177_v59  ;;  %v2124_v7 = vmax.f32 %v1793_v5, %v1985_v14 }
 0x5e9   :  { %v2328_v23 = vld [vmem:[#allocation3 + $0x2] sm:$0xff]  ;;  %4353 = vmatmul.f32.vlgmr.msra.gmra.mxu2 %v2296_v21  ;;  %v2121_v42 = vmax.f32 %v1787_v46, %v1979_v22  ;;  %2226 = vst [vmem:[#allocation3 + $0x50] sm:$0xff] %v11867_v43  ;;  %v11876_v11 = vmax.f32 %v2120_v40, %v2122_v36  ;;  %v1799_v60 = vld [vmem:[#allocation2 + $0x298] ss:$2 sm:$0xf]  ;;  %4467 = vmatpush.msrb.mxu1 %v7665_v3 }
 0x5ea   :  { %4418 = vmatmul.f32.vlgmr.msra.gmra.mxu3 %v2328_v23  ;;  %v1983_v34 = vld [vmem:[#allocation2 + $0x269] ss:$2 sm:$0xf]  ;;  %v1797_v18 = vld [vmem:[#allocation2 + $0x288] ss:$2 sm:$0xff]  ;;  %2228 = vst [vmem:[#allocation3 + $0x60] sm:$0xff] %v11870_v28 }
 0x5eb   :  { %v2123_v12 = vmax.f32 %v1791_v32, %v1983_v34  ;;  %2227 = vst [vmem:[#allocation3 + $0x58] sm:$0xf] %v2179_v4  ;;  %v1989_v45 = vld [vmem:[#allocation2 + $0x289] ss:$2 sm:$0xff]  ;;  %v1801_v35 = vld [vmem:[#allocation2 + $0x2a0] ss:$2 sm:$0xff] }
 0x5ec   :  { %v2126_v61 = vmax.f32 %v1797_v18, %v1989_v45  ;;  %v1795_v8 = vld [vmem:[#allocation2 + $0x280] ss:$2 sm:$0xf]  ;;  %2229 = vst [vmem:[#allocation3 + $0x68] sm:$0xf] %v2181_v17  ;;  %v2297_v52 = vld [vmem:[#allocation3 + $0x11] sm:$0xff]  ;;  %4303 = vmatmul.f32.gmra.mxu1 %v11867_v43 }
 0x5ed   :  { %v2193_v13 = vmax.f32 %v2121_v42, %v2123_v12  ;;  %2230 = vst [vmem:[#allocation3 + $0x70] sm:$0xff] %v11873_v19  ;;  %v1987_v33 = vld [vmem:[#allocation2 + $0x281] ss:$2 sm:$0xf]  ;;  %v2329_v63 = vld [vmem:[#allocation3 + $0x12] sm:$0xff] }
 0x5ee   :  { %v11880_v26 = vmax.f32 %v2124_v7, %v2126_v61  ;;  %2231 = vst [vmem:[#allocation3 + $0x78] sm:$0xf] %v2183_v58  ;;  %v1991_v56 = vld [vmem:[#allocation2 + $0x299] ss:$2 sm:$0xf]  ;;  %v2125_v38 = vmax.f32 %v1795_v8, %v1987_v33  ;;  %v2298_v59 = vld [vmem:[#allocation3 + $0x21] sm:$0xff] }
 0x5ef   :  { %2240 = vst [vmem:[#allocation3 + $0xc0] sm:$0xff] %v11876_v11  ;;  %v2127_v44 = vmax.f32 %v1799_v60, %v1991_v56  ;;  %v1805_v30 = vld [vmem:[#allocation2 + $0x2b8] ss:$2 sm:$0xff]  ;;  %v1993_v41 = vld [vmem:[#allocation2 + $0x2a1] ss:$2 sm:$0xff] }
 0x5f0   :  { %2241 = vst [vmem:[#allocation3 + $0xc8] sm:$0xf] %v2193_v13  ;;  %v1997_v29 = vld [vmem:[#allocation2 + $0x2b9] ss:$2 sm:$0xff]  ;;  %v2128_v48 = vmax.f32 %v1801_v35, %v1993_v41  ;;  %v1809_v0 = vld [vmem:[#allocation2 + $0x2d0] ss:$2 sm:$0xff] }
 0x5f1   :  { %4356 = vmatmul.f32.gmra.mxu2 %v2297_v52  ;;  %2242 = vst [vmem:[#allocation3 + $0xd0] sm:$0xff] %v11880_v26  ;;  %v2195_v54 = vmax.f32 %v2125_v38, %v2127_v44  ;;  %v2130_v49 = vmax.f32 %v1805_v30, %v1997_v29  ;;  %v1803_v2 = vld [vmem:[#allocation2 + $0x2b0] ss:$2 sm:$0xf]  ;;  %v2001_v47 = vld [vmem:[#allocation2 + $0x2d1] ss:$2 sm:$0xff] }
 0x5f2   :  { %4421 = vmatmul.f32.gmra.mxu3 %v2329_v63  ;;  %v1807_v57 = vld [vmem:[#allocation2 + $0x2c8] ss:$2 sm:$0xf]  ;;  %v1995_v51 = vld [vmem:[#allocation2 + $0x2b1] ss:$2 sm:$0xf]  ;;  %v2132_v27 = vmax.f32 %v1809_v0, %v2001_v47 }
 0x5f3   :  { %2243 = vst [vmem:[#allocation3 + $0xd8] sm:$0xf] %v2195_v54  ;;  %v11885_v6 = vmax.f32 %v2128_v48, %v2130_v49  ;;  %v1999_v9 = vld [vmem:[#allocation2 + $0x2c9] ss:$2 sm:$0xf]  ;;  %v2129_v1 = vmax.f32 %v1803_v2, %v1995_v51  ;;  %v2299_v42 = vld [vmem:[#allocation3 + $0x31] sm:$0xff] }
 0x5f4   :  { %v2131_v53 = vmax.f32 %v1807_v57, %v1999_v9  ;;  %v1813_v25 = vld [vmem:[#allocation2 + $0x2e8] ss:$2 sm:$0xff]  ;;  %v2005_v55 = vld [vmem:[#allocation2 + $0x2e9] ss:$2 sm:$0xff]  ;;  %v1821_v40 = vld [vmem:[#allocation2 + $0x318] ss:$2 sm:$0xff]  ;;  %4306 = vmatmul.f32.gmra.mxu1 %v11870_v28  ;;  %v7664_v28 = vunpack.c.l.bf16 %v8952_v62 }
 0x5f5   :  { %2244 = vst [vmem:[#allocation3 + $0xe0] sm:$0xff] %v11885_v6  ;;  %v2330_v10 = vld [vmem:[#allocation3 + $0x22] sm:$0xff]  ;;  %v2134_v50 = vmax.f32 %v1813_v25, %v2005_v55  ;;  %v1815_v46 = vld [vmem:[#allocation2 + $0x2f8] ss:$2 sm:$0xf] }
 0x5f6   :  { %v2197_v37 = vmax.f32 %v2129_v1, %v2131_v53  ;;  %v1811_v15 = vld [vmem:[#allocation2 + $0x2e0] ss:$2 sm:$0xf]  ;;  %v2003_v32 = vld [vmem:[#allocation2 + $0x2e1] ss:$2 sm:$0xf]  ;;  %4468 = vmatpush.msrb.mxu1 %v7664_v28 }
 0x5f7   :  { %v1817_v4 = vld [vmem:[#allocation2 + $0x300] ss:$2 sm:$0xff]  ;;  %v11891_v39 = vmax.f32 %v2132_v27, %v2134_v50  ;;  %v2007_v5 = vld [vmem:[#allocation2 + $0x2f9] ss:$2 sm:$0xf]  ;;  %v2133_v21 = vmax.f32 %v1811_v15, %v2003_v32 }
 0x5f8   :  { %2245 = vst [vmem:[#allocation3 + $0xe8] sm:$0xf] %v2197_v37  ;;  %v2135_v23 = vmax.f32 %v1815_v46, %v2007_v5  ;;  %v2009_v36 = vld [vmem:[#allocation2 + $0x301] ss:$2 sm:$0xff]  ;;  %v2331_v45 = vld [vmem:[#allocation3 + $0x32] sm:$0xff] }
 0x5f9   :  { %4359 = vmatmul.f32.gmra.mxu2 %v2298_v59  ;;  %2246 = vst [vmem:[#allocation3 + $0xf0] sm:$0xff] %v11891_v39  ;;  %v2013_v22 = vld [vmem:[#allocation2 + $0x319] ss:$2 sm:$0xff]  ;;  %v2136_v17 = vmax.f32 %v1817_v4, %v2009_v36  ;;  %v1819_v34 = vld [vmem:[#allocation2 + $0x310] ss:$2 sm:$0xf] }
 0x5fa   :  { %4424 = vmatmul.f32.gmra.mxu3 %v2330_v10  ;;  %v2199_v12 = vmax.f32 %v2133_v21, %v2135_v23  ;;  %v2138_v18 = vmax.f32 %v1821_v40, %v2013_v22  ;;  %v1823_v58 = vld [vmem:[#allocation2 + $0x328] ss:$2 sm:$0xf]  ;;  %v2011_v14 = vld [vmem:[#allocation2 + $0x311] ss:$2 sm:$0xf] }
 0x5fb   :  { %v2015_v7 = vld [vmem:[#allocation2 + $0x329] ss:$2 sm:$0xf]  ;;  %v2137_v61 = vmax.f32 %v1819_v34, %v2011_v14  ;;  %v1825_v8 = vld [vmem:[#allocation2 + $0x330] ss:$2 sm:$0xff]  ;;  %v2300_v9 = vld [vmem:[#allocation3 + $0x41] sm:$0xff] }
 0x5fc   :  { %2247 = vst [vmem:[#allocation3 + $0xf8] sm:$0xf] %v2199_v12  ;;  %v11895_v13 = vmax.f32 %v2136_v17, %v2138_v18  ;;  %v2139_v60 = vmax.f32 %v1823_v58, %v2015_v7  ;;  %v1829_v33 = vld [vmem:[#allocation2 + $0x348] ss:$2 sm:$0xff]  ;;  %v2017_v56 = vld [vmem:[#allocation2 + $0x331] ss:$2 sm:$0xff]  ;;  %4309 = vmatmul.f32.gmra.mxu1 %v11873_v19 }
 0x5fd   :  { %v2021_v38 = vld [vmem:[#allocation2 + $0x349] ss:$2 sm:$0xff]  ;;  %v2140_v52 = vmax.f32 %v1825_v8, %v2017_v56  ;;  %v1827_v35 = vld [vmem:[#allocation2 + $0x340] ss:$2 sm:$0xf] }
 0x5fe   :  { %2248 = vst [vmem:[#allocation3 + $0x100] sm:$0xff] %v11895_v13  ;;  %v2201_v63 = vmax.f32 %v2137_v61, %v2139_v60  ;;  %v2142_v44 = vmax.f32 %v1829_v33, %v2021_v38  ;;  %v1833_v30 = vld [vmem:[#allocation2 + $0x360] ss:$2 sm:$0xff]  ;;  %v1831_v41 = vld [vmem:[#allocation2 + $0x358] ss:$2 sm:$0xf] }
 0x5ff   :  { %v2019_v54 = vld [vmem:[#allocation2 + $0x341] ss:$2 sm:$0xf]  ;;  %v2023_v48 = vld [vmem:[#allocation2 + $0x359] ss:$2 sm:$0xf] }
 0x600   :  { %2249 = vst [vmem:[#allocation3 + $0x108] sm:$0xf] %v2201_v63  ;;  %v11898_v29 = vmax.f32 %v2140_v52, %v2142_v44  ;;  %v2141_v49 = vmax.f32 %v1827_v35, %v2019_v54  ;;  %v2143_v2 = vmax.f32 %v1831_v41, %v2023_v48  ;;  %v1837_v57 = vld [vmem:[#allocation2 + $0x378] ss:$2 sm:$0xff]  ;;  %v2025_v0 = vld [vmem:[#allocation2 + $0x361] ss:$2 sm:$0xff] }
 0x601   :  { %4362 = vmatmul.f32.gmra.mxu2 %v2299_v42  ;;  %v2029_v51 = vld [vmem:[#allocation2 + $0x379] ss:$2 sm:$0xff]  ;;  %v2144_v1 = vmax.f32 %v1833_v30, %v2025_v0  ;;  %v1835_v25 = vld [vmem:[#allocation2 + $0x370] ss:$2 sm:$0xf]  ;;  %v8951_v19 = vld [vmem:[%s14205_s1 + $0x130] sm:$0xff]  }
 0x602   :  { %4427 = vmatmul.f32.gmra.mxu3 %v2331_v45  ;;  %2250 = vst [vmem:[#allocation3 + $0x110] sm:$0xff] %v11898_v29  ;;  %v2146_v53 = vmax.f32 %v1837_v57, %v2029_v51  ;;  %v2332_v47 = vld [vmem:[#allocation3 + $0x42] sm:$0xff]  ;;  %v2203_v55 = vmax.f32 %v2141_v49, %v2143_v2  ;;  %v1841_v10 = vld [vmem:[#allocation2 + $0x390] ss:$2 sm:$0xff]  ;;  %v7661_v4 = vunpack.c.h.bf16 %v8951_v19  ;;  %v2033_v3 = vld [vmem:[#allocation2 + $0x391] ss:$2 sm:$0xff]  ;;  %v7660_v45 = vunpack.c.l.bf16 %v8951_v19 }
 0x603   :  { %v1839_v59 = vld [vmem:[#allocation2 + $0x388] ss:$2 sm:$0xf]  ;;  %v2027_v27 = vld [vmem:[#allocation2 + $0x371] ss:$2 sm:$0xf]  ;;  %v2148_v21 = vmax.f32 %v1841_v10, %v2033_v3 }
 0x604   :  { %v11902_v37 = vmax.f32 %v2144_v1, %v2146_v53  ;;  %v2031_v50 = vld [vmem:[#allocation2 + $0x389] ss:$2 sm:$0xf]  ;;  %2251 = vst [vmem:[#allocation3 + $0x118] sm:$0xf] %v2203_v55  ;;  %v2145_v15 = vmax.f32 %v1835_v25, %v2027_v27  ;;  %4469 = vmatpush.msrb.mxu1 %v7661_v4  ;;  %v2301_v18 = vld [vmem:[#allocation3 + $0x51] sm:$0xff] }
 0x605   :  { %v2147_v62 = vmax.f32 %v1839_v59, %v2031_v50  ;;  %v1845_v46 = vld [vmem:[#allocation2 + $0x3a8] ss:$2 sm:$0xff]  ;;  %v2037_v32 = vld [vmem:[#allocation2 + $0x3a9] ss:$2 sm:$0xff]  ;;  %4312 = vmatmul.f32.gmra.mxu1 %v11876_v11  ;;  %v1757_v61 = vld [vmem:[#allocation2 + $0x198] ss:$2 sm:$0xff] }
 0x606   :  { %2252 = vst [vmem:[#allocation3 + $0x120] sm:$0xff] %v11902_v37  ;;  %v2150_v23 = vmax.f32 %v1845_v46, %v2037_v32  ;;  %v1843_v40 = vld [vmem:[#allocation2 + $0x3a0] ss:$2 sm:$0xf]  ;;  %v2333_v58 = vld [vmem:[#allocation3 + $0x52] sm:$0xff]  ;;  %4470 = vmatpush.msrb.mxu1 %v7660_v45 }
 0x607   :  { %v2205_v5 = vmax.f32 %v2145_v15, %v2147_v62  ;;  %v1847_v36 = vld [vmem:[#allocation2 + $0x3b8] ss:$2 sm:$0xf]  ;;  %v2035_v22 = vld [vmem:[#allocation2 + $0x3a1] ss:$2 sm:$0xf] }
 0x608   :  { %v11909_v17 = vmax.f32 %v2148_v21, %v2150_v23  ;;  %v2039_v34 = vld [vmem:[#allocation2 + $0x3b9] ss:$2 sm:$0xf]  ;;  %v2149_v42 = vmax.f32 %v1843_v40, %v2035_v22  ;;  %v1753_v7 = vld [vmem:[#allocation2 + $0x180] ss:$2 sm:$0xff]  ;;  %v2303_v49 = vld [vmem:[#allocation3 + $0x71] sm:$0xff] }
 0x609   :  { %4365 = vmatmul.f32.gmra.mxu2 %v2300_v9  ;;  %2253 = vst [vmem:[#allocation3 + $0x128] sm:$0xf] %v2205_v5  ;;  %v2151_v12 = vmax.f32 %v1847_v36, %v2039_v34  ;;  %v1945_v8 = vld [vmem:[#allocation2 + $0x181] ss:$2 sm:$0xff]  ;;  %v1849_v52 = vld [vmem:[#allocation2 + $0x3c0] ss:$2 sm:$0xff] }
 0x60a   :  { %4430 = vmatmul.f32.gmra.mxu3 %v2332_v47  ;;  %2254 = vst [vmem:[#allocation3 + $0x130] sm:$0xff] %v11909_v17  ;;  %v1949_v60 = vld [vmem:[#allocation2 + $0x199] ss:$2 sm:$0xff]  ;;  %v2104_v11 = vmax.f32 %v1753_v7, %v1945_v8  ;;  %v1853_v44 = vld [vmem:[#allocation2 + $0x3d8] ss:$2 sm:$0xff]  ;;  %v8960_v19 = vld [vmem:[%s14205_s1 + $0x178] sm:$0xff]  }
 0x60b   :  { %v2207_v14 = vmax.f32 %v2149_v42, %v2151_v12  ;;  %v2106_v33 = vmax.f32 %v1757_v61, %v1949_v60  ;;  %v2302_v28 = vld [vmem:[#allocation3 + $0x61] sm:$0xff]  ;;  %v2335_v2 = vld [vmem:[#allocation3 + $0x72] sm:$0xff]  ;;  %v1951_v1 = vld [vmem:[#allocation2 + $0x1a9] ss:$2 sm:$0xf]  ;;  %v7697_v4 = vunpack.c.h.bf16 %v8960_v19  ;;  %v7696_v32 = vunpack.c.l.bf16 %v8960_v19 }
 0x60c   :  { %v2334_v38 = vld [vmem:[#allocation3 + $0x62] sm:$0xff]  ;;  %v1755_v57 = vld [vmem:[#allocation2 + $0x190] ss:$2 sm:$0xf]  ;;  %v1953_v7 = vld [vmem:[#allocation2 + $0x1b1] ss:$2 sm:$0xff] }
 0x60d   :  { %2255 = vst [vmem:[#allocation3 + $0x138] sm:$0xf] %v2207_v14  ;;  %4315 = vmatmul.f32.gmra.mxu1 %v11880_v26  ;;  %v11913_v56 = vmax.f32 %v2104_v11, %v2106_v33  ;;  %v8950_v63 = vld [vmem:[%s14205_s1 + $0x128] sm:$0xff]   ;;  %v1759_v51 = vld [vmem:[#allocation2 + $0x1a8] ss:$2 sm:$0xf]  ;;  %4532 = vmatpush.msrb.mxu2 %v7697_v4 }
 0x60e   :  { %v7657_v35 = vunpack.c.h.bf16 %v8950_v63  ;;  %v2041_v30 = vld [vmem:[#allocation2 + $0x3c1] ss:$2 sm:$0xff]  ;;  %v7656_v0 = vunpack.c.l.bf16 %v8950_v63  ;;  %v1947_v9 = vld [vmem:[#allocation2 + $0x191] ss:$2 sm:$0xf]  ;;  %v2107_v25 = vmax.f32 %v1759_v51, %v1951_v1  ;;  %v8957_v60 = vld [vmem:[%s14205_s1 + $0x160] sm:$0xff]  }
 0x60f   :  { %2232 = vst [vmem:[#allocation3 + $0x80] sm:$0xff] %v11913_v56  ;;  %v2045_v41 = vld [vmem:[#allocation2 + $0x3d9] ss:$2 sm:$0xff]  ;;  %v2152_v54 = vmax.f32 %v1849_v52, %v2041_v30  ;;  %v2105_v53 = vmax.f32 %v1755_v57, %v1947_v9  ;;  %v1851_v59 = vld [vmem:[#allocation2 + $0x3d0] ss:$2 sm:$0xf]  ;;  %4533 = vmatpush.msrb.mxu2 %v7696_v32 }
 0x610   :  { %4471 = vmatpush.msrb.mxu1 %v7657_v35  ;;  %v2154_v26 = vmax.f32 %v1853_v44, %v2045_v41  ;;  %v2304_v55 = vld [vmem:[#allocation3 + $0xc1] sm:$0xff]  ;;  %v2043_v27 = vld [vmem:[#allocation2 + $0x3d1] ss:$2 sm:$0xf]  ;;  %v1761_v14 = vld [vmem:[#allocation2 + $0x1b0] ss:$2 sm:$0xff] }
 0x611   :  { %4368 = vmatmul.f32.gmra.mxu2 %v2301_v18  ;;  %v2185_v47 = vmax.f32 %v2105_v53, %v2107_v25  ;;  %v1855_v10 = vld [vmem:[#allocation2 + $0x3e8] ss:$2 sm:$0xf]  ;;  %v2047_v50 = vld [vmem:[#allocation2 + $0x3e9] ss:$2 sm:$0xf]  ;;  %v2153_v62 = vmax.f32 %v1851_v59, %v2043_v27  ;;  %v2108_v11 = vmax.f32 %v1761_v14, %v1953_v7 }
 0x612   :  { %4433 = vmatmul.f32.gmra.mxu3 %v2333_v58  ;;  %v2208_v48 = vmax.f32 %v2152_v54, %v2154_v26  ;;  %4472 = vmatpush.msrb.mxu1 %v7656_v0  ;;  %v8968_v15 = vld [vmem:[%s14205_s1 + $0x1b8] sm:$0xff]   ;;  %v2155_v46 = vmax.f32 %v1855_v10, %v2047_v50  ;;  %v8959_v21 = vld [vmem:[%s14205_s1 + $0x170] sm:$0xff]   ;;  %v8958_v61 = vld [vmem:[%s14205_s1 + $0x168] sm:$0xff]   ;;  %v7685_v54 = vunpack.c.h.bf16 %v8957_v60  ;;  %v7684_v0 = vunpack.c.l.bf16 %v8957_v60 }
 0x613   :  { %2233 = vst [vmem:[#allocation3 + $0x88] sm:$0xf] %v2185_v47  ;;  %v7729_v3 = vunpack.c.h.bf16 %v8968_v15  ;;  %v7728_v5 = vunpack.c.l.bf16 %v8968_v15  ;;  %v8967_v23 = vld [vmem:[%s14205_s1 + $0x1b0] sm:$0xff]   ;;  %v7693_v36 = vunpack.c.h.bf16 %v8959_v21  ;;  %v7692_v42 = vunpack.c.l.bf16 %v8959_v21  ;;  %v2305_v18 = vld [vmem:[#allocation3 + $0xd1] sm:$0xff] }
 0x614   :  { %2256 = vst [vmem:[#allocation3 + $0x140] sm:$0xff] %v2208_v48  ;;  %v7725_v22 = vunpack.c.h.bf16 %v8967_v23  ;;  %v2209_v34 = vmax.f32 %v2153_v62, %v2155_v46  ;;  %v7724_v12 = vunpack.c.l.bf16 %v8967_v23  ;;  %v2337_v58 = vld [vmem:[#allocation3 + $0xd2] sm:$0xff]  ;;  %v7689_v33 = vunpack.c.h.bf16 %v8958_v61  ;;  %v1763_v35 = vld [vmem:[#allocation2 + $0x1c0] ss:$2 sm:$0xf]  ;;  %v8947_v50 = vld [vmem:[%s14205_s1 + $0x110] sm:$0xff]  }
 0x615   :  { %4318 = vmatmul.f32.gmra.mxu1 %v11885_v6  ;;  %v2336_v6 = vld [vmem:[#allocation3 + $0xc2] sm:$0xff]  ;;  %4597 = vmatpush.msrb.mxu3 %v7729_v3  ;;  %v8965_v63 = vld [vmem:[%s14205_s1 + $0x1a0] sm:$0xff]   ;;  %v8948_v47 = vld [vmem:[%s14205_s1 + $0x118] sm:$0xff]   ;;  %v7645_v46 = vunpack.c.h.bf16 %v8947_v50 }
 0x616   :  { %2257 = vst [vmem:[#allocation3 + $0x148] sm:$0xf] %v2209_v34  ;;  %4534 = vmatpush.msrb.mxu2 %v7693_v36  ;;  %v1765_v45 = vld [vmem:[#allocation2 + $0x1c8] ss:$2 sm:$0xff]  ;;  %v1957_v44 = vld [vmem:[#allocation2 + $0x1c9] ss:$2 sm:$0xff]  ;;  %v7717_v26 = vunpack.c.h.bf16 %v8965_v63  ;;  %v7716_v51 = vunpack.c.l.bf16 %v8965_v63  ;;  %v7649_v59 = vunpack.c.h.bf16 %v8948_v47  ;;  %v7648_v27 = vunpack.c.l.bf16 %v8948_v47 }
 0x617   :  { %4598 = vmatpush.msrb.mxu3 %v7728_v5  ;;  %v1767_v30 = vld [vmem:[#allocation2 + $0x1d8] ss:$2 sm:$0xf]  ;;  %v1955_v41 = vld [vmem:[#allocation2 + $0x1c1] ss:$2 sm:$0xf]  ;;  %v2110_v48 = vmax.f32 %v1765_v45, %v1957_v44 }
 0x618   :  { %4535 = vmatpush.msrb.mxu2 %v7692_v42  ;;  %v2306_v53 = vld [vmem:[#allocation3 + $0xe1] sm:$0xff]  ;;  %v1857_v3 = vld [vmem:[#allocation2 + $0x3f0] ss:$2 sm:$0xff]  ;;  %v2049_v5 = vld [vmem:[#allocation2 + $0x3f1] ss:$2 sm:$0xff] }
 0x619   :  { %4371 = vmatmul.f32.gmra.mxu2 %v2302_v28  ;;  %4599 = vmatpush.msrb.mxu3 %v7725_v22  ;;  %v2186_v9 = vmax.f32 %v2108_v11, %v2110_v48  ;;  %v2338_v25 = vld [vmem:[#allocation3 + $0xe2] sm:$0xff]  ;;  %v2156_v36 = vmax.f32 %v1857_v3, %v2049_v5  ;;  %v1863_v42 = vld [vmem:[#allocation2 + $0x418] ss:$2 sm:$0xf] }
 0x61a   :  { %4436 = vmatmul.f32.gmra.mxu3 %v2334_v38  ;;  %v7688_v38 = vunpack.c.l.bf16 %v8958_v61  ;;  %4536 = vmatpush.msrb.mxu2 %v7689_v33  ;;  %v8955_v19 = vld [vmem:[%s14205_s1 + $0x150] sm:$0xff]   ;;  %v1859_v34 = vld [vmem:[#allocation2 + $0x400] ss:$2 sm:$0xf]  ;;  %v2307_v14 = vld [vmem:[#allocation3 + $0xf1] sm:$0xff] }
 0x61b   :  { %4600 = vmatpush.msrb.mxu3 %v7724_v12  ;;  %2234 = vst [vmem:[#allocation3 + $0x90] sm:$0xff] %v2186_v9  ;;  %v8963_v62 = vld [vmem:[%s14205_s1 + $0x190] sm:$0xff]   ;;  %v7677_v4 = vunpack.c.h.bf16 %v8955_v19  ;;  %v7676_v12 = vunpack.c.l.bf16 %v8955_v19  ;;  %v2339_v45 = vld [vmem:[#allocation3 + $0xf2] sm:$0xff]  ;;  %v8946_v61 = vld [vmem:[%s14205_s1 + $0x108] sm:$0xff]  }
 0x61c   :  { %4537 = vmatpush.msrb.mxu2 %v7688_v38  ;;  %v1861_v32 = vld [vmem:[#allocation2 + $0x408] ss:$2 sm:$0xff]  ;;  %v2053_v21 = vld [vmem:[#allocation2 + $0x409] ss:$2 sm:$0xff]  ;;  %v7709_v23 = vunpack.c.h.bf16 %v8963_v62  ;;  %v7641_v33 = vunpack.c.h.bf16 %v8946_v61  ;;  %v8945_v63 = vld [vmem:[%s14205_s1 + $0x100] sm:$0xff]  }
 0x61d   :  { %4321 = vmatmul.f32.gmra.mxu1 %v11891_v39  ;;  %v8949_v39 = vld [vmem:[%s14205_s1 + $0x120] sm:$0xff]   ;;  %v2158_v22 = vmax.f32 %v1861_v32, %v2053_v21  ;;  %v1771_v19 = vld [vmem:[#allocation2 + $0x1f0] ss:$2 sm:$0xf]  ;;  %v2310_v32 = vld [vmem:[#allocation3 + $0x121] sm:$0xff] }
 0x61e   :  { %v7653_v40 = vunpack.c.h.bf16 %v8949_v39  ;;  %v7652_v8 = vunpack.c.l.bf16 %v8949_v39  ;;  %4538 = vmatpush.msrb.mxu2 %v7685_v54  ;;  %v7637_v54 = vunpack.c.h.bf16 %v8945_v63  ;;  %v2342_v5 = vld [vmem:[#allocation3 + $0x122] sm:$0xff] }
 0x61f   :  { %v2210_v7 = vmax.f32 %v2156_v36, %v2158_v22  ;;  %v1865_v36 = vld [vmem:[#allocation2 + $0x420] ss:$2 sm:$0xff] }
 0x620   :  { %4473 = vmatpush.msrb.mxu1 %v7653_v40  ;;  %4539 = vmatpush.msrb.mxu2 %v7684_v0  ;;  %v7644_v40 = vunpack.c.l.bf16 %v8947_v50  ;;  %v2340_v0 = vld [vmem:[#allocation3 + $0x102] sm:$0xff] }
 0x621   :  { %4374 = vmatmul.f32.gmra.mxu2 %v2303_v49  ;;  %v1959_v49 = vld [vmem:[#allocation2 + $0x1d9] ss:$2 sm:$0xf]  ;;  %2258 = vst [vmem:[#allocation3 + $0x150] sm:$0xff] %v2210_v7  ;;  %v1869_v22 = vld [vmem:[#allocation2 + $0x438] ss:$2 sm:$0xff] }
 0x622   :  { %4439 = vmatmul.f32.gmra.mxu3 %v2335_v2  ;;  %4474 = vmatpush.msrb.mxu1 %v7652_v8  ;;  %v2109_v2 = vmax.f32 %v1763_v35, %v1955_v41  ;;  %v2111_v57 = vmax.f32 %v1767_v30, %v1959_v49  ;;  %v8962_v8 = vld [vmem:[%s14205_s1 + $0x188] sm:$0xff]   ;;  %v8953_v35 = vld [vmem:[%s14205_s1 + $0x140] sm:$0xff]  }
 0x623   :  { %v7705_v38 = vunpack.c.h.bf16 %v8962_v8  ;;  %v8961_v30 = vld [vmem:[%s14205_s1 + $0x180] sm:$0xff]   ;;  %v7704_v41 = vunpack.c.l.bf16 %v8962_v8  ;;  %v7669_v48 = vunpack.c.h.bf16 %v8953_v35 }
 0x624   :  { %v2187_v1 = vmax.f32 %v2109_v2, %v2111_v57  ;;  %4475 = vmatpush.msrb.mxu1 %v7649_v59  ;;  %v7701_v49 = vunpack.c.h.bf16 %v8961_v30  ;;  %v7636_v2 = vunpack.c.l.bf16 %v8945_v63  ;;  %v2308_v57 = vld [vmem:[#allocation3 + $0x101] sm:$0xff]  ;;  %v7700_v9 = vunpack.c.l.bf16 %v8961_v30  ;;  %v2311_v8 = vld [vmem:[#allocation3 + $0x131] sm:$0xff] }
 0x625   :  { %4324 = vmatmul.f32.gmra.mxu1 %v11895_v13  ;;  %v8966_v13 = vld [vmem:[%s14205_s1 + $0x1a8] sm:$0xff]   ;;  %v1969_v63 = vld [vmem:[#allocation2 + $0x211] ss:$2 sm:$0xff] }
 0x626   :  { %v7721_v28 = vunpack.c.h.bf16 %v8966_v13  ;;  %v7720_v52 = vunpack.c.l.bf16 %v8966_v13  ;;  %2235 = vst [vmem:[#allocation3 + $0x98] sm:$0xf] %v2187_v1  ;;  %4476 = vmatpush.msrb.mxu1 %v7648_v27  ;;  %v8954_v13 = vld [vmem:[%s14205_s1 + $0x148] sm:$0xff]  }
 0x627   :  { %v7672_v44 = vunpack.c.l.bf16 %v8954_v13  ;;  %v1773_v59 = vld [vmem:[#allocation2 + $0x1f8] ss:$2 sm:$0xff] }
 0x628   :  { %4601 = vmatpush.msrb.mxu3 %v7721_v28  ;;  %4477 = vmatpush.msrb.mxu1 %v7645_v46  ;;  %v7673_v28 = vunpack.c.h.bf16 %v8954_v13 }
 0x629   :  { %4377 = vmatmul.f32.gmra.mxu2 %v2304_v55  ;;  %v8964_v55 = vld [vmem:[%s14205_s1 + $0x198] sm:$0xff]  }
 0x62a   :  { %4442 = vmatmul.f32.gmra.mxu3 %v2336_v6  ;;  %v7713_v10 = vunpack.c.h.bf16 %v8964_v55  ;;  %v7712_v39 = vunpack.c.l.bf16 %v8964_v55  ;;  %4478 = vmatpush.msrb.mxu1 %v7644_v40  ;;  %v1769_v55 = vld [vmem:[#allocation2 + $0x1e0] ss:$2 sm:$0xff] }
 0x62b   :  { %4602 = vmatpush.msrb.mxu3 %v7720_v52  ;;  %v7640_v52 = vunpack.c.l.bf16 %v8946_v61  ;;  %v11997_v40 = vld [vmem:[#allocation3 + $0x23] sm:$0xff] }
 0x62c   :  { %4479 = vmatpush.msrb.mxu1 %v7641_v33 }
 0x62d   :  { %4327 = vmatmul.f32.gmra.mxu1 %v11898_v29  ;;  %4603 = vmatpush.msrb.mxu3 %v7717_v26  ;;  %v8956_v29 = vld [vmem:[%s14205_s1 + $0x158] sm:$0xff]  }
 0x62e   :  { %v7681_v6 = vunpack.c.h.bf16 %v8956_v29  ;;  %v7680_v15 = vunpack.c.l.bf16 %v8956_v29  ;;  %4480 = vmatpush.msrb.mxu1 %v7640_v52  ;;  %v11992_v29 = vld [vmem:[#allocation3 + $0x13] sm:$0xff] }
 0x62f   :  { %4604 = vmatpush.msrb.mxu3 %v7716_v51  ;;  %v7668_v51 = vunpack.c.l.bf16 %v8953_v35  ;;  %v1781_v52 = vld [vmem:[#allocation2 + $0x228] ss:$2 sm:$0xff] }
 0x630   :  { %4540 = vmatpush.msrb.mxu2 %v7681_v6  ;;  %4481 = vmatpush.msrb.mxu1 %v7637_v54  ;;  %v1961_v6 = vld [vmem:[#allocation2 + $0x1e1] ss:$2 sm:$0xff] }
 0x631   :  { %4380 = vmatmul.f32.gmra.mxu2 %v2305_v18  ;;  %4605 = vmatpush.msrb.mxu3 %v7713_v10  ;;  %v2051_v18 = vld [vmem:[#allocation2 + $0x401] ss:$2 sm:$0xf]  ;;  %v2112_v27 = vmax.f32 %v1769_v55, %v1961_v6 }
 0x632   :  { %4445 = vmatmul.f32.gmra.mxu3 %v2337_v58  ;;  %4541 = vmatpush.msrb.mxu2 %v7680_v15  ;;  %v2055_v58 = vld [vmem:[#allocation2 + $0x419] ss:$2 sm:$0xf]  ;;  %v2157_v60 = vmax.f32 %v1859_v34, %v2051_v18  ;;  %v1775_v15 = vld [vmem:[#allocation2 + $0x208] ss:$2 sm:$0xf] }
 0x633   :  { %4606 = vmatpush.msrb.mxu3 %v7712_v39  ;;  %v2159_v11 = vmax.f32 %v1863_v42, %v2055_v58  ;;  %4482 = vmatpush.msrb.mxu1 %v7636_v2  ;;  %v1965_v10 = vld [vmem:[#allocation2 + $0x1f9] ss:$2 sm:$0xff]  ;;  %v1963_v39 = vld [vmem:[#allocation2 + $0x1f1] ss:$2 sm:$0xf] }
 0x634   :  { %4542 = vmatpush.msrb.mxu2 %v7677_v4  ;;  %v2114_v50 = vmax.f32 %v1773_v59, %v1965_v10  ;;  %v2113_v4 = vmax.f32 %v1771_v19, %v1963_v39  ;;  %v2057_v34 = vld [vmem:[#allocation2 + $0x421] ss:$2 sm:$0xff]  ;;  %v1867_v58 = vld [vmem:[#allocation2 + $0x430] ss:$2 sm:$0xf] }
 0x635   :  { %4330 = vmatmul.f32.gmra.mxu1 %v11902_v37  ;;  %v7708_v37 = vunpack.c.l.bf16 %v8963_v62  ;;  %4607 = vmatpush.msrb.mxu3 %v7709_v23  ;;  %v2211_v26 = vmax.f32 %v2157_v60, %v2159_v11  ;;  %v1967_v62 = vld [vmem:[#allocation2 + $0x209] ss:$2 sm:$0xf]  ;;  %v2061_v42 = vld [vmem:[#allocation2 + $0x439] ss:$2 sm:$0xff] }
 0x636   :  { %4543 = vmatpush.msrb.mxu2 %v7676_v12  ;;  %v2188_v46 = vmax.f32 %v2112_v27, %v2114_v50  ;;  %v2115_v3 = vmax.f32 %v1775_v15, %v1967_v62  ;;  %v2160_v12 = vmax.f32 %v1865_v36, %v2057_v34  ;;  %v2162_v18 = vmax.f32 %v1869_v22, %v2061_v42  ;;  %v2343_v60 = vld [vmem:[#allocation3 + $0x132] sm:$0xff]  ;;  %v2392_v54 = vld [vmem:[#allocation3 + $0x4] sm:$0xff] }
 0x637   :  { %4608 = vmatpush.msrb.mxu3 %v7708_v37  ;;  %2259 = vst [vmem:[#allocation3 + $0x158] sm:$0xf] %v2211_v26  ;;  %v2063_v37 = vld [vmem:[#allocation2 + $0x449] ss:$2 sm:$0xf]  ;;  %v2393_v10 = vld [vmem:[#allocation3 + $0x14] sm:$0xff] }
 0x638   :  { %4544 = vmatpush.msrb.mxu2 %v7673_v28  ;;  %2236 = vst [vmem:[#allocation3 + $0xa0] sm:$0xff] %v2188_v46  ;;  %v2189_v21 = vmax.f32 %v2113_v4, %v2115_v3  ;;  %v2212_v7 = vmax.f32 %v2160_v12, %v2162_v18  ;;  %v12002_v28 = vld [vmem:[#allocation3 + $0x33] sm:$0xff]  ;;  %v1971_v19 = vld [vmem:[#allocation2 + $0x221] ss:$2 sm:$0xf] }
 0x639   :  { %4383 = vmatmul.f32.gmra.mxu2 %v2306_v53  ;;  %4609 = vmatpush.msrb.mxu3 %v7705_v38  ;;  %v2309_v53 = vld [vmem:[#allocation3 + $0x111] sm:$0xff]  ;;  %v1975_v39 = vld [vmem:[#allocation2 + $0x239] ss:$2 sm:$0xf]  ;;  %v2394_v22 = vld [vmem:[#allocation3 + $0x24] sm:$0xff] }
 0x63a   :  { %4448 = vmatmul.f32.gmra.mxu3 %v2338_v25  ;;  %4545 = vmatpush.msrb.mxu2 %v7672_v44  ;;  %v2341_v25 = vld [vmem:[#allocation3 + $0x112] sm:$0xff]  ;;  %2237 = vst [vmem:[#allocation3 + $0xa8] sm:$0xf] %v2189_v21  ;;  %v1875_v36 = vld [vmem:[#allocation2 + $0x460] ss:$2 sm:$0xf] }
 0x63b   :  { %4610 = vmatpush.msrb.mxu3 %v7704_v41  ;;  %2260 = vst [vmem:[#allocation3 + $0x160] sm:$0xff] %v2212_v7  ;;  %v1777_v38 = vld [vmem:[#allocation2 + $0x210] ss:$2 sm:$0xff]  ;;  %v1973_v44 = vld [vmem:[#allocation2 + $0x229] ss:$2 sm:$0xff] }
 0x63c   :  { %4546 = vmatpush.msrb.mxu2 %v7669_v48  ;;  %v2116_v35 = vmax.f32 %v1777_v38, %v1969_v63  ;;  %v2118_v30 = vmax.f32 %v1781_v52, %v1973_v44  ;;  %v12008_v41 = vld [vmem:[%s14206_s2 + $0x3] ss:$0 sm:$0xff]  ;;  %v1873_v2 = vld [vmem:[#allocation2 + $0x450] ss:$2 sm:$0xff]  ;;  %v12033_v7 = vld [vmem:[#allocation3 + $0x63] sm:$0xff] }
 0x63d   :  { %4333 = vmatmul.f32.gmra.mxu1 %v11909_v17  ;;  %4611 = vmatpush.msrb.mxu3 %v7701_v49  ;;  %v2360_v17 = vld [vmem:[#allocation3 + $0x3] sm:$0xff]  ;;  %v1783_v50 = vld [vmem:[#allocation2 + $0x238] ss:$2 sm:$0xf] }
 0x63e   :  { %4547 = vmatpush.msrb.mxu2 %v7668_v51  ;;  %v2190_v26 = vmax.f32 %v2116_v35, %v2118_v30  ;;  %v12025_v3 = vld [vmem:[#allocation3 + $0x53] sm:$0xff] }
 0x63f   :  { %4612 = vmatpush.msrb.mxu3 %v7700_v9  ;;  %v12015_v9 = vld [vmem:[#allocation3 + $0x43] sm:$0xff]  ;;  %v1879_v34 = vld [vmem:[#allocation2 + $0x478] ss:$2 sm:$0xf] }
 0x640   :  { %2238 = vst [vmem:[#allocation3 + $0xb0] sm:$0xff] %v2190_v26  ;;  %v2071_v42 = vld [vmem:[#allocation2 + $0x479] ss:$2 sm:$0xf]  ;;  %v2396_v26 = vld [vmem:[#allocation3 + $0x44] sm:$0xff] }
 0x641   :  { %4386 = vmatmul.f32.gmra.mxu2 %v2307_v14  ;;  %v11988_v1 = vpop.f32.mrf.mxu1  ;;  %v1871_v14 = vld [vmem:[#allocation2 + $0x448] ss:$2 sm:$0xf]  ;;  %v12044_v44 = vld [vmem:[#allocation3 + $0x73] sm:$0xff] }
 0x642   :  { %4451 = vmatmul.f32.gmra.mxu3 %v2339_v45  ;;  %v2059_v45 = vld [vmem:[#allocation2 + $0x431] ss:$2 sm:$0xf]  ;;  %v2163_v13 = vmax.f32 %v1871_v14, %v2063_v37  ;;  %v4290_v49 = vadd.f32 %v12008_v41, %v11988_v1  ;;  %v1779_v1 = vld [vmem:[#allocation2 + $0x220] ss:$2 sm:$0xf] }
 0x643   :  { %v2161_v61 = vmax.f32 %v1867_v58, %v2059_v45  ;;  %v2117_v62 = vmax.f32 %v1779_v1, %v1971_v19  ;;  %v2167_v58 = vmax.f32 %v1879_v34, %v2071_v42 }
 0x645   :  { %4483 = vmatmul.f32.vlgmr.msrb.gmra.mxu1 %v2360_v17  ;;  %v2213_v11 = vmax.f32 %v2161_v61, %v2163_v13  ;;  %v2065_v17 = vld [vmem:[#allocation2 + $0x451] ss:$2 sm:$0xff] }
 0x646   :  { %v2164_v55 = vmax.f32 %v1873_v2, %v2065_v17  ;;  %v8975_v17 = vld [vmem:[%s14205_s1 + $0x1f0] sm:$0xff]  }
 0x647   :  { %2261 = vst [vmem:[#allocation3 + $0x168] sm:$0xf] %v2213_v11  ;;  %v7756_v19 = vunpack.c.l.bf16 %v8975_v17 }
 0x649   :  { %4389 = vmatmul.f32.gmra.mxu2 %v2308_v57  ;;  %v11990_v47 = vpop.f32.mrf.mxu1  ;;  %v1877_v57 = vld [vmem:[#allocation2 + $0x468] ss:$2 sm:$0xff] }
 0x64a   :  { %4454 = vmatmul.f32.gmra.mxu3 %v2340_v0  ;;  %v4293_v15 = vadd.f32 %v12008_v41, %v11990_v47  ;;  %v2067_v47 = vld [vmem:[#allocation2 + $0x461] ss:$2 sm:$0xf] }
 0x64b   :  { %v2165_v18 = vmax.f32 %v1875_v36, %v2067_v47  ;;  %v8974_v36 = vld [vmem:[%s14205_s1 + $0x1e8] sm:$0xff]  }
 0x64c   :  { %v7753_v34 = vunpack.c.h.bf16 %v8974_v36 }
 0x64d   :  { %4486 = vmatmul.f32.gmra.mxu1 %v11992_v29  ;;  %v2215_v61 = vmax.f32 %v2165_v18, %v2167_v58  ;;  %v12083_v58 = vld [vmem:[#allocation3 + $0xf3] sm:$0xff] }
 0x64f   :  { %2263 = vst [vmem:[#allocation3 + $0x178] sm:$0xf] %v2215_v61  ;;  %v2400_v61 = vld [vmem:[#allocation3 + $0xc4] sm:$0xff] }
 0x651   :  { %4392 = vmatmul.f32.gmra.mxu2 %v2309_v53  ;;  %v11995_v23 = vpop.f32.mrf.mxu1  ;;  %v2069_v53 = vld [vmem:[#allocation2 + $0x469] ss:$2 sm:$0xff] }
 0x652   :  { %4457 = vmatmul.f32.gmra.mxu3 %v2341_v25  ;;  %v2166_v59 = vmax.f32 %v1877_v57, %v2069_v53  ;;  %v4296_v14 = vadd.f32 %v12008_v41, %v11995_v23  ;;  %v2368_v57 = vld [vmem:[#allocation3 + $0xc3] sm:$0xff]  ;;  %v2397_v53 = vld [vmem:[#allocation3 + $0x54] sm:$0xff] }
 0x654   :  { %v2214_v6 = vmax.f32 %v2164_v55, %v2166_v59 }
 0x655   :  { %4489 = vmatmul.f32.gmra.mxu1 %v11997_v40 }
 0x656   :  { %2262 = vst [vmem:[#allocation3 + $0x170] sm:$0xff] %v2214_v6 }
 0x659   :  { %4395 = vmatmul.f32.gmra.mxu2 %v2310_v32  ;;  %v12000_v33 = vpop.f32.mrf.mxu1  ;;  %v2119_v32 = vmax.f32 %v1783_v50, %v1975_v39  ;;  %v9282_v39 = vld [vmem:[#allocation3 + $0x70] sm:$0xff] }
 0x65a   :  { %4460 = vmatmul.f32.gmra.mxu3 %v2342_v5  ;;  %v4299_v38 = vadd.f32 %v12008_v41, %v12000_v33 }
 0x65d   :  { %4492 = vmatmul.f32.gmra.mxu1 %v12002_v28 }
 0x661   :  { %4398 = vmatmul.f32.gmra.mxu2 %v2311_v8  ;;  %v12011_v48 = vpop.f32.mrf.mxu1 }
 0x662   :  { %4463 = vmatmul.f32.gmra.mxu3 %v2343_v60  ;;  %v2395_v60 = vld [vmem:[#allocation3 + $0x34] sm:$0xff]  ;;  %v4302_v33 = vadd.f32 %v12008_v41, %v12011_v48 }
 0x665   :  { %4495 = vmatmul.f32.gmra.mxu1 %v12015_v9 }
 0x669   :  { %4548 = vmatmul.f32.vlgmr.msrb.gmra.mxu2 %v2392_v54  ;;  %v12021_v27 = vpop.f32.mrf.mxu1 }
 0x66a   :  { %4613 = vmatmul.f32.vlgmr.msrb.gmra.mxu3 %v11832_v20  ;;  %v4305_v48 = vadd.f32 %v12008_v41, %v12021_v27 }
 0x66c   :  { %v4354_v0 = vpop.f32.mrf.mxu2 }
 0x66d   :  { %v4419_v51 = vpop.f32.mrf.mxu3  ;;  %v4355_v25 = vadd.f32 %v4354_v0, %v4290_v49  ;;  %4498 = vmatmul.f32.gmra.mxu1 %v12025_v3 }
 0x66f   :  { %v12018_v20 = vadd.f32 %v4419_v51, %v4355_v25  ;;  %v7757_v25 = vunpack.c.h.bf16 %v8975_v17 }
 0x671   :  { %4551 = vmatmul.f32.gmra.mxu2 %v2393_v10  ;;  %v4307_v12 = vpop.f32.mrf.mxu1  ;;  %v12063_v10 = vld [vmem:[#allocation3 + $0xd3] sm:$0xff] }
 0x672   :  { %4616 = vmatmul.f32.gmra.mxu3 %v11847_v24  ;;  %v2191_v24 = vmax.f32 %v2117_v62, %v2119_v32  ;;  %v12071_v32 = vld [vmem:[#allocation3 + $0xe3] sm:$0xff] }
 0x674   :  { %v4357_v46 = vpop.f32.mrf.mxu2  ;;  %2239 = vst [vmem:[#allocation3 + $0xb8] sm:$0xf] %v2191_v24 }
 0x675   :  { %v4422_v4 = vpop.f32.mrf.mxu3  ;;  %v4358_v5 = vadd.f32 %v4357_v46, %v4293_v15  ;;  %4501 = vmatmul.f32.gmra.mxu1 %v12033_v7  ;;  %v2398_v15 = vld [vmem:[#allocation3 + $0x64] sm:$0xff]  ;;  %v4308_v46 = vadd.f32 %v12008_v41, %v4307_v12 }
 0x677   :  { %v12028_v21 = vadd.f32 %v4422_v4, %v4358_v5 }
 0x679   :  { %4554 = vmatmul.f32.gmra.mxu2 %v2394_v22  ;;  %v4310_v23 = vpop.f32.mrf.mxu1  ;;  %v2399_v22 = vld [vmem:[#allocation3 + $0x74] sm:$0xff] }
 0x67a   :  { %4619 = vmatmul.f32.gmra.mxu3 %v11860_v31  ;;  %v8976_v31 = vld [vmem:[%s14205_s1 + $0x1f8] sm:$0xff]   ;;  %v4311_v42 = vadd.f32 %v12008_v41, %v4310_v23 }
 0x67b   :  { %v7761_v11 = vunpack.c.h.bf16 %v8976_v31  ;;  %v7760_v54 = vunpack.c.l.bf16 %v8976_v31  ;;  %v8992_v31 = vld [vmem:[%s14205_s1 + $0x278] sm:$0xff]  }
 0x67c   :  { %v4360_v45 = vpop.f32.mrf.mxu2  ;;  %v7825_v23 = vunpack.c.h.bf16 %v8992_v31 }
 0x67d   :  { %v4425_v37 = vpop.f32.mrf.mxu3  ;;  %v4361_v13 = vadd.f32 %v4360_v45, %v4296_v14  ;;  %4662 = vmatpush.msra.mxu1 %v7761_v11 }
 0x67e   :  { %4504 = vmatmul.f32.gmra.mxu1 %v12044_v44  ;;  %4792 = vmatpush.msra.mxu3 %v7825_v23 }
 0x67f   :  { %v12036_v8 = vadd.f32 %v4425_v37, %v4361_v13  ;;  %4663 = vmatpush.msra.mxu1 %v7760_v54  ;;  %v7752_v37 = vunpack.c.l.bf16 %v8974_v36  ;;  %v9283_v13 = vld [vmem:[#allocation3 + $0xd0] sm:$0xff] }
 0x681   :  { %4557 = vmatmul.f32.gmra.mxu2 %v2395_v60  ;;  %4664 = vmatpush.msra.mxu1 %v7757_v25 }
 0x682   :  { %4622 = vmatmul.f32.gmra.mxu3 %v11863_v16  ;;  %v12050_v16 = vpop.f32.mrf.mxu1 }
 0x683   :  { %4665 = vmatpush.msra.mxu1 %v7756_v19 }
 0x684   :  { %v4363_v52 = vpop.f32.mrf.mxu2 }
 0x685   :  { %v4428_v63 = vpop.f32.mrf.mxu3  ;;  %v4364_v35 = vadd.f32 %v4363_v52, %v4299_v38  ;;  %4666 = vmatpush.msra.mxu1 %v7753_v34  ;;  %v4314_v38 = vadd.f32 %v12008_v41, %v12050_v16  ;;  %v8983_v16 = vld [vmem:[%s14205_s1 + $0x230] sm:$0xff]  }
 0x686   :  { %4507 = vmatmul.f32.gmra.mxu1 %v2368_v57  ;;  %v8991_v57 = vld [vmem:[%s14205_s1 + $0x270] sm:$0xff]  }
 0x687   :  { %v12047_v30 = vadd.f32 %v4428_v63, %v4364_v35  ;;  %4667 = vmatpush.msra.mxu1 %v7752_v37  ;;  %v12098_v35 = vld [vmem:[#allocation3 + $0x103] sm:$0xff]  ;;  %v7821_v25 = vunpack.c.h.bf16 %v8991_v57  ;;  %v7820_v19 = vunpack.c.l.bf16 %v8991_v57 }
 0x689   :  { %4560 = vmatmul.f32.gmra.mxu2 %v2396_v26 }
 0x68a   :  { %4625 = vmatmul.f32.gmra.mxu3 %v11867_v43  ;;  %v9281_v43 = vld [vmem:[#allocation3 + $0x60] sm:$0xff]  ;;  %v12059_v55 = vpop.f32.mrf.mxu1 }
 0x68c   :  { %v4366_v49 = vpop.f32.mrf.mxu2 }
 0x68d   :  { %v4431_v2 = vpop.f32.mrf.mxu3  ;;  %v4367_v0 = vadd.f32 %v4366_v49, %v4302_v33  ;;  %v7824_v49 = vunpack.c.l.bf16 %v8992_v31  ;;  %v8980_v31 = vld [vmem:[%s14205_s1 + $0x218] sm:$0xff]  }
 0x68e   :  { %4510 = vmatmul.f32.gmra.mxu1 %v12063_v10 }
 0x68f   :  { %v12054_v51 = vadd.f32 %v4431_v2, %v4367_v0  ;;  %v8973_v2 = vld [vmem:[%s14205_s1 + $0x1e0] sm:$0xff]   ;;  %4793 = vmatpush.msra.mxu3 %v7824_v49 }
 0x690   :  { %v2401_v0 = vld [vmem:[#allocation3 + $0xd4] sm:$0xff]  ;;  %v7749_v17 = vunpack.c.h.bf16 %v8973_v2 }
 0x691   :  { %4563 = vmatmul.f32.gmra.mxu2 %v2397_v53  ;;  %v7789_v53 = vunpack.c.h.bf16 %v8983_v16  ;;  %4794 = vmatpush.msra.mxu3 %v7821_v25 }
 0x692   :  { %4628 = vmatmul.f32.gmra.mxu3 %v9281_v43  ;;  %v12068_v62 = vpop.f32.mrf.mxu1  ;;  %v9284_v43 = vld [vmem:[#allocation3 + $0xe0] sm:$0xff]  ;;  %4668 = vmatpush.msra.mxu1 %v7749_v17 }
 0x693   :  { %4795 = vmatpush.msra.mxu3 %v7820_v19 }
 0x694   :  { %v4369_v59 = vpop.f32.mrf.mxu2 }
 0x695   :  { %v4434_v6 = vpop.f32.mrf.mxu3  ;;  %v4370_v1 = vadd.f32 %v4369_v59, %v4305_v48  ;;  %v8982_v48 = vld [vmem:[%s14205_s1 + $0x228] sm:$0xff]  }
 0x696   :  { %4513 = vmatmul.f32.gmra.mxu1 %v12071_v32  ;;  %v8990_v59 = vld [vmem:[%s14205_s1 + $0x268] sm:$0xff]   ;;  %v7784_v34 = vunpack.c.l.bf16 %v8982_v48 }
 0x697   :  { %v12066_v50 = vadd.f32 %v4434_v6, %v4370_v1  ;;  %v7788_v1 = vunpack.c.l.bf16 %v8983_v16  ;;  %v7777_v16 = vunpack.c.h.bf16 %v8980_v31 }
 0x699   :  { %4566 = vmatmul.f32.gmra.mxu2 %v2398_v15  ;;  %v4317_v15 = vadd.f32 %v12008_v41, %v12059_v55  ;;  %v8981_v55 = vld [vmem:[%s14205_s1 + $0x220] sm:$0xff]  }
 0x69a   :  { %4631 = vmatmul.f32.gmra.mxu3 %v9282_v39  ;;  %v12080_v47 = vpop.f32.mrf.mxu1  ;;  %v7781_v37 = vunpack.c.h.bf16 %v8981_v55 }
 0x69c   :  { %v4372_v27 = vpop.f32.mrf.mxu2 }
 0x69d   :  { %v4437_v4 = vpop.f32.mrf.mxu3  ;;  %v4373_v5 = vadd.f32 %v4372_v27, %v4308_v46  ;;  %v12122_v27 = vld [vmem:[#allocation3 + $0x113] sm:$0xff] }
 0x69e   :  { %4516 = vmatmul.f32.gmra.mxu1 %v12083_v58 }
 0x69f   :  { %v12074_v24 = vadd.f32 %v4437_v4, %v4373_v5  ;;  %v7785_v4 = vunpack.c.h.bf16 %v8982_v48  ;;  %v7817_v5 = vunpack.c.h.bf16 %v8990_v59  ;;  %v8979_v48 = vld [vmem:[%s14205_s1 + $0x210] sm:$0xff]  }
 0x6a1   :  { %4569 = vmatmul.f32.gmra.mxu2 %v2399_v22  ;;  %4796 = vmatpush.msra.mxu3 %v7817_v5  ;;  %v8978_v5 = vld [vmem:[%s14205_s1 + $0x208] sm:$0xff]  }
 0x6a2   :  { %4634 = vmatmul.f32.gmra.mxu3 %v11913_v56  ;;  %v8984_v56 = vld [vmem:[%s14205_s1 + $0x238] sm:$0xff]   ;;  %v12094_v60 = vpop.f32.mrf.mxu1 }
 0x6a3   :  { %v7793_v11 = vunpack.c.h.bf16 %v8984_v56  ;;  %v7792_v33 = vunpack.c.l.bf16 %v8984_v56  ;;  %v8972_v56 = vld [vmem:[%s14205_s1 + $0x1d8] sm:$0xff]  }
 0x6a4   :  { %v4375_v12 = vpop.f32.mrf.mxu2 }
 0x6a5   :  { %v4440_v18 = vpop.f32.mrf.mxu3  ;;  %v4376_v14 = vadd.f32 %v4375_v12, %v4311_v42  ;;  %4727 = vmatpush.msra.mxu2 %v7793_v11  ;;  %v7816_v42 = vunpack.c.l.bf16 %v8990_v59  ;;  %v7748_v12 = vunpack.c.l.bf16 %v8973_v2  ;;  %v8988_v11 = vld [vmem:[%s14205_s1 + $0x258] sm:$0xff]   ;;  %v12146_v2 = vld [vmem:[#allocation3 + $0x123] sm:$0xff] }
 0x6a6   :  { %4519 = vmatmul.f32.gmra.mxu1 %v12098_v35  ;;  %v7809_v57 = vunpack.c.h.bf16 %v8988_v11  ;;  %v7808_v25 = vunpack.c.l.bf16 %v8988_v11  ;;  %v8987_v59 = vld [vmem:[%s14205_s1 + $0x250] sm:$0xff]  }
 0x6a7   :  { %v12086_v45 = vadd.f32 %v4440_v18, %v4376_v14  ;;  %4728 = vmatpush.msra.mxu2 %v7792_v33  ;;  %v8989_v18 = vld [vmem:[%s14205_s1 + $0x260] sm:$0xff]   ;;  %v2402_v14 = vld [vmem:[#allocation3 + $0xe4] sm:$0xff]  ;;  %4797 = vmatpush.msra.mxu3 %v7816_v42  ;;  %v7772_v42 = vunpack.c.l.bf16 %v8979_v48 }
 0x6a8   :  { %4669 = vmatpush.msra.mxu1 %v7748_v12  ;;  %v4323_v12 = vadd.f32 %v12008_v41, %v12080_v47 }
 0x6a9   :  { %4572 = vmatmul.f32.gmra.mxu2 %v2400_v61  ;;  %v7813_v61 = vunpack.c.h.bf16 %v8989_v18 }
 0x6aa   :  { %4637 = vmatmul.f32.gmra.mxu3 %v9283_v13  ;;  %v12118_v6 = vpop.f32.mrf.mxu1  ;;  %4729 = vmatpush.msra.mxu2 %v7789_v53  ;;  %v9285_v13 = vld [vmem:[#allocation3 + $0xf0] sm:$0xff]  ;;  %v7744_v53 = vunpack.c.l.bf16 %v8972_v56 }
 0x6ab   :  { %4798 = vmatpush.msra.mxu3 %v7813_v61  ;;  %v12173_v61 = vld [vmem:[#allocation3 + $0x133] sm:$0xff] }
 0x6ac   :  { %v4378_v52 = vpop.f32.mrf.mxu2  ;;  %4730 = vmatpush.msra.mxu2 %v7788_v1  ;;  %v2403_v1 = vld [vmem:[#allocation3 + $0xf4] sm:$0xff] }
 0x6ad   :  { %v4443_v63 = vpop.f32.mrf.mxu3  ;;  %v4379_v54 = vadd.f32 %v4378_v52, %v4314_v38  ;;  %v7780_v38 = vunpack.c.l.bf16 %v8981_v55  ;;  %v7812_v52 = vunpack.c.l.bf16 %v8989_v18  ;;  %v7804_v55 = vunpack.c.l.bf16 %v8987_v59  ;;  %v8986_v18 = vld [vmem:[%s14205_s1 + $0x248] sm:$0xff]  }
 0x6ae   :  { %4522 = vmatmul.f32.gmra.mxu1 %v12122_v27  ;;  %4731 = vmatpush.msra.mxu2 %v7785_v4  ;;  %v8970_v4 = vld [vmem:[%s14205_s1 + $0x1c8] sm:$0xff]   ;;  %v7801_v47 = vunpack.c.h.bf16 %v8986_v18 }
 0x6af   :  { %v12101_v26 = vadd.f32 %v4443_v63, %v4379_v54  ;;  %v4320_v63 = vadd.f32 %v12008_v41, %v12068_v62  ;;  %v7745_v54 = vunpack.c.h.bf16 %v8972_v56  ;;  %4799 = vmatpush.msra.mxu3 %v7812_v52  ;;  %v7776_v62 = vunpack.c.l.bf16 %v8980_v31 }
 0x6b0   :  { %4732 = vmatpush.msra.mxu2 %v7784_v34  ;;  %v7769_v56 = vunpack.c.h.bf16 %v8978_v5  ;;  %v7768_v52 = vunpack.c.l.bf16 %v8978_v5  ;;  %v2405_v5 = vld [vmem:[#allocation3 + $0x114] sm:$0xff] }
 0x6b1   :  { %4575 = vmatmul.f32.gmra.mxu2 %v2401_v0  ;;  %4670 = vmatpush.msra.mxu1 %v7745_v54  ;;  %v8977_v54 = vld [vmem:[%s14205_s1 + $0x200] sm:$0xff]  }
 0x6b2   :  { %4640 = vmatmul.f32.gmra.mxu3 %v9284_v43  ;;  %v12142_v23 = vpop.f32.mrf.mxu1  ;;  %4733 = vmatpush.msra.mxu2 %v7781_v37  ;;  %v8971_v43 = vld [vmem:[%s14205_s1 + $0x1d0] sm:$0xff]  }
 0x6b3   :  { %4800 = vmatpush.msra.mxu3 %v7809_v57  ;;  %v7741_v19 = vunpack.c.h.bf16 %v8971_v43  ;;  %4671 = vmatpush.msra.mxu1 %v7744_v53  ;;  %v7740_v34 = vunpack.c.l.bf16 %v8971_v43  ;;  %v7765_v53 = vunpack.c.h.bf16 %v8977_v54 }
 0x6b4   :  { %v4381_v39 = vpop.f32.mrf.mxu2  ;;  %4734 = vmatpush.msra.mxu2 %v7780_v38  ;;  %v7736_v38 = vunpack.c.l.bf16 %v8970_v4 }
 0x6b5   :  { %v4446_v46 = vpop.f32.mrf.mxu3  ;;  %v4382_v36 = vadd.f32 %v4381_v39, %v4317_v15  ;;  %v7773_v15 = vunpack.c.h.bf16 %v8979_v48  ;;  %v9286_v39 = vld [vmem:[#allocation3 + $0x100] sm:$0xff]  ;;  %4801 = vmatpush.msra.mxu3 %v7808_v25  ;;  %4672 = vmatpush.msra.mxu1 %v7741_v19  ;;  %v4326_v48 = vadd.f32 %v12008_v41, %v12094_v60 }
 0x6b6   :  { %4525 = vmatmul.f32.gmra.mxu1 %v12146_v2  ;;  %4735 = vmatpush.msra.mxu2 %v7777_v16  ;;  %v7800_v16 = vunpack.c.l.bf16 %v8986_v18  ;;  %v9288_v60 = vld [vmem:[#allocation3 + $0x120] sm:$0xff] }
 0x6b7   :  { %v12125_v22 = vadd.f32 %v4446_v46, %v4382_v36  ;;  %v7805_v46 = vunpack.c.h.bf16 %v8987_v59  ;;  %4673 = vmatpush.msra.mxu1 %v7740_v34  ;;  %v7764_v59 = vunpack.c.l.bf16 %v8977_v54 }
 0x6b8   :  { %4736 = vmatpush.msra.mxu2 %v7776_v62 }
 0x6b9   :  { %4578 = vmatmul.f32.gmra.mxu2 %v2402_v14  ;;  %4802 = vmatpush.msra.mxu3 %v7805_v46  ;;  %v2457_v46 = vld [vmem:[#allocation3 + $0x11] sm:$0xff] }
 0x6ba   :  { %4643 = vmatmul.f32.gmra.mxu3 %v9285_v13  ;;  %v12166_v36 = vpop.f32.mrf.mxu1  ;;  %4737 = vmatpush.msra.mxu2 %v7773_v15  ;;  %v7737_v13 = vunpack.c.h.bf16 %v8970_v4 }
 0x6bb   :  { %4803 = vmatpush.msra.mxu3 %v7804_v55 }
 0x6bc   :  { %v4384_v33 = vpop.f32.mrf.mxu2  ;;  %4738 = vmatpush.msra.mxu2 %v7772_v42  ;;  %4674 = vmatpush.msra.mxu1 %v7737_v13  ;;  %v4329_v42 = vadd.f32 %v12008_v41, %v12118_v6  ;;  %v2406_v13 = vld [vmem:[#allocation3 + $0x124] sm:$0xff] }
 0x6bd   :  { %v4449_v49 = vpop.f32.mrf.mxu3  ;;  %v4385_v0 = vadd.f32 %v4384_v33, %v4320_v63  ;;  %v8969_v63 = vld [vmem:[%s14205_s1 + $0x1c0] sm:$0xff]   ;;  %4804 = vmatpush.msra.mxu3 %v7801_v47  ;;  %v4332_v47 = vadd.f32 %v12008_v41, %v12142_v23 }
 0x6be   :  { %4528 = vmatmul.f32.gmra.mxu1 %v12173_v61  ;;  %v8985_v33 = vld [vmem:[%s14205_s1 + $0x240] sm:$0xff]   ;;  %4739 = vmatpush.msra.mxu2 %v7769_v56  ;;  %v7733_v57 = vunpack.c.h.bf16 %v8969_v63  ;;  %v7732_v43 = vunpack.c.l.bf16 %v8969_v63  ;;  %v9289_v56 = vld [vmem:[#allocation3 + $0x130] sm:$0xff] }
 0x6bf   :  { %v12149_v17 = vadd.f32 %v4449_v49, %v4385_v0  ;;  %v2404_v49 = vld [vmem:[#allocation3 + $0x104] sm:$0xff]  ;;  %v9287_v0 = vld [vmem:[#allocation3 + $0x110] sm:$0xff]  ;;  %4675 = vmatpush.msra.mxu1 %v7736_v38  ;;  %v7797_v25 = vunpack.c.h.bf16 %v8985_v33  ;;  %4805 = vmatpush.msra.mxu3 %v7800_v16  ;;  %v7796_v15 = vunpack.c.l.bf16 %v8985_v33 }
 0x6c0   :  { %4740 = vmatpush.msra.mxu2 %v7768_v52  ;;  %v12200_v63 = vld [vmem:[#allocation3 + $0x31] sm:$0xff] }
 0x6c1   :  { %4581 = vmatmul.f32.gmra.mxu2 %v2403_v1  ;;  %4676 = vmatpush.msra.mxu1 %v7733_v57  ;;  %v2407_v33 = vld [vmem:[#allocation3 + $0x134] sm:$0xff]  ;;  %v4335_v57 = vadd.f32 %v12008_v41, %v12166_v36 }
 0x6c2   :  { %4646 = vmatmul.f32.gmra.mxu3 %v9286_v39  ;;  %v4484_v62 = vpop.f32.mrf.mxu1  ;;  %4741 = vmatpush.msra.mxu2 %v7765_v53  ;;  %v12214_v41 = vld [vmem:[#allocation3 + $0x51] sm:$0xff] }
 0x6c3   :  { %4806 = vmatpush.msra.mxu3 %v7797_v25  ;;  %4677 = vmatpush.msra.mxu1 %v7732_v43  ;;  %v12207_v25 = vld [vmem:[#allocation3 + $0x41] sm:$0xff] }
 0x6c4   :  { %v4387_v14 = vpop.f32.mrf.mxu2  ;;  %4742 = vmatpush.msra.mxu2 %v7764_v59 }
 0x6c5   :  { %v4452_v37 = vpop.f32.mrf.mxu3  ;;  %v4388_v31 = vadd.f32 %v4387_v14, %v4323_v12  ;;  %4807 = vmatpush.msra.mxu3 %v7796_v15  ;;  %v12193_v14 = vld [vmem:[#allocation3 + $0x21] sm:$0xff] }
 0x6c6   :  { %4678 = vmatmul.f32.vlgmr.msra.gmra.mxu1 %v2457_v46  ;;  %v2490_v46 = vld [vmem:[#allocation3 + $0x22] sm:$0xff] }
 0x6c7   :  { %v12176_v11 = vadd.f32 %v4452_v37, %v4388_v31 }
 0x6c9   :  { %4584 = vmatmul.f32.gmra.mxu2 %v2404_v49  ;;  %v9290_v49 = vld [vmem:[#allocation3 + $0x140] sm:$0xff] }
 0x6ca   :  { %4649 = vmatmul.f32.gmra.mxu3 %v9287_v0  ;;  %v4487_v34 = vpop.f32.mrf.mxu1 }
 0x6cc   :  { %v4390_v1 = vpop.f32.mrf.mxu2 }
 0x6cd   :  { %v4455_v19 = vpop.f32.mrf.mxu3  ;;  %v4391_v39 = vadd.f32 %v4390_v1, %v4326_v48  ;;  %v2489_v48 = vld [vmem:[#allocation3 + $0x12] sm:$0xff]  ;;  %v4485_v1 = vadd.f32 %v4484_v62, %v12018_v20  ;;  %v12221_v20 = vld [vmem:[#allocation3 + $0x61] sm:$0xff] }
 0x6ce   :  { %4681 = vmatmul.f32.gmra.mxu1 %v12193_v14 }
 0x6cf   :  { %v12189_v4 = vadd.f32 %v4455_v19, %v4391_v39 }
 0x6d1   :  { %4587 = vmatmul.f32.gmra.mxu2 %v2405_v5 }
 0x6d2   :  { %4652 = vmatmul.f32.gmra.mxu3 %v9288_v60  ;;  %v4490_v31 = vpop.f32.mrf.mxu1  ;;  %v4488_v60 = vadd.f32 %v4487_v34, %v12028_v21  ;;  %v12228_v21 = vld [vmem:[#allocation3 + $0x71] sm:$0xff] }
 0x6d4   :  { %v4393_v12 = vpop.f32.mrf.mxu2 }
 0x6d5   :  { %v4458_v55 = vpop.f32.mrf.mxu3  ;;  %v4394_v18 = vadd.f32 %v4393_v12, %v4329_v42 }
 0x6d6   :  { %4684 = vmatmul.f32.gmra.mxu1 %v12200_v63 }
 0x6d7   :  { %v12195_v37 = vadd.f32 %v4458_v55, %v4394_v18  ;;  %v2491_v55 = vld [vmem:[#allocation3 + $0x32] sm:$0xff] }
 0x6d9   :  { %4590 = vmatmul.f32.gmra.mxu2 %v2406_v13  ;;  %v4491_v13 = vadd.f32 %v4490_v31, %v12036_v8 }
 0x6da   :  { %4655 = vmatmul.f32.gmra.mxu3 %v9289_v56  ;;  %v4493_v16 = vpop.f32.mrf.mxu1 }
 0x6db   :  { %v4494_v8 = vadd.f32 %v4493_v16, %v12047_v30 }
 0x6dc   :  { %v4396_v38 = vpop.f32.mrf.mxu2 }
 0x6dd   :  { %v4461_v52 = vpop.f32.mrf.mxu3  ;;  %v4397_v6 = vadd.f32 %v4396_v38, %v4332_v47  ;;  %v9000_v38 = vld [vmem:[%s14205_s1 + $0x2b8] sm:$0xff]  }
 0x6de   :  { %4687 = vmatmul.f32.gmra.mxu1 %v12207_v25 }
 0x6df   :  { %v12202_v54 = vadd.f32 %v4461_v52, %v4397_v6  ;;  %v2492_v52 = vld [vmem:[#allocation3 + $0x42] sm:$0xff]  ;;  %v7857_v6 = vunpack.c.h.bf16 %v9000_v38 }
 0x6e1   :  { %4593 = vmatmul.f32.gmra.mxu2 %v2407_v33  ;;  %4857 = vmatpush.msrb.mxu1 %v7857_v6  ;;  %v12271_v6 = vld [vmem:[#allocation3 + $0xf1] sm:$0xff] }
 0x6e2   :  { %4658 = vmatmul.f32.gmra.mxu3 %v9290_v49  ;;  %v4496_v59 = vpop.f32.mrf.mxu1 }
 0x6e4   :  { %v4399_v0 = vpop.f32.mrf.mxu2 }
 0x6e5   :  { %v4464_v53 = vpop.f32.mrf.mxu3  ;;  %v4400_v23 = vadd.f32 %v4399_v0, %v4335_v57  ;;  %v12238_v57 = vld [vmem:[#allocation3 + $0x81] sm:$0xff] }
 0x6e6   :  { %4690 = vmatmul.f32.gmra.mxu1 %v12214_v41 }
 0x6e7   :  { %v12209_v43 = vadd.f32 %v4464_v53, %v4400_v23  ;;  %v7856_v53 = vunpack.c.l.bf16 %v9000_v38  ;;  %v2493_v23 = vld [vmem:[#allocation3 + $0x52] sm:$0xff] }
 0x6e9   :  { %4743 = vmatmul.f32.vlgmr.msra.gmra.mxu2 %v2489_v48  ;;  %4858 = vmatpush.msrb.mxu1 %v7856_v53 }
 0x6ea   :  { %4808 = vmatmul.f32.vlgmr.msra.gmra.mxu3 %v11992_v29  ;;  %v4499_v5 = vpop.f32.mrf.mxu1 }
 0x6ec   :  { %v4549_v19 = vpop.f32.mrf.mxu2 }
 0x6ed   :  { %v4614_v15 = vpop.f32.mrf.mxu3  ;;  %v4550_v39 = vadd.f32 %v4549_v19, %v4485_v1  ;;  %v2465_v19 = vld [vmem:[#allocation3 + $0xd1] sm:$0xff] }
 0x6ee   :  { %4693 = vmatmul.f32.gmra.mxu1 %v12221_v20 }
 0x6ef   :  { %v12216_v36 = vadd.f32 %v4614_v15, %v4550_v39  ;;  %v12252_v39 = vld [vmem:[%s14205_s1 + $0x8b8] sm:$0xff]  }
 0x6f1   :  { %4746 = vmatmul.f32.gmra.mxu2 %v2490_v46  ;;  %v2494_v46 = vld [vmem:[#allocation3 + $0x62] sm:$0xff] }
 0x6f2   :  { %4811 = vmatmul.f32.gmra.mxu3 %v11997_v40  ;;  %v4502_v18 = vpop.f32.mrf.mxu1 }
 0x6f3   :  { %v4503_v38 = vadd.f32 %v4502_v18, %v12074_v24 }
 0x6f4   :  { %v4552_v29 = vpop.f32.mrf.mxu2 }
 0x6f5   :  { %v4617_v42 = vpop.f32.mrf.mxu3  ;;  %v4553_v12 = vadd.f32 %v4552_v29, %v4488_v60  ;;  %v8625_v60 = vunpack.c.h.bf16 %v12252_v39  ;;  %v4500_v29 = vadd.f32 %v4499_v5, %v12066_v50 }
 0x6f6   :  { %4696 = vmatmul.f32.gmra.mxu1 %v12228_v21 }
 0x6f7   :  { %v12223_v62 = vadd.f32 %v4617_v42, %v4553_v12  ;;  %7171 = vmatpush.msrb.mxu0 %v8625_v60 }
 0x6f9   :  { %4749 = vmatmul.f32.gmra.mxu2 %v2491_v55 }
 0x6fa   :  { %4814 = vmatmul.f32.gmra.mxu3 %v12002_v28 }
 0x6fb   :  { %v4505_v28 = vpop.f32.mrf.mxu1 }
 0x6fc   :  { %v4555_v40 = vpop.f32.mrf.mxu2  ;;  %v4506_v24 = vadd.f32 %v4505_v28, %v12086_v45  ;;  %v9016_v45 = vld [vmem:[%s14205_s1 + $0x338] sm:$0xff]  }
 0x6fd   :  { %v4620_v56 = vpop.f32.mrf.mxu3  ;;  %v4556_v47 = vadd.f32 %v4555_v40, %v4491_v13  ;;  %v12262_v13 = vld [vmem:[#allocation3 + $0xe1] sm:$0xff]  ;;  %v7921_v60 = vunpack.c.h.bf16 %v9016_v45 }
 0x6fe   :  { %4699 = vmatmul.f32.gmra.mxu1 %v12238_v57 }
 0x6ff   :  { %v12230_v34 = vadd.f32 %v4620_v56, %v4556_v47  ;;  %v2495_v47 = vld [vmem:[#allocation3 + $0x72] sm:$0xff]  ;;  %4987 = vmatpush.msrb.mxu3 %v7921_v60 }
 0x701   :  { %4752 = vmatmul.f32.gmra.mxu2 %v2492_v52 }
 0x702   :  { %4817 = vmatmul.f32.gmra.mxu3 %v12015_v9  ;;  %v4497_v9 = vadd.f32 %v4496_v59, %v12054_v51 }
 0x703   :  { %v12244_v48 = vpop.f32.mrf.mxu1 }
 0x704   :  { %v4558_v31 = vpop.f32.mrf.mxu2 }
 0x705   :  { %v4623_v33 = vpop.f32.mrf.mxu3  ;;  %v4559_v49 = vadd.f32 %v4558_v31, %v4494_v8  ;;  %v8998_v31 = vld [vmem:[%s14205_s1 + $0x2a8] sm:$0xff]  }
 0x706   :  { %4702 = vmatmul.f32.gmra.mxu1 %v2465_v19  ;;  %v2497_v19 = vld [vmem:[#allocation3 + $0xd2] sm:$0xff] }
 0x707   :  { %v12240_v0 = vadd.f32 %v4623_v33, %v4559_v49  ;;  %v2496_v33 = vld [vmem:[#allocation3 + $0x82] sm:$0xff]  ;;  %v7849_v49 = vunpack.c.h.bf16 %v8998_v31 }
 0x709   :  { %4755 = vmatmul.f32.gmra.mxu2 %v2493_v23 }
 0x70a   :  { %4820 = vmatmul.f32.gmra.mxu3 %v12025_v3  ;;  %v8999_v3 = vld [vmem:[%s14205_s1 + $0x2b0] sm:$0xff]  }
 0x70b   :  { %v7853_v51 = vunpack.c.h.bf16 %v8999_v3  ;;  %v12259_v59 = vpop.f32.mrf.mxu1  ;;  %v7852_v56 = vunpack.c.l.bf16 %v8999_v3  ;;  %v9008_v3 = vld [vmem:[%s14205_s1 + $0x2f8] sm:$0xff]  }
 0x70c   :  { %v4561_v30 = vpop.f32.mrf.mxu2 }
 0x70d   :  { %v4626_v16 = vpop.f32.mrf.mxu3  ;;  %v4562_v1 = vadd.f32 %v4561_v30, %v4497_v9  ;;  %4859 = vmatpush.msrb.mxu1 %v7853_v51  ;;  %v12282_v30 = vld [vmem:[#allocation3 + $0x101] sm:$0xff]  ;;  %v4509_v51 = vadd.f32 %v12244_v48, %v12101_v26 }
 0x70e   :  { %4705 = vmatmul.f32.gmra.mxu1 %v12262_v13  ;;  %v9007_v26 = vld [vmem:[%s14205_s1 + $0x2f0] sm:$0xff]  }
 0x70f   :  { %v12247_v15 = vadd.f32 %v4626_v16, %v4562_v1  ;;  %4860 = vmatpush.msrb.mxu1 %v7852_v56  ;;  %v7848_v1 = vunpack.c.l.bf16 %v8998_v31  ;;  %v7888_v56 = vunpack.c.l.bf16 %v9008_v3  ;;  %v9015_v48 = vld [vmem:[%s14205_s1 + $0x330] sm:$0xff]  }
 0x710   :  { %v7917_v31 = vunpack.c.h.bf16 %v9015_v48 }
 0x711   :  { %4758 = vmatmul.f32.gmra.mxu2 %v2494_v46  ;;  %4861 = vmatpush.msrb.mxu1 %v7849_v49  ;;  %v7889_v46 = vunpack.c.h.bf16 %v9008_v3 }
 0x712   :  { %4823 = vmatmul.f32.gmra.mxu3 %v12033_v7 }
 0x713   :  { %v12268_v7 = vpop.f32.mrf.mxu1  ;;  %4862 = vmatpush.msrb.mxu1 %v7848_v1  ;;  %4922 = vmatpush.msrb.mxu2 %v7889_v46 }
 0x714   :  { %v4564_v42 = vpop.f32.mrf.mxu2 }
 0x715   :  { %v4629_v12 = vpop.f32.mrf.mxu3  ;;  %v4565_v55 = vadd.f32 %v4564_v42, %v4500_v29  ;;  %4923 = vmatpush.msrb.mxu2 %v7888_v56 }
 0x716   :  { %4708 = vmatmul.f32.gmra.mxu1 %v12271_v6 }
 0x717   :  { %v12264_v40 = vadd.f32 %v4629_v12, %v4565_v55  ;;  %v12298_v12 = vld [vmem:[#allocation3 + $0x111] sm:$0xff] }
 0x719   :  { %4761 = vmatmul.f32.gmra.mxu2 %v2495_v47  ;;  %v7920_v47 = vunpack.c.l.bf16 %v9016_v45  ;;  %v12323_v45 = vld [vmem:[#allocation3 + $0x121] sm:$0xff] }
 0x71a   :  { %4826 = vmatmul.f32.gmra.mxu3 %v12044_v44  ;;  %v2528_v44 = vld [vmem:[#allocation3 + $0x83] sm:$0xff] }
 0x71b   :  { %v12279_v53 = vpop.f32.mrf.mxu1  ;;  %4988 = vmatpush.msrb.mxu3 %v7920_v47  ;;  %v8996_v47 = vld [vmem:[%s14205_s1 + $0x298] sm:$0xff]  }
 0x71c   :  { %v4567_v50 = vpop.f32.mrf.mxu2 }
 0x71d   :  { %v4632_v5 = vpop.f32.mrf.mxu3  ;;  %v4568_v52 = vadd.f32 %v4567_v50, %v4503_v38  ;;  %v8997_v38 = vld [vmem:[%s14205_s1 + $0x2a0] sm:$0xff]   ;;  %v2498_v50 = vld [vmem:[#allocation3 + $0xe2] sm:$0xff]  ;;  %4989 = vmatpush.msrb.mxu3 %v7917_v31 }
 0x71e   :  { %4711 = vmatmul.f32.gmra.mxu1 %v12282_v30 }
 0x71f   :  { %v12273_v8 = vadd.f32 %v4632_v5, %v4568_v52  ;;  %v7845_v5 = vunpack.c.h.bf16 %v8997_v38  ;;  %v7885_v52 = vunpack.c.h.bf16 %v9007_v26 }
 0x721   :  { %4764 = vmatmul.f32.gmra.mxu2 %v2496_v33  ;;  %v9006_v33 = vld [vmem:[%s14205_s1 + $0x2e8] sm:$0xff]   ;;  %4863 = vmatpush.msrb.mxu1 %v7845_v5 }
 0x722   :  { %4829 = vmatmul.f32.gmra.mxu3 %v2528_v44  ;;  %v9014_v44 = vld [vmem:[%s14205_s1 + $0x328] sm:$0xff]   ;;  %4924 = vmatpush.msrb.mxu2 %v7885_v52  ;;  %v7881_v1 = vunpack.c.h.bf16 %v9006_v33  ;;  %v7880_v60 = vunpack.c.l.bf16 %v9006_v33  ;;  %v7841_v52 = vunpack.c.h.bf16 %v8996_v47 }
 0x723   :  { %v12294_v28 = vpop.f32.mrf.mxu1 }
 0x724   :  { %v4570_v18 = vpop.f32.mrf.mxu2 }
 0x725   :  { %v4635_v23 = vpop.f32.mrf.mxu3  ;;  %v4571_v9 = vadd.f32 %v4570_v18, %v4506_v24  ;;  %v7884_v24 = vunpack.c.l.bf16 %v9007_v26  ;;  %v7916_v18 = vunpack.c.l.bf16 %v9015_v48  ;;  %v9012_v26 = vld [vmem:[%s14205_s1 + $0x318] sm:$0xff]  }
 0x726   :  { %4714 = vmatmul.f32.gmra.mxu1 %v12298_v12 }
 0x727   :  { %v12284_v16 = vadd.f32 %v4635_v23, %v4571_v9  ;;  %v4512_v23 = vadd.f32 %v12259_v59, %v12125_v22  ;;  %4925 = vmatpush.msrb.mxu2 %v7884_v24  ;;  %4990 = vmatpush.msrb.mxu3 %v7916_v18  ;;  %v9005_v22 = vld [vmem:[%s14205_s1 + $0x2e0] sm:$0xff]   ;;  %v7905_v24 = vunpack.c.h.bf16 %v9012_v26 }
 0x728   :  { %v9013_v59 = vld [vmem:[%s14205_s1 + $0x320] sm:$0xff]  }
 0x729   :  { %4767 = vmatmul.f32.gmra.mxu2 %v2497_v19  ;;  %v7913_v19 = vunpack.c.h.bf16 %v9014_v44  ;;  %v7909_v56 = vunpack.c.h.bf16 %v9013_v59  ;;  %v7908_v5 = vunpack.c.l.bf16 %v9013_v59  ;;  %v8994_v59 = vld [vmem:[%s14205_s1 + $0x288] sm:$0xff]  }
 0x72a   :  { %4832 = vmatmul.f32.gmra.mxu3 %v12063_v10  ;;  %4926 = vmatpush.msrb.mxu2 %v7881_v1 }
 0x72b   :  { %v12319_v49 = vpop.f32.mrf.mxu1  ;;  %4991 = vmatpush.msrb.mxu3 %v7913_v19  ;;  %v9003_v19 = vld [vmem:[%s14205_s1 + $0x2d0] sm:$0xff]  }
 0x72c   :  { %v4573_v29 = vpop.f32.mrf.mxu2  ;;  %4927 = vmatpush.msrb.mxu2 %v7880_v60  ;;  %v2500_v60 = vld [vmem:[#allocation3 + $0x102] sm:$0xff] }
 0x72d   :  { %v4638_v42 = vpop.f32.mrf.mxu3  ;;  %v4574_v10 = vadd.f32 %v4573_v29, %v4509_v51  ;;  %v7912_v51 = vunpack.c.l.bf16 %v9014_v44  ;;  %v7844_v29 = vunpack.c.l.bf16 %v8997_v38  ;;  %v9004_v38 = vld [vmem:[%s14205_s1 + $0x2d8] sm:$0xff]  }
 0x72e   :  { %4717 = vmatmul.f32.gmra.mxu1 %v12323_v45  ;;  %v7873_v44 = vunpack.c.h.bf16 %v9004_v38  ;;  %v7872_v1 = vunpack.c.l.bf16 %v9004_v38 }
 0x72f   :  { %v12300_v55 = vadd.f32 %v4638_v42, %v4574_v10  ;;  %v2499_v42 = vld [vmem:[#allocation3 + $0xf2] sm:$0xff]  ;;  %v7877_v10 = vunpack.c.h.bf16 %v9005_v22  ;;  %4992 = vmatpush.msrb.mxu3 %v7912_v51  ;;  %4864 = vmatpush.msrb.mxu1 %v7844_v29  ;;  %v7869_v29 = vunpack.c.h.bf16 %v9003_v19 }
 0x731   :  { %4770 = vmatmul.f32.gmra.mxu2 %v2498_v50  ;;  %v7876_v50 = vunpack.c.l.bf16 %v9005_v22  ;;  %4993 = vmatpush.msrb.mxu3 %v7909_v56  ;;  %v7868_v56 = vunpack.c.l.bf16 %v9003_v19 }
 0x732   :  { %4835 = vmatmul.f32.gmra.mxu3 %v12071_v32  ;;  %4928 = vmatpush.msrb.mxu2 %v7877_v10 }
 0x733   :  { %v12344_v48 = vpop.f32.mrf.mxu1  ;;  %4865 = vmatpush.msrb.mxu1 %v7841_v52  ;;  %4994 = vmatpush.msrb.mxu3 %v7908_v5  ;;  %v7833_v52 = vunpack.c.h.bf16 %v8994_v59 }
 0x734   :  { %v4576_v9 = vpop.f32.mrf.mxu2  ;;  %4929 = vmatpush.msrb.mxu2 %v7876_v50 }
 0x735   :  { %v4641_v32 = vpop.f32.mrf.mxu3  ;;  %v4577_v3 = vadd.f32 %v4576_v9, %v4512_v23  ;;  %v12348_v23 = vld [vmem:[#allocation3 + $0x131] sm:$0xff]  ;;  %4995 = vmatpush.msrb.mxu3 %v7905_v24 }
 0x736   :  { %4720 = vmatmul.f32.gmra.mxu1 %v12348_v23  ;;  %4930 = vmatpush.msrb.mxu2 %v7873_v44  ;;  %v7832_v44 = vunpack.c.l.bf16 %v8994_v59 }
 0x737   :  { %v12325_v46 = vadd.f32 %v4641_v32, %v4577_v3  ;;  %v7840_v32 = vunpack.c.l.bf16 %v8996_v47  ;;  %v9011_v3 = vld [vmem:[%s14205_s1 + $0x310] sm:$0xff]   ;;  %v4518_v47 = vadd.f32 %v12279_v53, %v12176_v11 }
 0x738   :  { %v7901_v22 = vunpack.c.h.bf16 %v9011_v3  ;;  %4931 = vmatpush.msrb.mxu2 %v7872_v1  ;;  %v9009_v1 = vld [vmem:[%s14205_s1 + $0x300] sm:$0xff]  }
 0x739   :  { %4773 = vmatmul.f32.gmra.mxu2 %v2499_v42  ;;  %v9002_v42 = vld [vmem:[%s14205_s1 + $0x2c8] sm:$0xff]   ;;  %4866 = vmatpush.msrb.mxu1 %v7840_v32  ;;  %v9001_v32 = vld [vmem:[%s14205_s1 + $0x2c0] sm:$0xff]  }
 0x73a   :  { %4838 = vmatmul.f32.gmra.mxu3 %v12083_v58  ;;  %v4515_v58 = vadd.f32 %v12268_v7, %v12149_v17  ;;  %v7904_v17 = vunpack.c.l.bf16 %v9012_v26  ;;  %v8995_v7 = vld [vmem:[%s14205_s1 + $0x290] sm:$0xff]   ;;  %v9010_v26 = vld [vmem:[%s14205_s1 + $0x308] sm:$0xff]   ;;  %4932 = vmatpush.msrb.mxu2 %v7869_v29  ;;  %v7864_v24 = vunpack.c.l.bf16 %v9002_v42  ;;  %v4521_v29 = vadd.f32 %v12294_v28, %v12189_v4 }
 0x73b   :  { %v7837_v51 = vunpack.c.h.bf16 %v8995_v7  ;;  %v7836_v10 = vunpack.c.l.bf16 %v8995_v7  ;;  %v12371_v38 = vpop.f32.mrf.mxu1  ;;  %v7897_v11 = vunpack.c.h.bf16 %v9010_v26  ;;  %v7896_v7 = vunpack.c.l.bf16 %v9010_v26  ;;  %v2502_v26 = vld [vmem:[#allocation3 + $0x122] sm:$0xff] }
 0x73c   :  { %v4579_v31 = vpop.f32.mrf.mxu2  ;;  %4996 = vmatpush.msrb.mxu3 %v7904_v17  ;;  %4933 = vmatpush.msrb.mxu2 %v7868_v56  ;;  %v2501_v17 = vld [vmem:[#allocation3 + $0x112] sm:$0xff]  ;;  %v4524_v4 = vadd.f32 %v12319_v49, %v12195_v37 }
 0x73d   :  { %v4644_v33 = vpop.f32.mrf.mxu3  ;;  %v4580_v18 = vadd.f32 %v4579_v31, %v4515_v58  ;;  %4867 = vmatpush.msrb.mxu1 %v7837_v51  ;;  %v7865_v58 = vunpack.c.h.bf16 %v9002_v42 }
 0x73e   :  { %4997 = vmatpush.msrb.mxu3 %v7901_v22  ;;  %v7860_v22 = vunpack.c.l.bf16 %v9001_v32 }
 0x73f   :  { %v12350_v9 = vadd.f32 %v4644_v33, %v4580_v18  ;;  %4868 = vmatpush.msrb.mxu1 %v7836_v10  ;;  %v12376_v33 = vld [vmem:[#allocation3 + $0x141] sm:$0xff]  ;;  %v8993_v18 = vld [vmem:[%s14205_s1 + $0x280] sm:$0xff]   ;;  %4934 = vmatpush.msrb.mxu2 %v7865_v58  ;;  %v7892_v10 = vunpack.c.l.bf16 %v9009_v1 }
 0x740   :  { %4723 = vmatmul.f32.gmra.mxu1 %v12376_v33  ;;  %v7829_v19 = vunpack.c.h.bf16 %v8993_v18  ;;  %v7828_v51 = vunpack.c.l.bf16 %v8993_v18  ;;  %v12398_v58 = vld [vmem:[#allocation3 + $0x24] sm:$0xff] }
 0x741   :  { %4776 = vmatmul.f32.gmra.mxu2 %v2500_v60  ;;  %4869 = vmatpush.msrb.mxu1 %v7833_v52  ;;  %v7893_v60 = vunpack.c.h.bf16 %v9009_v1 }
 0x742   :  { %4841 = vmatmul.f32.gmra.mxu3 %v12098_v35  ;;  %v7900_v35 = vunpack.c.l.bf16 %v9011_v3  ;;  %v7861_v3 = vunpack.c.h.bf16 %v9001_v32  ;;  %4935 = vmatpush.msrb.mxu2 %v7864_v24  ;;  %v12407_v32 = vld [vmem:[#allocation3 + $0x34] sm:$0xff] }
 0x743   :  { %4870 = vmatpush.msrb.mxu1 %v7832_v44  ;;  %v2503_v44 = vld [vmem:[#allocation3 + $0x132] sm:$0xff] }
 0x744   :  { %v4582_v50 = vpop.f32.mrf.mxu2  ;;  %4998 = vmatpush.msrb.mxu3 %v7900_v35  ;;  %4936 = vmatpush.msrb.mxu2 %v7861_v3  ;;  %v12414_v3 = vld [vmem:[#allocation3 + $0x44] sm:$0xff] }
 0x745   :  { %v4647_v5 = vpop.f32.mrf.mxu3  ;;  %v4583_v31 = vadd.f32 %v4582_v50, %v4518_v47  ;;  %4871 = vmatpush.msrb.mxu1 %v7829_v19  ;;  %v4679_v47 = vpop.f32.mrf.mxu1 }
 0x746   :  { %4999 = vmatpush.msrb.mxu3 %v7897_v11  ;;  %4937 = vmatpush.msrb.mxu2 %v7860_v22  ;;  %v8624_v11 = vunpack.c.l.bf16 %v12252_v39  ;;  %v2536_v39 = vld [vmem:[#allocation3 + $0x143] sm:$0xff] }
 0x747   :  { %v12378_v53 = vadd.f32 %v4647_v5, %v4583_v31  ;;  %4872 = vmatpush.msrb.mxu1 %v7828_v51  ;;  %v2586_v51 = vld [vmem:[#allocation3 + $0x20] sm:$0xff] }
 0x748   :  { %5000 = vmatpush.msrb.mxu3 %v7896_v7  ;;  %7172 = vmatpush.msrb.mxu0 %v8624_v11 }
 0x749   :  { %4779 = vmatmul.f32.gmra.mxu2 %v2501_v17  ;;  %v2504_v17 = vld [vmem:[#allocation3 + $0x142] sm:$0xff] }
 0x74a   :  { %4844 = vmatmul.f32.gmra.mxu3 %v12122_v27  ;;  %v2553_v27 = vld [vmem:[#allocation3 + $0x14] sm:$0xff] }
 0x74b   :  { %5001 = vmatpush.msrb.mxu3 %v7893_v60  ;;  %4873 = vmatmul.f32.vlgmr.msrb.gmra.mxu1 %v2553_v27 }
 0x74c   :  { %v4585_v59 = vpop.f32.mrf.mxu2 }
 0x74d   :  { %v4650_v42 = vpop.f32.mrf.mxu3  ;;  %v4586_v56 = vadd.f32 %v4585_v59, %v4521_v29  ;;  %5002 = vmatpush.msrb.mxu3 %v7892_v10  ;;  %v4682_v52 = vpop.f32.mrf.mxu1  ;;  %v4680_v29 = vadd.f32 %v4679_v47, %v12216_v36  ;;  %v12428_v47 = vld [vmem:[#allocation3 + $0x64] sm:$0xff] }
 0x74e   :  { %v4683_v27 = vadd.f32 %v4682_v52, %v12223_v62  ;;  %v12435_v52 = vld [vmem:[#allocation3 + $0x74] sm:$0xff] }
 0x74f   :  { %v12393_v35 = vadd.f32 %v4650_v42, %v4586_v56  ;;  %v2587_v56 = vld [vmem:[#allocation3 + $0x30] sm:$0xff] }
 0x751   :  { %4782 = vmatmul.f32.gmra.mxu2 %v2502_v26 }
 0x752   :  { %4847 = vmatmul.f32.gmra.mxu3 %v12146_v2  ;;  %v4527_v2 = vadd.f32 %v12344_v48, %v12202_v54 }
 0x753   :  { %4876 = vmatmul.f32.gmra.mxu1 %v12398_v58 }
 0x754   :  { %v4588_v28 = vpop.f32.mrf.mxu2 }
 0x755   :  { %v4653_v50 = vpop.f32.mrf.mxu3  ;;  %v4589_v5 = vadd.f32 %v4588_v28, %v4524_v4  ;;  %v4685_v18 = vpop.f32.mrf.mxu1 }
 0x757   :  { %v12400_v31 = vadd.f32 %v4653_v50, %v4589_v5  ;;  %v2588_v50 = vld [vmem:[#allocation3 + $0x40] sm:$0xff]  ;;  %v4686_v5 = vadd.f32 %v4685_v18, %v12230_v34 }
 0x759   :  { %4785 = vmatmul.f32.gmra.mxu2 %v2503_v44 }
 0x75a   :  { %4850 = vmatmul.f32.gmra.mxu3 %v12173_v61  ;;  %v4530_v61 = vadd.f32 %v12371_v38, %v12209_v43  ;;  %v12421_v38 = vld [vmem:[#allocation3 + $0x54] sm:$0xff] }
 0x75b   :  { %4879 = vmatmul.f32.gmra.mxu1 %v12407_v32 }
 0x75c   :  { %v4591_v37 = vpop.f32.mrf.mxu2 }
 0x75d   :  { %v4656_v49 = vpop.f32.mrf.mxu3  ;;  %v4592_v24 = vadd.f32 %v4591_v37, %v4527_v2  ;;  %v4688_v48 = vpop.f32.mrf.mxu1  ;;  %v9024_v37 = vld [vmem:[%s14205_s1 + $0x378] sm:$0xff]  }
 0x75f   :  { %v12409_v1 = vadd.f32 %v4656_v49, %v4592_v24  ;;  %v2589_v49 = vld [vmem:[#allocation3 + $0x50] sm:$0xff]  ;;  %v7953_v24 = vunpack.c.h.bf16 %v9024_v37 }
 0x761   :  { %4788 = vmatmul.f32.gmra.mxu2 %v2504_v17  ;;  %5052 = vmatpush.msra.mxu1 %v7953_v24  ;;  %v12478_v24 = vld [vmem:[%s14205_s1 + $0x8b0] sm:$0xff]  }
 0x762   :  { %4853 = vmatmul.f32.gmra.mxu3 %v2536_v39 }
 0x763   :  { %4882 = vmatmul.f32.gmra.mxu1 %v12414_v3 }
 0x764   :  { %v4594_v7 = vpop.f32.mrf.mxu2 }
 0x765   :  { %v4659_v19 = vpop.f32.mrf.mxu3  ;;  %v4595_v54 = vadd.f32 %v4594_v7, %v4530_v61  ;;  %v4691_v43 = vpop.f32.mrf.mxu1  ;;  %v12445_v61 = vld [vmem:[#allocation3 + $0x84] sm:$0xff] }
 0x767   :  { %v12416_v60 = vadd.f32 %v4659_v19, %v4595_v54  ;;  %v7952_v19 = vunpack.c.l.bf16 %v9024_v37  ;;  %v2590_v54 = vld [vmem:[#allocation3 + $0x60] sm:$0xff]  ;;  %v12470_v37 = vld [vmem:[#allocation3 + $0xf4] sm:$0xff] }
 0x769   :  { %4938 = vmatmul.f32.vlgmr.msrb.gmra.mxu2 %v2586_v51  ;;  %5053 = vmatpush.msra.mxu1 %v7952_v19 }
 0x76a   :  { %5003 = vmatmul.f32.vlgmr.msrb.gmra.mxu3 %v12193_v14 }
 0x76b   :  { %4885 = vmatmul.f32.gmra.mxu1 %v12421_v38 }
 0x76c   :  { %v4744_v22 = vpop.f32.mrf.mxu2 }
 0x76d   :  { %v4809_v59 = vpop.f32.mrf.mxu3  ;;  %v4745_v42 = vadd.f32 %v4744_v22, %v4680_v29  ;;  %v4694_v36 = vpop.f32.mrf.mxu1  ;;  %v2561_v22 = vld [vmem:[#allocation3 + $0xd4] sm:$0xff] }
 0x76f   :  { %v12423_v10 = vadd.f32 %v4809_v59, %v4745_v42  ;;  %v9023_v42 = vld [vmem:[%s14205_s1 + $0x370] sm:$0xff]  }
 0x771   :  { %4941 = vmatmul.f32.gmra.mxu2 %v2587_v56  ;;  %v2591_v56 = vld [vmem:[#allocation3 + $0x70] sm:$0xff] }
 0x772   :  { %5006 = vmatmul.f32.gmra.mxu3 %v12200_v63 }
 0x773   :  { %4888 = vmatmul.f32.gmra.mxu1 %v12428_v47 }
 0x774   :  { %v4747_v26 = vpop.f32.mrf.mxu2 }
 0x775   :  { %v4812_v14 = vpop.f32.mrf.mxu3  ;;  %v4748_v4 = vadd.f32 %v4747_v26, %v4683_v27  ;;  %v4697_v62 = vpop.f32.mrf.mxu1  ;;  %v7949_v27 = vunpack.c.h.bf16 %v9023_v42 }
 0x777   :  { %v12430_v28 = vadd.f32 %v4812_v14, %v4748_v4  ;;  %5054 = vmatpush.msra.mxu1 %v7949_v27  ;;  %v12461_v4 = vld [vmem:[#allocation3 + $0xe4] sm:$0xff] }
 0x779   :  { %4944 = vmatmul.f32.gmra.mxu2 %v2588_v50 }
 0x77a   :  { %5009 = vmatmul.f32.gmra.mxu3 %v12207_v25  ;;  %v4689_v25 = vadd.f32 %v4688_v48, %v12240_v0 }
 0x77b   :  { %4891 = vmatmul.f32.gmra.mxu1 %v12435_v52 }
 0x77c   :  { %v4750_v11 = vpop.f32.mrf.mxu2 }
 0x77d   :  { %v4815_v63 = vpop.f32.mrf.mxu3  ;;  %v4751_v44 = vadd.f32 %v4750_v11, %v4686_v5  ;;  %v4700_v39 = vpop.f32.mrf.mxu1  ;;  %v7948_v5 = vunpack.c.l.bf16 %v9023_v42  ;;  %v2592_v11 = vld [vmem:[#allocation3 + $0x80] sm:$0xff] }
 0x77f   :  { %v12437_v2 = vadd.f32 %v4815_v63, %v4751_v44  ;;  %5055 = vmatpush.msra.mxu1 %v7948_v5 }
 0x781   :  { %4947 = vmatmul.f32.gmra.mxu2 %v2589_v49 }
 0x782   :  { %5012 = vmatmul.f32.gmra.mxu3 %v12214_v41  ;;  %v4692_v41 = vadd.f32 %v4691_v43, %v12247_v15 }
 0x783   :  { %4894 = vmatmul.f32.gmra.mxu1 %v12445_v61 }
 0x784   :  { %v4753_v34 = vpop.f32.mrf.mxu2 }
 0x785   :  { %v4818_v18 = vpop.f32.mrf.mxu3  ;;  %v4754_v17 = vadd.f32 %v4753_v34, %v4689_v25  ;;  %v4703_v29 = vpop.f32.mrf.mxu1  ;;  %v9291_v34 = vld [vmem:[#allocation3 + $0x90] sm:$0xff] }
 0x786   :  { %v4704_v27 = vadd.f32 %v4703_v29, %v12300_v55  ;;  %v9031_v55 = vld [vmem:[%s14205_s1 + $0x3b0] sm:$0xff]  }
 0x787   :  { %v12447_v7 = vadd.f32 %v4818_v18, %v4754_v17  ;;  %v4701_v18 = vadd.f32 %v4700_v39, %v12284_v16  ;;  %v9032_v16 = vld [vmem:[%s14205_s1 + $0x3b8] sm:$0xff]   ;;  %v9039_v29 = vld [vmem:[%s14205_s1 + $0x3f0] sm:$0xff]  }
 0x788   :  { %v9040_v39 = vld [vmem:[%s14205_s1 + $0x3f8] sm:$0xff]   ;;  %v7985_v42 = vunpack.c.h.bf16 %v9032_v16 }
 0x789   :  { %4950 = vmatmul.f32.gmra.mxu2 %v2590_v54 }
 0x78a   :  { %5015 = vmatmul.f32.gmra.mxu3 %v12221_v20  ;;  %v4695_v20 = vadd.f32 %v4694_v36, %v12264_v40  ;;  %5117 = vmatpush.msra.mxu2 %v7985_v42 }
 0x78b   :  { %4897 = vmatmul.f32.gmra.mxu1 %v2561_v22  ;;  %v2594_v22 = vld [vmem:[#allocation3 + $0xe0] sm:$0xff] }
 0x78c   :  { %v4756_v51 = vpop.f32.mrf.mxu2 }
 0x78d   :  { %v4821_v0 = vpop.f32.mrf.mxu3  ;;  %v4757_v48 = vadd.f32 %v4756_v51, %v4692_v41  ;;  %v12459_v14 = vpop.f32.mrf.mxu1  ;;  %v12487_v51 = vld [vmem:[#allocation3 + $0x104] sm:$0xff] }
 0x78f   :  { %v12452_v59 = vadd.f32 %v4821_v0, %v4757_v48 }
 0x791   :  { %4953 = vmatmul.f32.gmra.mxu2 %v2591_v56  ;;  %v8017_v56 = vunpack.c.h.bf16 %v9040_v39 }
 0x792   :  { %5018 = vmatmul.f32.gmra.mxu3 %v12228_v21  ;;  %v4698_v21 = vadd.f32 %v4697_v62, %v12273_v8  ;;  %v2625_v8 = vld [vmem:[#allocation3 + $0x91] sm:$0xff]  ;;  %v8621_v62 = vunpack.c.h.bf16 %v12478_v24 }
 0x793   :  { %4900 = vmatmul.f32.gmra.mxu1 %v12461_v4  ;;  %5182 = vmatpush.msra.mxu3 %v8017_v56 }
 0x794   :  { %v4759_v15 = vpop.f32.mrf.mxu2  ;;  %7173 = vmatpush.msrb.mxu0 %v8621_v62  ;;  %v9030_v62 = vld [vmem:[%s14205_s1 + $0x3a8] sm:$0xff]  }
 0x795   :  { %v4824_v43 = vpop.f32.mrf.mxu3  ;;  %v4760_v26 = vadd.f32 %v4759_v15, %v4695_v20  ;;  %v12468_v44 = vpop.f32.mrf.mxu1  ;;  %v7976_v56 = vunpack.c.l.bf16 %v9030_v62 }
 0x797   :  { %v12463_v50 = vadd.f32 %v4824_v43, %v4760_v26 }
 0x799   :  { %4956 = vmatmul.f32.gmra.mxu2 %v2592_v11  ;;  %v7984_v11 = vunpack.c.l.bf16 %v9032_v16 }
 0x79a   :  { %5021 = vmatmul.f32.gmra.mxu3 %v12238_v57  ;;  %v9022_v57 = vld [vmem:[%s14205_s1 + $0x368] sm:$0xff]  }
 0x79b   :  { %4903 = vmatmul.f32.gmra.mxu1 %v12470_v37  ;;  %v7945_v25 = vunpack.c.h.bf16 %v9022_v57  ;;  %v7944_v48 = vunpack.c.l.bf16 %v9022_v57  ;;  %v7981_v57 = vunpack.c.h.bf16 %v9031_v55  ;;  %5118 = vmatpush.msra.mxu2 %v7984_v11 }
 0x79c   :  { %v4762_v40 = vpop.f32.mrf.mxu2 }
 0x79d   :  { %v4827_v36 = vpop.f32.mrf.mxu3  ;;  %v4763_v63 = vadd.f32 %v4762_v40, %v4698_v21  ;;  %5056 = vmatpush.msra.mxu1 %v7945_v25  ;;  %v12485_v41 = vpop.f32.mrf.mxu1  ;;  %v8016_v21 = vunpack.c.l.bf16 %v9040_v39  ;;  %v9021_v40 = vld [vmem:[%s14205_s1 + $0x360] sm:$0xff]   ;;  %v9038_v25 = vld [vmem:[%s14205_s1 + $0x3e8] sm:$0xff]   ;;  %5119 = vmatpush.msra.mxu2 %v7981_v57 }
 0x79e   :  { %v12527_v39 = vld [vmem:[#allocation3 + $0x124] sm:$0xff] }
 0x79f   :  { %v12472_v49 = vadd.f32 %v4827_v36, %v4763_v63  ;;  %5057 = vmatpush.msra.mxu1 %v7944_v48  ;;  %v2595_v36 = vld [vmem:[#allocation3 + $0xf0] sm:$0xff]  ;;  %v7941_v63 = vunpack.c.h.bf16 %v9021_v40  ;;  %5183 = vmatpush.msra.mxu3 %v8016_v21  ;;  %v8009_v48 = vunpack.c.h.bf16 %v9038_v25 }
 0x7a0   :  { %v9020_v21 = vld [vmem:[%s14205_s1 + $0x358] sm:$0xff]  }
 0x7a1   :  { %4959 = vmatmul.f32.gmra.mxu2 %v9291_v34  ;;  %v7980_v34 = vunpack.c.l.bf16 %v9031_v55  ;;  %5058 = vmatpush.msra.mxu1 %v7941_v63  ;;  %v9036_v55 = vld [vmem:[%s14205_s1 + $0x3d8] sm:$0xff]   ;;  %v7937_v63 = vunpack.c.h.bf16 %v9020_v21 }
 0x7a2   :  { %5024 = vmatmul.f32.gmra.mxu3 %v2625_v8  ;;  %v8013_v8 = vunpack.c.h.bf16 %v9039_v29 }
 0x7a3   :  { %4906 = vmatmul.f32.gmra.mxu1 %v12487_v51  ;;  %5120 = vmatpush.msra.mxu2 %v7980_v34 }
 0x7a4   :  { %v4765_v17 = vpop.f32.mrf.mxu2  ;;  %5184 = vmatpush.msra.mxu3 %v8013_v8 }
 0x7a5   :  { %v4830_v19 = vpop.f32.mrf.mxu3  ;;  %v4766_v54 = vadd.f32 %v4765_v17, %v4701_v18  ;;  %v12500_v26 = vpop.f32.mrf.mxu1  ;;  %v8012_v18 = vunpack.c.l.bf16 %v9039_v29  ;;  %v4707_v17 = vadd.f32 %v12459_v14, %v12325_v46  ;;  %v8008_v46 = vunpack.c.l.bf16 %v9038_v25 }
 0x7a6   :  { %v7940_v14 = vunpack.c.l.bf16 %v9021_v40  ;;  %v9028_v40 = vld [vmem:[%s14205_s1 + $0x398] sm:$0xff]   ;;  %v8001_v25 = vunpack.c.h.bf16 %v9036_v55 }
 0x7a7   :  { %v12489_v0 = vadd.f32 %v4830_v19, %v4766_v54  ;;  %5185 = vmatpush.msra.mxu3 %v8012_v18 }
 0x7a8   :  { %5059 = vmatpush.msra.mxu1 %v7940_v14 }
 0x7a9   :  { %4962 = vmatmul.f32.gmra.mxu2 %v2594_v22  ;;  %5186 = vmatpush.msra.mxu3 %v8009_v48  ;;  %v9027_v48 = vld [vmem:[%s14205_s1 + $0x390] sm:$0xff]  }
 0x7aa   :  { %5027 = vmatmul.f32.gmra.mxu3 %v12262_v13  ;;  %v12502_v13 = vld [vmem:[#allocation3 + $0x114] sm:$0xff]  ;;  %5060 = vmatpush.msra.mxu1 %v7937_v63  ;;  %v7965_v14 = vunpack.c.h.bf16 %v9027_v48 }
 0x7ab   :  { %4909 = vmatmul.f32.gmra.mxu1 %v12502_v13  ;;  %5187 = vmatpush.msra.mxu3 %v8008_v46 }
 0x7ac   :  { %v4768_v20 = vpop.f32.mrf.mxu2 }
 0x7ad   :  { %v4833_v15 = vpop.f32.mrf.mxu3  ;;  %v4769_v43 = vadd.f32 %v4768_v20, %v4704_v27  ;;  %v12525_v16 = vpop.f32.mrf.mxu1  ;;  %v9029_v27 = vld [vmem:[%s14205_s1 + $0x3a0] sm:$0xff]  }
 0x7ae   :  { %v9037_v20 = vld [vmem:[%s14205_s1 + $0x3e0] sm:$0xff]   ;;  %v7972_v29 = vunpack.c.l.bf16 %v9029_v27 }
 0x7af   :  { %v12504_v5 = vadd.f32 %v4833_v15, %v4769_v43  ;;  %v2596_v15 = vld [vmem:[#allocation3 + $0x100] sm:$0xff]  ;;  %v7973_v43 = vunpack.c.h.bf16 %v9029_v27  ;;  %v8005_v11 = vunpack.c.h.bf16 %v9037_v20 }
 0x7b1   :  { %4965 = vmatmul.f32.gmra.mxu2 %v2595_v36  ;;  %v8004_v36 = vunpack.c.l.bf16 %v9037_v20  ;;  %5188 = vmatpush.msra.mxu3 %v8005_v11  ;;  %v9018_v20 = vld [vmem:[%s14205_s1 + $0x348] sm:$0xff]   ;;  %v7964_v11 = vunpack.c.l.bf16 %v9027_v48 }
 0x7b2   :  { %5030 = vmatmul.f32.gmra.mxu3 %v12271_v6  ;;  %v7977_v6 = vunpack.c.h.bf16 %v9030_v62  ;;  %v7969_v62 = vunpack.c.h.bf16 %v9028_v40 }
 0x7b3   :  { %4912 = vmatmul.f32.gmra.mxu1 %v12527_v39  ;;  %5189 = vmatpush.msra.mxu3 %v8004_v36  ;;  %v7929_v36 = vunpack.c.h.bf16 %v9018_v20 }
 0x7b4   :  { %v4771_v19 = vpop.f32.mrf.mxu2  ;;  %5121 = vmatpush.msra.mxu2 %v7977_v6  ;;  %v9019_v6 = vld [vmem:[%s14205_s1 + $0x350] sm:$0xff]  }
 0x7b5   :  { %v4836_v54 = vpop.f32.mrf.mxu3  ;;  %v4772_v22 = vadd.f32 %v4771_v19, %v4707_v17  ;;  %v12550_v18 = vpop.f32.mrf.mxu1  ;;  %v12552_v17 = vld [vmem:[#allocation3 + $0x134] sm:$0xff]  ;;  %5190 = vmatpush.msra.mxu3 %v8001_v25  ;;  %v7933_v46 = vunpack.c.h.bf16 %v9019_v6 }
 0x7b6   :  { %5122 = vmatpush.msra.mxu2 %v7976_v56  ;;  %v2597_v56 = vld [vmem:[#allocation3 + $0x110] sm:$0xff] }
 0x7b7   :  { %v12529_v42 = vadd.f32 %v4836_v54, %v4772_v22  ;;  %v8000_v54 = vunpack.c.l.bf16 %v9036_v55  ;;  %v9035_v22 = vld [vmem:[%s14205_s1 + $0x3d0] sm:$0xff]  }
 0x7b8   :  { %5123 = vmatpush.msra.mxu2 %v7973_v43  ;;  %v7997_v27 = vunpack.c.h.bf16 %v9035_v22  ;;  %v7932_v43 = vunpack.c.l.bf16 %v9019_v6 }
 0x7b9   :  { %4968 = vmatmul.f32.gmra.mxu2 %v2596_v15  ;;  %v9026_v15 = vld [vmem:[%s14205_s1 + $0x388] sm:$0xff]   ;;  %5191 = vmatpush.msra.mxu3 %v8000_v54 }
 0x7ba   :  { %5033 = vmatmul.f32.gmra.mxu3 %v12282_v30  ;;  %v4710_v30 = vadd.f32 %v12468_v44, %v12350_v9  ;;  %5124 = vmatpush.msra.mxu2 %v7972_v29  ;;  %v7936_v9 = vunpack.c.l.bf16 %v9020_v21  ;;  %v7968_v44 = vunpack.c.l.bf16 %v9028_v40  ;;  %v4713_v21 = vadd.f32 %v12485_v41, %v12378_v53  ;;  %v2598_v54 = vld [vmem:[#allocation3 + $0x120] sm:$0xff] }
 0x7bb   :  { %4915 = vmatmul.f32.gmra.mxu1 %v12552_v17  ;;  %v7996_v40 = vunpack.c.l.bf16 %v9035_v22  ;;  %v7961_v63 = vunpack.c.h.bf16 %v9026_v15  ;;  %5192 = vmatpush.msra.mxu3 %v7997_v27  ;;  %v7960_v25 = vunpack.c.l.bf16 %v9026_v15 }
 0x7bc   :  { %v4774_v57 = vpop.f32.mrf.mxu2  ;;  %5125 = vmatpush.msra.mxu2 %v7969_v62  ;;  %5061 = vmatpush.msra.mxu1 %v7936_v9  ;;  %v7928_v62 = vunpack.c.l.bf16 %v9018_v20  ;;  %v9025_v9 = vld [vmem:[%s14205_s1 + $0x380] sm:$0xff]  }
 0x7bd   :  { %v4839_v8 = vpop.f32.mrf.mxu3  ;;  %v4775_v34 = vadd.f32 %v4774_v57, %v4710_v30  ;;  %v12578_v57 = vpop.f32.mrf.mxu1  ;;  %5193 = vmatpush.msra.mxu3 %v7996_v40  ;;  %v7957_v22 = vunpack.c.h.bf16 %v9025_v9  ;;  %v7956_v27 = vunpack.c.l.bf16 %v9025_v9 }
 0x7be   :  { %5126 = vmatpush.msra.mxu2 %v7968_v44  ;;  %5062 = vmatpush.msra.mxu1 %v7933_v46  ;;  %v9033_v44 = vld [vmem:[%s14205_s1 + $0x3c0] sm:$0xff]  }
 0x7bf   :  { %v12554_v19 = vadd.f32 %v4839_v8, %v4775_v34  ;;  %v12580_v8 = vld [vmem:[#allocation3 + $0x144] sm:$0xff]  ;;  %v9017_v34 = vld [vmem:[%s14205_s1 + $0x340] sm:$0xff]  }
 0x7c0   :  { %5127 = vmatpush.msra.mxu2 %v7965_v14  ;;  %5063 = vmatpush.msra.mxu1 %v7932_v43  ;;  %v7925_v48 = vunpack.c.h.bf16 %v9017_v34  ;;  %v7924_v46 = vunpack.c.l.bf16 %v9017_v34  ;;  %v4716_v14 = vadd.f32 %v12500_v26, %v12393_v35  ;;  %v7988_v43 = vunpack.c.l.bf16 %v9033_v44  ;;  %v12610_v34 = vld [vmem:[#allocation3 + $0x42] sm:$0xff] }
 0x7c1   :  { %4971 = vmatmul.f32.gmra.mxu2 %v2597_v56  ;;  %v7989_v56 = vunpack.c.h.bf16 %v9033_v44  ;;  %v4719_v35 = vadd.f32 %v12525_v16, %v12400_v31  ;;  %v2633_v44 = vld [vmem:[#allocation3 + $0x151] sm:$0xff] }
 0x7c2   :  { %5036 = vmatmul.f32.gmra.mxu3 %v12298_v12  ;;  %v9034_v12 = vld [vmem:[%s14205_s1 + $0x3c8] sm:$0xff]   ;;  %5128 = vmatpush.msra.mxu2 %v7964_v11 }
 0x7c3   :  { %v7993_v53 = vunpack.c.h.bf16 %v9034_v12  ;;  %4918 = vmatmul.f32.gmra.mxu1 %v12580_v8  ;;  %v7992_v6 = vunpack.c.l.bf16 %v9034_v12  ;;  %v2599_v12 = vld [vmem:[#allocation3 + $0x130] sm:$0xff] }
 0x7c4   :  { %v4777_v55 = vpop.f32.mrf.mxu2  ;;  %5064 = vmatpush.msra.mxu1 %v7929_v36  ;;  %5129 = vmatpush.msra.mxu2 %v7961_v63  ;;  %v12602_v63 = vld [vmem:[#allocation3 + $0x32] sm:$0xff] }
 0x7c5   :  { %v4842_v29 = vpop.f32.mrf.mxu3  ;;  %v4778_v30 = vadd.f32 %v4777_v55, %v4713_v21  ;;  %5194 = vmatpush.msra.mxu3 %v7993_v53  ;;  %v2600_v53 = vld [vmem:[#allocation3 + $0x140] sm:$0xff] }
 0x7c6   :  { %5065 = vmatpush.msra.mxu1 %v7928_v62  ;;  %5130 = vmatpush.msra.mxu2 %v7960_v25 }
 0x7c7   :  { %v12582_v41 = vadd.f32 %v4842_v29, %v4778_v30  ;;  %5195 = vmatpush.msra.mxu3 %v7992_v6 }
 0x7c8   :  { %5066 = vmatpush.msra.mxu1 %v7925_v48  ;;  %v4874_v21 = vpop.f32.mrf.mxu1  ;;  %5131 = vmatpush.msra.mxu2 %v7957_v22  ;;  %v12617_v22 = vld [vmem:[#allocation3 + $0x52] sm:$0xff] }
 0x7c9   :  { %4974 = vmatmul.f32.gmra.mxu2 %v2598_v54  ;;  %5196 = vmatpush.msra.mxu3 %v7989_v56  ;;  %v9292_v54 = vld [vmem:[#allocation3 + $0x150] sm:$0xff] }
 0x7ca   :  { %5039 = vmatmul.f32.gmra.mxu3 %v12323_v45  ;;  %5067 = vmatpush.msra.mxu1 %v7924_v46  ;;  %v2650_v45 = vld [vmem:[#allocation3 + $0x22] sm:$0xff]  ;;  %v8620_v46 = vunpack.c.l.bf16 %v12478_v24 }
 0x7cb   :  { %5132 = vmatpush.msra.mxu2 %v7956_v27  ;;  %5068 = vmatmul.f32.vlgmr.msra.gmra.mxu1 %v2650_v45  ;;  %v4875_v27 = vadd.f32 %v4874_v21, %v12423_v10  ;;  %v2683_v45 = vld [vmem:[#allocation3 + $0x33] sm:$0xff] }
 0x7cc   :  { %v4780_v20 = vpop.f32.mrf.mxu2  ;;  %5197 = vmatpush.msra.mxu3 %v7988_v43  ;;  %7174 = vmatpush.msrb.mxu0 %v8620_v46  ;;  %v12625_v43 = vld [vmem:[#allocation3 + $0x62] sm:$0xff]  ;;  %v12632_v21 = vld [vmem:[#allocation3 + $0x72] sm:$0xff] }
 0x7cd   :  { %v4845_v15 = vpop.f32.mrf.mxu3  ;;  %v4781_v11 = vadd.f32 %v4780_v20, %v4716_v14  ;;  %v2682_v14 = vld [vmem:[#allocation3 + $0x23] sm:$0xff] }
 0x7ce   :  { %v2686_v46 = vld [vmem:[#allocation3 + $0x63] sm:$0xff] }
 0x7cf   :  { %v12597_v40 = vadd.f32 %v4845_v15, %v4781_v11 }
 0x7d0   :  { %v4877_v36 = vpop.f32.mrf.mxu1 }
 0x7d1   :  { %4977 = vmatmul.f32.gmra.mxu2 %v2599_v12  ;;  %v4878_v24 = vadd.f32 %v4877_v36, %v12430_v28  ;;  %v12639_v36 = vld [vmem:[#allocation3 + $0x82] sm:$0xff] }
 0x7d2   :  { %5042 = vmatmul.f32.gmra.mxu3 %v12348_v23  ;;  %v4722_v23 = vadd.f32 %v12550_v18, %v12409_v1 }
 0x7d3   :  { %5071 = vmatmul.f32.gmra.mxu1 %v12602_v63 }
 0x7d4   :  { %v4783_v26 = vpop.f32.mrf.mxu2 }
 0x7d5   :  { %v4848_v55 = vpop.f32.mrf.mxu3  ;;  %v4784_v29 = vadd.f32 %v4783_v26, %v4719_v35 }
 0x7d7   :  { %v12604_v30 = vadd.f32 %v4848_v55, %v4784_v29  ;;  %v2684_v55 = vld [vmem:[#allocation3 + $0x43] sm:$0xff] }
 0x7d8   :  { %v4880_v16 = vpop.f32.mrf.mxu1 }
 0x7d9   :  { %4980 = vmatmul.f32.gmra.mxu2 %v2600_v53  ;;  %v4881_v29 = vadd.f32 %v4880_v16, %v12437_v2 }
 0x7da   :  { %5045 = vmatmul.f32.gmra.mxu3 %v12376_v33  ;;  %v4725_v33 = vadd.f32 %v12578_v57, %v12416_v60 }
 0x7db   :  { %5074 = vmatmul.f32.gmra.mxu1 %v12610_v34 }
 0x7dc   :  { %v4786_v62 = vpop.f32.mrf.mxu2 }
 0x7dd   :  { %v4851_v25 = vpop.f32.mrf.mxu3  ;;  %v4787_v31 = vadd.f32 %v4786_v62, %v4722_v23 }
 0x7df   :  { %v12612_v9 = vadd.f32 %v4851_v25, %v4787_v31  ;;  %v9048_v25 = vld [vmem:[%s14205_s1 + $0x438] sm:$0xff]  }
 0x7e0   :  { %v4883_v18 = vpop.f32.mrf.mxu1  ;;  %v2685_v31 = vld [vmem:[#allocation3 + $0x53] sm:$0xff] }
 0x7e1   :  { %4983 = vmatmul.f32.gmra.mxu2 %v9292_v54 }
 0x7e2   :  { %5048 = vmatmul.f32.gmra.mxu3 %v2633_v44  ;;  %v8049_v44 = vunpack.c.h.bf16 %v9048_v25 }
 0x7e3   :  { %5077 = vmatmul.f32.gmra.mxu1 %v12617_v22 }
 0x7e4   :  { %v4789_v6 = vpop.f32.mrf.mxu2  ;;  %5247 = vmatpush.msrb.mxu1 %v8049_v44  ;;  %v9046_v44 = vld [vmem:[%s14205_s1 + $0x428] sm:$0xff]  }
 0x7e5   :  { %v4854_v48 = vpop.f32.mrf.mxu3  ;;  %v4790_v1 = vadd.f32 %v4789_v6, %v4725_v33  ;;  %v12649_v6 = vld [vmem:[#allocation3 + $0x92] sm:$0xff] }
 0x7e7   :  { %v12619_v56 = vadd.f32 %v4854_v48, %v4790_v1  ;;  %v8048_v1 = vunpack.c.l.bf16 %v9048_v25  ;;  %v12674_v25 = vld [vmem:[#allocation3 + $0x102] sm:$0xff] }
 0x7e8   :  { %v4886_v15 = vpop.f32.mrf.mxu1 }
 0x7e9   :  { %5133 = vmatmul.f32.vlgmr.msra.gmra.mxu2 %v2682_v14  ;;  %5248 = vmatpush.msrb.mxu1 %v8048_v1 }
 0x7ea   :  { %5198 = vmatmul.f32.vlgmr.msra.gmra.mxu3 %v12398_v58 }
 0x7eb   :  { %5080 = vmatmul.f32.gmra.mxu1 %v12625_v43 }
 0x7ec   :  { %v4939_v60 = vpop.f32.mrf.mxu2 }
 0x7ed   :  { %v5004_v57 = vpop.f32.mrf.mxu3  ;;  %v4940_v20 = vadd.f32 %v4939_v60, %v4875_v27  ;;  %v2658_v60 = vld [vmem:[#allocation3 + $0xe2] sm:$0xff] }
 0x7ef   :  { %v12627_v11 = vadd.f32 %v5004_v57, %v4940_v20  ;;  %v9047_v20 = vld [vmem:[%s14205_s1 + $0x430] sm:$0xff]  }
 0x7f0   :  { %v4889_v10 = vpop.f32.mrf.mxu1 }
 0x7f1   :  { %5136 = vmatmul.f32.gmra.mxu2 %v2683_v45  ;;  %v2687_v45 = vld [vmem:[#allocation3 + $0x73] sm:$0xff] }
 0x7f2   :  { %5201 = vmatmul.f32.gmra.mxu3 %v12407_v32 }
 0x7f3   :  { %5083 = vmatmul.f32.gmra.mxu1 %v12632_v21 }
 0x7f4   :  { %v4942_v58 = vpop.f32.mrf.mxu2 }
 0x7f5   :  { %v5007_v12 = vpop.f32.mrf.mxu3  ;;  %v4943_v35 = vadd.f32 %v4942_v58, %v4878_v24  ;;  %v8045_v24 = vunpack.c.h.bf16 %v9047_v20 }
 0x7f7   :  { %v12634_v26 = vadd.f32 %v5007_v12, %v4943_v35  ;;  %5249 = vmatpush.msrb.mxu1 %v8045_v24  ;;  %v12665_v35 = vld [vmem:[#allocation3 + $0xf2] sm:$0xff] }
 0x7f8   :  { %v4892_v28 = vpop.f32.mrf.mxu1 }
 0x7f9   :  { %5139 = vmatmul.f32.gmra.mxu2 %v2684_v55 }
 0x7fa   :  { %5204 = vmatmul.f32.gmra.mxu3 %v12414_v3  ;;  %v4884_v3 = vadd.f32 %v4883_v18, %v12447_v7 }
 0x7fb   :  { %5086 = vmatmul.f32.gmra.mxu1 %v12639_v36 }
 0x7fc   :  { %v4945_v53 = vpop.f32.mrf.mxu2 }
 0x7fd   :  { %v5010_v32 = vpop.f32.mrf.mxu3  ;;  %v4946_v23 = vadd.f32 %v4945_v53, %v4881_v29  ;;  %v8044_v29 = vunpack.c.l.bf16 %v9047_v20  ;;  %v2688_v53 = vld [vmem:[#allocation3 + $0x83] sm:$0xff] }
 0x7ff   :  { %v12641_v62 = vadd.f32 %v5010_v32, %v4946_v23  ;;  %5250 = vmatpush.msrb.mxu1 %v8044_v29 }
 0x800   :  { %v4895_v33 = vpop.f32.mrf.mxu1 }
 0x801   :  { %5142 = vmatmul.f32.gmra.mxu2 %v2685_v31 }
 0x802   :  { %5207 = vmatmul.f32.gmra.mxu3 %v12421_v38  ;;  %v4887_v38 = vadd.f32 %v4886_v15, %v12452_v59 }
 0x803   :  { %5089 = vmatmul.f32.gmra.mxu1 %v12649_v6 }
 0x804   :  { %v4948_v2 = vpop.f32.mrf.mxu2 }
 0x805   :  { %v5013_v16 = vpop.f32.mrf.mxu3  ;;  %v4949_v54 = vadd.f32 %v4948_v2, %v4884_v3  ;;  %v2689_v3 = vld [vmem:[#allocation3 + $0x93] sm:$0xff]  ;;  %v8041_v2 = vunpack.c.h.bf16 %v9046_v44 }
 0x807   :  { %v12651_v48 = vadd.f32 %v5013_v16, %v4949_v54  ;;  %5251 = vmatpush.msrb.mxu1 %v8041_v2  ;;  %v9062_v2 = vld [vmem:[%s14205_s1 + $0x4a8] sm:$0xff]  }
 0x808   :  { %v4898_v27 = vpop.f32.mrf.mxu1 }
 0x809   :  { %5145 = vmatmul.f32.gmra.mxu2 %v2686_v46  ;;  %v12685_v46 = vld [vmem:[#allocation3 + $0x112] sm:$0xff]  ;;  %v4899_v20 = vadd.f32 %v4898_v27, %v12504_v5  ;;  %v9055_v27 = vld [vmem:[%s14205_s1 + $0x470] sm:$0xff]  }
 0x80a   :  { %5210 = vmatmul.f32.gmra.mxu3 %v12428_v47  ;;  %v4890_v47 = vadd.f32 %v4889_v10, %v12463_v50  ;;  %v9045_v5 = vld [vmem:[%s14205_s1 + $0x420] sm:$0xff]  }
 0x80b   :  { %5092 = vmatmul.f32.gmra.mxu1 %v2658_v60 }
 0x80c   :  { %v4951_v14 = vpop.f32.mrf.mxu2 }
 0x80d   :  { %v5016_v7 = vpop.f32.mrf.mxu3  ;;  %v4952_v18 = vadd.f32 %v4951_v14, %v4887_v38  ;;  %v8040_v14 = vunpack.c.l.bf16 %v9046_v44  ;;  %v9063_v44 = vld [vmem:[%s14205_s1 + $0x4b0] sm:$0xff]  }
 0x80f   :  { %v12656_v57 = vadd.f32 %v5016_v7, %v4952_v18  ;;  %v2690_v7 = vld [vmem:[#allocation3 + $0xe3] sm:$0xff]  ;;  %5252 = vmatpush.msrb.mxu1 %v8040_v14 }
 0x810   :  { %v12663_v12 = vpop.f32.mrf.mxu1 }
 0x811   :  { %5148 = vmatmul.f32.gmra.mxu2 %v2687_v45 }
 0x812   :  { %5213 = vmatmul.f32.gmra.mxu3 %v12435_v52  ;;  %v4893_v52 = vadd.f32 %v4892_v28, %v12472_v49  ;;  %v4896_v49 = vadd.f32 %v4895_v33, %v12489_v0  ;;  %v9056_v0 = vld [vmem:[%s14205_s1 + $0x478] sm:$0xff]  }
 0x813   :  { %5095 = vmatmul.f32.gmra.mxu1 %v12665_v35  ;;  %v9064_v33 = vld [vmem:[%s14205_s1 + $0x4b8] sm:$0xff]   ;;  %v8081_v18 = vunpack.c.h.bf16 %v9056_v0 }
 0x814   :  { %v4954_v59 = vpop.f32.mrf.mxu2  ;;  %v8113_v60 = vunpack.c.h.bf16 %v9064_v33  ;;  %v8112_v29 = vunpack.c.l.bf16 %v9064_v33 }
 0x815   :  { %v5019_v15 = vpop.f32.mrf.mxu3  ;;  %v4955_v58 = vadd.f32 %v4954_v59, %v4890_v47  ;;  %5312 = vmatpush.msrb.mxu2 %v8081_v18  ;;  %v12731_v18 = vld [vmem:[#allocation3 + $0x132] sm:$0xff] }
 0x816   :  { %5377 = vmatpush.msrb.mxu3 %v8113_v60 }
 0x817   :  { %v12667_v55 = vadd.f32 %v5019_v15, %v4955_v58  ;;  %v8080_v58 = vunpack.c.l.bf16 %v9056_v0 }
 0x818   :  { %v12672_v23 = vpop.f32.mrf.mxu1  ;;  %5378 = vmatpush.msrb.mxu3 %v8112_v29 }
 0x819   :  { %5151 = vmatmul.f32.gmra.mxu2 %v2688_v53  ;;  %v12708_v53 = vld [vmem:[%s14205_s1 + $0x8a8] sm:$0xff]  }
 0x81a   :  { %5216 = vmatmul.f32.gmra.mxu3 %v12445_v61  ;;  %v2721_v61 = vld [vmem:[#allocation3 + $0x94] sm:$0xff]  ;;  %5313 = vmatpush.msrb.mxu2 %v8080_v58 }
 0x81b   :  { %5098 = vmatmul.f32.gmra.mxu1 %v12674_v25 }
 0x81c   :  { %v4957_v50 = vpop.f32.mrf.mxu2 }
 0x81d   :  { %v5022_v10 = vpop.f32.mrf.mxu3  ;;  %v4958_v32 = vadd.f32 %v4957_v50, %v4893_v52  ;;  %v2691_v52 = vld [vmem:[#allocation3 + $0xf3] sm:$0xff]  ;;  %v8617_v50 = vunpack.c.h.bf16 %v12708_v53 }
 0x81f   :  { %v12676_v31 = vadd.f32 %v5022_v10, %v4958_v32  ;;  %v8037_v10 = vunpack.c.h.bf16 %v9045_v5  ;;  %v8077_v32 = vunpack.c.h.bf16 %v9055_v27  ;;  %7175 = vmatpush.msrb.mxu0 %v8617_v50 }
 0x820   :  { %v12683_v1 = vpop.f32.mrf.mxu1 }
 0x821   :  { %5154 = vmatmul.f32.gmra.mxu2 %v2689_v3  ;;  %v8109_v3 = vunpack.c.h.bf16 %v9063_v44  ;;  %5253 = vmatpush.msrb.mxu1 %v8037_v10 }
 0x822   :  { %5219 = vmatmul.f32.gmra.mxu3 %v2721_v61  ;;  %v9054_v61 = vld [vmem:[%s14205_s1 + $0x468] sm:$0xff]   ;;  %5314 = vmatpush.msrb.mxu2 %v8077_v32 }
 0x823   :  { %5101 = vmatmul.f32.gmra.mxu1 %v12685_v46  ;;  %5379 = vmatpush.msrb.mxu3 %v8109_v3  ;;  %v8073_v14 = vunpack.c.h.bf16 %v9054_v61 }
 0x824   :  { %v4960_v28 = vpop.f32.mrf.mxu2 }
 0x825   :  { %v5025_v16 = vpop.f32.mrf.mxu3  ;;  %v4961_v54 = vadd.f32 %v4960_v28, %v4896_v49  ;;  %v8076_v49 = vunpack.c.l.bf16 %v9055_v27  ;;  %v8108_v28 = vunpack.c.l.bf16 %v9063_v44  ;;  %v9052_v27 = vld [vmem:[%s14205_s1 + $0x458] sm:$0xff]  }
 0x827   :  { %v12687_v38 = vadd.f32 %v5025_v16, %v4961_v54  ;;  %v4902_v16 = vadd.f32 %v12663_v12, %v12529_v42  ;;  %5315 = vmatpush.msrb.mxu2 %v8076_v49  ;;  %5380 = vmatpush.msrb.mxu3 %v8108_v28  ;;  %v8072_v42 = vunpack.c.l.bf16 %v9054_v61  ;;  %v8104_v12 = vunpack.c.l.bf16 %v9062_v2 }
 0x828   :  { %v12698_v59 = vpop.f32.mrf.mxu1  ;;  %v8065_v61 = vunpack.c.h.bf16 %v9052_v27 }
 0x829   :  { %5157 = vmatmul.f32.gmra.mxu2 %v2690_v7  ;;  %v8105_v7 = vunpack.c.h.bf16 %v9062_v2 }
 0x82a   :  { %5222 = vmatmul.f32.gmra.mxu3 %v12461_v4  ;;  %v12700_v4 = vld [vmem:[#allocation3 + $0x122] sm:$0xff]  ;;  %5316 = vmatpush.msrb.mxu2 %v8073_v14 }
 0x82b   :  { %5104 = vmatmul.f32.gmra.mxu1 %v12700_v4  ;;  %5381 = vmatpush.msrb.mxu3 %v8105_v7  ;;  %v9043_v14 = vld [vmem:[%s14205_s1 + $0x410] sm:$0xff]  }
 0x82c   :  { %v4963_v45 = vpop.f32.mrf.mxu2  ;;  %5317 = vmatpush.msrb.mxu2 %v8072_v42  ;;  %v9051_v7 = vld [vmem:[%s14205_s1 + $0x450] sm:$0xff]   ;;  %v2693_v42 = vld [vmem:[#allocation3 + $0x113] sm:$0xff] }
 0x82d   :  { %v5028_v24 = vpop.f32.mrf.mxu3  ;;  %v4964_v47 = vadd.f32 %v4963_v45, %v4899_v20  ;;  %v8036_v20 = vunpack.c.l.bf16 %v9045_v5  ;;  %v9053_v45 = vld [vmem:[%s14205_s1 + $0x460] sm:$0xff]   ;;  %v9044_v5 = vld [vmem:[%s14205_s1 + $0x418] sm:$0xff]   ;;  %5382 = vmatpush.msrb.mxu3 %v8104_v12  ;;  %v8029_v12 = vunpack.c.h.bf16 %v9043_v14 }
 0x82e   :  { %v8069_v58 = vunpack.c.h.bf16 %v9053_v45  ;;  %v8068_v50 = vunpack.c.l.bf16 %v9053_v45  ;;  %v8033_v32 = vunpack.c.h.bf16 %v9044_v5 }
 0x82f   :  { %v12702_v15 = vadd.f32 %v5028_v24, %v4964_v47  ;;  %v9061_v24 = vld [vmem:[%s14205_s1 + $0x4a0] sm:$0xff]   ;;  %v2692_v47 = vld [vmem:[#allocation3 + $0x103] sm:$0xff]  ;;  %5254 = vmatpush.msrb.mxu1 %v8036_v20  ;;  %v8061_v20 = vunpack.c.h.bf16 %v9051_v7 }
 0x830   :  { %v12729_v33 = vpop.f32.mrf.mxu1  ;;  %v8101_v29 = vunpack.c.h.bf16 %v9061_v24  ;;  %v8100_v10 = vunpack.c.l.bf16 %v9061_v24  ;;  %5318 = vmatpush.msrb.mxu2 %v8069_v58  ;;  %v9042_v24 = vld [vmem:[%s14205_s1 + $0x408] sm:$0xff]   ;;  %v8028_v58 = vunpack.c.l.bf16 %v9043_v14 }
 0x831   :  { %5160 = vmatmul.f32.gmra.mxu2 %v2691_v52  ;;  %v9060_v52 = vld [vmem:[%s14205_s1 + $0x498] sm:$0xff]   ;;  %5255 = vmatpush.msrb.mxu1 %v8033_v32 }
 0x832   :  { %5225 = vmatmul.f32.gmra.mxu3 %v12470_v37  ;;  %v8097_v2 = vunpack.c.h.bf16 %v9060_v52  ;;  %5319 = vmatpush.msrb.mxu2 %v8068_v50 }
 0x833   :  { %5107 = vmatmul.f32.gmra.mxu1 %v12731_v18  ;;  %5383 = vmatpush.msrb.mxu3 %v8101_v29  ;;  %v8060_v29 = vunpack.c.l.bf16 %v9051_v7 }
 0x834   :  { %v4966_v54 = vpop.f32.mrf.mxu2  ;;  %5320 = vmatpush.msrb.mxu2 %v8065_v61  ;;  %v8024_v61 = vunpack.c.l.bf16 %v9042_v24 }
 0x835   :  { %v5031_v37 = vpop.f32.mrf.mxu3  ;;  %v4967_v0 = vadd.f32 %v4966_v54, %v4902_v16  ;;  %5384 = vmatpush.msrb.mxu3 %v8100_v10  ;;  %v12756_v16 = vld [vmem:[#allocation3 + $0x142] sm:$0xff]  ;;  %v8025_v10 = vunpack.c.h.bf16 %v9042_v24 }
 0x837   :  { %v12733_v60 = vadd.f32 %v5031_v37, %v4967_v0  ;;  %v8096_v37 = vunpack.c.l.bf16 %v9060_v52  ;;  %v9059_v0 = vld [vmem:[%s14205_s1 + $0x490] sm:$0xff]   ;;  %5385 = vmatpush.msrb.mxu3 %v8097_v2 }
 0x838   :  { %v12754_v28 = vpop.f32.mrf.mxu1  ;;  %v8093_v45 = vunpack.c.h.bf16 %v9059_v0 }
 0x839   :  { %5163 = vmatmul.f32.gmra.mxu2 %v2692_v47  ;;  %v9050_v47 = vld [vmem:[%s14205_s1 + $0x448] sm:$0xff]   ;;  %5386 = vmatpush.msrb.mxu3 %v8096_v37 }
 0x83a   :  { %5228 = vmatmul.f32.gmra.mxu3 %v12487_v51  ;;  %v4905_v51 = vadd.f32 %v12672_v23, %v12554_v19  ;;  %v8032_v19 = vunpack.c.l.bf16 %v9044_v5  ;;  %v8064_v23 = vunpack.c.l.bf16 %v9052_v27  ;;  %v4908_v5 = vadd.f32 %v12683_v1, %v12582_v41  ;;  %v2694_v37 = vld [vmem:[#allocation3 + $0x123] sm:$0xff] }
 0x83b   :  { %5110 = vmatmul.f32.gmra.mxu1 %v12756_v16  ;;  %v8092_v27 = vunpack.c.l.bf16 %v9059_v0  ;;  %v8057_v32 = vunpack.c.h.bf16 %v9050_v47  ;;  %5387 = vmatpush.msrb.mxu3 %v8093_v45  ;;  %v8056_v2 = vunpack.c.l.bf16 %v9050_v47 }
 0x83c   :  { %v4969_v44 = vpop.f32.mrf.mxu2  ;;  %5256 = vmatpush.msrb.mxu1 %v8032_v19  ;;  %5321 = vmatpush.msrb.mxu2 %v8064_v23  ;;  %v9049_v19 = vld [vmem:[%s14205_s1 + $0x440] sm:$0xff]  }
 0x83d   :  { %v5034_v3 = vpop.f32.mrf.mxu3  ;;  %v4970_v49 = vadd.f32 %v4969_v44, %v4905_v51  ;;  %5388 = vmatpush.msrb.mxu3 %v8092_v27  ;;  %v9057_v23 = vld [vmem:[%s14205_s1 + $0x480] sm:$0xff]   ;;  %v8053_v0 = vunpack.c.h.bf16 %v9049_v19  ;;  %v8052_v45 = vunpack.c.l.bf16 %v9049_v19 }
 0x83e   :  { %5257 = vmatpush.msrb.mxu1 %v8029_v12  ;;  %5322 = vmatpush.msrb.mxu2 %v8061_v20  ;;  %v4911_v20 = vadd.f32 %v12698_v59, %v12597_v40  ;;  %v4914_v40 = vadd.f32 %v12729_v33, %v12604_v30 }
 0x83f   :  { %v12758_v54 = vadd.f32 %v5034_v3, %v4970_v49  ;;  %v12784_v3 = vld [vmem:[#allocation3 + $0x152] sm:$0xff] }
 0x840   :  { %v12782_v44 = vpop.f32.mrf.mxu1  ;;  %5258 = vmatpush.msrb.mxu1 %v8028_v58  ;;  %5323 = vmatpush.msrb.mxu2 %v8060_v29  ;;  %v9041_v49 = vld [vmem:[%s14205_s1 + $0x400] sm:$0xff]   ;;  %v8084_v58 = vunpack.c.l.bf16 %v9057_v23 }
 0x841   :  { %5166 = vmatmul.f32.gmra.mxu2 %v2693_v42  ;;  %v8021_v7 = vunpack.c.h.bf16 %v9041_v49  ;;  %v8085_v42 = vunpack.c.h.bf16 %v9057_v23  ;;  %v8020_v12 = vunpack.c.l.bf16 %v9041_v49  ;;  %v12814_v49 = vld [vmem:[#allocation3 + $0x50] sm:$0xff] }
 0x842   :  { %5231 = vmatmul.f32.gmra.mxu3 %v12502_v13  ;;  %v9058_v13 = vld [vmem:[%s14205_s1 + $0x488] sm:$0xff]   ;;  %5259 = vmatpush.msrb.mxu1 %v8025_v10  ;;  %v2697_v23 = vld [vmem:[#allocation3 + $0x153] sm:$0xff] }
 0x843   :  { %v8089_v41 = vunpack.c.h.bf16 %v9058_v13  ;;  %5113 = vmatmul.f32.gmra.mxu1 %v12784_v3  ;;  %5324 = vmatpush.msrb.mxu2 %v8057_v32  ;;  %v8088_v14 = vunpack.c.l.bf16 %v9058_v13  ;;  %v2695_v13 = vld [vmem:[#allocation3 + $0x133] sm:$0xff]  ;;  %v12806_v32 = vld [vmem:[#allocation3 + $0x40] sm:$0xff] }
 0x844   :  { %v4972_v52 = vpop.f32.mrf.mxu2  ;;  %5260 = vmatpush.msrb.mxu1 %v8024_v61 }
 0x845   :  { %v5037_v50 = vpop.f32.mrf.mxu3  ;;  %v4973_v51 = vadd.f32 %v4972_v52, %v4908_v5  ;;  %5389 = vmatpush.msrb.mxu3 %v8089_v41  ;;  %5325 = vmatpush.msrb.mxu2 %v8056_v2  ;;  %v2696_v41 = vld [vmem:[#allocation3 + $0x143] sm:$0xff] }
 0x846   :  { %5261 = vmatpush.msrb.mxu1 %v8021_v7 }
 0x847   :  { %v12786_v1 = vadd.f32 %v5037_v50, %v4973_v51  ;;  %5390 = vmatpush.msrb.mxu3 %v8088_v14  ;;  %5326 = vmatpush.msrb.mxu2 %v8053_v0  ;;  %v12821_v0 = vld [vmem:[#allocation3 + $0x60] sm:$0xff] }
 0x848   :  { %v5069_v5 = vpop.f32.mrf.mxu1  ;;  %5262 = vmatpush.msrb.mxu1 %v8020_v12  ;;  %v2779_v12 = vld [vmem:[#allocation3 + $0x31] sm:$0xff] }
 0x849   :  { %5169 = vmatmul.f32.gmra.mxu2 %v2694_v37  ;;  %5391 = vmatpush.msrb.mxu3 %v8085_v42  ;;  %v2729_v37 = vld [vmem:[#allocation3 + $0x154] sm:$0xff] }
 0x84a   :  { %5234 = vmatmul.f32.gmra.mxu3 %v12527_v39  ;;  %v2747_v39 = vld [vmem:[#allocation3 + $0x30] sm:$0xff]  ;;  %5327 = vmatpush.msrb.mxu2 %v8052_v45 }
 0x84b   :  { %5263 = vmatmul.f32.vlgmr.msrb.gmra.mxu1 %v2747_v39  ;;  %5392 = vmatpush.msrb.mxu3 %v8084_v58 }
 0x84c   :  { %v4975_v24 = vpop.f32.mrf.mxu2 }
 0x84d   :  { %v5040_v47 = vpop.f32.mrf.mxu3  ;;  %v4976_v29 = vadd.f32 %v4975_v24, %v4911_v20  ;;  %v5070_v20 = vadd.f32 %v5069_v5, %v12627_v11  ;;  %v12835_v5 = vld [vmem:[#allocation3 + $0x80] sm:$0xff] }
 0x84f   :  { %v12801_v27 = vadd.f32 %v5040_v47, %v4976_v29  ;;  %v2780_v29 = vld [vmem:[#allocation3 + $0x41] sm:$0xff] }
 0x850   :  { %v5072_v10 = vpop.f32.mrf.mxu1 }
 0x851   :  { %5172 = vmatmul.f32.gmra.mxu2 %v2695_v13  ;;  %v5073_v39 = vadd.f32 %v5072_v10, %v12634_v26 }
 0x852   :  { %5237 = vmatmul.f32.gmra.mxu3 %v12552_v17  ;;  %v4917_v17 = vadd.f32 %v12754_v28, %v12612_v9 }
 0x853   :  { %5266 = vmatmul.f32.gmra.mxu1 %v12806_v32 }
 0x854   :  { %v4978_v59 = vpop.f32.mrf.mxu2 }
 0x855   :  { %v5043_v52 = vpop.f32.mrf.mxu3  ;;  %v4979_v50 = vadd.f32 %v4978_v59, %v4914_v40 }
 0x857   :  { %v12808_v51 = vadd.f32 %v5043_v52, %v4979_v50  ;;  %v8616_v52 = vunpack.c.l.bf16 %v12708_v53  ;;  %v2781_v50 = vld [vmem:[#allocation3 + $0x51] sm:$0xff] }
 0x858   :  { %v5075_v33 = vpop.f32.mrf.mxu1  ;;  %v9072_v53 = vld [vmem:[%s14205_s1 + $0x4f8] sm:$0xff]  }
 0x859   :  { %5175 = vmatmul.f32.gmra.mxu2 %v2696_v41  ;;  %7176 = vmatpush.msrb.mxu0 %v8616_v52  ;;  %v12869_v52 = vld [vmem:[#allocation3 + $0x100] sm:$0xff] }
 0x85a   :  { %5240 = vmatmul.f32.gmra.mxu3 %v12580_v8  ;;  %v4920_v8 = vadd.f32 %v12782_v44, %v12619_v56  ;;  %v12828_v44 = vld [vmem:[#allocation3 + $0x70] sm:$0xff] }
 0x85b   :  { %5269 = vmatmul.f32.gmra.mxu1 %v12814_v49 }
 0x85c   :  { %v4981_v61 = vpop.f32.mrf.mxu2 }
 0x85d   :  { %v5046_v2 = vpop.f32.mrf.mxu3  ;;  %v4982_v30 = vadd.f32 %v4981_v61, %v4917_v17  ;;  %v12843_v61 = vld [vmem:[#allocation3 + $0x90] sm:$0xff] }
 0x85f   :  { %v12816_v19 = vadd.f32 %v5046_v2, %v4982_v30  ;;  %v2782_v30 = vld [vmem:[#allocation3 + $0x61] sm:$0xff] }
 0x860   :  { %v5078_v28 = vpop.f32.mrf.mxu1 }
 0x861   :  { %5178 = vmatmul.f32.gmra.mxu2 %v2697_v23  ;;  %v8145_v23 = vunpack.c.h.bf16 %v9072_v53 }
 0x862   :  { %5243 = vmatmul.f32.gmra.mxu3 %v2729_v37 }
 0x863   :  { %5272 = vmatmul.f32.gmra.mxu1 %v12821_v0 }
 0x864   :  { %v4984_v14 = vpop.f32.mrf.mxu2  ;;  %5442 = vmatpush.msra.mxu1 %v8145_v23  ;;  %v9070_v23 = vld [vmem:[%s14205_s1 + $0x4e8] sm:$0xff]  }
 0x865   :  { %v5049_v7 = vpop.f32.mrf.mxu3  ;;  %v4985_v9 = vadd.f32 %v4984_v14, %v4920_v8 }
 0x867   :  { %v12823_v42 = vadd.f32 %v5049_v7, %v4985_v9  ;;  %v12855_v7 = vld [vmem:[#allocation3 + $0xa0] sm:$0xff]  ;;  %v8144_v9 = vunpack.c.l.bf16 %v9072_v53  ;;  %v12878_v53 = vld [vmem:[#allocation3 + $0x110] sm:$0xff] }
 0x868   :  { %v5081_v56 = vpop.f32.mrf.mxu1 }
 0x869   :  { %5328 = vmatmul.f32.vlgmr.msrb.gmra.mxu2 %v2779_v12  ;;  %v2783_v12 = vld [vmem:[#allocation3 + $0x71] sm:$0xff]  ;;  %5443 = vmatpush.msra.mxu1 %v8144_v9 }
 0x86a   :  { %5393 = vmatmul.f32.vlgmr.msrb.gmra.mxu3 %v12602_v63 }
 0x86b   :  { %5275 = vmatmul.f32.gmra.mxu1 %v12828_v44 }
 0x86c   :  { %v5134_v45 = vpop.f32.mrf.mxu2 }
 0x86d   :  { %v5199_v24 = vpop.f32.mrf.mxu3  ;;  %v5135_v47 = vadd.f32 %v5134_v45, %v5070_v20 }
 0x86f   :  { %v12830_v58 = vadd.f32 %v5199_v24, %v5135_v47  ;;  %v2755_v24 = vld [vmem:[#allocation3 + $0xf0] sm:$0xff] }
 0x870   :  { %v5084_v11 = vpop.f32.mrf.mxu1 }
 0x871   :  { %5331 = vmatmul.f32.gmra.mxu2 %v2780_v29  ;;  %v9071_v29 = vld [vmem:[%s14205_s1 + $0x4f0] sm:$0xff]  }
 0x872   :  { %5396 = vmatmul.f32.gmra.mxu3 %v12610_v34  ;;  %v5076_v34 = vadd.f32 %v5075_v33, %v12641_v62 }
 0x873   :  { %5278 = vmatmul.f32.gmra.mxu1 %v12835_v5 }
 0x874   :  { %v5137_v13 = vpop.f32.mrf.mxu2 }
 0x875   :  { %v5202_v63 = vpop.f32.mrf.mxu3  ;;  %v5138_v40 = vadd.f32 %v5137_v13, %v5073_v39  ;;  %v2784_v39 = vld [vmem:[#allocation3 + $0x81] sm:$0xff]  ;;  %v8141_v13 = vunpack.c.h.bf16 %v9071_v29 }
 0x877   :  { %v12837_v59 = vadd.f32 %v5202_v63, %v5138_v40  ;;  %5444 = vmatpush.msra.mxu1 %v8141_v13 }
 0x878   :  { %v5087_v17 = vpop.f32.mrf.mxu1 }
 0x879   :  { %5334 = vmatmul.f32.gmra.mxu2 %v2781_v50 }
 0x87a   :  { %5399 = vmatmul.f32.gmra.mxu3 %v12617_v22  ;;  %v5079_v22 = vadd.f32 %v5078_v28, %v12651_v48 }
 0x87b   :  { %5281 = vmatmul.f32.gmra.mxu1 %v12843_v61 }
 0x87c   :  { %v5140_v26 = vpop.f32.mrf.mxu2 }
 0x87d   :  { %v5205_v10 = vpop.f32.mrf.mxu3  ;;  %v5141_v41 = vadd.f32 %v5140_v26, %v5076_v34  ;;  %v8140_v34 = vunpack.c.l.bf16 %v9071_v29  ;;  %v2785_v26 = vld [vmem:[#allocation3 + $0x91] sm:$0xff] }
 0x87f   :  { %v12845_v2 = vadd.f32 %v5205_v10, %v5141_v41  ;;  %5445 = vmatpush.msra.mxu1 %v8140_v34 }
 0x880   :  { %v5090_v8 = vpop.f32.mrf.mxu1 }
 0x881   :  { %5337 = vmatmul.f32.gmra.mxu2 %v2782_v30 }
 0x882   :  { %5402 = vmatmul.f32.gmra.mxu3 %v12625_v43  ;;  %v5082_v43 = vadd.f32 %v5081_v56, %v12656_v57 }
 0x883   :  { %5284 = vmatmul.f32.gmra.mxu1 %v12855_v7 }
 0x884   :  { %v5143_v62 = vpop.f32.mrf.mxu2 }
 0x885   :  { %v5208_v33 = vpop.f32.mrf.mxu3  ;;  %v5144_v37 = vadd.f32 %v5143_v62, %v5079_v22  ;;  %v2786_v22 = vld [vmem:[#allocation3 + $0xa1] sm:$0xff]  ;;  %v8137_v62 = vunpack.c.h.bf16 %v9070_v23 }
 0x887   :  { %v12853_v14 = vadd.f32 %v5208_v33, %v5144_v37  ;;  %5446 = vmatpush.msra.mxu1 %v8137_v62 }
 0x888   :  { %v5093_v45 = vpop.f32.mrf.mxu1 }
 0x889   :  { %5340 = vmatmul.f32.gmra.mxu2 %v2783_v12  ;;  %v12889_v12 = vld [vmem:[#allocation3 + $0x120] sm:$0xff]  ;;  %v5094_v29 = vadd.f32 %v5093_v45, %v12702_v15  ;;  %v9079_v15 = vld [vmem:[%s14205_s1 + $0x530] sm:$0xff]  }
 0x88a   :  { %5405 = vmatmul.f32.gmra.mxu3 %v12632_v21  ;;  %v5085_v21 = vadd.f32 %v5084_v11, %v12667_v55  ;;  %v9087_v45 = vld [vmem:[%s14205_s1 + $0x570] sm:$0xff]  }
 0x88b   :  { %5287 = vmatmul.f32.gmra.mxu1 %v2755_v24  ;;  %v8204_v62 = vunpack.c.l.bf16 %v9087_v45 }
 0x88c   :  { %v5146_v20 = vpop.f32.mrf.mxu2 }
 0x88d   :  { %v5211_v48 = vpop.f32.mrf.mxu3  ;;  %v5147_v28 = vadd.f32 %v5146_v20, %v5082_v43  ;;  %v8136_v20 = vunpack.c.l.bf16 %v9070_v23  ;;  %v9078_v23 = vld [vmem:[%s14205_s1 + $0x528] sm:$0xff]  }
 0x88f   :  { %v12860_v47 = vadd.f32 %v5211_v48, %v5147_v28  ;;  %v2787_v48 = vld [vmem:[#allocation3 + $0xf1] sm:$0xff]  ;;  %5447 = vmatpush.msra.mxu1 %v8136_v20 }
 0x890   :  { %v12867_v40 = vpop.f32.mrf.mxu1 }
 0x891   :  { %5343 = vmatmul.f32.gmra.mxu2 %v2784_v39 }
 0x892   :  { %5408 = vmatmul.f32.gmra.mxu3 %v12639_v36  ;;  %v5088_v36 = vadd.f32 %v5087_v17, %v12676_v31  ;;  %v5091_v31 = vadd.f32 %v5090_v8, %v12687_v38  ;;  %v9080_v38 = vld [vmem:[%s14205_s1 + $0x538] sm:$0xff]  }
 0x893   :  { %5290 = vmatmul.f32.gmra.mxu1 %v12869_v52  ;;  %v9088_v8 = vld [vmem:[%s14205_s1 + $0x578] sm:$0xff]   ;;  %v8177_v28 = vunpack.c.h.bf16 %v9080_v38 }
 0x894   :  { %v5149_v57 = vpop.f32.mrf.mxu2  ;;  %v8209_v24 = vunpack.c.h.bf16 %v9088_v8  ;;  %v8208_v34 = vunpack.c.l.bf16 %v9088_v8 }
 0x895   :  { %v5214_v56 = vpop.f32.mrf.mxu3  ;;  %v5150_v63 = vadd.f32 %v5149_v57, %v5085_v21  ;;  %5507 = vmatpush.msra.mxu2 %v8177_v28  ;;  %v8168_v28 = vunpack.c.l.bf16 %v9078_v23 }
 0x896   :  { %5572 = vmatpush.msra.mxu3 %v8209_v24  ;;  %v9077_v24 = vld [vmem:[%s14205_s1 + $0x520] sm:$0xff]  }
 0x897   :  { %v12871_v50 = vadd.f32 %v5214_v56, %v5150_v63  ;;  %v8176_v63 = vunpack.c.l.bf16 %v9080_v38  ;;  %v12929_v38 = vld [vmem:[#allocation3 + $0x140] sm:$0xff] }
 0x898   :  { %v12876_v41 = vpop.f32.mrf.mxu1  ;;  %5573 = vmatpush.msra.mxu3 %v8208_v34  ;;  %v9076_v34 = vld [vmem:[%s14205_s1 + $0x518] sm:$0xff]  }
 0x899   :  { %5346 = vmatmul.f32.gmra.mxu2 %v2785_v26  ;;  %v9069_v26 = vld [vmem:[%s14205_s1 + $0x4e0] sm:$0xff]  }
 0x89a   :  { %5411 = vmatmul.f32.gmra.mxu3 %v12649_v6  ;;  %v2818_v6 = vld [vmem:[#allocation3 + $0xa2] sm:$0xff]  ;;  %5508 = vmatpush.msra.mxu2 %v8176_v63  ;;  %v9068_v63 = vld [vmem:[%s14205_s1 + $0x4d8] sm:$0xff]  }
 0x89b   :  { %5293 = vmatmul.f32.gmra.mxu1 %v12878_v53 }
 0x89c   :  { %v5152_v55 = vpop.f32.mrf.mxu2 }
 0x89d   :  { %v5217_v11 = vpop.f32.mrf.mxu3  ;;  %v5153_v10 = vadd.f32 %v5152_v55, %v5088_v36  ;;  %v2788_v36 = vld [vmem:[#allocation3 + $0x101] sm:$0xff]  ;;  %v8133_v55 = vunpack.c.h.bf16 %v9069_v26 }
 0x89f   :  { %v12880_v30 = vadd.f32 %v5217_v11, %v5153_v10  ;;  %v8173_v11 = vunpack.c.h.bf16 %v9079_v15  ;;  %v8205_v10 = vunpack.c.h.bf16 %v9087_v45  ;;  %5448 = vmatpush.msra.mxu1 %v8133_v55 }
 0x8a0   :  { %v12887_v9 = vpop.f32.mrf.mxu1 }
 0x8a1   :  { %5349 = vmatmul.f32.gmra.mxu2 %v2786_v22  ;;  %v9086_v22 = vld [vmem:[%s14205_s1 + $0x568] sm:$0xff]   ;;  %5574 = vmatpush.msra.mxu3 %v8205_v10  ;;  %v8161_v10 = vunpack.c.h.bf16 %v9076_v34 }
 0x8a2   :  { %5414 = vmatmul.f32.gmra.mxu3 %v2818_v6  ;;  %v8172_v6 = vunpack.c.l.bf16 %v9079_v15  ;;  %5509 = vmatpush.msra.mxu2 %v8173_v11  ;;  %v8164_v15 = vunpack.c.l.bf16 %v9077_v24 }
 0x8a3   :  { %5296 = vmatmul.f32.gmra.mxu1 %v12889_v12  ;;  %5575 = vmatpush.msra.mxu3 %v8204_v62  ;;  %v12954_v62 = vld [vmem:[#allocation3 + $0x150] sm:$0xff] }
 0x8a4   :  { %v5155_v17 = vpop.f32.mrf.mxu2  ;;  %5510 = vmatpush.msra.mxu2 %v8172_v6 }
 0x8a5   :  { %v5220_v33 = vpop.f32.mrf.mxu3  ;;  %v5156_v37 = vadd.f32 %v5155_v17, %v5091_v31  ;;  %v5097_v31 = vadd.f32 %v12867_v40, %v12733_v60  ;;  %v8200_v60 = vunpack.c.l.bf16 %v9086_v22  ;;  %v8132_v40 = vunpack.c.l.bf16 %v9069_v26  ;;  %v9084_v26 = vld [vmem:[%s14205_s1 + $0x558] sm:$0xff]  }
 0x8a7   :  { %v12891_v43 = vadd.f32 %v5220_v33, %v5156_v37  ;;  %v8201_v37 = vunpack.c.h.bf16 %v9086_v22  ;;  %5449 = vmatpush.msra.mxu1 %v8132_v40 }
 0x8a8   :  { %v12902_v57 = vpop.f32.mrf.mxu1 }
 0x8a9   :  { %5352 = vmatmul.f32.gmra.mxu2 %v2787_v48  ;;  %5576 = vmatpush.msra.mxu3 %v8201_v37  ;;  %v9075_v37 = vld [vmem:[%s14205_s1 + $0x510] sm:$0xff]  }
 0x8aa   :  { %5417 = vmatmul.f32.gmra.mxu3 %v12665_v35  ;;  %v12904_v35 = vld [vmem:[#allocation3 + $0x130] sm:$0xff]  ;;  %v8157_v40 = vunpack.c.h.bf16 %v9075_v37 }
 0x8ab   :  { %5299 = vmatmul.f32.gmra.mxu1 %v12904_v35  ;;  %5577 = vmatpush.msra.mxu3 %v8200_v60 }
 0x8ac   :  { %v5158_v39 = vpop.f32.mrf.mxu2 }
 0x8ad   :  { %v5223_v13 = vpop.f32.mrf.mxu3  ;;  %v5159_v21 = vadd.f32 %v5158_v39, %v5094_v29  ;;  %v9085_v29 = vld [vmem:[%s14205_s1 + $0x560] sm:$0xff]  }
 0x8ae   :  { %v2789_v39 = vld [vmem:[#allocation3 + $0x111] sm:$0xff]  ;;  %v8196_v45 = vunpack.c.l.bf16 %v9085_v29 }
 0x8af   :  { %v12906_v56 = vadd.f32 %v5223_v13, %v5159_v21  ;;  %v8165_v13 = vunpack.c.h.bf16 %v9077_v24  ;;  %v8197_v21 = vunpack.c.h.bf16 %v9085_v29  ;;  %v9083_v24 = vld [vmem:[%s14205_s1 + $0x550] sm:$0xff]  }
 0x8b0   :  { %v12927_v48 = vpop.f32.mrf.mxu1  ;;  %v8189_v29 = vunpack.c.h.bf16 %v9083_v24 }
 0x8b1   :  { %5355 = vmatmul.f32.gmra.mxu2 %v2788_v36  ;;  %v8129_v36 = vunpack.c.h.bf16 %v9068_v63  ;;  %5578 = vmatpush.msra.mxu3 %v8197_v21 }
 0x8b2   :  { %5420 = vmatmul.f32.gmra.mxu3 %v12674_v25  ;;  %v8169_v25 = vunpack.c.h.bf16 %v9078_v23  ;;  %v8193_v23 = vunpack.c.h.bf16 %v9084_v26 }
 0x8b3   :  { %5302 = vmatmul.f32.gmra.mxu1 %v12929_v38  ;;  %5579 = vmatpush.msra.mxu3 %v8196_v45 }
 0x8b4   :  { %v5161_v17 = vpop.f32.mrf.mxu2  ;;  %5511 = vmatpush.msra.mxu2 %v8169_v25  ;;  %5450 = vmatpush.msra.mxu1 %v8129_v36  ;;  %v9067_v25 = vld [vmem:[%s14205_s1 + $0x4d0] sm:$0xff]  }
 0x8b5   :  { %v5226_v33 = vpop.f32.mrf.mxu3  ;;  %v5162_v20 = vadd.f32 %v5161_v17, %v5097_v31  ;;  %v8192_v17 = vunpack.c.l.bf16 %v9084_v26  ;;  %5580 = vmatpush.msra.mxu3 %v8193_v23  ;;  %v8125_v60 = vunpack.c.h.bf16 %v9067_v25  ;;  %v8124_v21 = vunpack.c.l.bf16 %v9067_v25  ;;  %v2791_v25 = vld [vmem:[#allocation3 + $0x131] sm:$0xff] }
 0x8b6   :  { %5512 = vmatpush.msra.mxu2 %v8168_v28  ;;  %v8188_v26 = vunpack.c.l.bf16 %v9083_v24  ;;  %v5106_v24 = vadd.f32 %v12902_v57, %v12801_v27  ;;  %v5109_v27 = vadd.f32 %v12927_v48, %v12808_v51 }
 0x8b7   :  { %v12931_v8 = vadd.f32 %v5226_v33, %v5162_v20  ;;  %v12962_v33 = vld [vmem:[%s14205_s1 + $0x8a0] sm:$0xff]   ;;  %v2790_v20 = vld [vmem:[#allocation3 + $0x121] sm:$0xff]  ;;  %5581 = vmatpush.msra.mxu3 %v8192_v17 }
 0x8b8   :  { %5513 = vmatpush.msra.mxu2 %v8165_v13  ;;  %v12952_v6 = vpop.f32.mrf.mxu1  ;;  %v8613_v28 = vunpack.c.h.bf16 %v12962_v33  ;;  %v9074_v13 = vld [vmem:[%s14205_s1 + $0x508] sm:$0xff]   ;;  %v9081_v17 = vld [vmem:[%s14205_s1 + $0x540] sm:$0xff]  }
 0x8b9   :  { %5358 = vmatmul.f32.gmra.mxu2 %v2789_v39  ;;  %v9066_v39 = vld [vmem:[%s14205_s1 + $0x4c8] sm:$0xff]   ;;  %5582 = vmatpush.msra.mxu3 %v8189_v29 }
 0x8ba   :  { %5423 = vmatmul.f32.gmra.mxu3 %v12685_v46  ;;  %v5100_v46 = vadd.f32 %v12876_v41, %v12758_v54  ;;  %5514 = vmatpush.msra.mxu2 %v8164_v15  ;;  %v8128_v54 = vunpack.c.l.bf16 %v9068_v63  ;;  %v8160_v41 = vunpack.c.l.bf16 %v9076_v34  ;;  %v8156_v63 = vunpack.c.l.bf16 %v9075_v37 }
 0x8bb   :  { %5305 = vmatmul.f32.gmra.mxu1 %v12954_v62  ;;  %v5103_v34 = vadd.f32 %v12887_v9, %v12786_v1  ;;  %7177 = vmatpush.msrb.mxu0 %v8613_v28  ;;  %v8121_v36 = vunpack.c.h.bf16 %v9066_v39  ;;  %v8120_v23 = vunpack.c.l.bf16 %v9066_v39 }
 0x8bc   :  { %v5164_v55 = vpop.f32.mrf.mxu2  ;;  %5515 = vmatpush.msra.mxu2 %v8161_v10  ;;  %5451 = vmatpush.msra.mxu1 %v8128_v54  ;;  %v12990_v10 = vld [vmem:[#allocation3 + $0x160] sm:$0xff]  ;;  %v9065_v54 = vld [vmem:[%s14205_s1 + $0x4c0] sm:$0xff]  }
 0x8bd   :  { %v5229_v11 = vpop.f32.mrf.mxu3  ;;  %v5165_v22 = vadd.f32 %v5164_v55, %v5100_v46  ;;  %v8153_v46 = vunpack.c.h.bf16 %v9074_v13  ;;  %5583 = vmatpush.msra.mxu3 %v8188_v26 }
 0x8be   :  { %5516 = vmatpush.msra.mxu2 %v8160_v41  ;;  %5452 = vmatpush.msra.mxu1 %v8125_v60  ;;  %v9073_v41 = vld [vmem:[%s14205_s1 + $0x500] sm:$0xff]   ;;  %v8181_v60 = vunpack.c.h.bf16 %v9081_v17 }
 0x8bf   :  { %v12956_v31 = vadd.f32 %v5229_v11, %v5165_v22  ;;  %v8152_v22 = vunpack.c.l.bf16 %v9074_v13  ;;  %v8149_v28 = vunpack.c.h.bf16 %v9073_v41  ;;  %v8148_v29 = vunpack.c.l.bf16 %v9073_v41 }
 0x8c0   :  { %5517 = vmatpush.msra.mxu2 %v8157_v40  ;;  %v12986_v11 = vpop.f32.mrf.mxu1  ;;  %5453 = vmatpush.msra.mxu1 %v8124_v21  ;;  %v8116_v40 = vunpack.c.l.bf16 %v9065_v54  ;;  %v8180_v21 = vunpack.c.l.bf16 %v9081_v17  ;;  %v2794_v17 = vld [vmem:[#allocation3 + $0x161] sm:$0xff] }
 0x8c1   :  { %5361 = vmatmul.f32.gmra.mxu2 %v2790_v20  ;;  %v8117_v20 = vunpack.c.h.bf16 %v9065_v54  ;;  %v13018_v54 = vld [vmem:[#allocation3 + $0x53] sm:$0xff] }
 0x8c2   :  { %5426 = vmatmul.f32.gmra.mxu3 %v12700_v4  ;;  %v9082_v4 = vld [vmem:[%s14205_s1 + $0x548] sm:$0xff]   ;;  %5518 = vmatpush.msra.mxu2 %v8156_v63 }
 0x8c3   :  { %v8185_v1 = vunpack.c.h.bf16 %v9082_v4  ;;  %5308 = vmatmul.f32.gmra.mxu1 %v12990_v10  ;;  %v8184_v37 = vunpack.c.l.bf16 %v9082_v4  ;;  %v2792_v4 = vld [vmem:[#allocation3 + $0x141] sm:$0xff] }
 0x8c4   :  { %v5167_v15 = vpop.f32.mrf.mxu2  ;;  %5454 = vmatpush.msra.mxu1 %v8121_v36  ;;  %5519 = vmatpush.msra.mxu2 %v8153_v46  ;;  %v13010_v46 = vld [vmem:[#allocation3 + $0x43] sm:$0xff] }
 0x8c5   :  { %v5232_v45 = vpop.f32.mrf.mxu3  ;;  %v5168_v55 = vadd.f32 %v5167_v15, %v5103_v34  ;;  %5584 = vmatpush.msra.mxu3 %v8185_v1  ;;  %v2793_v1 = vld [vmem:[#allocation3 + $0x151] sm:$0xff] }
 0x8c6   :  { %5455 = vmatpush.msra.mxu1 %v8120_v23  ;;  %5520 = vmatpush.msra.mxu2 %v8152_v22 }
 0x8c7   :  { %v12988_v9 = vadd.f32 %v5232_v45, %v5168_v55  ;;  %5585 = vmatpush.msra.mxu3 %v8184_v37 }
 0x8c8   :  { %5456 = vmatpush.msra.mxu1 %v8117_v20  ;;  %v5264_v34 = vpop.f32.mrf.mxu1  ;;  %5521 = vmatpush.msra.mxu2 %v8149_v28  ;;  %v13025_v28 = vld [vmem:[#allocation3 + $0x63] sm:$0xff] }
 0x8c9   :  { %5364 = vmatmul.f32.gmra.mxu2 %v2791_v25  ;;  %5586 = vmatpush.msra.mxu3 %v8181_v60  ;;  %v2826_v25 = vld [vmem:[#allocation3 + $0x162] sm:$0xff] }
 0x8ca   :  { %5429 = vmatmul.f32.gmra.mxu3 %v12731_v18  ;;  %5457 = vmatpush.msra.mxu1 %v8116_v40  ;;  %v2843_v18 = vld [vmem:[#allocation3 + $0x33] sm:$0xff] }
 0x8cb   :  { %5522 = vmatpush.msra.mxu2 %v8148_v29  ;;  %5458 = vmatmul.f32.vlgmr.msra.gmra.mxu1 %v2843_v18  ;;  %v2875_v40 = vld [vmem:[#allocation3 + $0x34] sm:$0xff] }
 0x8cc   :  { %v5170_v39 = vpop.f32.mrf.mxu2  ;;  %5587 = vmatpush.msra.mxu3 %v8180_v21 }
 0x8cd   :  { %v5235_v13 = vpop.f32.mrf.mxu3  ;;  %v5171_v63 = vadd.f32 %v5170_v39, %v5106_v24  ;;  %v5265_v24 = vadd.f32 %v5264_v34, %v12830_v58  ;;  %v13039_v34 = vld [vmem:[#allocation3 + $0x83] sm:$0xff] }
 0x8cf   :  { %v13005_v26 = vadd.f32 %v5235_v13, %v5171_v63  ;;  %v2876_v63 = vld [vmem:[#allocation3 + $0x44] sm:$0xff] }
 0x8d0   :  { %v5267_v36 = vpop.f32.mrf.mxu1 }
 0x8d1   :  { %5367 = vmatmul.f32.gmra.mxu2 %v2792_v4  ;;  %v5268_v18 = vadd.f32 %v5267_v36, %v12837_v59  ;;  %v13046_v36 = vld [vmem:[#allocation3 + $0x93] sm:$0xff] }
 0x8d2   :  { %5432 = vmatmul.f32.gmra.mxu3 %v12756_v16  ;;  %v5112_v16 = vadd.f32 %v12952_v6, %v12816_v19 }
 0x8d3   :  { %5461 = vmatmul.f32.gmra.mxu1 %v13010_v46 }
 0x8d4   :  { %v5173_v57 = vpop.f32.mrf.mxu2 }
 0x8d5   :  { %v5238_v15 = vpop.f32.mrf.mxu3  ;;  %v5174_v45 = vadd.f32 %v5173_v57, %v5109_v27 }
 0x8d7   :  { %v13012_v55 = vadd.f32 %v5238_v15, %v5174_v45  ;;  %v2877_v15 = vld [vmem:[#allocation3 + $0x54] sm:$0xff] }
 0x8d8   :  { %v5270_v48 = vpop.f32.mrf.mxu1 }
 0x8d9   :  { %5370 = vmatmul.f32.gmra.mxu2 %v2793_v1  ;;  %v5271_v45 = vadd.f32 %v5270_v48, %v12845_v2 }
 0x8da   :  { %5435 = vmatmul.f32.gmra.mxu3 %v12784_v3  ;;  %v5115_v3 = vadd.f32 %v12986_v11, %v12823_v42  ;;  %v13032_v11 = vld [vmem:[#allocation3 + $0x73] sm:$0xff] }
 0x8db   :  { %5464 = vmatmul.f32.gmra.mxu1 %v13018_v54 }
 0x8dc   :  { %v5176_v23 = vpop.f32.mrf.mxu2 }
 0x8dd   :  { %v5241_v22 = vpop.f32.mrf.mxu3  ;;  %v5177_v51 = vadd.f32 %v5176_v23, %v5112_v16 }
 0x8df   :  { %v13020_v41 = vadd.f32 %v5241_v22, %v5177_v51  ;;  %v9096_v22 = vld [vmem:[%s14205_s1 + $0x5b8] sm:$0xff]   ;;  %v2878_v51 = vld [vmem:[#allocation3 + $0x64] sm:$0xff] }
 0x8e0   :  { %v5273_v6 = vpop.f32.mrf.mxu1 }
 0x8e1   :  { %5373 = vmatmul.f32.gmra.mxu2 %v2794_v17  ;;  %v8241_v17 = vunpack.c.h.bf16 %v9096_v22 }
 0x8e2   :  { %5438 = vmatmul.f32.gmra.mxu3 %v2826_v25 }
 0x8e3   :  { %5467 = vmatmul.f32.gmra.mxu1 %v13025_v28 }
 0x8e4   :  { %v5179_v37 = vpop.f32.mrf.mxu2  ;;  %5637 = vmatpush.msrb.mxu1 %v8241_v17 }
 0x8e5   :  { %v5244_v20 = vpop.f32.mrf.mxu3  ;;  %v5180_v19 = vadd.f32 %v5179_v37, %v5115_v3  ;;  %v13056_v37 = vld [vmem:[#allocation3 + $0xa3] sm:$0xff] }
 0x8e7   :  { %v13027_v60 = vadd.f32 %v5244_v20, %v5180_v19  ;;  %v8612_v19 = vunpack.c.l.bf16 %v12962_v33  ;;  %v9095_v33 = vld [vmem:[%s14205_s1 + $0x5b0] sm:$0xff]  }
 0x8e8   :  { %v5276_v42 = vpop.f32.mrf.mxu1 }
 0x8e9   :  { %5523 = vmatmul.f32.vlgmr.msra.gmra.mxu2 %v2875_v40  ;;  %v8240_v40 = vunpack.c.l.bf16 %v9096_v22  ;;  %7178 = vmatpush.msrb.mxu0 %v8612_v19 }
 0x8ea   :  { %5588 = vmatmul.f32.vlgmr.msra.gmra.mxu3 %v12806_v32 }
 0x8eb   :  { %5470 = vmatmul.f32.gmra.mxu1 %v13032_v11 }
 0x8ec   :  { %v5329_v29 = vpop.f32.mrf.mxu2  ;;  %5638 = vmatpush.msrb.mxu1 %v8240_v40 }
 0x8ed   :  { %v5394_v39 = vpop.f32.mrf.mxu3  ;;  %v5330_v13 = vadd.f32 %v5329_v29, %v5265_v24  ;;  %v2879_v24 = vld [vmem:[#allocation3 + $0x74] sm:$0xff] }
 0x8ef   :  { %v13034_v21 = vadd.f32 %v5394_v39, %v5330_v13  ;;  %v2851_v13 = vld [vmem:[#allocation3 + $0xf3] sm:$0xff] }
 0x8f0   :  { %v5279_v58 = vpop.f32.mrf.mxu1 }
 0x8f1   :  { %5526 = vmatmul.f32.gmra.mxu2 %v2876_v63 }
 0x8f2   :  { %5591 = vmatmul.f32.gmra.mxu3 %v12814_v49 }
 0x8f3   :  { %5473 = vmatmul.f32.gmra.mxu1 %v13039_v34 }
 0x8f4   :  { %v5332_v4 = vpop.f32.mrf.mxu2 }
 0x8f5   :  { %v5397_v32 = vpop.f32.mrf.mxu3  ;;  %v5333_v27 = vadd.f32 %v5332_v4, %v5268_v18  ;;  %v2880_v18 = vld [vmem:[#allocation3 + $0x84] sm:$0xff]  ;;  %v8237_v4 = vunpack.c.h.bf16 %v9095_v33 }
 0x8f7   :  { %v13041_v57 = vadd.f32 %v5397_v32, %v5333_v27  ;;  %5639 = vmatpush.msrb.mxu1 %v8237_v4 }
 0x8f8   :  { %v5282_v59 = vpop.f32.mrf.mxu1 }
 0x8f9   :  { %5529 = vmatmul.f32.gmra.mxu2 %v2877_v15  ;;  %v13073_v15 = vld [vmem:[#allocation3 + $0x103] sm:$0xff] }
 0x8fa   :  { %5594 = vmatmul.f32.gmra.mxu3 %v12821_v0  ;;  %v5274_v0 = vadd.f32 %v5273_v6, %v12853_v14 }
 0x8fb   :  { %5476 = vmatmul.f32.gmra.mxu1 %v13046_v36 }
 0x8fc   :  { %v5335_v1 = vpop.f32.mrf.mxu2 }
 0x8fd   :  { %v5400_v49 = vpop.f32.mrf.mxu3  ;;  %v5336_v16 = vadd.f32 %v5335_v1, %v5271_v45  ;;  %v8236_v1 = vunpack.c.l.bf16 %v9095_v33 }
 0x8ff   :  { %v13048_v23 = vadd.f32 %v5400_v49, %v5336_v16  ;;  %v2881_v49 = vld [vmem:[#allocation3 + $0x94] sm:$0xff]  ;;  %5640 = vmatpush.msrb.mxu1 %v8236_v1 }
 0x900   :  { %v5285_v3 = vpop.f32.mrf.mxu1 }
 0x901   :  { %5532 = vmatmul.f32.gmra.mxu2 %v2878_v51  ;;  %v13082_v51 = vld [vmem:[#allocation3 + $0x113] sm:$0xff] }
 0x902   :  { %5597 = vmatmul.f32.gmra.mxu3 %v12828_v44  ;;  %v5277_v44 = vadd.f32 %v5276_v42, %v12860_v47 }
 0x903   :  { %5479 = vmatmul.f32.gmra.mxu1 %v13056_v37 }
 0x904   :  { %v5338_v2 = vpop.f32.mrf.mxu2 }
 0x905   :  { %v5403_v48 = vpop.f32.mrf.mxu3  ;;  %v5339_v25 = vadd.f32 %v5338_v2, %v5274_v0  ;;  %v9094_v0 = vld [vmem:[%s14205_s1 + $0x5a8] sm:$0xff]  }
 0x906   :  { %v2882_v2 = vld [vmem:[#allocation3 + $0xa4] sm:$0xff] }
 0x907   :  { %v13058_v20 = vadd.f32 %v5403_v48, %v5339_v25  ;;  %v9295_v48 = vld [vmem:[#allocation3 + $0xb0] sm:$0xff] }
 0x908   :  { %v5288_v39 = vpop.f32.mrf.mxu1 }
 0x909   :  { %5535 = vmatmul.f32.gmra.mxu2 %v2879_v24  ;;  %v13093_v24 = vld [vmem:[#allocation3 + $0x123] sm:$0xff]  ;;  %v5289_v33 = vadd.f32 %v5288_v39, %v12906_v56 }
 0x90a   :  { %5600 = vmatmul.f32.gmra.mxu3 %v12835_v5  ;;  %v5280_v5 = vadd.f32 %v5279_v58, %v12871_v50  ;;  %v9103_v56 = vld [vmem:[%s14205_s1 + $0x5f0] sm:$0xff]  }
 0x90b   :  { %5482 = vmatmul.f32.gmra.mxu1 %v2851_v13  ;;  %v9111_v39 = vld [vmem:[%s14205_s1 + $0x630] sm:$0xff]  }
 0x90c   :  { %v5341_v14 = vpop.f32.mrf.mxu2 }
 0x90d   :  { %v5406_v6 = vpop.f32.mrf.mxu3  ;;  %v5342_v29 = vadd.f32 %v5341_v14, %v5277_v44  ;;  %v8232_v14 = vunpack.c.l.bf16 %v9094_v0 }
 0x90f   :  { %v13064_v63 = vadd.f32 %v5406_v6, %v5342_v29  ;;  %v2883_v6 = vld [vmem:[#allocation3 + $0xf4] sm:$0xff] }
 0x910   :  { %v13071_v27 = vpop.f32.mrf.mxu1 }
 0x911   :  { %5538 = vmatmul.f32.gmra.mxu2 %v2880_v18 }
 0x912   :  { %5603 = vmatmul.f32.gmra.mxu3 %v12843_v61  ;;  %v5283_v61 = vadd.f32 %v5282_v59, %v12880_v30  ;;  %v5286_v30 = vadd.f32 %v5285_v3, %v12891_v43  ;;  %v9104_v43 = vld [vmem:[%s14205_s1 + $0x5f8] sm:$0xff]  }
 0x913   :  { %5485 = vmatmul.f32.gmra.mxu1 %v13073_v15  ;;  %v9112_v3 = vld [vmem:[%s14205_s1 + $0x638] sm:$0xff]   ;;  %v8273_v29 = vunpack.c.h.bf16 %v9104_v43 }
 0x914   :  { %v5344_v47 = vpop.f32.mrf.mxu2  ;;  %v8305_v13 = vunpack.c.h.bf16 %v9112_v3  ;;  %v8304_v1 = vunpack.c.l.bf16 %v9112_v3 }
 0x915   :  { %v5409_v42 = vpop.f32.mrf.mxu3  ;;  %v5345_v32 = vadd.f32 %v5344_v47, %v5280_v5  ;;  %5702 = vmatpush.msrb.mxu2 %v8273_v29 }
 0x916   :  { %5767 = vmatpush.msrb.mxu3 %v8305_v13  ;;  %v9101_v13 = vld [vmem:[%s14205_s1 + $0x5e0] sm:$0xff]  }
 0x917   :  { %v13075_v45 = vadd.f32 %v5409_v42, %v5345_v32  ;;  %v8272_v32 = vunpack.c.l.bf16 %v9104_v43  ;;  %v13133_v43 = vld [vmem:[#allocation3 + $0x143] sm:$0xff] }
 0x918   :  { %v13080_v22 = vpop.f32.mrf.mxu1  ;;  %5768 = vmatpush.msrb.mxu3 %v8304_v1  ;;  %v9100_v1 = vld [vmem:[%s14205_s1 + $0x5d8] sm:$0xff]  }
 0x919   :  { %5541 = vmatmul.f32.gmra.mxu2 %v2881_v49  ;;  %v9093_v49 = vld [vmem:[%s14205_s1 + $0x5a0] sm:$0xff]  }
 0x91a   :  { %5606 = vmatmul.f32.gmra.mxu3 %v12855_v7  ;;  %v8233_v7 = vunpack.c.h.bf16 %v9094_v0  ;;  %v9102_v0 = vld [vmem:[%s14205_s1 + $0x5e8] sm:$0xff]   ;;  %5703 = vmatpush.msrb.mxu2 %v8272_v32  ;;  %v9092_v32 = vld [vmem:[%s14205_s1 + $0x598] sm:$0xff]  }
 0x91b   :  { %5488 = vmatmul.f32.gmra.mxu1 %v13082_v51  ;;  %v8264_v29 = vunpack.c.l.bf16 %v9102_v0 }
 0x91c   :  { %v5347_v50 = vpop.f32.mrf.mxu2  ;;  %5641 = vmatpush.msrb.mxu1 %v8233_v7  ;;  %v8268_v7 = vunpack.c.l.bf16 %v9103_v56 }
 0x91d   :  { %v5412_v58 = vpop.f32.mrf.mxu3  ;;  %v5348_v16 = vadd.f32 %v5347_v50, %v5283_v61  ;;  %v2884_v61 = vld [vmem:[#allocation3 + $0x104] sm:$0xff]  ;;  %v8229_v50 = vunpack.c.h.bf16 %v9093_v49 }
 0x91e   :  { %5642 = vmatpush.msrb.mxu1 %v8232_v14 }
 0x91f   :  { %v13084_v17 = vadd.f32 %v5412_v58, %v5348_v16  ;;  %v8269_v58 = vunpack.c.h.bf16 %v9103_v56  ;;  %v8301_v16 = vunpack.c.h.bf16 %v9111_v39  ;;  %v8260_v56 = vunpack.c.l.bf16 %v9101_v13 }
 0x920   :  { %v13091_v40 = vpop.f32.mrf.mxu1  ;;  %5643 = vmatpush.msrb.mxu1 %v8229_v50 }
 0x921   :  { %5544 = vmatmul.f32.gmra.mxu2 %v2882_v2  ;;  %v9110_v2 = vld [vmem:[%s14205_s1 + $0x628] sm:$0xff]   ;;  %5769 = vmatpush.msrb.mxu3 %v8301_v16  ;;  %v8257_v16 = vunpack.c.h.bf16 %v9100_v1 }
 0x922   :  { %5609 = vmatmul.f32.gmra.mxu3 %v9295_v48  ;;  %v8300_v48 = vunpack.c.l.bf16 %v9111_v39  ;;  %5704 = vmatpush.msrb.mxu2 %v8269_v58 }
 0x923   :  { %5491 = vmatmul.f32.gmra.mxu1 %v13093_v24 }
 0x924   :  { %v5350_v59 = vpop.f32.mrf.mxu2  ;;  %5705 = vmatpush.msrb.mxu2 %v8268_v7  ;;  %5770 = vmatpush.msrb.mxu3 %v8300_v48  ;;  %v13158_v48 = vld [vmem:[#allocation3 + $0x153] sm:$0xff] }
 0x925   :  { %v5415_v25 = vpop.f32.mrf.mxu3  ;;  %v5351_v19 = vadd.f32 %v5350_v59, %v5286_v30  ;;  %v5292_v30 = vadd.f32 %v13071_v27, %v12931_v8  ;;  %v8296_v8 = vunpack.c.l.bf16 %v9110_v2  ;;  %v8228_v27 = vunpack.c.l.bf16 %v9093_v49  ;;  %v9108_v49 = vld [vmem:[%s14205_s1 + $0x618] sm:$0xff]  }
 0x927   :  { %v13095_v44 = vadd.f32 %v5415_v25, %v5351_v19  ;;  %v8297_v19 = vunpack.c.h.bf16 %v9110_v2  ;;  %5644 = vmatpush.msrb.mxu1 %v8228_v27 }
 0x928   :  { %v13106_v47 = vpop.f32.mrf.mxu1 }
 0x929   :  { %5547 = vmatmul.f32.gmra.mxu2 %v2883_v6  ;;  %5771 = vmatpush.msrb.mxu3 %v8297_v19  ;;  %v9107_v19 = vld [vmem:[%s14205_s1 + $0x610] sm:$0xff]  }
 0x92a   :  { %5612 = vmatmul.f32.gmra.mxu3 %v12869_v52  ;;  %v13108_v52 = vld [vmem:[#allocation3 + $0x133] sm:$0xff]  ;;  %v8285_v27 = vunpack.c.h.bf16 %v9107_v19 }
 0x92b   :  { %5494 = vmatmul.f32.gmra.mxu1 %v13108_v52  ;;  %5772 = vmatpush.msrb.mxu3 %v8296_v8 }
 0x92c   :  { %v5353_v18 = vpop.f32.mrf.mxu2 }
 0x92d   :  { %v5418_v4 = vpop.f32.mrf.mxu3  ;;  %v5354_v5 = vadd.f32 %v5353_v18, %v5289_v33  ;;  %v9109_v33 = vld [vmem:[%s14205_s1 + $0x620] sm:$0xff]  }
 0x92e   :  { %v2885_v18 = vld [vmem:[#allocation3 + $0x114] sm:$0xff]  ;;  %v8292_v39 = vunpack.c.l.bf16 %v9109_v33 }
 0x92f   :  { %v13110_v42 = vadd.f32 %v5418_v4, %v5354_v5  ;;  %v8261_v4 = vunpack.c.h.bf16 %v9101_v13  ;;  %v8293_v5 = vunpack.c.h.bf16 %v9109_v33  ;;  %v9090_v13 = vld [vmem:[%s14205_s1 + $0x588] sm:$0xff]  }
 0x930   :  { %v13131_v6 = vpop.f32.mrf.mxu1  ;;  %v9098_v33 = vld [vmem:[%s14205_s1 + $0x5c8] sm:$0xff]  }
 0x931   :  { %5550 = vmatmul.f32.gmra.mxu2 %v2884_v61  ;;  %v8225_v61 = vunpack.c.h.bf16 %v9092_v32  ;;  %5773 = vmatpush.msrb.mxu3 %v8293_v5  ;;  %v5298_v5 = vadd.f32 %v13091_v40, %v12988_v9 }
 0x932   :  { %5615 = vmatmul.f32.gmra.mxu3 %v12878_v53  ;;  %v8265_v53 = vunpack.c.h.bf16 %v9102_v0  ;;  %v8289_v0 = vunpack.c.h.bf16 %v9108_v49 }
 0x933   :  { %5497 = vmatmul.f32.gmra.mxu1 %v13133_v43  ;;  %5774 = vmatpush.msrb.mxu3 %v8292_v39  ;;  %v8249_v39 = vunpack.c.h.bf16 %v9098_v33 }
 0x934   :  { %v5356_v59 = vpop.f32.mrf.mxu2  ;;  %5706 = vmatpush.msrb.mxu2 %v8265_v53  ;;  %5645 = vmatpush.msrb.mxu1 %v8225_v61  ;;  %v9099_v53 = vld [vmem:[%s14205_s1 + $0x5d0] sm:$0xff]  }
 0x935   :  { %v5421_v25 = vpop.f32.mrf.mxu3  ;;  %v5357_v14 = vadd.f32 %v5356_v59, %v5292_v30  ;;  %v8288_v59 = vunpack.c.l.bf16 %v9108_v49  ;;  %5775 = vmatpush.msrb.mxu3 %v8289_v0  ;;  %v8253_v8 = vunpack.c.h.bf16 %v9099_v53  ;;  %v9089_v0 = vld [vmem:[%s14205_s1 + $0x580] sm:$0xff]  }
 0x936   :  { %5707 = vmatpush.msrb.mxu2 %v8264_v29 }
 0x937   :  { %v13135_v3 = vadd.f32 %v5421_v25, %v5357_v14  ;;  %v9091_v25 = vld [vmem:[%s14205_s1 + $0x590] sm:$0xff]   ;;  %5776 = vmatpush.msrb.mxu3 %v8288_v59 }
 0x938   :  { %5708 = vmatpush.msrb.mxu2 %v8261_v4  ;;  %v13156_v7 = vpop.f32.mrf.mxu1  ;;  %v13172_v14 = vld [vmem:[#allocation3 + $0x124] sm:$0xff]  ;;  %v8221_v29 = vunpack.c.h.bf16 %v9091_v25  ;;  %v8252_v4 = vunpack.c.l.bf16 %v9099_v53 }
 0x939   :  { %5553 = vmatmul.f32.gmra.mxu2 %v2885_v18  ;;  %v8220_v18 = vunpack.c.l.bf16 %v9091_v25  ;;  %5777 = vmatpush.msrb.mxu3 %v8285_v27  ;;  %v8213_v25 = vunpack.c.h.bf16 %v9089_v0 }
 0x93a   :  { %5618 = vmatmul.f32.gmra.mxu3 %v12889_v12  ;;  %v5295_v12 = vadd.f32 %v13080_v22, %v12956_v31  ;;  %5709 = vmatpush.msrb.mxu2 %v8260_v56  ;;  %v8224_v31 = vunpack.c.l.bf16 %v9092_v32  ;;  %v8256_v22 = vunpack.c.l.bf16 %v9100_v1  ;;  %v8284_v32 = vunpack.c.l.bf16 %v9107_v19 }
 0x93b   :  { %5500 = vmatmul.f32.gmra.mxu1 %v13158_v48  ;;  %v8217_v56 = vunpack.c.h.bf16 %v9090_v13 }
 0x93c   :  { %v5359_v50 = vpop.f32.mrf.mxu2  ;;  %5710 = vmatpush.msrb.mxu2 %v8257_v16  ;;  %5646 = vmatpush.msrb.mxu1 %v8224_v31  ;;  %v8248_v16 = vunpack.c.l.bf16 %v9098_v33  ;;  %v9105_v31 = vld [vmem:[%s14205_s1 + $0x600] sm:$0xff]  }
 0x93d   :  { %v5424_v58 = vpop.f32.mrf.mxu3  ;;  %v5360_v2 = vadd.f32 %v5359_v50, %v5295_v12  ;;  %v13189_v50 = vld [vmem:[#allocation3 + $0x163] sm:$0xff]  ;;  %5778 = vmatpush.msrb.mxu3 %v8284_v32  ;;  %v8277_v19 = vunpack.c.h.bf16 %v9105_v31 }
 0x93e   :  { %5711 = vmatpush.msrb.mxu2 %v8256_v22  ;;  %5647 = vmatpush.msrb.mxu1 %v8221_v29  ;;  %v13203_v22 = vld [vmem:[#allocation3 + $0x134] sm:$0xff]  ;;  %v8212_v29 = vunpack.c.l.bf16 %v9089_v0 }
 0x93f   :  { %v13160_v30 = vadd.f32 %v5424_v58, %v5360_v2  ;;  %v8216_v58 = vunpack.c.l.bf16 %v9090_v13  ;;  %v9097_v2 = vld [vmem:[%s14205_s1 + $0x5c0] sm:$0xff]  }
 0x940   :  { %5712 = vmatpush.msrb.mxu2 %v8253_v8  ;;  %v13187_v12 = vpop.f32.mrf.mxu1  ;;  %5648 = vmatpush.msrb.mxu1 %v8220_v18  ;;  %v8245_v53 = vunpack.c.h.bf16 %v9097_v2  ;;  %v5301_v8 = vadd.f32 %v13106_v47, %v13005_v26  ;;  %v8244_v27 = vunpack.c.l.bf16 %v9097_v2  ;;  %v8276_v18 = vunpack.c.l.bf16 %v9105_v31  ;;  %v13214_v26 = vld [vmem:[%s14205_s1 + $0x898] sm:$0xff]   ;;  %v13216_v47 = vld [vmem:[#allocation3 + $0x144] sm:$0xff] }
 0x941   :  { %5556 = vmatmul.f32.gmra.mxu2 %v13172_v14  ;;  %v2942_v31 = vld [vmem:[#allocation3 + $0x61] sm:$0xff] }
 0x942   :  { %5621 = vmatmul.f32.gmra.mxu3 %v12904_v35  ;;  %v9106_v35 = vld [vmem:[%s14205_s1 + $0x608] sm:$0xff]   ;;  %5713 = vmatpush.msrb.mxu2 %v8252_v4 }
 0x943   :  { %v8281_v9 = vunpack.c.h.bf16 %v9106_v35  ;;  %5503 = vmatmul.f32.gmra.mxu1 %v13189_v50  ;;  %v8280_v59 = vunpack.c.l.bf16 %v9106_v35  ;;  %v8609_v35 = vunpack.c.h.bf16 %v13214_v26 }
 0x944   :  { %v5362_v1 = vpop.f32.mrf.mxu2  ;;  %5649 = vmatpush.msrb.mxu1 %v8217_v56  ;;  %5714 = vmatpush.msrb.mxu2 %v8249_v39 }
 0x945   :  { %v5427_v49 = vpop.f32.mrf.mxu3  ;;  %v5363_v61 = vadd.f32 %v5362_v1, %v5298_v5  ;;  %5779 = vmatpush.msrb.mxu3 %v8281_v9  ;;  %7179 = vmatpush.msrb.mxu0 %v8609_v35  ;;  %v5304_v1 = vadd.f32 %v13131_v6, %v13012_v55  ;;  %v2941_v9 = vld [vmem:[#allocation3 + $0x51] sm:$0xff] }
 0x946   :  { %5650 = vmatpush.msrb.mxu1 %v8216_v58  ;;  %5715 = vmatpush.msrb.mxu2 %v8248_v16  ;;  %v13225_v16 = vld [vmem:[#allocation3 + $0x154] sm:$0xff] }
 0x947   :  { %v13191_v40 = vadd.f32 %v5427_v49, %v5363_v61  ;;  %5780 = vmatpush.msrb.mxu3 %v8280_v59 }
 0x948   :  { %5651 = vmatpush.msrb.mxu1 %v8213_v25  ;;  %v5459_v5 = vpop.f32.mrf.mxu1  ;;  %5716 = vmatpush.msrb.mxu2 %v8245_v53  ;;  %v13233_v25 = vld [vmem:[#allocation3 + $0x164] sm:$0xff]  ;;  %v9296_v53 = vld [vmem:[#allocation3 + $0x170] sm:$0xff] }
 0x949   :  { %5559 = vmatmul.f32.gmra.mxu2 %v13203_v22  ;;  %5781 = vmatpush.msrb.mxu3 %v8277_v19 }
 0x94a   :  { %5624 = vmatmul.f32.gmra.mxu3 %v12929_v38  ;;  %5652 = vmatpush.msrb.mxu1 %v8212_v29  ;;  %v2940_v38 = vld [vmem:[#allocation3 + $0x41] sm:$0xff] }
 0x94b   :  { %5717 = vmatpush.msrb.mxu2 %v8244_v27  ;;  %5653 = vmatmul.f32.vlgmr.msrb.gmra.mxu1 %v2940_v38 }
 0x94c   :  { %v5365_v13 = vpop.f32.mrf.mxu2  ;;  %5782 = vmatpush.msrb.mxu3 %v8276_v18 }
 0x94d   :  { %v5430_v33 = vpop.f32.mrf.mxu3  ;;  %v5366_v4 = vadd.f32 %v5365_v13, %v5301_v8  ;;  %v2943_v8 = vld [vmem:[#allocation3 + $0x71] sm:$0xff]  ;;  %v2972_v13 = vld [vmem:[#allocation3 + $0x42] sm:$0xff] }
 0x94f   :  { %v13209_v32 = vadd.f32 %v5430_v33, %v5366_v4  ;;  %v5460_v33 = vadd.f32 %v5459_v5, %v13034_v21  ;;  %v2974_v5 = vld [vmem:[#allocation3 + $0x62] sm:$0xff] }
 0x950   :  { %v5462_v61 = vpop.f32.mrf.mxu1 }
 0x951   :  { %5562 = vmatmul.f32.gmra.mxu2 %v13216_v47 }
 0x952   :  { %5627 = vmatmul.f32.gmra.mxu3 %v12954_v62  ;;  %v5307_v62 = vadd.f32 %v13156_v7, %v13020_v41 }
 0x953   :  { %5656 = vmatmul.f32.gmra.mxu1 %v2941_v9 }
 0x954   :  { %v5368_v49 = vpop.f32.mrf.mxu2 }
 0x955   :  { %v5433_v56 = vpop.f32.mrf.mxu3  ;;  %v5369_v39 = vadd.f32 %v5368_v49, %v5304_v1  ;;  %v2944_v1 = vld [vmem:[#allocation3 + $0x81] sm:$0xff]  ;;  %v5463_v49 = vadd.f32 %v5462_v61, %v13041_v57  ;;  %v9120_v61 = vld [vmem:[%s14205_s1 + $0x678] sm:$0xff]  }
 0x957   :  { %v13223_v58 = vadd.f32 %v5433_v56, %v5369_v39 }
 0x958   :  { %v5465_v6 = vpop.f32.mrf.mxu1 }
 0x959   :  { %5565 = vmatmul.f32.gmra.mxu2 %v13225_v16 }
 0x95a   :  { %5630 = vmatmul.f32.gmra.mxu3 %v12990_v10  ;;  %v5310_v10 = vadd.f32 %v13187_v12, %v13027_v60  ;;  %v2973_v12 = vld [vmem:[#allocation3 + $0x52] sm:$0xff] }
 0x95b   :  { %5659 = vmatmul.f32.gmra.mxu1 %v2942_v31 }
 0x95c   :  { %v5371_v0 = vpop.f32.mrf.mxu2 }
 0x95d   :  { %v5436_v2 = vpop.f32.mrf.mxu3  ;;  %v5372_v55 = vadd.f32 %v5371_v0, %v5307_v62  ;;  %v2945_v62 = vld [vmem:[#allocation3 + $0x91] sm:$0xff]  ;;  %v5466_v0 = vadd.f32 %v5465_v6, %v13048_v23 }
 0x95f   :  { %v13231_v59 = vadd.f32 %v5436_v2, %v5372_v55 }
 0x960   :  { %v5468_v7 = vpop.f32.mrf.mxu1 }
 0x961   :  { %5568 = vmatmul.f32.gmra.mxu2 %v13233_v25 }
 0x962   :  { %5633 = vmatmul.f32.gmra.mxu3 %v9296_v53  ;;  %v2946_v53 = vld [vmem:[#allocation3 + $0xa1] sm:$0xff] }
 0x963   :  { %5662 = vmatmul.f32.gmra.mxu1 %v2943_v8  ;;  %v2947_v8 = vld [vmem:[#allocation3 + $0xb1] sm:$0xff] }
 0x964   :  { %v5374_v19 = vpop.f32.mrf.mxu2 }
 0x965   :  { %v5439_v29 = vpop.f32.mrf.mxu3  ;;  %v5375_v41 = vadd.f32 %v5374_v19, %v5310_v10  ;;  %v2975_v10 = vld [vmem:[#allocation3 + $0x72] sm:$0xff]  ;;  %v8337_v19 = vunpack.c.h.bf16 %v9120_v61 }
 0x967   :  { %v13238_v27 = vadd.f32 %v5439_v29, %v5375_v41  ;;  %5832 = vmatpush.msra.mxu1 %v8337_v19 }
 0x968   :  { %v5471_v35 = vpop.f32.mrf.mxu1 }
 0x969   :  { %5718 = vmatmul.f32.vlgmr.msrb.gmra.mxu2 %v2972_v13 }
 0x96a   :  { %5783 = vmatmul.f32.vlgmr.msrb.gmra.mxu3 %v13010_v46 }
 0x96b   :  { %5665 = vmatmul.f32.gmra.mxu1 %v2944_v1 }
 0x96c   :  { %v5524_v18 = vpop.f32.mrf.mxu2 }
 0x96d   :  { %v5589_v4 = vpop.f32.mrf.mxu3  ;;  %v5525_v38 = vadd.f32 %v5524_v18, %v5460_v33  ;;  %v8336_v33 = vunpack.c.l.bf16 %v9120_v61  ;;  %v2976_v18 = vld [vmem:[#allocation3 + $0x82] sm:$0xff] }
 0x96f   :  { %v13242_v60 = vadd.f32 %v5589_v4, %v5525_v38  ;;  %5833 = vmatpush.msra.mxu1 %v8336_v33  ;;  %v5472_v4 = vadd.f32 %v5471_v35, %v13064_v63  ;;  %v2951_v33 = vld [vmem:[#allocation3 + $0x131] sm:$0xff] }
 0x970   :  { %v5474_v46 = vpop.f32.mrf.mxu1 }
 0x971   :  { %5721 = vmatmul.f32.gmra.mxu2 %v2973_v12 }
 0x972   :  { %5786 = vmatmul.f32.gmra.mxu3 %v13018_v54 }
 0x973   :  { %5668 = vmatmul.f32.gmra.mxu1 %v2945_v62 }
 0x974   :  { %v5527_v56 = vpop.f32.mrf.mxu2 }
 0x975   :  { %v5592_v39 = vpop.f32.mrf.mxu3  ;;  %v5528_v9 = vadd.f32 %v5527_v56, %v5463_v49  ;;  %v9119_v49 = vld [vmem:[%s14205_s1 + $0x670] sm:$0xff]   ;;  %v2977_v56 = vld [vmem:[#allocation3 + $0x92] sm:$0xff] }
 0x977   :  { %v13246_v21 = vadd.f32 %v5592_v39, %v5528_v9  ;;  %v8333_v39 = vunpack.c.h.bf16 %v9119_v49 }
 0x978   :  { %v5477_v54 = vpop.f32.mrf.mxu1 }
 0x979   :  { %5724 = vmatmul.f32.gmra.mxu2 %v2974_v5  ;;  %5834 = vmatpush.msra.mxu1 %v8333_v39  ;;  %v2949_v5 = vld [vmem:[#allocation3 + $0x111] sm:$0xff] }
 0x97a   :  { %5789 = vmatmul.f32.gmra.mxu3 %v13025_v28  ;;  %v5469_v28 = vadd.f32 %v5468_v7, %v13058_v20  ;;  %v2948_v7 = vld [vmem:[#allocation3 + $0x101] sm:$0xff] }
 0x97b   :  { %5671 = vmatmul.f32.gmra.mxu1 %v2946_v53 }
 0x97c   :  { %v5530_v2 = vpop.f32.mrf.mxu2 }
 0x97d   :  { %v5595_v55 = vpop.f32.mrf.mxu3  ;;  %v5531_v31 = vadd.f32 %v5530_v2, %v5466_v0  ;;  %v8608_v2 = vunpack.c.l.bf16 %v13214_v26  ;;  %v9118_v26 = vld [vmem:[%s14205_s1 + $0x668] sm:$0xff]  }
 0x97f   :  { %v13250_v57 = vadd.f32 %v5595_v55, %v5531_v31  ;;  %v8332_v55 = vunpack.c.l.bf16 %v9119_v49  ;;  %v2978_v31 = vld [vmem:[#allocation3 + $0xa2] sm:$0xff]  ;;  %7180 = vmatpush.msrb.mxu0 %v8608_v2  ;;  %v2981_v49 = vld [vmem:[#allocation3 + $0x112] sm:$0xff] }
 0x980   :  { %v5480_v41 = vpop.f32.mrf.mxu1 }
 0x981   :  { %5727 = vmatmul.f32.gmra.mxu2 %v2975_v10  ;;  %5835 = vmatpush.msra.mxu1 %v8332_v55  ;;  %v2950_v10 = vld [vmem:[#allocation3 + $0x121] sm:$0xff] }
 0x982   :  { %5792 = vmatmul.f32.gmra.mxu3 %v13032_v11 }
 0x983   :  { %5674 = vmatmul.f32.gmra.mxu1 %v2947_v8 }
 0x984   :  { %v5533_v23 = vpop.f32.mrf.mxu2 }
 0x985   :  { %v5598_v6 = vpop.f32.mrf.mxu3  ;;  %v5534_v29 = vadd.f32 %v5533_v23, %v5469_v28  ;;  %v2979_v28 = vld [vmem:[#allocation3 + $0xb2] sm:$0xff] }
 0x986   :  { %v3011_v23 = vld [vmem:[#allocation3 + $0xb3] sm:$0xff] }
 0x987   :  { %v13257_v13 = vadd.f32 %v5598_v6, %v5534_v29 }
 0x988   :  { %v13261_v20 = vpop.f32.mrf.mxu1 }
 0x989   :  { %5730 = vmatmul.f32.gmra.mxu2 %v2976_v18 }
 0x98a   :  { %5795 = vmatmul.f32.gmra.mxu3 %v13039_v34  ;;  %v5475_v34 = vadd.f32 %v5474_v46, %v13075_v45 }
 0x98b   :  { %5677 = vmatmul.f32.gmra.mxu1 %v2948_v7  ;;  %v9117_v7 = vld [vmem:[%s14205_s1 + $0x660] sm:$0xff]  }
 0x98c   :  { %v5536_v11 = vpop.f32.mrf.mxu2 }
 0x98d   :  { %v5601_v38 = vpop.f32.mrf.mxu3  ;;  %v5537_v1 = vadd.f32 %v5536_v11, %v5472_v4  ;;  %v8328_v4 = vunpack.c.l.bf16 %v9118_v26  ;;  %v2980_v11 = vld [vmem:[#allocation3 + $0x102] sm:$0xff] }
 0x98f   :  { %v13263_v12 = vadd.f32 %v5601_v38, %v5537_v1 }
 0x990   :  { %v13270_v62 = vpop.f32.mrf.mxu1 }
 0x991   :  { %5733 = vmatmul.f32.gmra.mxu2 %v2977_v56  ;;  %v8325_v56 = vunpack.c.h.bf16 %v9117_v7 }
 0x992   :  { %5798 = vmatmul.f32.gmra.mxu3 %v13046_v36  ;;  %v5478_v36 = vadd.f32 %v5477_v54, %v13084_v17  ;;  %v5481_v17 = vadd.f32 %v5480_v41, %v13095_v44  ;;  %v2952_v41 = vld [vmem:[#allocation3 + $0x141] sm:$0xff] }
 0x993   :  { %5680 = vmatmul.f32.gmra.mxu1 %v2949_v5  ;;  %v9116_v5 = vld [vmem:[%s14205_s1 + $0x658] sm:$0xff]  }
 0x994   :  { %v5539_v63 = vpop.f32.mrf.mxu2 }
 0x995   :  { %v5604_v35 = vpop.f32.mrf.mxu3  ;;  %v5540_v9 = vadd.f32 %v5539_v63, %v5475_v34  ;;  %v2953_v63 = vld [vmem:[#allocation3 + $0x151] sm:$0xff] }
 0x997   :  { %v13272_v0 = vadd.f32 %v5604_v35, %v5540_v9  ;;  %v8324_v35 = vunpack.c.l.bf16 %v9117_v7  ;;  %v2982_v9 = vld [vmem:[#allocation3 + $0x122] sm:$0xff] }
 0x998   :  { %v13277_v61 = vpop.f32.mrf.mxu1 }
 0x999   :  { %5736 = vmatmul.f32.gmra.mxu2 %v2978_v31 }
 0x99a   :  { %5801 = vmatmul.f32.gmra.mxu3 %v13056_v37  ;;  %v8329_v37 = vunpack.c.h.bf16 %v9118_v26 }
 0x99b   :  { %5683 = vmatmul.f32.gmra.mxu1 %v2950_v10  ;;  %v9114_v10 = vld [vmem:[%s14205_s1 + $0x648] sm:$0xff]  }
 0x99c   :  { %v5542_v45 = vpop.f32.mrf.mxu2  ;;  %5836 = vmatpush.msra.mxu1 %v8329_v37  ;;  %v8313_v37 = vunpack.c.h.bf16 %v9114_v10 }
 0x99d   :  { %v5607_v46 = vpop.f32.mrf.mxu3  ;;  %v5543_v53 = vadd.f32 %v5542_v45, %v5478_v36  ;;  %v2954_v36 = vld [vmem:[#allocation3 + $0x161] sm:$0xff]  ;;  %v8320_v45 = vunpack.c.l.bf16 %v9116_v5 }
 0x99e   :  { %5837 = vmatpush.msra.mxu1 %v8328_v4 }
 0x99f   :  { %v13279_v19 = vadd.f32 %v5607_v46, %v5543_v53  ;;  %v9115_v46 = vld [vmem:[%s14205_s1 + $0x650] sm:$0xff]  }
 0x9a0   :  { %v13285_v8 = vpop.f32.mrf.mxu1  ;;  %5838 = vmatpush.msra.mxu1 %v8325_v56  ;;  %v8317_v53 = vunpack.c.h.bf16 %v9115_v46  ;;  %v8316_v26 = vunpack.c.l.bf16 %v9115_v46  ;;  %v2985_v56 = vld [vmem:[#allocation3 + $0x152] sm:$0xff] }
 0x9a1   :  { %5739 = vmatmul.f32.gmra.mxu2 %v2979_v28 }
 0x9a2   :  { %5804 = vmatmul.f32.gmra.mxu3 %v3011_v23  ;;  %5839 = vmatpush.msra.mxu1 %v8324_v35 }
 0x9a3   :  { %5686 = vmatmul.f32.gmra.mxu1 %v2951_v33 }
 0x9a4   :  { %v5545_v54 = vpop.f32.mrf.mxu2 }
 0x9a5   :  { %v5610_v6 = vpop.f32.mrf.mxu3  ;;  %v5546_v29 = vadd.f32 %v5545_v54, %v5481_v17  ;;  %v2955_v54 = vld [vmem:[#allocation3 + $0x171] sm:$0xff] }
 0x9a7   :  { %v13287_v18 = vadd.f32 %v5610_v6, %v5546_v29  ;;  %v8312_v6 = vunpack.c.l.bf16 %v9114_v10  ;;  %v2984_v29 = vld [vmem:[#allocation3 + $0x142] sm:$0xff] }
 0x9a8   :  { %v13294_v44 = vpop.f32.mrf.mxu1 }
 0x9a9   :  { %5742 = vmatmul.f32.gmra.mxu2 %v2980_v11 }
 0x9aa   :  { %5807 = vmatmul.f32.gmra.mxu3 %v13073_v15 }
 0x9ab   :  { %5689 = vmatmul.f32.gmra.mxu1 %v2952_v41 }
 0x9ac   :  { %v13290_v38 = vpop.f32.mrf.mxu2 }
 0x9ad   :  { %v13292_v1 = vpop.f32.mrf.mxu3 }
 0x9b0   :  { %v13304_v34 = vpop.f32.mrf.mxu1 }
 0x9b1   :  { %5745 = vmatmul.f32.gmra.mxu2 %v2981_v49  ;;  %v3036_v49 = vld [vmem:[#allocation3 + $0x44] sm:$0xff] }
 0x9b2   :  { %5810 = vmatmul.f32.gmra.mxu3 %v13082_v51  ;;  %v8321_v51 = vunpack.c.h.bf16 %v9116_v5  ;;  %v2986_v5 = vld [vmem:[#allocation3 + $0x162] sm:$0xff] }
 0x9b3   :  { %5692 = vmatmul.f32.gmra.mxu1 %v2953_v63 }
 0x9b4   :  { %v13300_v15 = vpop.f32.mrf.mxu2  ;;  %5840 = vmatpush.msra.mxu1 %v8321_v51 }
 0x9b5   :  { %v13302_v39 = vpop.f32.mrf.mxu3 }
 0x9b6   :  { %5841 = vmatpush.msra.mxu1 %v8320_v45 }
 0x9b8   :  { %v5501_v31 = vpop.f32.mrf.mxu1  ;;  %5842 = vmatpush.msra.mxu1 %v8317_v53  ;;  %v3038_v53 = vld [vmem:[#allocation3 + $0x64] sm:$0xff] }
 0x9b9   :  { %5748 = vmatmul.f32.gmra.mxu2 %v2982_v9  ;;  %v3037_v9 = vld [vmem:[#allocation3 + $0x54] sm:$0xff]  ;;  %v5502_v51 = vadd.f32 %v5501_v31, %v13231_v59 }
 0x9ba   :  { %5813 = vmatmul.f32.gmra.mxu3 %v13093_v24  ;;  %v2983_v24 = vld [vmem:[#allocation3 + $0x132] sm:$0xff]  ;;  %5843 = vmatpush.msra.mxu1 %v8316_v26 }
 0x9bb   :  { %5695 = vmatmul.f32.gmra.mxu1 %v2954_v36  ;;  %v2987_v26 = vld [vmem:[#allocation3 + $0x172] sm:$0xff] }
 0x9bc   :  { %v13310_v2 = vpop.f32.mrf.mxu2  ;;  %5844 = vmatpush.msra.mxu1 %v8313_v37  ;;  %v3019_v37 = vld [vmem:[#allocation3 + $0x173] sm:$0xff] }
 0x9bd   :  { %v13312_v55 = vpop.f32.mrf.mxu3 }
 0x9be   :  { %5845 = vmatpush.msra.mxu1 %v8312_v6 }
 0x9c0   :  { %v5504_v17 = vpop.f32.mrf.mxu1 }
 0x9c1   :  { %5751 = vmatmul.f32.gmra.mxu2 %v2983_v24 }
 0x9c2   :  { %5816 = vmatmul.f32.gmra.mxu3 %v13108_v52  ;;  %v9113_v52 = vld [vmem:[%s14205_s1 + $0x640] sm:$0xff]  }
 0x9c3   :  { %5698 = vmatmul.f32.gmra.mxu1 %v2955_v54  ;;  %v8309_v33 = vunpack.c.h.bf16 %v9113_v52  ;;  %v8308_v4 = vunpack.c.l.bf16 %v9113_v52 }
 0x9c4   :  { %v13321_v28 = vpop.f32.mrf.mxu2 }
 0x9c5   :  { %v13323_v23 = vpop.f32.mrf.mxu3  ;;  %5846 = vmatpush.msra.mxu1 %v8309_v33 }
 0x9c7   :  { %5847 = vmatpush.msra.mxu1 %v8308_v4 }
 0x9c8   :  { %v5654_v7 = vpop.f32.mrf.mxu1 }
 0x9c9   :  { %5754 = vmatmul.f32.gmra.mxu2 %v2984_v29  ;;  %v3039_v29 = vld [vmem:[#allocation3 + $0x74] sm:$0xff]  ;;  %v5655_v4 = vadd.f32 %v5654_v7, %v13242_v60 }
 0x9ca   :  { %5819 = vmatmul.f32.gmra.mxu3 %v13133_v43 }
 0x9cb   :  { %5848 = vmatmul.f32.vlgmr.msra.gmra.mxu1 %v3036_v49 }
 0x9cc   :  { %v13329_v11 = vpop.f32.mrf.mxu2 }
 0x9cd   :  { %v13331_v41 = vpop.f32.mrf.mxu3 }
 0x9d0   :  { %v5657_v43 = vpop.f32.mrf.mxu1 }
 0x9d1   :  { %5757 = vmatmul.f32.gmra.mxu2 %v2985_v56 }
 0x9d2   :  { %5822 = vmatmul.f32.gmra.mxu3 %v13158_v48  ;;  %v13345_v48 = vld [vmem:[%s14205_s1 + $0x890] sm:$0xff]  }
 0x9d3   :  { %5851 = vmatmul.f32.gmra.mxu1 %v3037_v9  ;;  %v8605_v54 = vunpack.c.h.bf16 %v13345_v48 }
 0x9d4   :  { %v13334_v63 = vpop.f32.mrf.mxu2 }
 0x9d5   :  { %v13336_v35 = vpop.f32.mrf.mxu3  ;;  %7181 = vmatpush.msrb.mxu0 %v8605_v54 }
 0x9d8   :  { %v5660_v24 = vpop.f32.mrf.mxu1 }
 0x9d9   :  { %5760 = vmatmul.f32.gmra.mxu2 %v2986_v5  ;;  %v5661_v60 = vadd.f32 %v5660_v24, %v13250_v57 }
 0x9da   :  { %5825 = vmatmul.f32.gmra.mxu3 %v13189_v50  ;;  %v5505_v50 = vadd.f32 %v5504_v17, %v13238_v27  ;;  %v5658_v27 = vadd.f32 %v5657_v43, %v13246_v21 }
 0x9db   :  { %5854 = vmatmul.f32.gmra.mxu1 %v3038_v53 }
 0x9dc   :  { %v5566_v36 = vpop.f32.mrf.mxu2 }
 0x9dd   :  { %v5631_v45 = vpop.f32.mrf.mxu3  ;;  %v5567_v46 = vadd.f32 %v5566_v36, %v5502_v51  ;;  %v3040_v51 = vld [vmem:[#allocation3 + $0x84] sm:$0xff] }
 0x9df   :  { %v13340_v10 = vadd.f32 %v5631_v45, %v5567_v46 }
 0x9e0   :  { %v5663_v52 = vpop.f32.mrf.mxu1 }
 0x9e1   :  { %5763 = vmatmul.f32.gmra.mxu2 %v2987_v26  ;;  %v3041_v26 = vld [vmem:[#allocation3 + $0x94] sm:$0xff]  ;;  %v5664_v21 = vadd.f32 %v5663_v52, %v13257_v13 }
 0x9e2   :  { %5828 = vmatmul.f32.gmra.mxu3 %v3019_v37  ;;  %v3045_v13 = vld [vmem:[#allocation3 + $0x114] sm:$0xff] }
 0x9e3   :  { %5857 = vmatmul.f32.gmra.mxu1 %v3039_v29 }
 0x9e4   :  { %v5569_v59 = vpop.f32.mrf.mxu2 }
 0x9e5   :  { %v5634_v31 = vpop.f32.mrf.mxu3  ;;  %v5570_v6 = vadd.f32 %v5569_v59, %v5505_v50 }
 0x9e7   :  { %v13349_v33 = vadd.f32 %v5634_v31, %v5570_v6  ;;  %v3042_v31 = vld [vmem:[#allocation3 + $0xa4] sm:$0xff] }
 0x9e8   :  { %v5666_v5 = vpop.f32.mrf.mxu1 }
 0x9e9   :  { %v5667_v57 = vadd.f32 %v5666_v5, %v13263_v12 }
 0x9eb   :  { %5860 = vmatmul.f32.gmra.mxu1 %v3040_v51 }
 0x9ec   :  { %v5719_v49 = vpop.f32.mrf.mxu2 }
 0x9ed   :  { %v5784_v56 = vpop.f32.mrf.mxu3  ;;  %v5720_v9 = vadd.f32 %v5719_v49, %v5655_v4 }
 0x9ef   :  { %v13352_v36 = vadd.f32 %v5784_v56, %v5720_v9  ;;  %v3043_v56 = vld [vmem:[#allocation3 + $0xb4] sm:$0xff] }
 0x9f0   :  { %v13355_v53 = vpop.f32.mrf.mxu1 }
 0x9f3   :  { %5863 = vmatmul.f32.gmra.mxu1 %v3041_v26 }
 0x9f4   :  { %v5722_v17 = vpop.f32.mrf.mxu2 }
 0x9f5   :  { %v5787_v45 = vpop.f32.mrf.mxu3  ;;  %v5723_v46 = vadd.f32 %v5722_v17, %v5658_v27 }
 0x9f7   :  { %v13357_v37 = vadd.f32 %v5787_v45, %v5723_v46  ;;  %v3044_v45 = vld [vmem:[#allocation3 + $0x104] sm:$0xff] }
 0x9f8   :  { %v13360_v59 = vpop.f32.mrf.mxu1 }
 0x9fb   :  { %5866 = vmatmul.f32.gmra.mxu1 %v3042_v31  ;;  %v8604_v31 = vunpack.c.l.bf16 %v13345_v48 }
 0x9fc   :  { %v5725_v7 = vpop.f32.mrf.mxu2 }
 0x9fd   :  { %v5790_v54 = vpop.f32.mrf.mxu3  ;;  %v5726_v50 = vadd.f32 %v5725_v7, %v5661_v60  ;;  %v5493_v60 = vadd.f32 %v13285_v8, %v13191_v40  ;;  %7182 = vmatpush.msrb.mxu0 %v8604_v31  ;;  %v5499_v8 = vadd.f32 %v13304_v34, %v13223_v58 }
 0x9ff   :  { %v5791_v6 = vadd.f32 %v5790_v54, %v5726_v50  ;;  %v5558_v12 = vadd.f32 %v13321_v28, %v5493_v60  ;;  %v5496_v54 = vadd.f32 %v13294_v44, %v13209_v32  ;;  %v5564_v32 = vadd.f32 %v13334_v63, %v5499_v8 }
 0xa00   :  { %v13363_v49 = vpop.f32.mrf.mxu1 }
 0xa01   :  { %v5623_v5 = vadd.f32 %v13323_v23, %v5558_v12  ;;  %v5629_v44 = vadd.f32 %v13336_v35, %v5564_v32  ;;  %v5673_v12 = vadd.f32 %v13360_v59, %v13279_v19  ;;  %v5676_v19 = vadd.f32 %v13363_v49, %v13287_v18 }
 0xa03   :  { %5869 = vmatmul.f32.gmra.mxu1 %v3043_v56 }
 0xa04   :  { %v5728_v43 = vpop.f32.mrf.mxu2 }
 0xa05   :  { %v5793_v29 = vpop.f32.mrf.mxu3  ;;  %v5729_v4 = vadd.f32 %v5728_v43, %v5664_v21  ;;  %v5561_v21 = vadd.f32 %v13329_v11, %v5496_v54 }
 0xa07   :  { %v5794_v9 = vadd.f32 %v5793_v29, %v5729_v4  ;;  %v5626_v40 = vadd.f32 %v13331_v41, %v5561_v21 }
 0xa08   :  { %v13366_v27 = vpop.f32.mrf.mxu1 }
 0xa0b   :  { %5872 = vmatmul.f32.gmra.mxu1 %v3044_v45 }
 0xa0c   :  { %v5731_v24 = vpop.f32.mrf.mxu2 }
 0xa0d   :  { %v5732_v51 = vadd.f32 %v5731_v24, %v5667_v57  ;;  %v5796_v17 = vpop.f32.mrf.mxu3 }
 0xa0f   :  { %v5797_v46 = vadd.f32 %v5796_v17, %v5732_v51 }
 0xa10   :  { %v13368_v26 = vpop.f32.mrf.mxu1 }
 0xa13   :  { %5875 = vmatmul.f32.gmra.mxu1 %v3045_v13 }
 0xa15   :  { %v5799_v4 = vpop.f32.mrf.mxu3 }
 0xa18   :  { %v13370_v52 = vpop.f32.mrf.mxu1 }
 0xa1b   :  { %5878 = vmatmul.f32.gmra.mxu1 %v13172_v14 }
 0xa1d   :  { %v5802_v24 = vpop.f32.mrf.mxu3 }
 0xa20   :  { %v5687_v7 = vpop.f32.mrf.mxu1 }
 0xa21   :  { %v13379_v50 = vadd.f32 %v5687_v7, %v5623_v5 }
 0xa23   :  { %5881 = vmatmul.f32.gmra.mxu1 %v13203_v22 }
 0xa25   :  { %v5805_v13 = vpop.f32.mrf.mxu3 }
 0xa28   :  { %v5690_v14 = vpop.f32.mrf.mxu1 }
 0xa29   :  { %v13387_v28 = vadd.f32 %v5690_v14, %v5626_v40 }
 0xa2b   :  { %5884 = vmatmul.f32.gmra.mxu1 %v13216_v47  ;;  %v3051_v47 = vld [vmem:[#allocation3 + $0x174] sm:$0xff] }
 0xa30   :  { %v5693_v22 = vpop.f32.mrf.mxu1 }
 0xa31   :  { %v13392_v23 = vadd.f32 %v5693_v22, %v5629_v44 }
 0xa33   :  { %5887 = vmatmul.f32.gmra.mxu1 %v13225_v16  ;;  %v13408_v16 = vld [vmem:[%s14205_s1 + $0x888] sm:$0xff]  }
 0xa38   :  { %v5696_v11 = vpop.f32.mrf.mxu1 }
 0xa39   :  { %v13396_v41 = vadd.f32 %v5696_v11, %v13340_v10  ;;  %v8601_v10 = vunpack.c.h.bf16 %v13408_v16 }
 0xa3b   :  { %5890 = vmatmul.f32.gmra.mxu1 %v13233_v25  ;;  %7183 = vmatpush.msrb.mxu0 %v8601_v10 }
 0xa40   :  { %v5699_v58 = vpop.f32.mrf.mxu1 }
 0xa41   :  { %v13400_v34 = vadd.f32 %v5699_v58, %v13349_v33  ;;  %v5734_v33 = vpop.f32.mrf.mxu2 }
 0xa43   :  { %5893 = vmatmul.f32.gmra.mxu1 %v3051_v47 }
 0xa48   :  { %v5849_v63 = vpop.f32.mrf.mxu1 }
 0xa49   :  { %v13403_v35 = vadd.f32 %v5849_v63, %v13352_v36  ;;  %v5737_v56 = vpop.f32.mrf.mxu2 }
 0xa4a   :  { %v5738_v7 = vadd.f32 %v5737_v56, %v5673_v12 }
 0xa4b   :  { %v5918_v31 = vmul.f32 %v13403_v35, %v13403_v35 }
 0xa50   :  { %v5852_v48 = vpop.f32.mrf.mxu1 }
 0xa51   :  { %v13412_v25 = vadd.f32 %v5852_v48, %v13357_v37  ;;  %v5740_v51 = vpop.f32.mrf.mxu2  ;;  %v5670_v37 = vadd.f32 %v13355_v53, %v13272_v0  ;;  %v5803_v0 = vadd.f32 %v5802_v24, %v5738_v7  ;;  %v5808_v53 = vpop.f32.mrf.mxu3 }
 0xa52   :  { %v5741_v44 = vadd.f32 %v5740_v51, %v5676_v19  ;;  %v5484_v19 = vadd.f32 %v13261_v20, %v13110_v42 }
 0xa53   :  { %v5735_v5 = vadd.f32 %v5734_v33, %v5670_v37 }
 0xa54   :  { %v5806_v48 = vadd.f32 %v5805_v13, %v5741_v44  ;;  %v5490_v44 = vadd.f32 %v13277_v61, %v13160_v30 }
 0xa55   :  { %v5800_v54 = vadd.f32 %v5799_v4, %v5735_v5 }
 0xa58   :  { %v5855_v43 = vpop.f32.mrf.mxu1 }
 0xa59   :  { %v13414_v29 = vadd.f32 %v5855_v43, %v5791_v6  ;;  %v5743_v6 = vpop.f32.mrf.mxu2 }
 0xa5b   :  { %v5920_v21 = vmul.f32 %v13414_v29, %v13414_v29 }
 0xa60   :  { %v5858_v36 = vpop.f32.mrf.mxu1 }
 0xa61   :  { %v13416_v57 = vadd.f32 %v5858_v36, %v5794_v9  ;;  %v5919_v9 = vmul.f32 %v13412_v25, %v13412_v25  ;;  %v5746_v18 = vpop.f32.mrf.mxu2 }
 0xa63   :  { %v5934_v40 = vadd.f32 %v5919_v9, %v5918_v31  ;;  %v5921_v8 = vmul.f32 %v13416_v57, %v13416_v57 }
 0xa65   :  { %v5935_v22 = vadd.f32 %v5934_v40, %v5920_v21  ;;  %v5549_v40 = vadd.f32 %v13290_v38, %v5484_v19 }
 0xa67   :  { %v5936_v49 = vadd.f32 %v5935_v22, %v5921_v8  ;;  %v5614_v22 = vadd.f32 %v13292_v1, %v5549_v40 }
 0xa68   :  { %v5861_v17 = vpop.f32.mrf.mxu1 }
 0xa69   :  { %v13418_v45 = vadd.f32 %v5861_v17, %v5797_v46  ;;  %v5897_v46 = vadd.f32 %v13412_v25, %v13403_v35  ;;  %v5811_v17 = vpop.f32.mrf.mxu3  ;;  %v5749_v5 = vpop.f32.mrf.mxu2  ;;  %v5679_v42 = vadd.f32 %v13366_v27, %v5614_v22 }
 0xa6b   :  { %v5898_v14 = vadd.f32 %v5897_v46, %v13414_v29  ;;  %v5922_v58 = vmul.f32 %v13418_v45, %v13418_v45  ;;  %v8600_v46 = vunpack.c.l.bf16 %v13408_v16  ;;  %v5555_v16 = vadd.f32 %v13310_v2, %v5490_v44 }
 0xa6c   :  { %v5744_v38 = vadd.f32 %v5743_v6, %v5679_v42 }
 0xa6d   :  { %v5899_v11 = vadd.f32 %v5898_v14, %v13416_v57  ;;  %v5937_v33 = vadd.f32 %v5936_v49, %v5922_v58  ;;  %7184 = vmatpush.msrb.mxu0 %v8600_v46  ;;  %v5487_v14 = vadd.f32 %v13270_v62, %v13135_v3  ;;  %v5620_v20 = vadd.f32 %v13312_v55, %v5555_v16 }
 0xa6e   :  { %v5809_v30 = vadd.f32 %v5808_v53, %v5744_v38 }
 0xa6f   :  { %v5900_v63 = vadd.f32 %v5899_v11, %v13418_v45  ;;  %v5552_v8 = vadd.f32 %v13300_v15, %v5487_v14 }
 0xa70   :  { %v5864_v60 = vpop.f32.mrf.mxu1 }
 0xa71   :  { %v13437_v32 = vadd.f32 %v5864_v60, %v5800_v54  ;;  %v5814_v9 = vpop.f32.mrf.mxu3  ;;  %v5752_v54 = vpop.f32.mrf.mxu2  ;;  %v5617_v49 = vadd.f32 %v13302_v39, %v5552_v8 }
 0xa72   :  { %v5753_v2 = vadd.f32 %v5752_v54, %v13379_v50 }
 0xa73   :  { %v5923_v10 = vmul.f32 %v13437_v32, %v13437_v32  ;;  %v5901_v43 = vadd.f32 %v5900_v63, %v13437_v32  ;;  %v5682_v3 = vadd.f32 %v13368_v26, %v5617_v49  ;;  %v5685_v63 = vadd.f32 %v13370_v52, %v5620_v20 }
 0xa75   :  { %v5938_v36 = vadd.f32 %v5937_v33, %v5923_v10  ;;  %v5747_v15 = vadd.f32 %v5746_v18, %v5682_v3  ;;  %v5750_v61 = vadd.f32 %v5749_v5, %v5685_v63 }
 0xa77   :  { %v5812_v10 = vadd.f32 %v5811_v17, %v5747_v15  ;;  %v5815_v33 = vadd.f32 %v5814_v9, %v5750_v61 }
 0xa78   :  { %v5867_v59 = vpop.f32.mrf.mxu1 }
 0xa79   :  { %v13442_v47 = vadd.f32 %v5867_v59, %v5803_v0  ;;  %v5817_v21 = vpop.f32.mrf.mxu3  ;;  %v5755_v59 = vpop.f32.mrf.mxu2 }
 0xa7a   :  { %v5756_v27 = vadd.f32 %v5755_v59, %v13387_v28  ;;  %v5818_v6 = vadd.f32 %v5817_v21, %v5753_v2 }
 0xa7b   :  { %v5924_v4 = vmul.f32 %v13442_v47, %v13442_v47  ;;  %v5902_v24 = vadd.f32 %v5901_v43, %v13442_v47 }
 0xa7d   :  { %v5939_v60 = vadd.f32 %v5938_v36, %v5924_v4 }
 0xa80   :  { %v5870_v56 = vpop.f32.mrf.mxu1 }
 0xa81   :  { %v13451_v51 = vadd.f32 %v5870_v56, %v5806_v48  ;;  %v5820_v11 = vpop.f32.mrf.mxu3  ;;  %v5758_v62 = vpop.f32.mrf.mxu2 }
 0xa82   :  { %v5759_v26 = vadd.f32 %v5758_v62, %v13392_v23  ;;  %v5821_v43 = vadd.f32 %v5820_v11, %v5756_v27 }
 0xa83   :  { %v5903_v37 = vadd.f32 %v5902_v24, %v13451_v51  ;;  %v5925_v12 = vmul.f32 %v13451_v51, %v13451_v51 }
 0xa85   :  { %v5940_v13 = vadd.f32 %v5939_v60, %v5925_v12 }
 0xa88   :  { %v5873_v7 = vpop.f32.mrf.mxu1 }
 0xa89   :  { %v13473_v48 = vadd.f32 %v5873_v7, %v5809_v30  ;;  %v5823_v39 = vpop.f32.mrf.mxu3  ;;  %v5761_v18 = vpop.f32.mrf.mxu2 }
 0xa8a   :  { %v5824_v28 = vadd.f32 %v5823_v39, %v5759_v26  ;;  %v5762_v12 = vadd.f32 %v5761_v18, %v13396_v41 }
 0xa8b   :  { %v5926_v52 = vmul.f32 %v13473_v48, %v13473_v48  ;;  %v5904_v50 = vadd.f32 %v5903_v37, %v13473_v48 }
 0xa8d   :  { %v5941_v24 = vadd.f32 %v5940_v13, %v5926_v52 }
 0xa90   :  { %v5876_v31 = vpop.f32.mrf.mxu1 }
 0xa91   :  { %v13476_v55 = vadd.f32 %v5876_v31, %v5812_v10  ;;  %v5826_v54 = vpop.f32.mrf.mxu3  ;;  %v5764_v59 = vpop.f32.mrf.mxu2 }
 0xa92   :  { %v5827_v21 = vadd.f32 %v5826_v54, %v5762_v12  ;;  %v5765_v22 = vadd.f32 %v5764_v59, %v13400_v34 }
 0xa93   :  { %v5927_v4 = vmul.f32 %v13476_v55, %v13476_v55  ;;  %v5905_v23 = vadd.f32 %v5904_v50, %v13476_v55 }
 0xa95   :  { %v5942_v5 = vadd.f32 %v5941_v24, %v5927_v4 }
 0xa98   :  { %v5879_v0 = vpop.f32.mrf.mxu1 }
 0xa99   :  { %v13481_v53 = vadd.f32 %v5879_v0, %v5815_v33  ;;  %v5829_v42 = vpop.f32.mrf.mxu3 }
 0xa9a   :  { %v5830_v20 = vadd.f32 %v5829_v42, %v5765_v22  ;;  %v9127_v42 = vld [vmem:[%s14205_s1 + $0x6b0] sm:$0xff]  }
 0xa9b   :  { %v5928_v17 = vmul.f32 %v13481_v53, %v13481_v53  ;;  %v5906_v37 = vadd.f32 %v5905_v23, %v13481_v53 }
 0xa9d   :  { %v5943_v31 = vadd.f32 %v5942_v5, %v5928_v17  ;;  %v4269_v5 = vld [vmem:[%s14206_s2 + $0x4] sm:$0x1] }
 0xaa0   :  { %v5882_v58 = vpop.f32.mrf.mxu1 }
 0xaa1   :  { %v13486_v56 = vadd.f32 %v5882_v58, %v5818_v6 }
 0xaa3   :  { %v5929_v7 = vmul.f32 %v13486_v56, %v13486_v56  ;;  %v5907_v13 = vadd.f32 %v5906_v37, %v13486_v56 }
 0xaa5   :  { %v5944_v0 = vadd.f32 %v5943_v31, %v5929_v7  ;;  %v4270_v31 = vld [vmem:[%s14206_s2 + $0x5] sm:$0x1] }
 0xaa8   :  { %v5885_v1 = vpop.f32.mrf.mxu1 }
 0xaa9   :  { %v13491_v60 = vadd.f32 %v5885_v1, %v5821_v43 }
 0xaab   :  { %v5930_v46 = vmul.f32 %v13491_v60, %v13491_v60  ;;  %v5908_v19 = vadd.f32 %v5907_v13, %v13491_v60 }
 0xaad   :  { %v5945_v14 = vadd.f32 %v5944_v0, %v5930_v46 }
 0xab0   :  { %v5888_v36 = vpop.f32.mrf.mxu1 }
 0xab1   :  { %v13497_v9 = vadd.f32 %v5888_v36, %v5824_v28 }
 0xab3   :  { %v5931_v41 = vmul.f32 %v13497_v9, %v13497_v9  ;;  %v5909_v8 = vadd.f32 %v5908_v19, %v13497_v9 }
 0xab5   :  { %v5946_v16 = vadd.f32 %v5945_v14, %v5931_v41 }
 0xab8   :  { %v5891_v40 = vpop.f32.mrf.mxu1 }
 0xab9   :  { %v5892_v44 = vadd.f32 %v5891_v40, %v5827_v21 }
 0xabb   :  { %v5910_v11 = vadd.f32 %v5909_v8, %v5892_v44  ;;  %v5932_v58 = vmul.f32 %v5892_v44, %v5892_v44 }
 0xabd   :  { %v5947_v49 = vadd.f32 %v5946_v16, %v5932_v58 }
 0xac0   :  { %v5894_v38 = vpop.f32.mrf.mxu1 }
 0xac1   :  { %v5895_v3 = vadd.f32 %v5894_v38, %v5830_v20  ;;  %v9135_v20 = vld [vmem:[%s14205_s1 + $0x6f0] sm:$0xff]  }
 0xac3   :  { %v5911_v62 = vadd.f32 %v5910_v11, %v5895_v3  ;;  %v5933_v15 = vmul.f32 %v5895_v3, %v5895_v3 }
 0xac5   :  { %v5912_v63 = vrot.slane %v5911_v62, 4  ;;  %v5948_v30 = vadd.f32 %v5947_v49, %v5933_v15 }
 0xac7   :  { %v5913_v61 = vadd.f32 %v5912_v63, %v5911_v62  ;;  %v5949_v1 = vrot.slane %v5948_v30, 4  ;;  %v9200_v63 = vld [vmem:[%s14205_s1 + $0x8f8] sm:$0xff]  }
 0xac9   :  { %v5914_v10 = vrot.slane %v5913_v61, 2  ;;  %v5950_v2 = vadd.f32 %v5949_v1, %v5948_v30  ;;  %v8365_v30 = vunpack.c.h.bf16 %v9127_v42  ;;  %v13545_v1 = vld [vmem:[%s14205_s1 + $0x6a8] sm:$0xff]  }
 0xacb   :  { %v5915_v39 = vadd.f32 %v5914_v10, %v5913_v61  ;;  %v5951_v33 = vrot.slane %v5950_v2, 2  ;;  %v8397_v61 = vunpack.c.h.bf16 %v9135_v20  ;;  %v13550_v10 = vld [vmem:[%s14205_s1 + $0x6e8] sm:$0xff]  }
 0xacd   :  { %v5916_v27 = vrot.slane %v5915_v39, 1  ;;  %v5952_v34 = vadd.f32 %v5951_v33, %v5950_v2  ;;  %v8364_v2 = vunpack.c.l.bf16 %v9127_v42  ;;  %v8657_v33 = vunpack.c.h.bf16 %v9200_v63 }
 0xacf   :  { %v5917_v26 = vadd.f32 %v5916_v27, %v5915_v39  ;;  %v5953_v6 = vrot.slane %v5952_v34, 1  ;;  %v8396_v39 = vunpack.c.l.bf16 %v9135_v20  ;;  %v13555_v27 = vld [vmem:[%s14205_s1 + $0x8f0] sm:$0xff]   ;;  %7191 = vmatpush.msrb.mxu1 %v8657_v33  ;;  %v13637_v33 = vld [vmem:[%s14205_s1 + $0x8d8] sm:$0xff]  }
 0xad1   :  { %v5954_v52 = vadd.f32 %v5953_v6, %v5952_v34  ;;  %v5955_v18 = vmul.f32 0.0078125, %v5917_v26  ;;  %v13560_v34 = vld [vmem:[%s14205_s1 + $0x6a0] sm:$0xff]   ;;  %v8656_v26 = vunpack.c.l.bf16 %v9200_v63  ;;  %v8361_v6 = vunpack.c.h.bf16 %v13545_v1 }
 0xad3   :  { %v5956_v43 = vmul.f32 0.0078125, %v5954_v52  ;;  %v5957_v50 = vmul.f32 %v5955_v18, %v5955_v18  ;;  %v8393_v52 = vunpack.c.h.bf16 %v13550_v10  ;;  %7192 = vmatpush.msrb.mxu1 %v8656_v26 }
 0xad5   :  { %v5958_v4 = vsub.f32 %v5956_v43, %v5957_v50  ;;  %v13572_v43 = vld [vmem:[%s14205_s1 + $0x698] sm:$0xff]  }
 0xad6   :  { %v13577_v50 = vld [vmem:[%s14205_s1 + $0x6d8] sm:$0xff]  }
 0xad7   :  { %v5959_v28 = vadd.f32 1e-05, %v5958_v4  ;;  %v13582_v4 = vld [vmem:[%s14205_s1 + $0x690] sm:$0xff]  }
 0xad9   :  { %9276 = vrsqrt.f32 %v5959_v28  ;;  %vm5966_vm4 = vweird.f32 %v5959_v28 }
 0xadf   :  { %v9277_v36 = vpop.eup %9276 }
 0xae0   :  { %v5961_v24 = vmul.f32 %v9277_v36, %v5959_v28  ;;  %vm5967_vm3 = vweird.f32 %v9277_v36  ;;  %v13587_v28 = vld [vmem:[%s14205_s1 + $0x6d0] sm:$0xff]  }
 0xae1   :  { %vm5968_vm5 = vmor %vm5966_vm4, %vm5967_vm3 }
 0xae2   :  { %v5962_v23 = vmul.f32 %v9277_v36, %v5961_v24  ;;  %v13593_v24 = vld [vmem:[%s14205_s1 + $0x8e8] sm:$0xff]  }
 0xae4   :  { %v5963_v17 = vmul.f32 0.5, %v5962_v23 }
 0xae6   :  { %v5964_v12 = vsub.f32 1.5, %v5963_v17 }
 0xae8   :  { %v5965_v37 = vmul.f32 %v9277_v36, %v5964_v12 }
 0xaea   :  { %v5969_v7 = vsel %vm5968_vm5, %v9277_v36, %v5965_v37  ;;  %v8653_v36 = vunpack.c.h.bf16 %v13555_v27  ;;  %v8392_v37 = vunpack.c.l.bf16 %v13550_v10  ;;  %v8349_v10 = vunpack.c.h.bf16 %v13582_v4 }
 0xaeb   :  { %v5970_v54 = vmul.f32 %v5969_v7, %v4269_v5  ;;  %v8360_v5 = vunpack.c.l.bf16 %v13545_v1  ;;  %v8357_v7 = vunpack.c.h.bf16 %v13560_v34 }
 0xaec   :  { %7193 = vmatpush.msrb.mxu1 %v8653_v36 }
 0xaed   :  { %v5971_v13 = vmul.f32 %v5970_v54, %v5955_v18  ;;  %v13513_v46 = vperm.slane %v5970_v54, 0  ;;  %v13567_v18 = vld [vmem:[%s14205_s1 + $0x6e0] sm:$0xff]  }
 0xaef   :  { %v5972_v21 = vsub.f32 %v4270_v31, %v5971_v13  ;;  %v5980_v0 = vmul.f32 %v13513_v46, %v13442_v47  ;;  %v5981_v19 = vmul.f32 %v13513_v46, %v13451_v51  ;;  %v5988_v41 = vmul.f32 %v13513_v46, %v5892_v44  ;;  %v9128_v47 = vld [vmem:[%s14205_s1 + $0x6b8] sm:$0xff]  }
 0xaf0   :  { %v5989_v59 = vmul.f32 %v13513_v46, %v5895_v3  ;;  %v9136_v51 = vld [vmem:[%s14205_s1 + $0x6f8] sm:$0xff]   ;;  %v8369_v38 = vunpack.c.h.bf16 %v9128_v47  ;;  %v8368_v62 = vunpack.c.l.bf16 %v9128_v47  ;;  %v8385_v47 = vunpack.c.h.bf16 %v13577_v50 }
 0xaf1   :  { %v13521_v40 = vperm.slane %v5972_v21, 0  ;;  %v8401_v3 = vunpack.c.h.bf16 %v9136_v51  ;;  %v8400_v15 = vunpack.c.l.bf16 %v9136_v51  ;;  %v8389_v21 = vunpack.c.h.bf16 %v13567_v18 }
 0xaf2   :  { %7011 = vmatpush.msra.mxu2 %v8369_v38  ;;  %v8352_v51 = vunpack.c.l.bf16 %v13572_v43 }
 0xaf3   :  { %v5997_v14 = vadd.f32 %v13521_v40, %v5980_v0  ;;  %v5998_v8 = vadd.f32 %v13521_v40, %v5981_v19  ;;  %v6005_v22 = vadd.f32 %v13521_v40, %v5988_v41  ;;  %v6006_v16 = vadd.f32 %v13521_v40, %v5989_v59  ;;  %7031 = vmatpush.msra.mxu3 %v8401_v3  ;;  %v13613_v59 = vld [vmem:[%s14205_s1 + $0x880] sm:$0xff]  }
 0xaf4   :  { %7012 = vmatpush.msra.mxu2 %v8368_v62  ;;  %v8356_v0 = vunpack.c.l.bf16 %v13560_v34  ;;  %v8388_v19 = vunpack.c.l.bf16 %v13567_v18  ;;  %v8652_v41 = vunpack.c.l.bf16 %v13555_v27  ;;  %v8649_v62 = vunpack.c.h.bf16 %v13593_v24 }
 0xaf5   :  { %v6013_v44 = vmax.f32 %v5997_v14, 0.0  ;;  %v6014_v11 = vmax.f32 %v5998_v8, 0.0  ;;  %v6021_v58 = vmax.f32 %v6005_v22, 0.0  ;;  %v6022_v49 = vmax.f32 %v6006_v16, 0.0  ;;  %7032 = vmatpush.msra.mxu3 %v8400_v15 }
 0xaf6   :  { %7013 = vmatpush.msra.mxu2 %v8365_v30  ;;  %v8353_v16 = vunpack.c.h.bf16 %v13572_v43  ;;  %7194 = vmatpush.msrb.mxu1 %v8652_v41 }
 0xaf7   :  { %6029 = vst [vmem:[#allocation5 + $0x30] sm:$0xff] %v6013_v44  ;;  %7033 = vmatpush.msra.mxu3 %v8397_v61  ;;  %v8384_v44 = vunpack.c.l.bf16 %v13577_v50 }
 0xaf8   :  { %6030 = vst [vmem:[#allocation5 + $0x38] sm:$0xff] %v6014_v11  ;;  %7014 = vmatpush.msra.mxu2 %v8364_v2  ;;  %v13622_v11 = vld [vmem:[%s14205_s1 + $0x8e0] sm:$0xff]   ;;  %v8381_v2 = vunpack.c.h.bf16 %v13587_v28  ;;  %7195 = vmatpush.msrb.mxu1 %v8649_v62 }
 0xaf9   :  { %6037 = vst [vmem:[#allocation5 + $0x70] sm:$0xff] %v6021_v58  ;;  %7034 = vmatpush.msra.mxu3 %v8396_v39  ;;  %v13632_v39 = vld [vmem:[%s14205_s1 + $0x688] sm:$0xff]  }
 0xafa   :  { %6038 = vst [vmem:[#allocation5 + $0x78] sm:$0xff] %v6022_v49  ;;  %7015 = vmatpush.msra.mxu2 %v8361_v6  ;;  %v8345_v62 = vunpack.c.h.bf16 %v13632_v39 }
 0xafb   :  { %7035 = vmatpush.msra.mxu3 %v8393_v52 }
 0xafc   :  { %7016 = vmatpush.msra.mxu2 %v8360_v5 }
 0xafd   :  { %7036 = vmatpush.msra.mxu3 %v8392_v37 }
 0xafe   :  { %v13595_v23 = vld [vmem:[#allocation5 + $0x30] sm:$0x1]  ;;  %v13597_v17 = vld [vmem:[#allocation5 + $0x31] sm:$0x1]  ;;  %v13599_v12 = vld [vmem:[#allocation5 + $0x32] sm:$0x1]  ;;  %7017 = vmatpush.msra.mxu2 %v8357_v7 }
 0xaff   :  { %v6356_v54 = vld [vmem:[#allocation5 + $0x38] sm:$0x1]  ;;  %v6358_v31 = vld [vmem:[#allocation5 + $0x39] sm:$0x1]  ;;  %v13604_v13 = vld [vmem:[#allocation5 + $0x33] sm:$0x1]  ;;  %v6360_v42 = vmax.f32 %v13595_v23, %v13597_v17  ;;  %v8348_v23 = vunpack.c.l.bf16 %v13582_v4  ;;  %v8648_v17 = vunpack.c.l.bf16 %v13593_v24  ;;  %7037 = vmatpush.msra.mxu3 %v8389_v21  ;;  %v8645_v24 = vunpack.c.h.bf16 %v13622_v11 }
 0xb00   :  { %v6352_v14 = vld [vmem:[#allocation5 + $0x70] sm:$0x1]  ;;  %v6354_v8 = vld [vmem:[#allocation5 + $0x71] sm:$0x1]  ;;  %v6378_v22 = vld [vmem:[#allocation5 + $0x72] sm:$0x1]  ;;  %v6362_v38 = vmax.f32 %v6356_v54, %v6358_v31  ;;  %v6385_v26 = vmax.f32 %v13599_v12, %v13604_v13  ;;  %7018 = vmatpush.msra.mxu2 %v8356_v0 }
 0xb01   :  { %v6357_v58 = vld [vmem:[#allocation5 + $0x78] sm:$0x1]  ;;  %v6359_v49 = vld [vmem:[#allocation5 + $0x79] sm:$0x1]  ;;  %v6361_v20 = vmax.f32 %v6352_v14, %v6354_v8  ;;  %v6380_v3 = vld [vmem:[#allocation5 + $0x73] sm:$0x1]  ;;  %v8380_v8 = vunpack.c.l.bf16 %v13587_v28  ;;  %7038 = vmatpush.msra.mxu3 %v8388_v19  ;;  %7196 = vmatpush.msrb.mxu1 %v8648_v17 }
 0xb02   :  { %v6363_v15 = vmax.f32 %v6357_v58, %v6359_v49  ;;  %v6381_v63 = vld [vmem:[#allocation5 + $0x3a] sm:$0x1]  ;;  %v6383_v61 = vld [vmem:[#allocation5 + $0x3b] sm:$0x1]  ;;  %v6386_v1 = vmax.f32 %v6378_v22, %v6380_v3  ;;  %v6402_v52 = vld [vmem:[#allocation5 + $0x34] sm:$0x1]  ;;  %v8597_v22 = vunpack.c.h.bf16 %v13613_v59  ;;  %v6364_v12 = vmax.f32 %v6360_v42, %v6362_v38  ;;  %7019 = vmatpush.msra.mxu2 %v8353_v16 }
 0xb03   :  { %v6382_v30 = vld [vmem:[#allocation5 + $0x7a] sm:$0x1]  ;;  %v6384_v27 = vld [vmem:[#allocation5 + $0x7b] sm:$0x1]  ;;  %v6387_v6 = vmax.f32 %v6381_v63, %v6383_v61  ;;  %v6403_v36 = vld [vmem:[#allocation5 + $0x74] sm:$0x1]  ;;  %7039 = vmatpush.msra.mxu3 %v8385_v47  ;;  %7197 = vmatpush.msrb.mxu1 %v8645_v24 }
 0xb04   :  { %v6365_v5 = vmax.f32 %v6361_v20, %v6363_v15  ;;  %v6388_v37 = vmax.f32 %v6382_v30, %v6384_v27  ;;  %v6404_v54 = vld [vmem:[#allocation5 + $0x35] sm:$0x1]  ;;  %v6406_v14 = vld [vmem:[#allocation5 + $0x3c] sm:$0x1]  ;;  %v6408_v58 = vld [vmem:[#allocation5 + $0x3d] sm:$0x1]  ;;  %7185 = vmatpush.msrb.mxu0 %v8597_v22  ;;  %7020 = vmatpush.msra.mxu2 %v8352_v51 }
 0xb05   :  { %v6405_v31 = vld [vmem:[#allocation5 + $0x75] sm:$0x1]  ;;  %v6407_v13 = vld [vmem:[#allocation5 + $0x7c] sm:$0x1]  ;;  %v6409_v49 = vld [vmem:[#allocation5 + $0x7d] sm:$0x1]  ;;  %v6410_v3 = vmax.f32 %v6402_v52, %v6404_v54  ;;  %v6412_v15 = vmax.f32 %v6406_v14, %v6408_v58  ;;  %v6389_v21 = vmax.f32 %v6385_v26, %v6387_v6  ;;  %v8644_v52 = vunpack.c.l.bf16 %v13622_v11  ;;  %7040 = vmatpush.msra.mxu3 %v8384_v44 }
 0xb06   :  { %v6411_v63 = vmax.f32 %v6403_v36, %v6405_v31  ;;  %v6370_v41 = vrot.slane %v6365_v5, 7  ;;  %v6390_v20 = vmax.f32 %v6386_v1, %v6388_v37  ;;  %v6413_v30 = vmax.f32 %v6407_v13, %v6409_v49  ;;  %v6427_v61 = vld [vmem:[#allocation5 + $0x36] sm:$0x1]  ;;  %v6429_v42 = vld [vmem:[#allocation5 + $0x37] sm:$0x1]  ;;  %v9130_v19 = vld [vmem:[%s14205_s1 + $0x6c8] sm:$0xff]   ;;  %7021 = vmatpush.msra.mxu2 %v8349_v10 }
 0xb07   :  { %v6428_v7 = vld [vmem:[#allocation5 + $0x76] sm:$0x1]  ;;  %v6430_v38 = vld [vmem:[#allocation5 + $0x77] sm:$0x1]  ;;  %v6431_v27 = vld [vmem:[#allocation5 + $0x3e] sm:$0x1]  ;;  %v8641_v1 = vunpack.c.h.bf16 %v13637_v33  ;;  %v6414_v34 = vmax.f32 %v6410_v3, %v6412_v15  ;;  %v6435_v6 = vmax.f32 %v6427_v61, %v6429_v42  ;;  %v8377_v58 = vunpack.c.h.bf16 %v9130_v19  ;;  %7198 = vmatpush.msrb.mxu1 %v8644_v52  ;;  %7041 = vmatpush.msra.mxu3 %v8381_v2 }
 0xb08   :  { %v6371_v36 = vsel %vm6061_vm6, %v6370_v41, %v6364_v12  ;;  %v6395_v5 = vrot.slane %v6390_v20, 7  ;;  %v6415_v0 = vmax.f32 %v6411_v63, %v6413_v30  ;;  %v6432_v37 = vld [vmem:[#allocation5 + $0x7e] sm:$0x1]  ;;  %v6433_v18 = vld [vmem:[#allocation5 + $0x3f] sm:$0x1]  ;;  %v6436_v17 = vmax.f32 %v6428_v7, %v6430_v38  ;;  %v9195_v47 = vld [vmem:[%s14205_s1 + $0x8d0] sm:$0xff]   ;;  %7022 = vmatpush.msra.mxu2 %v8348_v23 }
 0xb09   :  { %v6372_v11 = vsel %vm6063_vm7, %v6370_v41, %v6371_v36  ;;  %v6434_v26 = vld [vmem:[#allocation5 + $0x7f] sm:$0x1]  ;;  %v6437_v54 = vmax.f32 %v6431_v27, %v6433_v18  ;;  %v8640_v49 = vunpack.c.l.bf16 %v13637_v33  ;;  %v8344_v63 = vunpack.c.l.bf16 %v13632_v39  ;;  %7199 = vmatpush.msrb.mxu1 %v8641_v1  ;;  %7042 = vmatpush.msra.mxu3 %v8380_v8  ;;  %v9194_v15 = vld [vmem:[%s14205_s1 + $0x8c8] sm:$0xff]   ;;  %v9224_v30 = vld [vmem:[%s14205_s1 + $0x9b8] sm:$0xff]  }
 0xb0a   :  { %v6373_v31 = vsel %vm6065_vm8, %v6370_v41, %v6372_v11  ;;  %v6396_v14 = vsel %vm6061_vm6, %v6395_v5, %v6389_v21  ;;  %v6420_v22 = vrot.slane %v6415_v0, 7  ;;  %v6438_v16 = vmax.f32 %v6432_v37, %v6434_v26  ;;  %v9121_v33 = vld [vmem:[%s14205_s1 + $0x680] sm:$0xff]   ;;  %7023 = vmatpush.msra.mxu2 %v8345_v62  ;;  %v9144_v8 = vld [vmem:[%s14205_s1 + $0x738] sm:$0xff]   ;;  %v9223_v37 = vld [vmem:[%s14205_s1 + $0x9b0] sm:$0xff]  }
 0xb0b   :  { %v6374_v12 = vsel %vm6067_vm9, %v6370_v41, %v6373_v31  ;;  %v6397_v13 = vsel %vm6063_vm7, %v6395_v5, %v6396_v14  ;;  %v9129_v24 = vld [vmem:[%s14205_s1 + $0x6c0] sm:$0xff]   ;;  %v8637_v41 = vunpack.c.h.bf16 %v9195_v47  ;;  %v6439_v2 = vmax.f32 %v6435_v6, %v6437_v54  ;;  %7200 = vmatpush.msrb.mxu1 %v8640_v49  ;;  %7043 = vmatpush.msra.mxu3 %v8377_v58  ;;  %v9152_v21 = vld [vmem:[%s14205_s1 + $0x778] sm:$0xff]   ;;  %v9143_v18 = vld [vmem:[%s14205_s1 + $0x730] sm:$0xff]  }
 0xb0c   :  { %6376 = vst [vmem:[#allocation6 + $0x18] sm:$0x3] %v6374_v12  ;;  %v6398_v3 = vsel %vm6065_vm8, %v6395_v5, %v6397_v13  ;;  %v6421_v43 = vsel %vm6061_vm6, %v6420_v22, %v6414_v34  ;;  %v6440_v51 = vmax.f32 %v6436_v17, %v6438_v16  ;;  %v8376_v39 = vunpack.c.l.bf16 %v9130_v19  ;;  %7024 = vmatpush.msra.mxu2 %v8344_v63  ;;  %v9151_v19 = vld [vmem:[%s14205_s1 + $0x770] sm:$0xff]   ;;  %v9232_v31 = vld [vmem:[%s14205_s1 + $0x9f8] sm:$0xff]   ;;  %v9142_v12 = vld [vmem:[%s14205_s1 + $0x728] sm:$0xff]  }
 0xb0d   :  { %v6399_v50 = vsel %vm6067_vm9, %v6395_v5, %v6398_v3  ;;  %v6422_v44 = vsel %vm6063_vm7, %v6420_v22, %v6421_v43  ;;  %v8636_v7 = vunpack.c.l.bf16 %v9195_v47  ;;  %v8341_v28 = vunpack.c.h.bf16 %v9121_v33  ;;  %7201 = vmatpush.msrb.mxu1 %v8637_v41  ;;  %v9222_v47 = vld [vmem:[%s14205_s1 + $0x9a8] sm:$0xff]  }
 0xb0e   :  { %6401 = vst [vmem:[#allocation6 + $0x1a] sm:$0x3] %v6399_v50  ;;  %v6423_v10 = vsel %vm6065_vm8, %v6420_v22, %v6422_v44  ;;  %v6445_v20 = vrot.slane %v6440_v51, 7  ;;  %v8373_v23 = vunpack.c.h.bf16 %v9129_v24  ;;  %v8596_v42 = vunpack.c.l.bf16 %v13613_v59  ;;  %7044 = vmatpush.msra.mxu3 %v8376_v39  ;;  %v9193_v59 = vld [vmem:[%s14205_s1 + $0x8c0] sm:$0xff]   ;;  %v9150_v13 = vld [vmem:[%s14205_s1 + $0x768] sm:$0xff]   ;;  %v9231_v44 = vld [vmem:[%s14205_s1 + $0x9f0] sm:$0xff]  }
 0xb0f   :  { %v6424_v61 = vsel %vm6067_vm9, %v6420_v22, %v6423_v10  ;;  %v8633_v27 = vunpack.c.h.bf16 %v9194_v15  ;;  %v8753_v52 = vunpack.c.h.bf16 %v9224_v30  ;;  %v8340_v1 = vunpack.c.l.bf16 %v9121_v33  ;;  %7202 = vmatpush.msrb.mxu1 %v8636_v7  ;;  %7025 = vmatpush.msra.mxu2 %v8341_v28 }
 0xb10   :  { %6426 = vst [vmem:[#allocation6 + $0x1c] sm:$0x3] %v6424_v61  ;;  %v6446_v4 = vsel %vm6061_vm6, %v6445_v20, %v6439_v2  ;;  %v8372_v36 = vunpack.c.l.bf16 %v9129_v24  ;;  %v8433_v34 = vunpack.c.h.bf16 %v9144_v8  ;;  %v8465_v0 = vunpack.c.h.bf16 %v9152_v21  ;;  %7186 = vmatpush.msrb.mxu0 %v8596_v42  ;;  %7045 = vmatpush.msra.mxu3 %v8373_v23 }
 0xb11   :  { %v6447_v38 = vsel %vm6063_vm7, %v6445_v20, %v6446_v4  ;;  %v8632_v11 = vunpack.c.l.bf16 %v9194_v15  ;;  %v8752_v26 = vunpack.c.l.bf16 %v9224_v30  ;;  %v8432_v6 = vunpack.c.l.bf16 %v9144_v8  ;;  %7203 = vmatpush.msrb.mxu1 %v8633_v27  ;;  %7026 = vmatpush.msra.mxu2 %v8340_v1  ;;  %v9140_v1 = vld [vmem:[%s14205_s1 + $0x718] sm:$0xff]  }
 0xb12   :  { %v6448_v62 = vsel %vm6065_vm8, %v6445_v20, %v6447_v38  ;;  %v8464_v17 = vunpack.c.l.bf16 %v9152_v21  ;;  %7251 = vmatpush.msra.mxu0 %v8753_v52  ;;  %7046 = vmatpush.msra.mxu3 %v8372_v36  ;;  %v8629_v54 = vunpack.c.h.bf16 %v9193_v59  ;;  %v8749_v14 = vunpack.c.h.bf16 %v9223_v37  ;;  %v9148_v36 = vld [vmem:[%s14205_s1 + $0x758] sm:$0xff]  }
 0xb13   :  { %v6449_v5 = vsel %vm6067_vm9, %v6445_v20, %v6448_v62  ;;  %7051 = vmatpush.msrb.mxu2 %v8433_v34  ;;  %v8429_v22 = vunpack.c.h.bf16 %v9143_v18  ;;  %v8461_v16 = vunpack.c.h.bf16 %v9151_v19  ;;  %7204 = vmatpush.msrb.mxu1 %v8632_v11  ;;  %v8628_v58 = vunpack.c.l.bf16 %v9193_v59  ;;  %v9221_v20 = vld [vmem:[%s14205_s1 + $0x9a0] sm:$0xff]   ;;  %v9230_v62 = vld [vmem:[%s14205_s1 + $0x9e8] sm:$0xff]  }
 0xb14   :  { %6451 = vst [vmem:[#allocation6 + $0x1e] sm:$0x3] %v6449_v5  ;;  %7071 = vmatpush.msrb.mxu3 %v8465_v0  ;;  %7252 = vmatpush.msra.mxu0 %v8752_v26  ;;  %v8748_v49 = vunpack.c.l.bf16 %v9223_v37  ;;  %v8428_v3 = vunpack.c.l.bf16 %v9143_v18  ;;  %v8460_v43 = vunpack.c.l.bf16 %v9151_v19  ;;  %v8785_v51 = vunpack.c.h.bf16 %v9232_v31  ;;  %v9229_v11 = vld [vmem:[%s14205_s1 + $0x9e0] sm:$0xff]   ;;  %v9139_v26 = vld [vmem:[%s14205_s1 + $0x710] sm:$0xff]  }
 0xb15   :  { %7052 = vmatpush.msrb.mxu2 %v8432_v6  ;;  %v5974_v50 = vmul.f32 %v13513_v46, %v13403_v35  ;;  %7205 = vmatpush.msrb.mxu1 %v8629_v54  ;;  %v8745_v63 = vunpack.c.h.bf16 %v9222_v47  ;;  %v5975_v33 = vmul.f32 %v13513_v46, %v13412_v25  ;;  %v5982_v24 = vmul.f32 %v13513_v46, %v13473_v48  ;;  %v9141_v25 = vld [vmem:[%s14205_s1 + $0x720] sm:$0xff]   ;;  %v9147_v6 = vld [vmem:[%s14205_s1 + $0x750] sm:$0xff]  }
 0xb16   :  { %7072 = vmatpush.msrb.mxu3 %v8464_v17  ;;  %7253 = vmatpush.msra.mxu0 %v8749_v14  ;;  %v5983_v41 = vmul.f32 %v13513_v46, %v13476_v55  ;;  %v8425_v10 = vunpack.c.h.bf16 %v9142_v12  ;;  %v8457_v35 = vunpack.c.h.bf16 %v9150_v13  ;;  %v8784_v2 = vunpack.c.l.bf16 %v9232_v31  ;;  %v9149_v48 = vld [vmem:[%s14205_s1 + $0x760] sm:$0xff]   ;;  %v13781_v14 = vld [vmem:[%s14205_s1 + $0x708] sm:$0xff]  }
 0xb17   :  { %7053 = vmatpush.msrb.mxu2 %v8429_v22  ;;  %v5991_v39 = vadd.f32 %v13521_v40, %v5974_v50  ;;  %7206 = vmatpush.msrb.mxu1 %v8628_v58  ;;  %v8744_v55 = vunpack.c.l.bf16 %v9222_v47  ;;  %v5992_v15 = vadd.f32 %v13521_v40, %v5975_v33  ;;  %v5999_v30 = vadd.f32 %v13521_v40, %v5982_v24  ;;  %v13786_v22 = vld [vmem:[%s14205_s1 + $0x748] sm:$0xff]  }
 0xb18   :  { %7073 = vmatpush.msrb.mxu3 %v8461_v16  ;;  %7254 = vmatpush.msra.mxu0 %v8748_v49  ;;  %v6000_v61 = vadd.f32 %v13521_v40, %v5983_v41  ;;  %v8424_v7 = vunpack.c.l.bf16 %v9142_v12  ;;  %v8456_v4 = vunpack.c.l.bf16 %v9150_v13  ;;  %v8781_v28 = vunpack.c.h.bf16 %v9231_v44 }
 0xb19   :  { %7054 = vmatpush.msrb.mxu2 %v8428_v3  ;;  %v6007_v23 = vmax.f32 %v5991_v39, 0.0  ;;  %7271 = vmatpush.msra.mxu1 %v8785_v51  ;;  %v8741_v8 = vunpack.c.h.bf16 %v9221_v20  ;;  %v6008_v21 = vmax.f32 %v5992_v15, 0.0  ;;  %v6015_v42 = vmax.f32 %v5999_v30, 0.0 }
 0xb1a   :  { %7074 = vmatpush.msrb.mxu3 %v8460_v43  ;;  %7255 = vmatpush.msra.mxu0 %v8745_v63  ;;  %v6016_v38 = vmax.f32 %v6000_v61, 0.0  ;;  %v8421_v27 = vunpack.c.h.bf16 %v9141_v25  ;;  %v8453_v52 = vunpack.c.h.bf16 %v9149_v48  ;;  %v8780_v5 = vunpack.c.l.bf16 %v9231_v44 }
 0xb1b   :  { %7055 = vmatpush.msrb.mxu2 %v8425_v10  ;;  %6023 = vst [vmem:[#allocation5] sm:$0xff] %v6007_v23  ;;  %7272 = vmatpush.msra.mxu1 %v8784_v2  ;;  %v8740_v34 = vunpack.c.l.bf16 %v9221_v20  ;;  %v8420_v0 = vunpack.c.l.bf16 %v9141_v25  ;;  %v8452_v59 = vunpack.c.l.bf16 %v9149_v48  ;;  %v8777_v37 = vunpack.c.h.bf16 %v9230_v62  ;;  %v13793_v48 = vld [vmem:[%s14205_s1 + $0x700] sm:$0xff]  }
 0xb1c   :  { %7075 = vmatpush.msrb.mxu3 %v8457_v35  ;;  %7256 = vmatpush.msra.mxu0 %v8744_v55  ;;  %6024 = vst [vmem:[#allocation5 + $0x8] sm:$0xff] %v6008_v21  ;;  %v8417_v18 = vunpack.c.h.bf16 %v9140_v1  ;;  %v8449_v19 = vunpack.c.h.bf16 %v9148_v36  ;;  %v8776_v17 = vunpack.c.l.bf16 %v9230_v62  ;;  %v8416_v54 = vunpack.c.l.bf16 %v9140_v1  ;;  %v13798_v55 = vld [vmem:[%s14205_s1 + $0x740] sm:$0xff]  }
 0xb1d   :  { %7056 = vmatpush.msrb.mxu2 %v8424_v7  ;;  %6031 = vst [vmem:[#allocation5 + $0x40] sm:$0xff] %v6015_v42  ;;  %7273 = vmatpush.msra.mxu1 %v8781_v28  ;;  %v8448_v31 = vunpack.c.l.bf16 %v9148_v36  ;;  %v8773_v16 = vunpack.c.h.bf16 %v9229_v11  ;;  %v8413_v58 = vunpack.c.h.bf16 %v9139_v26  ;;  %v8445_v49 = vunpack.c.h.bf16 %v9147_v6 }
 0xb1e   :  { %7076 = vmatpush.msrb.mxu3 %v8456_v4  ;;  %7257 = vmatpush.msra.mxu0 %v8741_v8  ;;  %6032 = vst [vmem:[#allocation5 + $0x48] sm:$0xff] %v6016_v38  ;;  %v8412_v50 = vunpack.c.l.bf16 %v9139_v26  ;;  %v8772_v44 = vunpack.c.l.bf16 %v9229_v11  ;;  %v8444_v41 = vunpack.c.l.bf16 %v9147_v6  ;;  %v8409_v28 = vunpack.c.h.bf16 %v13781_v14 }
 0xb1f   :  { %7057 = vmatpush.msrb.mxu2 %v8421_v27  ;;  %7274 = vmatpush.msra.mxu1 %v8780_v5  ;;  %v8441_v23 = vunpack.c.h.bf16 %v13786_v22 }
 0xb20   :  { %7077 = vmatpush.msrb.mxu3 %v8453_v52  ;;  %7258 = vmatpush.msra.mxu0 %v8740_v34  ;;  %v8408_v52 = vunpack.c.l.bf16 %v13781_v14 }
 0xb21   :  { %7058 = vmatpush.msrb.mxu2 %v8420_v0  ;;  %7275 = vmatpush.msra.mxu1 %v8777_v37  ;;  %v8440_v0 = vunpack.c.l.bf16 %v13786_v22  ;;  %v8404_v22 = vunpack.c.l.bf16 %v13793_v48 }
 0xb22   :  { %7078 = vmatpush.msrb.mxu3 %v8452_v59  ;;  %v6039_v47 = vld [vmem:[#allocation5] sm:$0x1]  ;;  %v6041_v12 = vld [vmem:[#allocation5 + $0x1] sm:$0x1]  ;;  %v13788_v13 = vld [vmem:[#allocation5 + $0x2] sm:$0x1] }
 0xb23   :  { %7059 = vmatpush.msrb.mxu2 %v8417_v18  ;;  %v6044_v3 = vld [vmem:[#allocation5 + $0x8] sm:$0x1]  ;;  %v6046_v43 = vld [vmem:[#allocation5 + $0x9] sm:$0x1]  ;;  %v6073_v51 = vld [vmem:[#allocation5 + $0x3] sm:$0x1]  ;;  %7276 = vmatpush.msra.mxu1 %v8776_v17  ;;  %v6048_v2 = vmax.f32 %v6039_v47, %v6041_v12  ;;  %v8405_v47 = vunpack.c.h.bf16 %v13793_v48  ;;  %v8437_v12 = vunpack.c.h.bf16 %v13798_v55 }
 0xb24   :  { %7079 = vmatpush.msrb.mxu3 %v8449_v19  ;;  %v6040_v63 = vld [vmem:[#allocation5 + $0x40] sm:$0x1]  ;;  %v6042_v33 = vld [vmem:[#allocation5 + $0x41] sm:$0x1]  ;;  %v6072_v24 = vld [vmem:[#allocation5 + $0x42] sm:$0x1]  ;;  %v6050_v39 = vmax.f32 %v6044_v3, %v6046_v43  ;;  %v6079_v21 = vmax.f32 %v13788_v13, %v6073_v51 }
 0xb25   :  { %7060 = vmatpush.msrb.mxu2 %v8416_v54  ;;  %v6045_v10 = vld [vmem:[#allocation5 + $0x48] sm:$0x1]  ;;  %v6047_v35 = vld [vmem:[#allocation5 + $0x49] sm:$0x1]  ;;  %v6049_v20 = vmax.f32 %v6040_v63, %v6042_v33  ;;  %v6074_v25 = vld [vmem:[#allocation5 + $0x43] sm:$0x1]  ;;  %7277 = vmatpush.msra.mxu1 %v8773_v16 }
 0xb26   :  { %7080 = vmatpush.msrb.mxu3 %v8448_v31  ;;  %v6051_v15 = vmax.f32 %v6045_v10, %v6047_v35  ;;  %v6075_v30 = vld [vmem:[#allocation5 + $0xa] sm:$0x1]  ;;  %v6077_v7 = vld [vmem:[#allocation5 + $0xb] sm:$0x1]  ;;  %v6080_v4 = vmax.f32 %v6072_v24, %v6074_v25  ;;  %v6096_v38 = vld [vmem:[#allocation5 + $0x4] sm:$0x1]  ;;  %v6052_v59 = vmax.f32 %v6048_v2, %v6050_v39  ;;  %v8436_v24 = vunpack.c.l.bf16 %v13798_v55 }
 0xb27   :  { %v6076_v61 = vld [vmem:[#allocation5 + $0x4a] sm:$0x1]  ;;  %7061 = vmatpush.msrb.mxu2 %v8413_v58  ;;  %v6078_v8 = vld [vmem:[#allocation5 + $0x4b] sm:$0x1]  ;;  %v6081_v42 = vmax.f32 %v6075_v30, %v6077_v7  ;;  %v6097_v27 = vld [vmem:[#allocation5 + $0x44] sm:$0x1]  ;;  %7278 = vmatpush.msra.mxu1 %v8772_v44 }
 0xb28   :  { %7081 = vmatpush.msrb.mxu3 %v8445_v49  ;;  %v6053_v62 = vmax.f32 %v6049_v20, %v6051_v15  ;;  %v6082_v1 = vmax.f32 %v6076_v61, %v6078_v8  ;;  %v6098_v36 = vld [vmem:[#allocation5 + $0x5] sm:$0x1]  ;;  %v6100_v34 = vld [vmem:[#allocation5 + $0xc] sm:$0x1]  ;;  %v6102_v18 = vld [vmem:[#allocation5 + $0xd] sm:$0x1] }
 0xb29   :  { %v6099_v5 = vld [vmem:[#allocation5 + $0x45] sm:$0x1]  ;;  %7062 = vmatpush.msrb.mxu2 %v8412_v50  ;;  %v6101_v37 = vld [vmem:[#allocation5 + $0x4c] sm:$0x1]  ;;  %v6103_v19 = vld [vmem:[#allocation5 + $0x4d] sm:$0x1]  ;;  %v6104_v11 = vmax.f32 %v6096_v38, %v6098_v36  ;;  %v6106_v54 = vmax.f32 %v6100_v34, %v6102_v18  ;;  %v6083_v13 = vmax.f32 %v6079_v21, %v6081_v42 }
 0xb2a   :  { %7082 = vmatpush.msrb.mxu3 %v8444_v41  ;;  %v6105_v26 = vmax.f32 %v6097_v27, %v6099_v5  ;;  %v6060_v6 = vrot.slane %v6053_v62, 7  ;;  %v6084_v17 = vmax.f32 %v6080_v4, %v6082_v1  ;;  %v6107_v31 = vmax.f32 %v6101_v37, %v6103_v19  ;;  %v6121_v14 = vld [vmem:[#allocation5 + $0x6] sm:$0x1]  ;;  %v6123_v58 = vld [vmem:[#allocation5 + $0x7] sm:$0x1]  ;;  %v9220_v20 = vld [vmem:[%s14205_s1 + $0x998] sm:$0xff]  }
 0xb2b   :  { %v6122_v16 = vld [vmem:[#allocation5 + $0x46] sm:$0x1]  ;;  %7063 = vmatpush.msrb.mxu2 %v8409_v28  ;;  %v6124_v49 = vld [vmem:[#allocation5 + $0x47] sm:$0x1]  ;;  %v6125_v3 = vld [vmem:[#allocation5 + $0xe] sm:$0x1]  ;;  %v6108_v50 = vmax.f32 %v6104_v11, %v6106_v54  ;;  %v6129_v35 = vmax.f32 %v6121_v14, %v6123_v58  ;;  %v8737_v4 = vunpack.c.h.bf16 %v9220_v20  ;;  %v8736_v1 = vunpack.c.l.bf16 %v9220_v20 }
 0xb2c   :  { %7083 = vmatpush.msrb.mxu3 %v8441_v23  ;;  %v6062_v43 = vsel %vm6061_vm6, %v6060_v6, %v6052_v59  ;;  %v6089_v51 = vrot.slane %v6084_v17, 7  ;;  %v6109_v44 = vmax.f32 %v6105_v26, %v6107_v31  ;;  %v6126_v63 = vld [vmem:[#allocation5 + $0x4e] sm:$0x1]  ;;  %v6127_v33 = vld [vmem:[#allocation5 + $0xf] sm:$0x1]  ;;  %v6130_v2 = vmax.f32 %v6122_v16, %v6124_v49  ;;  %v9228_v39 = vld [vmem:[%s14205_s1 + $0x9d8] sm:$0xff]  }
 0xb2d   :  { %7064 = vmatpush.msrb.mxu2 %v8408_v52  ;;  %v6064_v41 = vsel %vm6063_vm7, %v6060_v6, %v6062_v43  ;;  %v6128_v10 = vld [vmem:[#allocation5 + $0x4f] sm:$0x1]  ;;  %v6131_v30 = vmax.f32 %v6125_v3, %v6127_v33  ;;  %v8769_v8 = vunpack.c.h.bf16 %v9228_v39  ;;  %7259 = vmatpush.msra.mxu0 %v8737_v4  ;;  %v8768_v36 = vunpack.c.l.bf16 %v9228_v39  ;;  %v9160_v49 = vld [vmem:[%s14205_s1 + $0x7b8] sm:$0xff]  }
 0xb2e   :  { %7084 = vmatpush.msrb.mxu3 %v8440_v0  ;;  %v6066_v25 = vsel %vm6065_vm8, %v6060_v6, %v6064_v41  ;;  %v6090_v48 = vsel %vm6061_vm6, %v6089_v51, %v6083_v13  ;;  %v6114_v15 = vrot.slane %v6109_v44, 7  ;;  %v6132_v7 = vmax.f32 %v6126_v63, %v6128_v10  ;;  %v9219_v21 = vld [vmem:[%s14205_s1 + $0x990] sm:$0xff]   ;;  %v9168_v3 = vld [vmem:[%s14205_s1 + $0x7f8] sm:$0xff]  }
 0xb2f   :  { %7065 = vmatpush.msrb.mxu2 %v8405_v47  ;;  %v6068_v55 = vsel %vm6067_vm9, %v6060_v6, %v6066_v25  ;;  %v6091_v61 = vsel %vm6063_vm7, %v6089_v51, %v6090_v48  ;;  %v9227_v52 = vld [vmem:[%s14205_s1 + $0x9d0] sm:$0xff]   ;;  %7279 = vmatpush.msra.mxu1 %v8769_v8  ;;  %v6133_v34 = vmax.f32 %v6129_v35, %v6131_v30  ;;  %v8733_v59 = vunpack.c.h.bf16 %v9219_v21 }
 0xb30   :  { %7085 = vmatpush.msrb.mxu3 %v8437_v12  ;;  %6070 = vst [vmem:[#allocation6] sm:$0x3] %v6068_v55  ;;  %v6092_v28 = vsel %vm6065_vm8, %v6089_v51, %v6091_v61  ;;  %v6115_v23 = vsel %vm6061_vm6, %v6114_v15, %v6108_v50  ;;  %v6134_v27 = vmax.f32 %v6130_v2, %v6132_v7  ;;  %v8765_v37 = vunpack.c.h.bf16 %v9227_v52  ;;  %v13858_v44 = vld [vmem:[%s14205_s1 + $0x7b0] sm:$0xff]  }
 0xb31   :  { %7066 = vmatpush.msrb.mxu2 %v8404_v22  ;;  %v6093_v42 = vsel %vm6067_vm9, %v6089_v51, %v6092_v28  ;;  %v6116_v38 = vsel %vm6063_vm7, %v6114_v15, %v6115_v23  ;;  %7260 = vmatpush.msra.mxu0 %v8736_v1  ;;  %v8732_v18 = vunpack.c.l.bf16 %v9219_v21  ;;  %v8764_v11 = vunpack.c.l.bf16 %v9227_v52  ;;  %v13863_v41 = vld [vmem:[%s14205_s1 + $0x7f0] sm:$0xff]  }
 0xb32   :  { %7086 = vmatpush.msrb.mxu3 %v8436_v24  ;;  %6095 = vst [vmem:[#allocation6 + $0x2] sm:$0x3] %v6093_v42  ;;  %v6117_v62 = vsel %vm6065_vm8, %v6114_v15, %v6116_v38  ;;  %v6139_v0 = vrot.slane %v6134_v27, 7  ;;  %7280 = vmatpush.msra.mxu1 %v8768_v36  ;;  %v5978_v26 = vmul.f32 %v13513_v46, %v13418_v45  ;;  %v8497_v20 = vunpack.c.h.bf16 %v9160_v49 }
 0xb33   :  { %v6118_v5 = vsel %vm6067_vm9, %v6114_v15, %v6117_v62  ;;  %v5979_v6 = vmul.f32 %v13513_v46, %v13437_v32  ;;  %7261 = vmatpush.msra.mxu0 %v8733_v59  ;;  %v5986_v54 = vmul.f32 %v13513_v46, %v13491_v60  ;;  %v5987_v31 = vmul.f32 %v13513_v46, %v13497_v9 }
 0xb34   :  { %6120 = vst [vmem:[#allocation6 + $0x4] sm:$0x3] %v6118_v5  ;;  %v6140_v19 = vsel %vm6061_vm6, %v6139_v0, %v6133_v34  ;;  %7281 = vmatpush.msra.mxu1 %v8765_v37  ;;  %v5995_v16 = vadd.f32 %v13521_v40, %v5978_v26  ;;  %v8529_v61 = vunpack.c.h.bf16 %v9168_v3  ;;  %v8496_v42 = vunpack.c.l.bf16 %v9160_v49 }
 0xb35   :  { %v6141_v17 = vsel %vm6063_vm7, %v6139_v0, %v6140_v19  ;;  %v5996_v47 = vadd.f32 %v13521_v40, %v5979_v6  ;;  %7262 = vmatpush.msra.mxu0 %v8732_v18  ;;  %v6003_v32 = vadd.f32 %v13521_v40, %v5986_v54  ;;  %v6004_v12 = vadd.f32 %v13521_v40, %v5987_v31  ;;  %v13872_v6 = vld [vmem:[%s14205_s1 + $0x7a8] sm:$0xff]  }
 0xb36   :  { %v6142_v14 = vsel %vm6065_vm8, %v6139_v0, %v6141_v17  ;;  %7282 = vmatpush.msra.mxu1 %v8764_v11  ;;  %v6011_v22 = vmax.f32 %v5995_v16, 0.0  ;;  %v8528_v5 = vunpack.c.l.bf16 %v9168_v3  ;;  %v8493_v34 = vunpack.c.h.bf16 %v13858_v44 }
 0xb37   :  { %v6143_v45 = vsel %vm6067_vm9, %v6139_v0, %v6142_v14  ;;  %v6012_v60 = vmax.f32 %v5996_v47, 0.0  ;;  %v6019_v13 = vmax.f32 %v6003_v32, 0.0  ;;  %v6020_v58 = vmax.f32 %v6004_v12, 0.0 }
 0xb38   :  { %6145 = vst [vmem:[#allocation6 + $0x6] sm:$0x3] %v6143_v45  ;;  %v8525_v37 = vunpack.c.h.bf16 %v13863_v41  ;;  %v8492_v18 = vunpack.c.l.bf16 %v13858_v44  ;;  %v8524_v19 = vunpack.c.l.bf16 %v13863_v41  ;;  %v13877_v45 = vld [vmem:[%s14205_s1 + $0x7e8] sm:$0xff]  }
 0xb39   :  { %6027 = vst [vmem:[#allocation5 + $0x20] sm:$0xff] %v6011_v22 }
 0xb3a   :  { %6028 = vst [vmem:[#allocation5 + $0x28] sm:$0xff] %v6012_v60 }
 0xb3b   :  { %6035 = vst [vmem:[#allocation5 + $0x60] sm:$0xff] %v6019_v13  ;;  %v8489_v13 = vunpack.c.h.bf16 %v13872_v6 }
 0xb3c   :  { %6036 = vst [vmem:[#allocation5 + $0x68] sm:$0xff] %v6020_v58  ;;  %v8521_v58 = vunpack.c.h.bf16 %v13877_v45 }
 0xb3f   :  { %v6452_v9 = vld [vmem:[#allocation6] sm:$0xff] }
 0xb40   :  { %6974 = vst [vmem:[#allocation1] ss:$4 sm:$0xff] %v6452_v9  ;;  %v6249_v43 = vld [vmem:[#allocation5 + $0x20] sm:$0x1]  ;;  %v6251_v51 = vld [vmem:[#allocation5 + $0x21] sm:$0x1]  ;;  %v8488_v9 = vunpack.c.l.bf16 %v13872_v6  ;;  %v5977_v6 = vmul.f32 %v13513_v46, %v13416_v57 }
 0xb41   :  { %v6275_v50 = vld [vmem:[#allocation5 + $0x22] sm:$0x1]  ;;  %v6254_v63 = vld [vmem:[#allocation5 + $0x28] sm:$0x1]  ;;  %v6256_v33 = vld [vmem:[#allocation5 + $0x29] sm:$0x1]  ;;  %v6258_v48 = vmax.f32 %v6249_v43, %v6251_v51 }
 0xb42   :  { %v6277_v24 = vld [vmem:[#allocation5 + $0x23] sm:$0x1]  ;;  %v6250_v10 = vld [vmem:[#allocation5 + $0x60] sm:$0x1]  ;;  %v6252_v35 = vld [vmem:[#allocation5 + $0x61] sm:$0x1]  ;;  %v6260_v30 = vmax.f32 %v6254_v63, %v6256_v33  ;;  %v5994_v57 = vadd.f32 %v13521_v40, %v5977_v6 }
 0xb43   :  { %v6276_v2 = vld [vmem:[#allocation5 + $0x62] sm:$0x1]  ;;  %v6255_v39 = vld [vmem:[#allocation5 + $0x68] sm:$0x1]  ;;  %v6257_v25 = vld [vmem:[#allocation5 + $0x69] sm:$0x1]  ;;  %v6259_v15 = vmax.f32 %v6250_v10, %v6252_v35  ;;  %v6283_v8 = vmax.f32 %v6275_v50, %v6277_v24 }
 0xb44   :  { %v6278_v55 = vld [vmem:[#allocation5 + $0x63] sm:$0x1]  ;;  %v6261_v7 = vmax.f32 %v6255_v39, %v6257_v25  ;;  %v6279_v4 = vld [vmem:[#allocation5 + $0x2a] sm:$0x1]  ;;  %v6281_v23 = vld [vmem:[#allocation5 + $0x2b] sm:$0x1]  ;;  %v6262_v11 = vmax.f32 %v6258_v48, %v6260_v30 }
 0xb45   :  { %v6280_v28 = vld [vmem:[#allocation5 + $0x6a] sm:$0x1]  ;;  %v6284_v21 = vmax.f32 %v6276_v2, %v6278_v55  ;;  %v6282_v38 = vld [vmem:[#allocation5 + $0x6b] sm:$0x1]  ;;  %v6285_v27 = vmax.f32 %v6279_v4, %v6281_v23  ;;  %v6300_v52 = vld [vmem:[#allocation5 + $0x24] sm:$0x1]  ;;  %v8520_v2 = vunpack.c.l.bf16 %v13877_v45 }
 0xb46   :  { %v6301_v62 = vld [vmem:[#allocation5 + $0x64] sm:$0x1]  ;;  %v6263_v0 = vmax.f32 %v6259_v15, %v6261_v7  ;;  %v6286_v59 = vmax.f32 %v6280_v28, %v6282_v38  ;;  %v6302_v26 = vld [vmem:[#allocation5 + $0x25] sm:$0x1]  ;;  %v6304_v16 = vld [vmem:[#allocation5 + $0x2c] sm:$0x1] }
 0xb47   :  { %v6977_v1 = vld.sshfl [vmem:[#allocation1] sm:$0xff pattern:$0x73625140]  ;;  %v6978_v36 = vld.sshfl [vmem:[#allocation1 + $0x8] sm:$0xff pattern:$0x73625140]  ;;  %v6287_v54 = vmax.f32 %v6283_v8, %v6285_v27  ;;  %v6308_v47 = vmax.f32 %v6300_v52, %v6302_v26 }
 0xb48   :  { %7027 = vmatmul.f32.vlgmr.msra.gmra.mxu2 %v6977_v1  ;;  %7047 = vmatmul.f32.vlgmr.msra.gmra.mxu3 %v6978_v36  ;;  %v6268_v17 = vrot.slane %v6263_v0, 7  ;;  %v6288_v31 = vmax.f32 %v6284_v21, %v6286_v59  ;;  %v6303_v14 = vld [vmem:[#allocation5 + $0x65] sm:$0x1]  ;;  %v6305_v32 = vld [vmem:[#allocation5 + $0x6c] sm:$0x1]  ;;  %v9217_v1 = vld [vmem:[%s14205_s1 + $0x980] sm:$0xff]  }
 0xb49   :  { %7091 = vmatpush.msra.mxu2 %v8497_v20  ;;  %7111 = vmatpush.msra.mxu3 %v8529_v61  ;;  %v6306_v12 = vld [vmem:[#allocation5 + $0x2d] sm:$0x1]  ;;  %v6309_v60 = vmax.f32 %v6301_v62, %v6303_v14  ;;  %v6325_v50 = vld [vmem:[#allocation5 + $0x26] sm:$0x1]  ;;  %v6327_v24 = vld [vmem:[#allocation5 + $0x27] sm:$0x1]  ;;  %v13890_v20 = vmul.f32 %v13513_v46, %v13414_v29 }
 0xb4a   :  { %v6307_v22 = vld [vmem:[#allocation5 + $0x6d] sm:$0x1]  ;;  %v6269_v49 = vsel %vm6061_vm6, %v6268_v17, %v6262_v11  ;;  %v6293_v3 = vrot.slane %v6288_v31, 7  ;;  %v6310_v43 = vmax.f32 %v6304_v16, %v6306_v12  ;;  %v6326_v44 = vld [vmem:[#allocation5 + $0x66] sm:$0x1]  ;;  %v6333_v8 = vmax.f32 %v6325_v50, %v6327_v24  ;;  %v9165_v62 = vld [vmem:[%s14205_s1 + $0x7e0] sm:$0xff]  }
 0xb4b   :  { %7092 = vmatpush.msra.mxu2 %v8496_v42  ;;  %7112 = vmatpush.msra.mxu3 %v8528_v5  ;;  %v6311_v51 = vmax.f32 %v6305_v32, %v6307_v22  ;;  %v9218_v63 = vld [vmem:[%s14205_s1 + $0x988] sm:$0xff]   ;;  %v6270_v33 = vsel %vm6063_vm7, %v6268_v17, %v6269_v49  ;;  %v6329_v10 = vld [vmem:[#allocation5 + $0x2e] sm:$0x1]  ;;  %v6331_v55 = vld [vmem:[#allocation5 + $0x2f] sm:$0x1]  ;;  %v8517_v11 = vunpack.c.h.bf16 %v9165_v62  ;;  %v8725_v31 = vunpack.c.h.bf16 %v9217_v1 }
 0xb4c   :  { %v6328_v41 = vld [vmem:[#allocation5 + $0x67] sm:$0x1]  ;;  %v8729_v35 = vunpack.c.h.bf16 %v9218_v63  ;;  %v6979_v39 = vld.sshfl [vmem:[#allocation1 + $0x10] sm:$0xff pattern:$0x73625140]  ;;  %v6271_v25 = vsel %vm6065_vm8, %v6268_v17, %v6270_v33  ;;  %v6294_v48 = vsel %vm6061_vm6, %v6293_v3, %v6287_v54  ;;  %v6312_v15 = vmax.f32 %v6308_v47, %v6310_v43  ;;  %v9157_v42 = vld [vmem:[%s14205_s1 + $0x7a0] sm:$0xff]  }
 0xb4d   :  { %7093 = vmatpush.msra.mxu2 %v8493_v34  ;;  %7113 = vmatpush.msra.mxu3 %v8525_v37  ;;  %v6330_v30 = vld [vmem:[#allocation5 + $0x6e] sm:$0x1]  ;;  %v6332_v61 = vld [vmem:[#allocation5 + $0x6f] sm:$0x1]  ;;  %v8728_v7 = vunpack.c.l.bf16 %v9218_v63  ;;  %v6272_v4 = vsel %vm6067_vm9, %v6268_v17, %v6271_v25  ;;  %v6295_v28 = vsel %vm6063_vm7, %v6293_v3, %v6294_v48  ;;  %v6313_v23 = vmax.f32 %v6309_v60, %v6311_v51  ;;  %v9226_v21 = vld [vmem:[%s14205_s1 + $0x9c8] sm:$0xff]  }
 0xb4e   :  { %v6980_v29 = vld.sshfl [vmem:[#allocation1 + $0x18] sm:$0xff pattern:$0x73625140]  ;;  %7263 = vmatpush.msra.mxu0 %v8729_v35  ;;  %6274 = vst [vmem:[#allocation6 + $0x10] sm:$0x3] %v6272_v4  ;;  %v6296_v38 = vsel %vm6065_vm8, %v6293_v3, %v6295_v28  ;;  %v6334_v27 = vmax.f32 %v6326_v44, %v6328_v41  ;;  %v6335_v52 = vmax.f32 %v6329_v10, %v6331_v55  ;;  %v9225_v36 = vld [vmem:[%s14205_s1 + $0x9c0] sm:$0xff]   ;;  %v8761_v59 = vunpack.c.h.bf16 %v9226_v21 }
 0xb4f   :  { %7094 = vmatpush.msra.mxu2 %v8492_v18  ;;  %7114 = vmatpush.msra.mxu3 %v8524_v19  ;;  %v6297_v5 = vsel %vm6067_vm9, %v6293_v3, %v6296_v38  ;;  %v6318_v34 = vrot.slane %v6313_v23, 7  ;;  %v6336_v0 = vmax.f32 %v6330_v30, %v6332_v61  ;;  %v8760_v18 = vunpack.c.l.bf16 %v9226_v21  ;;  %v13916_v26 = vld [vmem:[%s14205_s1 + $0x798] sm:$0xff]  }
 0xb50   :  { %7067 = vmatmul.f32.vlgmr.msrb.gmra.mxu2 %v6979_v39  ;;  %7087 = vmatmul.f32.vlgmr.msrb.gmra.mxu3 %v6980_v29  ;;  %6299 = vst [vmem:[#allocation6 + $0x12] sm:$0x3] %v6297_v5  ;;  %v6337_v37 = vmax.f32 %v6333_v8, %v6335_v52  ;;  %v8485_v19 = vunpack.c.h.bf16 %v9157_v42  ;;  %v8757_v14 = vunpack.c.h.bf16 %v9225_v36  ;;  %v13922_v16 = vld [vmem:[%s14205_s1 + $0x7d8] sm:$0xff]   ;;  %v8484_v45 = vunpack.c.l.bf16 %v9157_v42 }
 0xb51   :  { %7095 = vmatpush.msra.mxu2 %v8489_v13  ;;  %7115 = vmatpush.msra.mxu3 %v8521_v58  ;;  %v6319_v17 = vsel %vm6061_vm6, %v6318_v34, %v6312_v15  ;;  %v6338_v54 = vmax.f32 %v6334_v27, %v6336_v0  ;;  %v8516_v32 = vunpack.c.l.bf16 %v9165_v62  ;;  %v8724_v12 = vunpack.c.l.bf16 %v9217_v1 }
 0xb52   :  { %7283 = vmatpush.msra.mxu1 %v8761_v59  ;;  %7264 = vmatpush.msra.mxu0 %v8728_v7  ;;  %v6320_v47 = vsel %vm6063_vm7, %v6318_v34, %v6319_v17  ;;  %v8756_v13 = vunpack.c.l.bf16 %v9225_v36  ;;  %v8481_v58 = vunpack.c.h.bf16 %v13916_v26  ;;  %v8513_v3 = vunpack.c.h.bf16 %v13922_v16 }
 0xb53   :  { %7096 = vmatpush.msra.mxu2 %v8488_v9  ;;  %7116 = vmatpush.msra.mxu3 %v8520_v2  ;;  %v6321_v22 = vsel %vm6065_vm8, %v6318_v34, %v6320_v47  ;;  %v6343_v60 = vrot.slane %v6338_v54, 7  ;;  %v5984_v9 = vmul.f32 %v13513_v46, %v13481_v53  ;;  %v5985_v51 = vmul.f32 %v13513_v46, %v13486_v56 }
 0xb54   :  { %7284 = vmatpush.msra.mxu1 %v8760_v18  ;;  %7265 = vmatpush.msra.mxu0 %v8725_v31  ;;  %v6322_v49 = vsel %vm6067_vm9, %v6318_v34, %v6321_v22  ;;  %v5993_v50 = vadd.f32 %v13521_v40, %v13890_v20  ;;  %v6010_v56 = vmax.f32 %v5994_v57, 0.0 }
 0xb55   :  { %7097 = vmatpush.msra.mxu2 %v8485_v19  ;;  %7117 = vmatpush.msra.mxu3 %v8517_v11  ;;  %6324 = vst [vmem:[#allocation6 + $0x14] sm:$0x3] %v6322_v49  ;;  %v6344_v43 = vsel %vm6061_vm6, %v6343_v60, %v6337_v37  ;;  %v6001_v63 = vadd.f32 %v13521_v40, %v5984_v9 }
 0xb56   :  { %7285 = vmatpush.msra.mxu1 %v8757_v14  ;;  %7266 = vmatpush.msra.mxu0 %v8724_v12  ;;  %v6345_v44 = vsel %vm6063_vm7, %v6343_v60, %v6344_v43  ;;  %v6002_v33 = vadd.f32 %v13521_v40, %v5985_v51  ;;  %v6009_v24 = vmax.f32 %v5993_v50, 0.0  ;;  %6026 = vst [vmem:[#allocation5 + $0x18] sm:$0xff] %v6010_v56 }
 0xb57   :  { %7098 = vmatpush.msra.mxu2 %v8484_v45  ;;  %7118 = vmatpush.msra.mxu3 %v8516_v32  ;;  %v6346_v53 = vsel %vm6065_vm8, %v6343_v60, %v6345_v44  ;;  %v6017_v46 = vmax.f32 %v6001_v63, 0.0 }
 0xb58   :  { %7286 = vmatpush.msra.mxu1 %v8756_v13  ;;  %v6347_v41 = vsel %vm6067_vm9, %v6343_v60, %v6346_v53  ;;  %v6018_v10 = vmax.f32 %v6002_v33, 0.0  ;;  %6025 = vst [vmem:[#allocation5 + $0x10] sm:$0xff] %v6009_v24 }
 0xb59   :  { %7099 = vmatpush.msra.mxu2 %v8481_v58  ;;  %7119 = vmatpush.msra.mxu3 %v8513_v3  ;;  %6349 = vst [vmem:[#allocation6 + $0x16] sm:$0x3] %v6347_v41 }
 0xb5a   :  { %6033 = vst [vmem:[#allocation5 + $0x50] sm:$0xff] %v6017_v46 }
 0xb5b   :  { %6034 = vst [vmem:[#allocation5 + $0x58] sm:$0xff] %v6018_v10 }
 0xb5d   :  { %v6152_v39 = vld [vmem:[#allocation5 + $0x18] sm:$0x1]  ;;  %v6154_v25 = vld [vmem:[#allocation5 + $0x19] sm:$0x1]  ;;  %v6177_v21 = vld [vmem:[#allocation5 + $0x1a] sm:$0x1] }
 0xb5e   :  { %v6158_v23 = vmax.f32 %v6152_v39, %v6154_v25  ;;  %v6179_v38 = vld [vmem:[#allocation5 + $0x1b] sm:$0x1]  ;;  %v6202_v31 = vld [vmem:[#allocation5 + $0x1c] sm:$0x1]  ;;  %v6204_v32 = vld [vmem:[#allocation5 + $0x1d] sm:$0x1] }
 0xb5f   :  { %v6147_v2 = vld [vmem:[#allocation5 + $0x10] sm:$0x1]  ;;  %v6149_v20 = vld [vmem:[#allocation5 + $0x11] sm:$0x1]  ;;  %v6173_v40 = vld [vmem:[#allocation5 + $0x12] sm:$0x1]  ;;  %v6183_v5 = vmax.f32 %v6177_v21, %v6179_v38  ;;  %v6208_v49 = vmax.f32 %v6202_v31, %v6204_v32 }
 0xb60   :  { %v6454_v35 = vld [vmem:[#allocation6 + $0x10] sm:$0xff]  ;;  %v6156_v28 = vmax.f32 %v6147_v2, %v6149_v20  ;;  %v6227_v50 = vld [vmem:[#allocation5 + $0x1e] sm:$0x1]  ;;  %v6229_v33 = vld [vmem:[#allocation5 + $0x1f] sm:$0x1] }
 0xb61   :  { %6985 = vst [vmem:[#allocation1] ss:$4 sm:$0xff] %v6454_v35  ;;  %v6148_v48 = vld [vmem:[#allocation5 + $0x50] sm:$0x1]  ;;  %v6150_v15 = vld [vmem:[#allocation5 + $0x51] sm:$0x1]  ;;  %v6233_v35 = vmax.f32 %v6227_v50, %v6229_v33 }
 0xb62   :  { %v6174_v30 = vld [vmem:[#allocation5 + $0x52] sm:$0x1]  ;;  %v6153_v55 = vld [vmem:[#allocation5 + $0x58] sm:$0x1]  ;;  %v6155_v61 = vld [vmem:[#allocation5 + $0x59] sm:$0x1]  ;;  %v6157_v7 = vmax.f32 %v6148_v48, %v6150_v15  ;;  %v6160_v11 = vmax.f32 %v6156_v28, %v6158_v23 }
 0xb63   :  { %v6175_v4 = vld [vmem:[#allocation5 + $0x13] sm:$0x1]  ;;  %v6159_v8 = vmax.f32 %v6153_v55, %v6155_v61  ;;  %v6178_v42 = vld [vmem:[#allocation5 + $0x5a] sm:$0x1]  ;;  %v6180_v27 = vld [vmem:[#allocation5 + $0x5b] sm:$0x1]  ;;  %v8480_v61 = vunpack.c.l.bf16 %v13916_v26 }
 0xb64   :  { %v6176_v29 = vld [vmem:[#allocation5 + $0x53] sm:$0x1]  ;;  %v6181_v52 = vmax.f32 %v6173_v40, %v6175_v4  ;;  %v6198_v1 = vld [vmem:[#allocation5 + $0x14] sm:$0x1]  ;;  %v6184_v34 = vmax.f32 %v6178_v42, %v6180_v27  ;;  %v6200_v59 = vld [vmem:[#allocation5 + $0x15] sm:$0x1] }
 0xb65   :  { %v6182_v62 = vmax.f32 %v6174_v30, %v6176_v29  ;;  %v6161_v36 = vmax.f32 %v6157_v7, %v6159_v8  ;;  %v6199_v0 = vld [vmem:[#allocation5 + $0x54] sm:$0x1]  ;;  %v6201_v37 = vld [vmem:[#allocation5 + $0x55] sm:$0x1]  ;;  %v6203_v14 = vld [vmem:[#allocation5 + $0x5c] sm:$0x1]  ;;  %v6206_v22 = vmax.f32 %v6198_v1, %v6200_v59  ;;  %v8512_v7 = vunpack.c.l.bf16 %v13922_v16  ;;  %7100 = vmatpush.msra.mxu2 %v8480_v61 }
 0xb66   :  { %v6207_v47 = vmax.f32 %v6199_v0, %v6201_v37  ;;  %v6185_v45 = vmax.f32 %v6181_v52, %v6183_v5  ;;  %v6205_v12 = vld [vmem:[#allocation5 + $0x5d] sm:$0x1]  ;;  %v6223_v60 = vld [vmem:[#allocation5 + $0x16] sm:$0x1]  ;;  %v6225_v9 = vld [vmem:[#allocation5 + $0x17] sm:$0x1] }
 0xb67   :  { %v6166_v17 = vrot.slane %v6161_v36, 7  ;;  %v6186_v54 = vmax.f32 %v6182_v62, %v6184_v34  ;;  %v6209_v3 = vmax.f32 %v6203_v14, %v6205_v12  ;;  %v6224_v6 = vld [vmem:[#allocation5 + $0x56] sm:$0x1]  ;;  %v6226_v51 = vld [vmem:[#allocation5 + $0x57] sm:$0x1]  ;;  %v6231_v41 = vmax.f32 %v6223_v60, %v6225_v9  ;;  %v9155_v4 = vld [vmem:[%s14205_s1 + $0x790] sm:$0xff]   ;;  %7120 = vmatpush.msra.mxu3 %v8512_v7 }
 0xb68   :  { %v6987_v18 = vld.sshfl [vmem:[#allocation1] sm:$0xff pattern:$0x73625140]  ;;  %v6988_v19 = vld.sshfl [vmem:[#allocation1 + $0x8] sm:$0xff pattern:$0x73625140]  ;;  %v6232_v10 = vmax.f32 %v6224_v6, %v6226_v51  ;;  %v6210_v20 = vmax.f32 %v6206_v22, %v6208_v49  ;;  %v8477_v29 = vunpack.c.h.bf16 %v9155_v4  ;;  %v8476_v38 = vunpack.c.l.bf16 %v9155_v4 }
 0xb69   :  { %7187 = vmatmul.f32.vlgmr.msrb.gmra.mxu0 %v6987_v18  ;;  %7207 = vmatmul.f32.vlgmr.msrb.gmra.mxu1 %v6988_v19  ;;  %v6167_v13 = vsel %vm6061_vm6, %v6166_v17, %v6160_v11  ;;  %v6191_v58 = vrot.slane %v6186_v54, 7  ;;  %v6228_v44 = vld [vmem:[#allocation5 + $0x5e] sm:$0x1]  ;;  %v6211_v53 = vmax.f32 %v6207_v47, %v6209_v3  ;;  %v6230_v24 = vld [vmem:[#allocation5 + $0x5f] sm:$0x1]  ;;  %v6235_v55 = vmax.f32 %v6231_v41, %v6233_v35  ;;  %v9163_v28 = vld [vmem:[%s14205_s1 + $0x7d0] sm:$0xff]  }
 0xb6a   :  { %v6168_v43 = vsel %vm6063_vm7, %v6166_v17, %v6167_v13  ;;  %v6234_v25 = vmax.f32 %v6228_v44, %v6230_v24  ;;  %v8509_v21 = vunpack.c.h.bf16 %v9163_v28  ;;  %v9154_v42 = vld [vmem:[%s14205_s1 + $0x788] sm:$0xff]   ;;  %v8508_v27 = vunpack.c.l.bf16 %v9163_v28  ;;  %7101 = vmatpush.msra.mxu2 %v8477_v29  ;;  %v9153_v34 = vld [vmem:[%s14205_s1 + $0x780] sm:$0xff]   ;;  %v9184_v54 = vld [vmem:[%s14205_s1 + $0x878] sm:$0xff]  }
 0xb6b   :  { %v6169_v57 = vsel %vm6065_vm8, %v6166_v17, %v6168_v43  ;;  %v6192_v63 = vsel %vm6061_vm6, %v6191_v58, %v6185_v45  ;;  %v6216_v39 = vrot.slane %v6211_v53, 7  ;;  %v9162_v26 = vld [vmem:[%s14205_s1 + $0x7c8] sm:$0xff]   ;;  %v8473_v1 = vunpack.c.h.bf16 %v9154_v42  ;;  %v9161_v0 = vld [vmem:[%s14205_s1 + $0x7c0] sm:$0xff]   ;;  %v9175_v32 = vld [vmem:[%s14205_s1 + $0x830] sm:$0xff]  }
 0xb6c   :  { %v6170_v56 = vsel %vm6067_vm9, %v6166_v17, %v6169_v57  ;;  %v6193_v46 = vsel %vm6063_vm7, %v6191_v58, %v6192_v63  ;;  %v6236_v15 = vmax.f32 %v6232_v10, %v6234_v25  ;;  %7121 = vmatpush.msra.mxu3 %v8509_v21  ;;  %v8505_v36 = vunpack.c.h.bf16 %v9162_v26  ;;  %7102 = vmatpush.msra.mxu2 %v8476_v38  ;;  %v9176_v17 = vld [vmem:[%s14205_s1 + $0x838] sm:$0xff]   ;;  %v9183_v12 = vld [vmem:[%s14205_s1 + $0x870] sm:$0xff]   ;;  %v9174_v9 = vld [vmem:[%s14205_s1 + $0x828] sm:$0xff]  }
 0xb6d   :  { %6172 = vst [vmem:[#allocation6 + $0x8] sm:$0x3] %v6170_v56  ;;  %v6194_v2 = vsel %vm6065_vm8, %v6191_v58, %v6193_v46  ;;  %v6217_v48 = vsel %vm6061_vm6, %v6216_v39, %v6210_v20  ;;  %v8472_v37 = vunpack.c.l.bf16 %v9154_v42  ;;  %v8504_v18 = vunpack.c.l.bf16 %v9162_v26  ;;  %v9182_v43 = vld [vmem:[%s14205_s1 + $0x868] sm:$0xff]   ;;  %v6455_v44 = vld [vmem:[#allocation6 + $0x18] sm:$0xff]  ;;  %v9180_v25 = vld [vmem:[%s14205_s1 + $0x858] sm:$0xff]  }
 0xb6e   :  { %v6195_v40 = vsel %vm6067_vm9, %v6191_v58, %v6194_v2  ;;  %v6218_v30 = vsel %vm6063_vm7, %v6216_v39, %v6217_v48  ;;  %v6241_v8 = vrot.slane %v6236_v15, 7  ;;  %7122 = vmatpush.msra.mxu3 %v8508_v27  ;;  %7103 = vmatpush.msra.mxu2 %v8473_v1  ;;  %v8469_v19 = vunpack.c.h.bf16 %v9153_v34  ;;  %v9173_v57 = vld [vmem:[%s14205_s1 + $0x820] sm:$0xff]   ;;  %v9171_v15 = vld [vmem:[%s14205_s1 + $0x810] sm:$0xff]   ;;  %v9178_v29 = vld [vmem:[%s14205_s1 + $0x848] sm:$0xff]  }
 0xb6f   :  { %6197 = vst [vmem:[#allocation6 + $0xa] sm:$0x3] %v6195_v40  ;;  %v6219_v23 = vsel %vm6065_vm8, %v6216_v39, %v6218_v30  ;;  %v8501_v11 = vunpack.c.h.bf16 %v9161_v0  ;;  %v8468_v31 = vunpack.c.l.bf16 %v9153_v34  ;;  %v8500_v14 = vunpack.c.l.bf16 %v9161_v0  ;;  %v9181_v63 = vld [vmem:[%s14205_s1 + $0x860] sm:$0xff]   ;;  %v9179_v30 = vld [vmem:[%s14205_s1 + $0x850] sm:$0xff]   ;;  %v9216_v34 = vld [vmem:[%s14205_s1 + $0x978] sm:$0xff]  }
 0xb70   :  { %v6220_v16 = vsel %vm6067_vm9, %v6216_v39, %v6219_v23  ;;  %v6242_v52 = vsel %vm6061_vm6, %v6241_v8, %v6235_v55  ;;  %7123 = vmatpush.msra.mxu3 %v8505_v36  ;;  %7104 = vmatpush.msra.mxu2 %v8472_v37  ;;  %v8561_v47 = vunpack.c.h.bf16 %v9176_v17  ;;  %v8593_v45 = vunpack.c.h.bf16 %v9184_v54  ;;  %v9172_v39 = vld [vmem:[%s14205_s1 + $0x818] sm:$0xff]   ;;  %v9169_v38 = vld [vmem:[%s14205_s1 + $0x800] sm:$0xff]  }
 0xb71   :  { %6222 = vst [vmem:[#allocation6 + $0xc] sm:$0x3] %v6220_v16  ;;  %v6243_v62 = vsel %vm6063_vm7, %v6241_v8, %v6242_v52  ;;  %v8560_v22 = vunpack.c.l.bf16 %v9176_v17  ;;  %v8592_v60 = vunpack.c.l.bf16 %v9184_v54  ;;  %v8557_v58 = vunpack.c.h.bf16 %v9175_v32  ;;  %v9177_v27 = vld [vmem:[%s14205_s1 + $0x840] sm:$0xff]  }
 0xb72   :  { %v6244_v5 = vsel %vm6065_vm8, %v6241_v8, %v6243_v62  ;;  %7124 = vmatpush.msra.mxu3 %v8504_v18  ;;  %7105 = vmatpush.msra.mxu2 %v8469_v19  ;;  %v8589_v49 = vunpack.c.h.bf16 %v9183_v12  ;;  %v8556_v3 = vunpack.c.l.bf16 %v9175_v32  ;;  %v8588_v6 = vunpack.c.l.bf16 %v9183_v12  ;;  %v9207_v19 = vld [vmem:[%s14205_s1 + $0x930] sm:$0xff]  }
 0xb73   :  { %v6245_v59 = vsel %vm6067_vm9, %v6241_v8, %v6244_v5  ;;  %v8553_v51 = vunpack.c.h.bf16 %v9174_v9  ;;  %v8585_v50 = vunpack.c.h.bf16 %v9182_v43  ;;  %v8552_v24 = vunpack.c.l.bf16 %v9174_v9  ;;  %v9170_v8 = vld [vmem:[%s14205_s1 + $0x808] sm:$0xff]   ;;  %v9208_v5 = vld [vmem:[%s14205_s1 + $0x938] sm:$0xff]  }
 0xb74   :  { %6247 = vst [vmem:[#allocation6 + $0xe] sm:$0x3] %v6245_v59  ;;  %7125 = vmatpush.msra.mxu3 %v8501_v11  ;;  %7106 = vmatpush.msra.mxu2 %v8468_v31  ;;  %v8584_v41 = vunpack.c.l.bf16 %v9182_v43  ;;  %v8549_v10 = vunpack.c.h.bf16 %v9173_v57  ;;  %v8581_v35 = vunpack.c.h.bf16 %v9181_v63  ;;  %v8548_v2 = vunpack.c.l.bf16 %v9173_v57  ;;  %v9215_v11 = vld [vmem:[%s14205_s1 + $0x970] sm:$0xff]   ;;  %v9204_v43 = vld [vmem:[%s14205_s1 + $0x918] sm:$0xff]  }
 0xb75   :  { %v8580_v20 = vunpack.c.l.bf16 %v9181_v63  ;;  %v8545_v40 = vunpack.c.h.bf16 %v9172_v39  ;;  %v8577_v48 = vunpack.c.h.bf16 %v9180_v25  ;;  %v8544_v7 = vunpack.c.l.bf16 %v9172_v39 }
 0xb76   :  { %7126 = vmatpush.msra.mxu3 %v8500_v14  ;;  %7131 = vmatpush.msrb.mxu2 %v8561_v47  ;;  %v8576_v4 = vunpack.c.l.bf16 %v9180_v25  ;;  %v8541_v28 = vunpack.c.h.bf16 %v9171_v15  ;;  %v8573_v23 = vunpack.c.h.bf16 %v9179_v30  ;;  %v8540_v21 = vunpack.c.l.bf16 %v9171_v15  ;;  %v9206_v47 = vld [vmem:[%s14205_s1 + $0x928] sm:$0xff]  }
 0xb77   :  { %v8572_v42 = vunpack.c.l.bf16 %v9179_v30  ;;  %v8537_v26 = vunpack.c.h.bf16 %v9170_v8  ;;  %v8569_v16 = vunpack.c.h.bf16 %v9178_v29  ;;  %v8536_v52 = vunpack.c.l.bf16 %v9170_v8 }
 0xb78   :  { %7151 = vmatpush.msrb.mxu3 %v8593_v45  ;;  %7132 = vmatpush.msrb.mxu2 %v8560_v22  ;;  %v8568_v62 = vunpack.c.l.bf16 %v9178_v29  ;;  %v8533_v1 = vunpack.c.h.bf16 %v9169_v38  ;;  %v8565_v36 = vunpack.c.h.bf16 %v9177_v27  ;;  %v8532_v0 = vunpack.c.l.bf16 %v9169_v38  ;;  %v9214_v45 = vld [vmem:[%s14205_s1 + $0x968] sm:$0xff]  }
 0xb79   :  { %v8564_v59 = vunpack.c.l.bf16 %v9177_v27  ;;  %v8689_v37 = vunpack.c.h.bf16 %v9208_v5  ;;  %v8721_v18 = vunpack.c.h.bf16 %v9216_v34  ;;  %v8688_v17 = vunpack.c.l.bf16 %v9208_v5 }
 0xb7a   :  { %7152 = vmatpush.msrb.mxu3 %v8592_v60  ;;  %7133 = vmatpush.msrb.mxu2 %v8557_v58  ;;  %v8720_v54 = vunpack.c.l.bf16 %v9216_v34  ;;  %v8685_v31 = vunpack.c.h.bf16 %v9207_v19  ;;  %v8717_v14 = vunpack.c.h.bf16 %v9215_v11  ;;  %v8684_v32 = vunpack.c.l.bf16 %v9207_v19  ;;  %v9213_v58 = vld [vmem:[%s14205_s1 + $0x960] sm:$0xff]  }
 0xb7b   :  { %v6453_v13 = vld [vmem:[#allocation6 + $0x8] sm:$0xff]  ;;  %v8716_v12 = vunpack.c.l.bf16 %v9215_v11  ;;  %v8681_v22 = vunpack.c.h.bf16 %v9206_v47  ;;  %v8713_v60 = vunpack.c.h.bf16 %v9214_v45  ;;  %v8709_v9 = vunpack.c.h.bf16 %v9213_v58 }
 0xb7c   :  { %6976 = vst [vmem:[#allocation1 + $0x20] ss:$4 sm:$0xff] %v6453_v13  ;;  %7153 = vmatpush.msrb.mxu3 %v8589_v49  ;;  %7134 = vmatpush.msrb.mxu2 %v8556_v3  ;;  %v9205_v13 = vld [vmem:[%s14205_s1 + $0x920] sm:$0xff]   ;;  %v8680_v49 = vunpack.c.l.bf16 %v9206_v47  ;;  %v8712_v3 = vunpack.c.l.bf16 %v9214_v45  ;;  %v8673_v57 = vunpack.c.h.bf16 %v9204_v43 }
 0xb7e   :  { %7154 = vmatpush.msrb.mxu3 %v8588_v6  ;;  %7135 = vmatpush.msrb.mxu2 %v8553_v51  ;;  %v8677_v6 = vunpack.c.h.bf16 %v9205_v13  ;;  %v9212_v51 = vld [vmem:[%s14205_s1 + $0x958] sm:$0xff]  }
 0xb7f   :  { %v8705_v63 = vunpack.c.h.bf16 %v9212_v51 }
 0xb80   :  { %7155 = vmatpush.msrb.mxu3 %v8585_v50  ;;  %7136 = vmatpush.msrb.mxu2 %v8552_v24  ;;  %v8676_v50 = vunpack.c.l.bf16 %v9205_v13  ;;  %v8672_v24 = vunpack.c.l.bf16 %v9204_v43 }
 0xb82   :  { %7156 = vmatpush.msrb.mxu3 %v8584_v41  ;;  %7137 = vmatpush.msrb.mxu2 %v8549_v10  ;;  %v8704_v41 = vunpack.c.l.bf16 %v9212_v51  ;;  %v9202_v10 = vld [vmem:[%s14205_s1 + $0x908] sm:$0xff]  }
 0xb83   :  { %v6981_v53 = vld.sshfl [vmem:[#allocation1 + $0x20] sm:$0xff pattern:$0x73625140]  ;;  %v6982_v33 = vld.sshfl [vmem:[#allocation1 + $0x28] sm:$0xff pattern:$0x73625140]  ;;  %v8665_v39 = vunpack.c.h.bf16 %v9202_v10  ;;  %v8664_v15 = vunpack.c.l.bf16 %v9202_v10 }
 0xb84   :  { %v14006_v56 = vld.sshfl [vmem:[#allocation1 + $0x30] sm:$0xff pattern:$0x73625140]  ;;  %v14008_v46 = vld.sshfl [vmem:[#allocation1 + $0x38] sm:$0xff pattern:$0x73625140]  ;;  %7107 = vmatmul.f32.vlgmr.msra.gmra.mxu2 %v6981_v53  ;;  %7127 = vmatmul.f32.vlgmr.msra.gmra.mxu3 %v6982_v33 }
 0xb85   :  { %6986 = vst [vmem:[#allocation1 + $0x20] ss:$4 sm:$0xff] %v6455_v44  ;;  %7157 = vmatpush.msrb.mxu3 %v8581_v35  ;;  %7138 = vmatpush.msrb.mxu2 %v8548_v2  ;;  %v8708_v44 = vunpack.c.l.bf16 %v9213_v58  ;;  %v9203_v53 = vld [vmem:[%s14205_s1 + $0x910] sm:$0xff]   ;;  %v9210_v35 = vld [vmem:[%s14205_s1 + $0x948] sm:$0xff]  }
 0xb86   :  { %v9211_v33 = vld [vmem:[%s14205_s1 + $0x950] sm:$0xff]   ;;  %v8668_v2 = vunpack.c.l.bf16 %v9203_v53  ;;  %v8697_v25 = vunpack.c.h.bf16 %v9210_v35  ;;  %v8696_v30 = vunpack.c.l.bf16 %v9210_v35 }
 0xb87   :  { %7158 = vmatpush.msrb.mxu3 %v8580_v20  ;;  %7139 = vmatpush.msrb.mxu2 %v8545_v40  ;;  %v8700_v20 = vunpack.c.l.bf16 %v9211_v33  ;;  %v9201_v40 = vld [vmem:[%s14205_s1 + $0x900] sm:$0xff]  }
 0xb89   :  { %7159 = vmatpush.msrb.mxu3 %v8577_v48  ;;  %7140 = vmatpush.msrb.mxu2 %v8544_v7  ;;  %v9209_v48 = vld [vmem:[%s14205_s1 + $0x940] sm:$0xff]   ;;  %v9240_v7 = vld [vmem:[%s14205_s1 + $0xa38] sm:$0xff]  }
 0xb8a   :  { %v8817_v8 = vunpack.c.h.bf16 %v9240_v7  ;;  %v8816_v38 = vunpack.c.l.bf16 %v9240_v7 }
 0xb8b   :  { %7160 = vmatpush.msrb.mxu3 %v8576_v4  ;;  %7141 = vmatpush.msrb.mxu2 %v8541_v28  ;;  %v9248_v4 = vld [vmem:[%s14205_s1 + $0xa78] sm:$0xff]   ;;  %v8660_v28 = vunpack.c.l.bf16 %v9201_v40 }
 0xb8c   :  { %v6991_v55 = vld.sshfl [vmem:[#allocation1 + $0x20] sm:$0xff pattern:$0x73625140]  ;;  %v6992_v61 = vld.sshfl [vmem:[#allocation1 + $0x28] sm:$0xff pattern:$0x73625140]  ;;  %v8849_v29 = vunpack.c.h.bf16 %v9248_v4  ;;  %v8848_v27 = vunpack.c.l.bf16 %v9248_v4 }
 0xb8d   :  { %7267 = vmatmul.f32.vlgmr.msra.gmra.mxu0 %v6991_v55  ;;  %7287 = vmatmul.f32.vlgmr.msra.gmra.mxu1 %v6992_v61  ;;  %v8661_v55 = vunpack.c.h.bf16 %v9201_v40  ;;  %v8693_v61 = vunpack.c.h.bf16 %v9209_v48  ;;  %v6993_v10 = vld.sshfl [vmem:[#allocation1 + $0x30] sm:$0xff pattern:$0x73625140]  ;;  %v6994_v35 = vld.sshfl [vmem:[#allocation1 + $0x38] sm:$0xff pattern:$0x73625140] }
 0xb8e   :  { %7161 = vmatpush.msrb.mxu3 %v8573_v23  ;;  %7142 = vmatpush.msrb.mxu2 %v8540_v21  ;;  %v8692_v23 = vunpack.c.l.bf16 %v9209_v48  ;;  %v9239_v21 = vld [vmem:[%s14205_s1 + $0xa30] sm:$0xff]  }
 0xb8f   :  { %v8812_v5 = vunpack.c.l.bf16 %v9239_v21 }
 0xb90   :  { %7162 = vmatpush.msrb.mxu3 %v8572_v42  ;;  %7143 = vmatpush.msrb.mxu2 %v8537_v26  ;;  %v9247_v42 = vld [vmem:[%s14205_s1 + $0xa70] sm:$0xff]  }
 0xb91   :  { %v6989_v26 = vld.sshfl [vmem:[#allocation1 + $0x10] sm:$0xff pattern:$0x73625140]  ;;  %v8844_v34 = vunpack.c.l.bf16 %v9247_v42 }
 0xb92   :  { %7163 = vmatpush.msrb.mxu3 %v8569_v16  ;;  %7144 = vmatpush.msrb.mxu2 %v8536_v52  ;;  %v6990_v16 = vld.sshfl [vmem:[#allocation1 + $0x18] sm:$0xff pattern:$0x73625140]  ;;  %v8813_v52 = vunpack.c.h.bf16 %v9239_v21 }
 0xb94   :  { %7164 = vmatpush.msrb.mxu3 %v8568_v62  ;;  %7145 = vmatpush.msrb.mxu2 %v8533_v1  ;;  %v8845_v62 = vunpack.c.h.bf16 %v9247_v42  ;;  %v9238_v1 = vld [vmem:[%s14205_s1 + $0xa28] sm:$0xff]  }
 0xb95   :  { %v8808_v19 = vunpack.c.l.bf16 %v9238_v1 }
 0xb96   :  { %7165 = vmatpush.msrb.mxu3 %v8565_v36  ;;  %7146 = vmatpush.msrb.mxu2 %v8532_v0  ;;  %v9246_v36 = vld [vmem:[%s14205_s1 + $0xa68] sm:$0xff]   ;;  %v8809_v0 = vunpack.c.h.bf16 %v9238_v1 }
 0xb97   :  { %7147 = vmatmul.f32.vlgmr.msrb.gmra.mxu2 %v14006_v56  ;;  %v8669_v56 = vunpack.c.h.bf16 %v9203_v53  ;;  %v8840_v11 = vunpack.c.l.bf16 %v9246_v36 }
 0xb98   :  { %7166 = vmatpush.msrb.mxu3 %v8564_v59  ;;  %7211 = vmatpush.msra.mxu2 %v8689_v37  ;;  %v8841_v59 = vunpack.c.h.bf16 %v9246_v36  ;;  %v9237_v37 = vld [vmem:[%s14205_s1 + $0xa20] sm:$0xff]  }
 0xb99   :  { %7167 = vmatmul.f32.vlgmr.msrb.gmra.mxu3 %v14008_v46  ;;  %v8701_v46 = vunpack.c.h.bf16 %v9211_v33  ;;  %v8804_v47 = vunpack.c.l.bf16 %v9237_v37 }
 0xb9a   :  { %7231 = vmatpush.msra.mxu3 %v8721_v18  ;;  %7212 = vmatpush.msra.mxu2 %v8688_v17  ;;  %v9245_v18 = vld [vmem:[%s14205_s1 + $0xa60] sm:$0xff]   ;;  %v8805_v17 = vunpack.c.h.bf16 %v9237_v37 }
 0xb9b   :  { %v8836_v45 = vunpack.c.l.bf16 %v9245_v18 }
 0xb9c   :  { %7232 = vmatpush.msra.mxu3 %v8720_v54  ;;  %7213 = vmatpush.msra.mxu2 %v8685_v31  ;;  %v8837_v54 = vunpack.c.h.bf16 %v9245_v18  ;;  %v9236_v31 = vld [vmem:[%s14205_s1 + $0xa18] sm:$0xff]  }
 0xb9d   :  { %v8800_v13 = vunpack.c.l.bf16 %v9236_v31 }
 0xb9e   :  { %7233 = vmatpush.msra.mxu3 %v8717_v14  ;;  %7214 = vmatpush.msra.mxu2 %v8684_v32  ;;  %v9244_v14 = vld [vmem:[%s14205_s1 + $0xa58] sm:$0xff]   ;;  %v8801_v32 = vunpack.c.h.bf16 %v9236_v31 }
 0xb9f   :  { %v8832_v58 = vunpack.c.l.bf16 %v9244_v14 }
 0xba0   :  { %7234 = vmatpush.msra.mxu3 %v8716_v12  ;;  %7215 = vmatpush.msra.mxu2 %v8681_v22  ;;  %v8833_v12 = vunpack.c.h.bf16 %v9244_v14  ;;  %v9235_v22 = vld [vmem:[%s14205_s1 + $0xa10] sm:$0xff]   ;;  %v9264_v14 = vld [vmem:[%s14205_s1 + $0xaf8] sm:$0xff]  }
 0xba1   :  { %v8796_v43 = vunpack.c.l.bf16 %v9235_v22 }
 0xba2   :  { %7235 = vmatpush.msra.mxu3 %v8713_v60  ;;  %7216 = vmatpush.msra.mxu2 %v8680_v49  ;;  %v9243_v60 = vld [vmem:[%s14205_s1 + $0xa50] sm:$0xff]   ;;  %v8797_v49 = vunpack.c.h.bf16 %v9235_v22  ;;  %v8912_v22 = vunpack.c.l.bf16 %v9264_v14 }
 0xba3   :  { %v8828_v51 = vunpack.c.l.bf16 %v9243_v60 }
 0xba4   :  { %7236 = vmatpush.msra.mxu3 %v8712_v3  ;;  %7217 = vmatpush.msra.mxu2 %v8677_v6  ;;  %v8829_v3 = vunpack.c.h.bf16 %v9243_v60  ;;  %v9234_v6 = vld [vmem:[%s14205_s1 + $0xa08] sm:$0xff]  }
 0xba5   :  { %v8792_v53 = vunpack.c.l.bf16 %v9234_v6 }
 0xba6   :  { %7237 = vmatpush.msra.mxu3 %v8709_v9  ;;  %7218 = vmatpush.msra.mxu2 %v8676_v50  ;;  %v9242_v9 = vld [vmem:[%s14205_s1 + $0xa48] sm:$0xff]   ;;  %v8793_v50 = vunpack.c.h.bf16 %v9234_v6 }
 0xba7   :  { %v8824_v33 = vunpack.c.l.bf16 %v9242_v9 }
 0xba8   :  { %7238 = vmatpush.msra.mxu3 %v8708_v44  ;;  %7219 = vmatpush.msra.mxu2 %v8673_v57  ;;  %v8825_v44 = vunpack.c.h.bf16 %v9242_v9  ;;  %v9233_v57 = vld [vmem:[%s14205_s1 + $0xa00] sm:$0xff]  }
 0xbaa   :  { %7239 = vmatpush.msra.mxu3 %v8705_v63  ;;  %7220 = vmatpush.msra.mxu2 %v8672_v24  ;;  %v9241_v63 = vld [vmem:[%s14205_s1 + $0xa40] sm:$0xff]   ;;  %v8789_v24 = vunpack.c.h.bf16 %v9233_v57 }
 0xbac   :  { %7240 = vmatpush.msra.mxu3 %v8704_v41  ;;  %7221 = vmatpush.msra.mxu2 %v8669_v56  ;;  %v8821_v41 = vunpack.c.h.bf16 %v9241_v63  ;;  %v8788_v56 = vunpack.c.l.bf16 %v9233_v57 }
 0xbae   :  { %7241 = vmatpush.msra.mxu3 %v8701_v46  ;;  %7222 = vmatpush.msra.mxu2 %v8668_v2  ;;  %v8820_v46 = vunpack.c.l.bf16 %v9241_v63  ;;  %v9256_v2 = vld [vmem:[%s14205_s1 + $0xab8] sm:$0xff]  }
 0xbb0   :  { %7242 = vmatpush.msra.mxu3 %v8700_v20  ;;  %7223 = vmatpush.msra.mxu2 %v8665_v39  ;;  %v9255_v20 = vld [vmem:[%s14205_s1 + $0xab0] sm:$0xff]   ;;  %v8881_v39 = vunpack.c.h.bf16 %v9256_v2 }
 0xbb1   :  { %v8877_v48 = vunpack.c.h.bf16 %v9255_v20 }
 0xbb2   :  { %7243 = vmatpush.msra.mxu3 %v8697_v25  ;;  %7224 = vmatpush.msra.mxu2 %v8664_v15  ;;  %v8880_v25 = vunpack.c.l.bf16 %v9256_v2  ;;  %v9254_v15 = vld [vmem:[%s14205_s1 + $0xaa8] sm:$0xff]  }
 0xbb3   :  { %7366 = vmatpush.msrb.mxu0 %v8881_v39  ;;  %v8872_v4 = vunpack.c.l.bf16 %v9254_v15 }
 0xbb4   :  { %7244 = vmatpush.msra.mxu3 %v8696_v30  ;;  %7225 = vmatpush.msra.mxu2 %v8661_v55  ;;  %v8876_v30 = vunpack.c.l.bf16 %v9255_v20  ;;  %v8873_v55 = vunpack.c.h.bf16 %v9254_v15 }
 0xbb5   :  { %7367 = vmatpush.msrb.mxu0 %v8880_v25 }
 0xbb6   :  { %7245 = vmatpush.msra.mxu3 %v8693_v61  ;;  %7226 = vmatpush.msra.mxu2 %v8660_v28  ;;  %v9253_v61 = vld [vmem:[%s14205_s1 + $0xaa0] sm:$0xff]  }
 0xbb7   :  { %7227 = vmatmul.f32.vlgmr.msra.gmra.mxu2 %v6989_v26  ;;  %7368 = vmatpush.msrb.mxu0 %v8877_v48  ;;  %v9271_v28 = vld [vmem:[%s14206_s2 + $0x6] ss:$0 sm:$0xff]  ;;  %v8868_v21 = vunpack.c.l.bf16 %v9253_v61 }
 0xbb8   :  { %7246 = vmatpush.msra.mxu3 %v8692_v23  ;;  %7291 = vmatpush.msrb.mxu2 %v8817_v8  ;;  %v8869_v23 = vunpack.c.h.bf16 %v9253_v61  ;;  %v9252_v8 = vld [vmem:[%s14205_s1 + $0xa98] sm:$0xff]  }
 0xbb9   :  { %7247 = vmatmul.f32.vlgmr.msra.gmra.mxu3 %v6990_v16  ;;  %7369 = vmatpush.msrb.mxu0 %v8876_v30  ;;  %v8865_v26 = vunpack.c.h.bf16 %v9252_v8  ;;  %v9251_v16 = vld [vmem:[%s14205_s1 + $0xa90] sm:$0xff]  }
 0xbba   :  { %7311 = vmatpush.msrb.mxu3 %v8849_v29  ;;  %7292 = vmatpush.msrb.mxu2 %v8816_v38  ;;  %v8864_v38 = vunpack.c.l.bf16 %v9252_v8 }
 0xbbb   :  { %7370 = vmatpush.msrb.mxu0 %v8873_v55 }
 0xbbc   :  { %7312 = vmatpush.msrb.mxu3 %v8848_v27  ;;  %7293 = vmatpush.msrb.mxu2 %v8813_v52 }
 0xbbd   :  { %7371 = vmatpush.msrb.mxu0 %v8872_v4 }
 0xbbe   :  { %7313 = vmatpush.msrb.mxu3 %v8845_v62  ;;  %7294 = vmatpush.msrb.mxu2 %v8812_v5  ;;  %v8861_v62 = vunpack.c.h.bf16 %v9251_v16  ;;  %v8860_v5 = vunpack.c.l.bf16 %v9251_v16 }
 0xbbf   :  { %7372 = vmatpush.msrb.mxu0 %v8869_v23 }
 0xbc0   :  { %7314 = vmatpush.msrb.mxu3 %v8844_v34  ;;  %7295 = vmatpush.msrb.mxu2 %v8809_v0 }
 0xbc1   :  { %7373 = vmatpush.msrb.mxu0 %v8868_v21 }
 0xbc2   :  { %7315 = vmatpush.msrb.mxu3 %v8841_v59  ;;  %7296 = vmatpush.msrb.mxu2 %v8808_v19 }
 0xbc3   :  { %7374 = vmatpush.msrb.mxu0 %v8865_v26  ;;  %v9272_v26 = vld [vmem:[%s14206_s2 + $0x7] ss:$0 sm:$0xff] }
 0xbc4   :  { %7316 = vmatpush.msrb.mxu3 %v8840_v11  ;;  %7297 = vmatpush.msrb.mxu2 %v8805_v17  ;;  %v9250_v11 = vld [vmem:[%s14205_s1 + $0xa88] sm:$0xff]   ;;  %v9249_v17 = vld [vmem:[%s14205_s1 + $0xa80] sm:$0xff]  }
 0xbc5   :  { %7375 = vmatpush.msrb.mxu0 %v8864_v38  ;;  %v8856_v31 = vunpack.c.l.bf16 %v9250_v11 }
 0xbc6   :  { %7317 = vmatpush.msrb.mxu3 %v8837_v54  ;;  %7298 = vmatpush.msrb.mxu2 %v8804_v47  ;;  %v8857_v54 = vunpack.c.h.bf16 %v9250_v11  ;;  %v9263_v47 = vld [vmem:[%s14205_s1 + $0xaf0] sm:$0xff]  }
 0xbc7   :  { %7376 = vmatpush.msrb.mxu0 %v8861_v62  ;;  %v8908_v6 = vunpack.c.l.bf16 %v9263_v47 }
 0xbc8   :  { %7318 = vmatpush.msrb.mxu3 %v8836_v45  ;;  %7299 = vmatpush.msrb.mxu2 %v8801_v32  ;;  %v8853_v32 = vunpack.c.h.bf16 %v9249_v17 }
 0xbc9   :  { %7377 = vmatpush.msrb.mxu0 %v8860_v5 }
 0xbca   :  { %7319 = vmatpush.msrb.mxu3 %v8833_v12  ;;  %7300 = vmatpush.msrb.mxu2 %v8800_v13  ;;  %v8913_v12 = vunpack.c.h.bf16 %v9264_v14  ;;  %v8852_v13 = vunpack.c.l.bf16 %v9249_v17 }
 0xbcb   :  { %v7028_v40 = vpop.f32.mrf.mxu2  ;;  %v7048_v7 = vpop.f32.mrf.mxu3  ;;  %7378 = vmatpush.msrb.mxu0 %v8857_v54 }
 0xbcc   :  { %7320 = vmatpush.msrb.mxu3 %v8832_v58  ;;  %7301 = vmatpush.msrb.mxu2 %v8797_v49  ;;  %v7029_v42 = vadd.f32 %v9271_v28, %v7028_v40  ;;  %v8909_v58 = vunpack.c.h.bf16 %v9263_v47  ;;  %v9262_v49 = vld [vmem:[%s14205_s1 + $0xae8] sm:$0xff]  }
 0xbcd   :  { %7379 = vmatpush.msrb.mxu0 %v8856_v31  ;;  %7421 = vmatpush.msrb.mxu1 %v8913_v12  ;;  %v8904_v57 = vunpack.c.l.bf16 %v9262_v49  ;;  %v9258_v40 = vld [vmem:[%s14205_s1 + $0xac8] sm:$0xff]  }
 0xbce   :  { %7321 = vmatpush.msrb.mxu3 %v8829_v3  ;;  %7302 = vmatpush.msrb.mxu2 %v8796_v43  ;;  %v7049_v27 = vadd.f32 %v7048_v7, %v7029_v42  ;;  %v8905_v43 = vunpack.c.h.bf16 %v9262_v49  ;;  %v8889_v30 = vunpack.c.h.bf16 %v9258_v40  ;;  %v8888_v8 = vunpack.c.l.bf16 %v9258_v40 }
 0xbcf   :  { %7380 = vmatpush.msrb.mxu0 %v8853_v32  ;;  %7422 = vmatpush.msrb.mxu1 %v8912_v22 }
 0xbd0   :  { %7322 = vmatpush.msrb.mxu3 %v8828_v51  ;;  %7303 = vmatpush.msrb.mxu2 %v8793_v50  ;;  %v9261_v51 = vld [vmem:[%s14205_s1 + $0xae0] sm:$0xff]  }
 0xbd1   :  { %7381 = vmatpush.msrb.mxu0 %v8852_v13  ;;  %7423 = vmatpush.msrb.mxu1 %v8909_v58 }
 0xbd2   :  { %7323 = vmatpush.msrb.mxu3 %v8825_v44  ;;  %7304 = vmatpush.msrb.mxu2 %v8792_v53  ;;  %v8901_v53 = vunpack.c.h.bf16 %v9261_v51 }
 0xbd3   :  { %v7068_v29 = vpop.f32.mrf.mxu2  ;;  %v7088_v52 = vpop.f32.mrf.mxu3  ;;  %7424 = vmatpush.msrb.mxu1 %v8908_v6 }
 0xbd4   :  { %7324 = vmatpush.msrb.mxu3 %v8824_v33  ;;  %7305 = vmatpush.msrb.mxu2 %v8789_v24  ;;  %v7069_v1 = vadd.f32 %v7068_v29, %v7049_v27  ;;  %v9260_v24 = vld [vmem:[%s14205_s1 + $0xad8] sm:$0xff]   ;;  %v9257_v29 = vld [vmem:[%s14205_s1 + $0xac0] sm:$0xff]  }
 0xbd5   :  { %7425 = vmatpush.msrb.mxu1 %v8905_v43  ;;  %v8896_v2 = vunpack.c.l.bf16 %v9260_v24  ;;  %v8885_v21 = vunpack.c.h.bf16 %v9257_v29  ;;  %v8884_v42 = vunpack.c.l.bf16 %v9257_v29 }
 0xbd6   :  { %7325 = vmatpush.msrb.mxu3 %v8821_v41  ;;  %7306 = vmatpush.msrb.mxu2 %v8788_v56  ;;  %v7089_v34 = vadd.f32 %v7088_v52, %v7069_v1  ;;  %v8900_v41 = vunpack.c.l.bf16 %v9261_v51  ;;  %v9273_v52 = vld [vmem:[%s14206_s2 + $0x8] ss:$0 sm:$0xff] }
 0xbd7   :  { %7307 = vmatmul.f32.vlgmr.msrb.gmra.mxu2 %v6993_v10  ;;  %7426 = vmatpush.msrb.mxu1 %v8904_v57 }
 0xbd8   :  { %7326 = vmatpush.msrb.mxu3 %v8820_v46  ;;  %v8897_v46 = vunpack.c.h.bf16 %v9260_v24 }
 0xbd9   :  { %7327 = vmatmul.f32.vlgmr.msrb.gmra.mxu3 %v6994_v35  ;;  %7427 = vmatpush.msrb.mxu1 %v8901_v53  ;;  %v9259_v35 = vld [vmem:[%s14205_s1 + $0xad0] sm:$0xff]   ;;  %s9373_s1 = smov 64  }
 0xbda   :  { %v8893_v39 = vunpack.c.h.bf16 %v9259_v35  ;;  %v8892_v48 = vunpack.c.l.bf16 %v9259_v35 }
 0xbdb   :  { %7428 = vmatpush.msrb.mxu1 %v8900_v41 }
 0xbdd   :  { %7429 = vmatpush.msrb.mxu1 %v8897_v46 }
 0xbdf   :  { %7430 = vmatpush.msrb.mxu1 %v8896_v2 }
 0xbe1   :  { %7431 = vmatpush.msrb.mxu1 %v8893_v39 }
 0xbe3   :  { %7432 = vmatpush.msrb.mxu1 %v8892_v48 }
 0xbe5   :  { %7433 = vmatpush.msrb.mxu1 %v8889_v30 }
 0xbe6   :  { %v7188_v3 = vpop.f32.mrf.mxu0  ;;  %v7208_v50 = vpop.f32.mrf.mxu1 }
 0xbe7   :  { %7434 = vmatpush.msrb.mxu1 %v8888_v8 }
 0xbe9   :  { %7435 = vmatpush.msrb.mxu1 %v8885_v21 }
 0xbeb   :  { %7436 = vmatpush.msrb.mxu1 %v8884_v42 }
 0xc07   :  { %v7108_v36 = vpop.f32.mrf.mxu2  ;;  %v7128_v59 = vpop.f32.mrf.mxu3 }
 0xc08   :  { %v7109_v0 = vadd.f32 %v7108_v36, %v7089_v34 }
 0xc0a   :  { %v7129_v18 = vadd.f32 %v7128_v59, %v7109_v0  ;;  %v7268_v20 = vpop.f32.mrf.mxu0  ;;  %v7288_v15 = vpop.f32.mrf.mxu1  ;;  %v7441_v0 = vld [vmem:[%s14207_s3] sm:$0x3] }
 0xc1a   :  { %v7148_v37 = vpop.f32.mrf.mxu2 }
 0xc1b   :  { %v7149_v19 = vadd.f32 %v7148_v37, %v7129_v18 }
 0xc1c   :  { %v7168_v45 = vpop.f32.mrf.mxu3 }
 0xc1d   :  { %v7169_v60 = vadd.f32 %v7168_v45, %v7149_v19 }
 0xc1f   :  { %v7189_v9 = vadd.f32 %v7188_v3, %v7169_v60 }
 0xc21   :  { %v7209_v63 = vadd.f32 %v7208_v50, %v7189_v9 }
 0xc3a   :  { %v7228_v44 = vpop.f32.mrf.mxu2 }
 0xc3b   :  { %v7229_v33 = vadd.f32 %v7228_v44, %v7209_v63 }
 0xc3c   :  { %v7248_v56 = vpop.f32.mrf.mxu3 }
 0xc3d   :  { %v7249_v10 = vadd.f32 %v7248_v56, %v7229_v33 }
 0xc3f   :  { %v7269_v25 = vadd.f32 %v7268_v20, %v7249_v10 }
 0xc41   :  { %v7289_v55 = vadd.f32 %v7288_v15, %v7269_v25 }
 0xc5a   :  { %v7308_v61 = vpop.f32.mrf.mxu2 }
 0xc5b   :  { %v7309_v7 = vadd.f32 %v7308_v61, %v7289_v55 }
 0xc5c   :  { %v7328_v4 = vpop.f32.mrf.mxu3 }
 0xc5d   :  { %v7329_v28 = vadd.f32 %v7328_v4, %v7309_v7 }
 0xc5f   :  { %v7331_v23 = vmax.f32 %v7329_v28, 0.0 }
 0xc61   :  { %7382 = vmatmul.f32.vlgmr.msrb.gmra.mxu0 %v7331_v23 }
 0xcde   :  { %v7383_v16 = vpop.f32.mrf.mxu0 }
 0xcdf   :  { %v7384_v38 = vadd.f32 %v9272_v26, %v7383_v16 }
 0xce1   :  { %v7386_v27 = vmax.f32 %v7384_v38, 0.0 }
 0xce3   :  { %7437 = vmatmul.f32.vlgmr.msrb.gmra.mxu1 %v7386_v27 }
 0xd60   :  { %v7438_v62 = vpop.f32.mrf.mxu1 }
 0xd61   :  { %v7439_v1 = vadd.f32 %v9273_v52, %v7438_v62 }
 0xd63   :  { %v7442_v36 = vmul.f32 0.5, %v7439_v1  ;;  %7453 = vst.msk [vmem:[#allocation9] sm:$0x3] %vm7451_vm10, %v7439_v1 }
 0xd64   :  { %7480 = dma.vmem_to_hbm [thread:$0]  %s7476_s21, 32, %s7478_s24, [#allocation10]  }
 0xd65   :  { %v7443_v5 = vmul.f32 1.442695, %v7442_v36 }
 0xd67   :  { %9278 = vpow2.f32 %v7443_v5 }
 0xd6d   :  { %v9279_v34 = vpop.eup %9278 }
 0xd6e   :  { %7446 = vrot.lane.b32.xlu0 %v9279_v34, %s9373_s1 }
 0xd76   :  { %7455 = vrot.lane.b32.xlu0 %v7439_v1, %s9373_s1 }
 0xde0   :  { %v7447_v59 = vpop.permute.xlu0 %7446 }
 0xde1   :  { %v7449_v37 = vmul.f32 %v7447_v59, %v7441_v0 }
 0xde3   :  { %v7450_v18 = vadd.f32 %v7449_v37, %v7439_v1 }
 0xde5   :  { %7452 = vst.msk [vmem:[#allocation7] sm:$0x3] %vm7451_vm10, %v7450_v18 }
 0xde6   :  { %7469 = dma.vmem_to_hbm [thread:$0]  %s7465_s27, 32, %s7467_s30, [#allocation8]  }
 0xde8   :  { %v7456_v19 = vpop.permute.xlu0 %7455 }
 0xde9   :  { %7458 = vst.msk [vmem:[#allocation11] sm:$0x3] %vm7451_vm10, %v7456_v19 }
 0xdea   :  { %7491 = dma.vmem_to_hbm [thread:$0]  %s7487_s7, 32, %s7489_s10, [#allocation10]  }
 0xdeb   :  { %9369 = dma.done.wait [#allocation8], 32  }
 0xdec   :  { %9370 = vsyncadd [#allocation8], 4294967264 }
 0xded   :  { %9371 = dma.done.wait [#allocation10], 64  }
 0xdee   :  { %9372 = vsyncadd [#allocation10], 4294967232 }
 0xdef   :  { %7504 = vsyncpa [#allocation8], 1 }
 0xdf0   :  { %7505 = vsyncpa [#allocation10], 1 }

</bundles_post_ra>
